<compile_context>
chip_gen: v6e
topology: v6e:2x2x1
jax: 0.10.0
libtpu: 0.0.40
codegen_flags: <defaults>
</compile_context>

<pallas_src>
import jax
import jax.numpy as jnp
from jax.experimental import pallas as pl
from jax.experimental.pallas import tpu as pltpu

INPUT_DIM = 512
HIDDEN_DIM = 2048   # MatchingModelSimple.HIDDEN_DIM_NETWORK
OUT_DIM = 1         # MatchingModelSimple.OUTPUT_DIM_LATENT
TK = 1024           # hidden-dim (K) tile streamed per grid step
NSPLIT = 2          # parallel split of the hidden dim across TensorCores (v7x/megacore)


def _mlp_partial_kernel(x_ref, w1_ref, b1_ref, w2_ref, out_ref):
    """Grid (c, k): c = parallel K-half (one per TensorCore), k = K tiles inside the half.

    Computes relu(x @ W1[:, kslice] + b1[kslice]) @ W2[kslice, :] and accumulates it
    into the per-half partial fc2 pre-activation (out_ref, f32, resident across k).
    """
    k = pl.program_id(1)

    @pl.when(k == 0)
    def _():
        out_ref[...] = jnp.zeros_like(out_ref)

    h1 = jnp.dot(x_ref[...], w1_ref[...], preferred_element_type=jnp.float32)
    h1 = jnp.maximum(h1 + b1_ref[...], 0.0)
    out_ref[...] += jnp.dot(h1, w2_ref[...], preferred_element_type=jnp.float32)


def _epilogue_kernel(p_ref, b2_ref, w3_ref, b3_ref, out_ref):
    """Sum the per-core partials, add b2, ReLU, fc3 (lane-dense row reduce), sigmoid."""
    h2 = p_ref[0]
    for c in range(1, NSPLIT):                     # static unroll, NSPLIT is tiny
        h2 = h2 + p_ref[c]
    h2 = jnp.maximum(h2 + b2_ref[...], 0.0)        # relu(fc2)
    # fc3: (B, H) * (1, H) -> sum over lanes -> (B, 1).  Avoids a padded (2048, 1)
    # weight block and an N=1 MXU matmul.
    logits = jnp.sum(h2 * w3_ref[...], axis=-1, keepdims=True) + b3_ref[...]
    out_ref[...] = jax.nn.sigmoid(logits).astype(out_ref.dtype)


def matching_model_forward(x, w1, b1, w2, b2, w3_row, b3):
    B = x.shape[0]
    assert HIDDEN_DIM % TK == 0
    n_k = HIDDEN_DIM // TK
    assert n_k % NSPLIT == 0
    n_k_half = n_k // NSPLIT
    # TODO(synk): add a 'parallel' batch grid axis (B tile 128-256) if B grows large.

    # Stage 1: partial fc2 pre-activations, one (B, HIDDEN) slab per K-half.
    partials = pl.pallas_call(
        _mlp_partial_kernel,
        out_shape=jax.ShapeDtypeStruct((NSPLIT, B, HIDDEN_DIM), jnp.float32),
        grid_spec=pltpu.PrefetchScalarGridSpec(
            num_scalar_prefetch=0,
            grid=(NSPLIT, n_k_half),
            in_specs=[
                pl.BlockSpec((B, INPUT_DIM), lambda c, k: (0, 0)),                    # x
                pl.BlockSpec((INPUT_DIM, TK), lambda c, k: (0, c * n_k_half + k)),    # W1 slice
                pl.BlockSpec((1, TK), lambda c, k: (0, c * n_k_half + k)),            # b1 slice
                pl.BlockSpec((TK, HIDDEN_DIM), lambda c, k: (c * n_k_half + k, 0)),   # W2 slice
            ],
            # Output block is the accumulator: constant across k (arbitrary axis),
            # disjoint across c (parallel axis -> safe for dual-TC sharding).
            out_specs=pl.BlockSpec((None, B, HIDDEN_DIM), lambda c, k: (c, 0, 0)),
        ),
        compiler_params=pltpu.CompilerParams(
            dimension_semantics=("parallel", "arbitrary"),
            vmem_limit_bytes=40 * 1024 * 1024),
    )(x, w1, b1, w2)

    # Stage 2: tiny epilogue (136 KiB of inputs), whole arrays resident in VMEM.
    return pl.pallas_call(
        _epilogue_kernel,
        out_shape=jax.ShapeDtypeStruct((B, OUT_DIM), jnp.float32),
        in_specs=[pl.BlockSpec(memory_space=pltpu.MemorySpace.VMEM)] * 4,
        out_specs=pl.BlockSpec(memory_space=pltpu.MemorySpace.VMEM),
    )(partials, b2, w3_row, b3)


def init_params(key):
    """Deterministic init mimicking PyTorch Linear's U(-1/sqrt(fan_in), 1/sqrt(fan_in))."""
    ks = jax.random.split(key, 6)

    def lin(kw, kb, fan_in, fan_out, w_shape):
        bound = 1.0 / jnp.sqrt(fan_in)
        w = jax.random.uniform(kw, w_shape, jnp.float32, -bound, bound)
        b = jax.random.uniform(kb, (1, fan_out), jnp.float32, -bound, bound)
        return w, b

    w1, b1 = lin(ks[0], ks[1], INPUT_DIM, HIDDEN_DIM, (INPUT_DIM, HIDDEN_DIM))
    w2, b2 = lin(ks[2], ks[3], HIDDEN_DIM, HIDDEN_DIM, (HIDDEN_DIM, HIDDEN_DIM))
    w3, b3 = lin(ks[4], ks[5], HIDDEN_DIM, OUT_DIM, (1, HIDDEN_DIM))   # lane-dense W3
    return w1, b1, w2, b2, w3, b3


def reference_forward(x, w1, b1, w2, b2, w3_row, b3):
    h = jnp.maximum(x @ w1 + b1, 0.0)
    h = jnp.maximum(h @ w2 + b2, 0.0)
    return jax.nn.sigmoid(h @ w3_row.T + b3)


if __name__ == "__main__":
    key = jax.random.PRNGKey(0)
    k_x, k_p = jax.random.split(key)

    B = 8  # keep B a multiple of 8 (f32 sublane)
    x = jax.random.normal(k_x, (B, INPUT_DIM), jnp.float32)
    params = init_params(k_p)

    out = matching_model_forward(x, *params)
    out = jax.block_until_ready(out)

    ref = reference_forward(x, *params)
    assert out.shape == (B, OUT_DIM)
    assert jnp.allclose(out, ref, atol=1e-5, rtol=1e-5), (out, ref)

    print("KERNEL_OK")
</pallas_src>

<mosaic_0001>
module attributes {stable_mosaic.version = 11 : i64} {
  func.func @_mlp_partial_kernel(%arg0: i32, %arg1: i32, %arg2: memref<8x512xf32, #tpu.memory_space<vmem>>, %arg3: memref<512x1024xf32, #tpu.memory_space<vmem>>, %arg4: memref<1x1024xf32, #tpu.memory_space<vmem>>, %arg5: memref<1024x2048xf32, #tpu.memory_space<vmem>>, %arg6: memref<1x8x2048xf32, #tpu.memory_space<vmem>>) attributes {dimension_semantics = [#tpu.dimension_semantics<parallel>, #tpu.dimension_semantics<arbitrary>], iteration_bounds = array<i64: 2, 1>, scalar_prefetch = 0 : i64, scratch_operands = 0 : i64, tpu.core_type = #tpu.core_type<tc>, window_params = [{pipeline_mode = #tpu.pipeline_mode<synchronous>, transform_indices = @transform_0, window_bounds = array<i64: 8, 512>}, {transform_indices = @transform_1, window_bounds = array<i64: 512, 1024>}, {transform_indices = @transform_2, window_bounds = array<i64: 1, 1024>}, {transform_indices = @transform_3, window_bounds = array<i64: 1024, 2048>}, {transform_indices = @transform_4, window_bounds = array<i64: 1, 8, 2048>}]} {
    %c0_i32 = arith.constant 0 : i32
    %0 = arith.cmpi eq, %arg1, %c0_i32 : i32
    %1 = arith.extui %0 : i1 to i32
    %c0_i32_0 = arith.constant 0 : i32
    %2 = arith.cmpi ne, %1, %c0_i32_0 : i32
    scf.if %2 {
      %cst_16 = arith.constant 0.000000e+00 : f32
      %19 = vector.broadcast %cst_16 : f32 to vector<8x2048xf32>
      %c0_17 = arith.constant 0 : index
      %c0_18 = arith.constant 0 : index
      %c0_19 = arith.constant 0 : index
      %20 = vector.load %arg6[%c0_17, %c0_18, %c0_19] : memref<1x8x2048xf32, #tpu.memory_space<vmem>>, vector<1x8x2048xf32>
      %21 = vector.shape_cast %20 : vector<1x8x2048xf32> to vector<8x2048xf32>
      %22 = vector.shape_cast %19 : vector<8x2048xf32> to vector<1x8x2048xf32>
      tpu.vector_store %arg6[%c0_17, %c0_18, %c0_19], %22 {strides = array<i32>} : memref<1x8x2048xf32, #tpu.memory_space<vmem>>, vector<1x8x2048xf32>,
    } else {
    }
    %c0 = arith.constant 0 : index
    %c0_1 = arith.constant 0 : index
    %3 = vector.load %arg2[%c0, %c0_1] : memref<8x512xf32, #tpu.memory_space<vmem>>, vector<8x512xf32>
    %c0_2 = arith.constant 0 : index
    %c0_3 = arith.constant 0 : index
    %4 = vector.load %arg3[%c0_2, %c0_3] : memref<512x1024xf32, #tpu.memory_space<vmem>>, vector<512x1024xf32>
    %cst = arith.constant dense<0.000000e+00> : vector<8x1024xf32>
    %5 = tpu.matmul %3, %4, %cst {dimension_numbers = #tpu.dot_dimension_numbers<[1], [0], [0], [1], [0, 0, 1, 1], [], []>} : vector<8x512xf32>, vector<512x1024xf32>, vector<8x1024xf32> -> vector<8x1024xf32>
    %c0_4 = arith.constant 0 : index
    %c0_5 = arith.constant 0 : index
    %6 = vector.load %arg4[%c0_4, %c0_5] : memref<1x1024xf32, #tpu.memory_space<vmem>>, vector<1x1024xf32>
    %7 = vector.broadcast %6 : vector<1x1024xf32> to vector<8x1024xf32>
    %8 = arith.addf %5, %7 : vector<8x1024xf32>
    %cst_6 = arith.constant 0.000000e+00 : f32
    %9 = vector.broadcast %cst_6 : f32 to vector<8x1024xf32>
    %10 = arith.maximumf %8, %9 : vector<8x1024xf32>
    %c0_7 = arith.constant 0 : index
    %c0_8 = arith.constant 0 : index
    %c0_9 = arith.constant 0 : index
    %11 = vector.load %arg6[%c0_7, %c0_8, %c0_9] : memref<1x8x2048xf32, #tpu.memory_space<vmem>>, vector<1x8x2048xf32>
    %12 = vector.shape_cast %11 : vector<1x8x2048xf32> to vector<8x2048xf32>
    %c0_10 = arith.constant 0 : index
    %c0_11 = arith.constant 0 : index
    %13 = vector.load %arg5[%c0_10, %c0_11] : memref<1024x2048xf32, #tpu.memory_space<vmem>>, vector<1024x2048xf32>
    %cst_12 = arith.constant dense<0.000000e+00> : vector<8x2048xf32>
    %14 = tpu.matmul %10, %13, %cst_12 {dimension_numbers = #tpu.dot_dimension_numbers<[1], [0], [0], [1], [0, 0, 1, 1], [], []>} : vector<8x1024xf32>, vector<1024x2048xf32>, vector<8x2048xf32> -> vector<8x2048xf32>
    %15 = arith.addf %12, %14 : vector<8x2048xf32>
    %c0_13 = arith.constant 0 : index
    %c0_14 = arith.constant 0 : index
    %c0_15 = arith.constant 0 : index
    %16 = vector.load %arg6[%c0_13, %c0_14, %c0_15] : memref<1x8x2048xf32, #tpu.memory_space<vmem>>, vector<1x8x2048xf32>
    %17 = vector.shape_cast %16 : vector<1x8x2048xf32> to vector<8x2048xf32>
    %18 = vector.shape_cast %15 : vector<8x2048xf32> to vector<1x8x2048xf32>
    tpu.vector_store %arg6[%c0_13, %c0_14, %c0_15], %18 {strides = array<i32>} : memref<1x8x2048xf32, #tpu.memory_space<vmem>>, vector<1x8x2048xf32>,
    return
  }
  func.func @transform_0(%arg0: i32, %arg1: i32) -> (i32, i32) {
    %c0_i32 = arith.constant 0 : i32
    %c0_i32_0 = arith.constant 0 : i32
    %c0_i32_1 = arith.constant 0 : i32
    return %c0_i32, %c0_i32_0 : i32, i32
  }
  func.func @transform_1(%arg0: i32, %arg1: i32) -> (i32, i32) {
    %c1_i32 = arith.constant 1 : i32
    %0 = arith.muli %arg0, %c1_i32 : i32
    %1 = arith.addi %0, %arg1 : i32
    %c0_i32 = arith.constant 0 : i32
    %c0_i32_0 = arith.constant 0 : i32
    return %c0_i32, %1 : i32, i32
  }
  func.func @transform_2(%arg0: i32, %arg1: i32) -> (i32, i32) {
    %c1_i32 = arith.constant 1 : i32
    %0 = arith.muli %arg0, %c1_i32 : i32
    %1 = arith.addi %0, %arg1 : i32
    %c0_i32 = arith.constant 0 : i32
    %c0_i32_0 = arith.constant 0 : i32
    return %c0_i32, %1 : i32, i32
  }
  func.func @transform_3(%arg0: i32, %arg1: i32) -> (i32, i32) {
    %c1_i32 = arith.constant 1 : i32
    %0 = arith.muli %arg0, %c1_i32 : i32
    %1 = arith.addi %0, %arg1 : i32
    %c0_i32 = arith.constant 0 : i32
    %c0_i32_0 = arith.constant 0 : i32
    return %1, %c0_i32 : i32, i32
  }
  func.func @transform_4(%arg0: i32, %arg1: i32) -> (i32, i32, i32) {
    %c0_i32 = arith.constant 0 : i32
    %c0_i32_0 = arith.constant 0 : i32
    %c0_i32_1 = arith.constant 0 : i32
    return %arg0, %c0_i32, %c0_i32_0 : i32, i32, i32
  }
}

</mosaic_0001>

<bundles_post_ra>
// kernel: tpu_custom_call.1
= control target key start
LH: loop header
LB: loop body
LE: loop exit
PB: predicated region body
PF: predicated region fallthrough
CT: control target
= control target key end

     0   :  { %s9298_s0 = inlined_call_operand.hbm [shape: f32[8,512], index: 0, kind: input, shape index: {}]   ;;  %s9299_s1 = inlined_call_operand.hbm [shape: f32[512,2048], index: 1, kind: input, shape index: {}]   ;;  %s9300_s2 = inlined_call_operand.hbm [shape: f32[1,2048], index: 2, kind: input, shape index: {}]   ;;  %s9301_s3 = inlined_call_operand.hbm [shape: f32[2048,2048], index: 3, kind: input, shape index: {}]   ;;  %s9302_s4 = inlined_call_operand.hbm [shape: f32[2,8,2048], index: 4, kind: output, shape index: {}]  }
   0x1   :  { %9309 = sst [smem:[#allocation17_spill]] %s9299_s1 }
   0x2   :  { %9 = vsyncpa [#allocation3], 0 }
   0x3   :  { %10 = vsyncpa [#allocation6], 0 }
   0x4   :  { %12 = vsyncpa [#allocation6 + $0x1], 0 }
   0x5   :  { %13 = vsyncpa [#allocation9], 0 }
   0x6   :  { %15 = vsyncpa [#allocation9 + $0x1], 0 }
   0x7   :  { %16 = vsyncpa [#allocation4], 0 }
   0x8   :  { %18 = vsyncpa [#allocation4 + $0x1], 0  ;;  %s6363_s15 = smov 0   ;;  %s6365_s16 = smov 0  }
   0x9   :  { %s6367_s17 = smov 0   ;;  %s6369_s18 = smov 0  }
   0xa   :  { %s6371_s19 = smov 0   ;;  %s6373_s20 = smov 0  }
   0xb LB: > { %s36_s21 = sadd.s32 1, %s6323_s19  ;;  %s66_s22 = sadd.s32 1, %s6315_s17  ;;  %s6327_s20 = sphi %s6373_s20, %s24_s20   ;;  %s6323_s19 = sphi %s6371_s19, %s9333_s19   ;;  %s6319_s18 = sphi %s6369_s18, %s9332_s18   ;;  %s6315_s17 = sphi %s6367_s17, %s9331_s17   ;;  %s6311_s16 = sphi %s6365_s16, %s9330_s16   ;;  %s6307_s15 = sphi %s6363_s15, %s9329_s15  }
   0xc   : > { %p38_p0 = scmp.ge.s32.totalorder %s36_s21, 2  ;;  %p73_p1 = scmp.ne.s32.totalorder %s6315_s17, %s6311_s16 }
   0xd   : > { %p74_p2 = scmp.eq.s32.totalorder %s6327_s20, 0  ;;  %p6067_p5 = scmp.lt.s32.totalorder %s6327_s20, 2 }
   0xe   : > { %s9335_s21 = smov (%p38_p0, %s36_s21), 0  ;;  %s196_s24 = sand.u32 1, %s6327_s20  }
   0xf   : > { %9310 = sst [smem:[#allocation15_spill]] %s9335_s21  ;;  %p75_p4 = por %p74_p2, %p73_p1 }
  0x10   : > { %s63_s23 = ssub.s32 %s6323_s19, %s9335_s21  ;;  %s6409_s25 = sand.u32 1, %s6315_s17  }
  0x11   : > { %p64_p6 = scmp.eq.s32.totalorder %s63_s23, 0  ;;  %s6031_s26 = sshll.u32 %s6323_s19, 10 }
  0x12   : > { %s6010_s28 = sshll.u32 %s6409_s25, 12  ;;  %s9312_s1 = sld [smem:[#allocation17_spill]] }
  0x13   : > { %s6413_s27 = scalar_select %p64_p6, %s6315_s17, %s66_s22  }
  0x14   : > { %p6419_p7 = pnand %p6067_p5, %p75_p4  ;;  %s200_s7 = scalar_lea.vmem [#allocation5], %s6010_s28 }
  0x15   : > { %9311 = sst [smem:[#allocation16_spill]] %s6413_s27  ;;  %s208_s8 = sshll.u32 %s200_s7, 4  ;;  %s209_s8 = int_to_ptr.vmem [resolvable:$true] %s208_s8 }
  0x16   : > { %s6423_s9 = scalar_lea.sflag [#allocation6], %s196_s24  ;;  %p9307_p8 = pneg %p6419_p7 }
  0x17   : > { %s6142_s10 = scalar_lea.vmem %s209_s8, 65536  ;;  %s6329_s11 = smov [#allocation5]  }
  0x18   : > { %s207_s5 = scalar_lea.hbm %s9312_s1, %s6031_s26  ;;  %p6143_p9 = scmp.ne.s32.totalorder %s209_s8, %s6142_s10 }
  0x19   : > { %s6147_s12 = sshll.u32 %s6329_s11, 4  ;;  %s6148_s12 = int_to_ptr.vmem [resolvable:$false] %s6147_s12 }
  0x1a   : > { %p6145_p10 = pnand %p6143_p9, %p9307_p8  ;;  %s6149_s13 = scalar_lea.vmem %s6148_s12, 131072 }
  0x1b   : > { %p6150_p12 = scmp.lt.s32.totalorder %s209_s8, %s6148_s12  ;;  %p6151_p13 = scmp.lt.s32.totalorder %s6149_s13, %s6142_s10 }
  0x1c   : > { %p6146_p11 = pneg %p6145_p10 }
  0x1d   : > { %p6152_p0 = por %p6151_p13, %p6150_p12 }
  0x1f   : > { %p6153_p2 = pnand %p6152_p0, %p6146_p11 }
  0x21   : > { %6156 = shalt.err (!%p6153_p2)
}
  0x22   : > { %s9303_s14 = smov 2048   ;;  %s6331_s22 = smov 1024  }
  0x23   : > { %s6332_s23 = smov 64   ;;  %s6435_s24 = sadd.s32 4294967295, %s6327_s20  }
  0x24   : > { %6055 = dma.hbm_to_vmem [thread:$0]  (!%p6419_p7), %s207_s5, 65536, %s209_s8, %s6423_s9, %s9303_s14, %s6331_s22, %s6332_s23  }
  0x25   : > { %s6006_s26 = sadd.s32 4294967294, %s6327_s20   ;;  %p79_p4 = scmp.ne.s32.totalorder %s6311_s16, %s6307_s15 }
  0x26   : > { %p9306_p5 = scmp.eq.s32.totalorder %s6435_s24, 0  ;;  %p159_p6 = scmp.eq.s32.totalorder %s6435_s24, 1 }
  0x27   : > { %p165_p9 = scmp.eq.s32.totalorder %s6006_s26, 1  ;;  %p6007_p11 = scmp.ge.s32.totalorder %s6327_s20, 1 }
  0x28   : > { %p6444_p10 = por %p9306_p5, %p79_p4  ;;  %p6452_p12 = por %p159_p6, %p73_p1 }
  0x29   : > { %p6456_p13 = por %p165_p9, %p79_p4  ;;  %p172_p0 = scmp.lt.s32.totalorder %s6327_s20, 3 }
  0x2a   : > { %s9314_s28 = scalar_select %p6444_p10, 1, 0 }
  0x2b   : > { %s9315_s29 = scalar_select %p6452_p12, 1, 0 }
  0x2c   : > { %s9316_s30 = scalar_select %p6456_p13, 1, 0 }
  0x2d   : > { %s6013_s5 = sshll.u32 %s6409_s25, 3  ;;  %p6462_p2 = pnand %p6007_p11, %p172_p0 }
  0x2e   : > { %s6333_s8 = smov [#allocation2]   ;;  %s6032_s11 = sshll.u32 %s6323_s19, 7 }
  0x2f   : > { %s185_s10 = sshll.u32 %s6333_s8, 4  ;;  %p6048_p1 = pneg %p6462_p2  ;;  %s6466_s10 = int_to_ptr.vmem [resolvable:$true] %s185_s10 }
  0x30   : > { %s229_s22 = scalar_lea.hbm %s9300_s2, %s6032_s11  ;;  %s222_s23 = scalar_lea.vmem [#allocation7], %s6013_s5 }
  0x31   : > { %s231_s26 = sshll.u32 %s222_s23, 4  ;;  %p6476_p4 = pnand %p6048_p1, %p9306_p5  ;;  %s232_s26 = int_to_ptr.vmem [resolvable:$true] %s231_s26 }
  0x32   : > { %s6170_s1 = scalar_lea.vmem %s232_s26, 128  ;;  %s6334_s8 = smov [#allocation7]  }
  0x33   : > { %p6171_p6 = scmp.ne.s32.totalorder %s232_s26, %s6170_s1  ;;  %s6175_s21 = sshll.u32 %s6334_s8, 4  ;;  %s6176_s21 = int_to_ptr.vmem [resolvable:$false] %s6175_s21 }
  0x34   : > { %s6177_s27 = scalar_lea.vmem %s6176_s21, 256  ;;  %p6178_p0 = scmp.lt.s32.totalorder %s232_s26, %s6176_s21 }
  0x35   : > { %p6173_p9 = pnand %p6171_p6, %p9307_p8  ;;  %p6179_p3 = scmp.lt.s32.totalorder %s6177_s27, %s6170_s1 }
  0x37   : > { %p6174_p11 = pneg %p6173_p9  ;;  %p6180_p13 = por %p6179_p3, %p6178_p0 }
  0x39   : > { %p6181_p12 = pnand %p6180_p13, %p6174_p11 }
  0x3b   : > { %6184 = shalt.err (!%p6181_p12)
}
  0x3c   : > { %6058 = dma.hbm_to_vmem [thread:$0]  (!%p6419_p7), %s229_s22, 128, %s232_s26, %s6423_s9  }
  0x3d   : > { %p6187_p1 = pneg %p6476_p4  ;;  %s6196_s5 = scalar_lea.vmem %s6466_s10, 512 }
  0x3e   : > { %p6197_p6 = scmp.ne.s32.totalorder %s6466_s10, %s6196_s5  ;;  %p6204_p8 = scmp.lt.s32.totalorder %s6466_s10, %s6466_s10 }
  0x3f   : > { %p6205_p10 = scmp.lt.s32.totalorder %s6196_s5, %s6196_s5 }
  0x40   : > { %p6199_p9 = pnand %p6197_p6, %p6187_p1 }
  0x41   : > { %p6206_p3 = por %p6205_p10, %p6204_p8 }
  0x42   : > { %p6200_p5 = pneg %p6199_p9 }
  0x44   : > { %p6207_p13 = pnand %p6206_p3, %p6200_p5 }
  0x46   : > { %6210 = shalt.err (!%p6207_p13)
}
  0x47   : > { %6051 = dma.hbm_to_vmem [thread:$0]  (!%p6476_p4), %s9298_s0, 512, %s6466_s10, [#allocation3]  }
  0x48   : > { %s6016_s27 = sshll.u32 %s6409_s25, 14  ;;  %s6034_s9 = sshll.u32 %s6323_s19, 18 }
  0x49   : > { %s250_s13 = scalar_lea.hbm %s9301_s3, %s6034_s9  ;;  %s242_s22 = scalar_lea.vmem [#allocation8], %s6016_s27 }
  0x4a   : > { %s251_s23 = sshll.u32 %s242_s22, 4  ;;  %s239_s26 = scalar_lea.sflag [#allocation9], %s6409_s25  ;;  %s252_s23 = int_to_ptr.vmem [resolvable:$true] %s251_s23 }
  0x4b   : > { %s6224_s14 = scalar_lea.vmem %s252_s23, 262144  ;;  %p9319_p5 = pneg %p6419_p7 }
  0x4c   : > { %p6225_p8 = scmp.ne.s32.totalorder %s252_s23, %s6224_s14  ;;  %s6335_s8 = smov [#allocation8]  }
  0x4d   : > { %s6229_s5 = sshll.u32 %s6335_s8, 4  ;;  %s6230_s5 = int_to_ptr.vmem [resolvable:$false] %s6229_s5 }
  0x4e   : > { %p6227_p10 = pnand %p6225_p8, %p9319_p5  ;;  %s6231_s10 = scalar_lea.vmem %s6230_s5, 524288 }
  0x4f   : > { %p6232_p4 = scmp.lt.s32.totalorder %s252_s23, %s6230_s5  ;;  %p6233_p11 = scmp.lt.s32.totalorder %s6231_s10, %s6224_s14 }
  0x50   : > { %p6228_p12 = pneg %p6227_p10 }
  0x51   : > { %p6234_p0 = por %p6233_p11, %p6232_p4 }
  0x53   : > { %p6235_p1 = pnand %p6234_p0, %p6228_p12 }
  0x55   : > { %6238 = shalt.err (!%p6235_p1)
}
  0x56   : > { %s6336_s1 = smov 128   ;;  %s9320_s21 = smov 2048  }
  0x57   : > { %6061 = dma.hbm_to_vmem [thread:$0]  (!%p6419_p7), %s250_s13, 262144, %s252_s23, %s239_s26, %s9320_s21, %s9320_s21, %s6336_s1  }
  0x58   : > { %263 = sbr.rel (%p6462_p2) target bundleno = 1700 (0x6a4), region = 36  ;;  %p9321_p6 = scmp.eq.s32.totalorder (!%p6462_p2), %s6435_s24, 0 }
  0x5d   : > { %6290 = dma.done.wait (%p9321_p6), [#allocation3], 512   ;;  %p9322_p9 = pmov %p9321_p6 }
  0x5e   : > { %s269_s25 = sand.u32 1, %s6435_s24   ;;  %s6519_s27 = sand.u32 1, %s6311_s16  }
  0x5f   : > { %6292 = vsyncadd (%p9322_p9), [#allocation3], 4294966784  ;;  %s6022_s6 = sshll.u32 %s6519_s27, 12  ;;  %s270_s9 = scalar_lea.sflag [#allocation6], %s269_s25 }
  0x60   : > { %s6522_s11 = scalar_lea.vmem [#allocation5], %s6022_s6  ;;  %p9323_p7 = scmp.ne.s32.totalorder %s9314_s28, 0 }
  0x62   : > { %6294 = dma.done.wait (%p9323_p7), %s270_s9, 65664  }
  0x63   : > { %6296 = vsyncadd (%p9323_p7), %s270_s9, 4294901632  ;;  %s6023_s7 = sshll.u32 %s6519_s27, 3  ;;  %s6024_s12 = sshll.u32 %s6519_s27, 14 }
  0x64   : > { %s6530_s13 = scalar_lea.vmem [#allocation7], %s6023_s7  ;;  %s288_s24 = scalar_lea.sflag [#allocation9], %s6519_s27 }
  0x65   : > { %s6533_s22 = scalar_lea.vmem [#allocation8], %s6024_s12 }
  0x66   : > { %6298 = dma.done.wait (%p9323_p7), %s288_s24, 262144  }
  0x67   : > { %6300 = vsyncadd (%p9323_p7), %s288_s24, 4294705152  ;;  %v477_v0 = vld [vmem:[%s6522_s11 + $0x3c8] sm:$0xff]  ;;  %v476_v2 = vld [vmem:[%s6522_s11 + $0x3c0] sm:$0xff]  ;;  %s6025_s28 = sshll.u32 %s6519_s27, 7  ;;  %s6035_s26 = sshll.u32 %s6319_s18, 11 }
  0x68   : > { %v733_v1 = vld [vmem:[%s6522_s11 + $0xbc8] sm:$0xff]  ;;  %910 = vmatprep.subr.mxu0 %v477_v0  ;;  %v732_v3 = vld [vmem:[%s6522_s11 + $0xbc0] sm:$0xff]  ;;  %s7859_s23 = scalar_lea.vmem [#allocation10], %s6025_s28  ;;  %s5867_s10 = scalar_lea.hbm %s9302_s4, %s6035_s26 }
  0x69   : > { %981 = vmatprep.subr.mxu1 %v733_v1  ;;  %v469_v4 = vld [vmem:[%s6522_s11 + $0x388] sm:$0xff]  ;;  %911 = vmatpush1.msra.mxu0 %v476_v2  ;;  %v468_v6 = vld [vmem:[%s6522_s11 + $0x380] sm:$0xff]  ;;  %s5869_s14 = sshll.u32 %s7859_s23, 4  ;;  %s5855_s1 = scalar_lea.sflag [#allocation4], %s6519_s27  ;;  %s5870_s14 = int_to_ptr.vmem [resolvable:$true] %s5869_s14 }
  0x6a   : > { %v725_v5 = vld [vmem:[%s6522_s11 + $0xb88] sm:$0xff]  ;;  %982 = vmatpush1.msra.mxu1 %v732_v3  ;;  %v724_v7 = vld [vmem:[%s6522_s11 + $0xb80] sm:$0xff]  ;;  %912 = vmatprep.subr.mxu0 %v469_v4  ;;  %s6239_s21 = scalar_lea.vmem %s5870_s14, 2048  ;;  %p9324_p3 = scmp.ne.s32.totalorder %s9315_s29, 0 }
  0x6b   : > { %v461_v8 = vld [vmem:[%s6522_s11 + $0x348] sm:$0xff]  ;;  %983 = vmatprep.subr.mxu1 %v725_v5  ;;  %v460_v10 = vld [vmem:[%s6522_s11 + $0x340] sm:$0xff]  ;;  %913 = vmatpush1.msra.mxu0 %v468_v6  ;;  %p6240_p2 = scmp.ne.s32.totalorder %s5870_s14, %s6239_s21  ;;  %s6337_s25 = smov [#allocation10]  }
  0x6c   : > { %v717_v9 = vld [vmem:[%s6522_s11 + $0xb48] sm:$0xff]  ;;  %v716_v11 = vld [vmem:[%s6522_s11 + $0xb40] sm:$0xff]  ;;  %984 = vmatpush1.msra.mxu1 %v724_v7  ;;  %914 = vmatprep.subr.mxu0 %v461_v8  ;;  %s6243_s6 = sshll.u32 %s6337_s25, 4  ;;  %s6244_s6 = int_to_ptr.vmem [resolvable:$false] %s6243_s6 }
  0x6d   : > { %v453_v12 = vld [vmem:[%s6522_s11 + $0x308] sm:$0xff]  ;;  %985 = vmatprep.subr.mxu1 %v717_v9  ;;  %v452_v14 = vld [vmem:[%s6522_s11 + $0x300] sm:$0xff]  ;;  %915 = vmatpush1.msra.mxu0 %v460_v10  ;;  %p6241_p13 = pnand %p6240_p2, %p9324_p3  ;;  %s6245_s9 = scalar_lea.vmem %s6244_s6, 4096 }
  0x6e   : > { %v709_v13 = vld [vmem:[%s6522_s11 + $0xb08] sm:$0xff]  ;;  %v708_v15 = vld [vmem:[%s6522_s11 + $0xb00] sm:$0xff]  ;;  %986 = vmatpush1.msra.mxu1 %v716_v11  ;;  %916 = vmatprep.subr.mxu0 %v453_v12  ;;  %p6246_p5 = scmp.lt.s32.totalorder %s5870_s14, %s6244_s6  ;;  %p6247_p10 = scmp.lt.s32.totalorder %s6245_s9, %s6239_s21 }
  0x6f   : > { %v445_v16 = vld [vmem:[%s6522_s11 + $0x2c8] sm:$0xff]  ;;  %987 = vmatprep.subr.mxu1 %v709_v13  ;;  %v444_v18 = vld [vmem:[%s6522_s11 + $0x2c0] sm:$0xff]  ;;  %917 = vmatpush1.msra.mxu0 %v452_v14  ;;  %p6242_p8 = pneg %p6241_p13 }
  0x70   : > { %v701_v17 = vld [vmem:[%s6522_s11 + $0xac8] sm:$0xff]  ;;  %v700_v19 = vld [vmem:[%s6522_s11 + $0xac0] sm:$0xff]  ;;  %988 = vmatpush1.msra.mxu1 %v708_v15  ;;  %918 = vmatprep.subr.mxu0 %v445_v16  ;;  %p6248_p12 = por %p6247_p10, %p6246_p5 }
  0x71   : > { %v437_v20 = vld [vmem:[%s6522_s11 + $0x288] sm:$0xff]  ;;  %989 = vmatprep.subr.mxu1 %v701_v17  ;;  %v436_v22 = vld [vmem:[%s6522_s11 + $0x280] sm:$0xff]  ;;  %919 = vmatpush1.msra.mxu0 %v444_v18 }
  0x72   : > { %v693_v21 = vld [vmem:[%s6522_s11 + $0xa88] sm:$0xff]  ;;  %v692_v23 = vld [vmem:[%s6522_s11 + $0xa80] sm:$0xff]  ;;  %990 = vmatpush1.msra.mxu1 %v700_v19  ;;  %920 = vmatprep.subr.mxu0 %v437_v20  ;;  %p6249_p4 = pnand %p6248_p12, %p6242_p8 }
  0x73   : > { %v429_v24 = vld [vmem:[%s6522_s11 + $0x248] sm:$0xff]  ;;  %991 = vmatprep.subr.mxu1 %v693_v21  ;;  %v428_v26 = vld [vmem:[%s6522_s11 + $0x240] sm:$0xff]  ;;  %921 = vmatpush1.msra.mxu0 %v436_v22 }
  0x74   : > { %v685_v25 = vld [vmem:[%s6522_s11 + $0xa48] sm:$0xff]  ;;  %v684_v27 = vld [vmem:[%s6522_s11 + $0xa40] sm:$0xff]  ;;  %992 = vmatpush1.msra.mxu1 %v692_v23  ;;  %922 = vmatprep.subr.mxu0 %v429_v24 }
  0x75   : > { %v421_v28 = vld [vmem:[%s6522_s11 + $0x208] sm:$0xff]  ;;  %993 = vmatprep.subr.mxu1 %v685_v25  ;;  %v420_v30 = vld [vmem:[%s6522_s11 + $0x200] sm:$0xff]  ;;  %923 = vmatpush1.msra.mxu0 %v428_v26 }
  0x76   : > { %v677_v29 = vld [vmem:[%s6522_s11 + $0xa08] sm:$0xff]  ;;  %v676_v31 = vld [vmem:[%s6522_s11 + $0xa00] sm:$0xff]  ;;  %994 = vmatpush1.msra.mxu1 %v684_v27  ;;  %924 = vmatprep.subr.mxu0 %v421_v28 }
  0x77   : > { %v413_v32 = vld [vmem:[%s6522_s11 + $0x1c8] sm:$0xff]  ;;  %995 = vmatprep.subr.mxu1 %v677_v29  ;;  %v412_v34 = vld [vmem:[%s6522_s11 + $0x1c0] sm:$0xff]  ;;  %925 = vmatpush1.msra.mxu0 %v420_v30 }
  0x78   : > { %v669_v33 = vld [vmem:[%s6522_s11 + $0x9c8] sm:$0xff]  ;;  %v668_v35 = vld [vmem:[%s6522_s11 + $0x9c0] sm:$0xff]  ;;  %996 = vmatpush1.msra.mxu1 %v676_v31  ;;  %926 = vmatprep.subr.mxu0 %v413_v32 }
  0x79   : > { %v405_v36 = vld [vmem:[%s6522_s11 + $0x188] sm:$0xff]  ;;  %997 = vmatprep.subr.mxu1 %v669_v33  ;;  %v404_v38 = vld [vmem:[%s6522_s11 + $0x180] sm:$0xff]  ;;  %927 = vmatpush1.msra.mxu0 %v412_v34 }
  0x7a   : > { %v661_v37 = vld [vmem:[%s6522_s11 + $0x988] sm:$0xff]  ;;  %v660_v39 = vld [vmem:[%s6522_s11 + $0x980] sm:$0xff]  ;;  %998 = vmatpush1.msra.mxu1 %v668_v35  ;;  %928 = vmatprep.subr.mxu0 %v405_v36 }
  0x7b   : > { %v397_v40 = vld [vmem:[%s6522_s11 + $0x148] sm:$0xff]  ;;  %999 = vmatprep.subr.mxu1 %v661_v37  ;;  %v396_v42 = vld [vmem:[%s6522_s11 + $0x140] sm:$0xff]  ;;  %929 = vmatpush1.msra.mxu0 %v404_v38 }
  0x7c   : > { %v653_v41 = vld [vmem:[%s6522_s11 + $0x948] sm:$0xff]  ;;  %v652_v43 = vld [vmem:[%s6522_s11 + $0x940] sm:$0xff]  ;;  %1000 = vmatpush1.msra.mxu1 %v660_v39  ;;  %930 = vmatprep.subr.mxu0 %v397_v40 }
  0x7d   : > { %v389_v44 = vld [vmem:[%s6522_s11 + $0x108] sm:$0xff]  ;;  %1001 = vmatprep.subr.mxu1 %v653_v41  ;;  %v388_v46 = vld [vmem:[%s6522_s11 + $0x100] sm:$0xff]  ;;  %931 = vmatpush1.msra.mxu0 %v396_v42 }
  0x7e   : > { %v645_v45 = vld [vmem:[%s6522_s11 + $0x908] sm:$0xff]  ;;  %v644_v47 = vld [vmem:[%s6522_s11 + $0x900] sm:$0xff]  ;;  %1002 = vmatpush1.msra.mxu1 %v652_v43  ;;  %932 = vmatprep.subr.mxu0 %v389_v44 }
  0x7f   : > { %v381_v48 = vld [vmem:[%s6522_s11 + $0xc8] sm:$0xff]  ;;  %1003 = vmatprep.subr.mxu1 %v645_v45  ;;  %v380_v50 = vld [vmem:[%s6522_s11 + $0xc0] sm:$0xff]  ;;  %933 = vmatpush1.msra.mxu0 %v388_v46 }
  0x80   : > { %v637_v49 = vld [vmem:[%s6522_s11 + $0x8c8] sm:$0xff]  ;;  %v636_v51 = vld [vmem:[%s6522_s11 + $0x8c0] sm:$0xff]  ;;  %1004 = vmatpush1.msra.mxu1 %v644_v47  ;;  %934 = vmatprep.subr.mxu0 %v381_v48 }
  0x81   : > { %v373_v52 = vld [vmem:[%s6522_s11 + $0x88] sm:$0xff]  ;;  %1005 = vmatprep.subr.mxu1 %v637_v49  ;;  %v372_v54 = vld [vmem:[%s6522_s11 + $0x80] sm:$0xff]  ;;  %935 = vmatpush1.msra.mxu0 %v380_v50 }
  0x82   : > { %v629_v53 = vld [vmem:[%s6522_s11 + $0x888] sm:$0xff]  ;;  %v628_v55 = vld [vmem:[%s6522_s11 + $0x880] sm:$0xff]  ;;  %1006 = vmatpush1.msra.mxu1 %v636_v51  ;;  %936 = vmatprep.subr.mxu0 %v373_v52 }
  0x83   : > { %v365_v56 = vld [vmem:[%s6522_s11 + $0x48] sm:$0xff]  ;;  %1007 = vmatprep.subr.mxu1 %v629_v53  ;;  %v364_v58 = vld [vmem:[%s6522_s11 + $0x40] sm:$0xff]  ;;  %937 = vmatpush1.msra.mxu0 %v372_v54 }
  0x84   : > { %v621_v57 = vld [vmem:[%s6522_s11 + $0x848] sm:$0xff]  ;;  %v620_v59 = vld [vmem:[%s6522_s11 + $0x840] sm:$0xff]  ;;  %1008 = vmatpush1.msra.mxu1 %v628_v55  ;;  %938 = vmatprep.subr.mxu0 %v365_v56 }
  0x85   : > { %v357_v60 = vld [vmem:[%s6522_s11 + $0x8] sm:$0xff]  ;;  %1009 = vmatprep.subr.mxu1 %v621_v57  ;;  %v356_v62 = vld [vmem:[%s6522_s11] sm:$0xff]  ;;  %939 = vmatpush1.msra.mxu0 %v364_v58 }
  0x86   : > { %v613_v61 = vld [vmem:[%s6522_s11 + $0x808] sm:$0xff]  ;;  %v612_v63 = vld [vmem:[%s6522_s11 + $0x800] sm:$0xff]  ;;  %1010 = vmatpush1.msra.mxu1 %v620_v59  ;;  %940 = vmatprep.subr.mxu0 %v357_v60 }
  0x87   : > { %v605_v0 = vld [vmem:[%s6522_s11 + $0x7c8] sm:$0xff]  ;;  %1011 = vmatprep.subr.mxu1 %v613_v61  ;;  %v604_v2 = vld [vmem:[%s6522_s11 + $0x7c0] sm:$0xff]  ;;  %941 = vmatpush1.msra.mxu0 %v356_v62 }
  0x88   : > { %v861_v1 = vld [vmem:[%s6522_s11 + $0xfc8] sm:$0xff]  ;;  %v860_v3 = vld [vmem:[%s6522_s11 + $0xfc0] sm:$0xff]  ;;  %1012 = vmatpush1.msra.mxu1 %v612_v63  ;;  %942 = vmatprep.subr.mxu0 %v605_v0 }
  0x89   : > { %v597_v4 = vld [vmem:[%s6522_s11 + $0x788] sm:$0xff]  ;;  %1013 = vmatprep.subr.mxu1 %v861_v1  ;;  %v596_v6 = vld [vmem:[%s6522_s11 + $0x780] sm:$0xff]  ;;  %943 = vmatpush2.msra.mxu0 %v604_v2  ;;  %v6671_v2 = vld [vmem:[#allocation2 + $0x18] sm:$0xff] }
  0x8a   : > { %v853_v5 = vld [vmem:[%s6522_s11 + $0xf88] sm:$0xff]  ;;  %v852_v7 = vld [vmem:[%s6522_s11 + $0xf80] sm:$0xff]  ;;  %1014 = vmatpush2.msra.mxu1 %v860_v3  ;;  %944 = vmatprep.subr.mxu0 %v597_v4  ;;  %v479_v3 = vld [vmem:[%s6522_s11 + $0x3d8] sm:$0xff] }
  0x8b   : > { %v589_v8 = vld [vmem:[%s6522_s11 + $0x748] sm:$0xff]  ;;  %1015 = vmatprep.subr.mxu1 %v853_v5  ;;  %v588_v10 = vld [vmem:[%s6522_s11 + $0x740] sm:$0xff]  ;;  %945 = vmatpush2.msra.mxu0 %v596_v6  ;;  %v735_v4 = vld [vmem:[%s6522_s11 + $0xbd8] sm:$0xff] }
  0x8c   : > { %v845_v9 = vld [vmem:[%s6522_s11 + $0xf48] sm:$0xff]  ;;  %v844_v11 = vld [vmem:[%s6522_s11 + $0xf40] sm:$0xff]  ;;  %1016 = vmatpush2.msra.mxu1 %v852_v7  ;;  %946 = vmatprep.subr.mxu0 %v589_v8  ;;  %v6676_v5 = vld [vmem:[#allocation2 + $0x10] sm:$0xff] }
  0x8d   : > { %v581_v12 = vld [vmem:[%s6522_s11 + $0x708] sm:$0xff]  ;;  %1017 = vmatprep.subr.mxu1 %v845_v9  ;;  %v580_v14 = vld [vmem:[%s6522_s11 + $0x700] sm:$0xff]  ;;  %947 = vmatpush2.msra.mxu0 %v588_v10  ;;  %v478_v6 = vld [vmem:[%s6522_s11 + $0x3d0] sm:$0xff] }
  0x8e   : > { %v837_v13 = vld [vmem:[%s6522_s11 + $0xf08] sm:$0xff]  ;;  %v836_v15 = vld [vmem:[%s6522_s11 + $0xf00] sm:$0xff]  ;;  %1018 = vmatpush2.msra.mxu1 %v844_v11  ;;  %948 = vmatprep.subr.mxu0 %v581_v12  ;;  %v734_v7 = vld [vmem:[%s6522_s11 + $0xbd0] sm:$0xff] }
  0x8f   : > { %v573_v16 = vld [vmem:[%s6522_s11 + $0x6c8] sm:$0xff]  ;;  %1019 = vmatprep.subr.mxu1 %v837_v13  ;;  %v572_v18 = vld [vmem:[%s6522_s11 + $0x6c0] sm:$0xff]  ;;  %949 = vmatpush2.msra.mxu0 %v580_v14  ;;  %v471_v8 = vld [vmem:[%s6522_s11 + $0x398] sm:$0xff] }
  0x90   : > { %v829_v17 = vld [vmem:[%s6522_s11 + $0xec8] sm:$0xff]  ;;  %v828_v19 = vld [vmem:[%s6522_s11 + $0xec0] sm:$0xff]  ;;  %1020 = vmatpush2.msra.mxu1 %v836_v15  ;;  %950 = vmatprep.subr.mxu0 %v573_v16  ;;  %v727_v9 = vld [vmem:[%s6522_s11 + $0xb98] sm:$0xff] }
  0x91   : > { %v565_v20 = vld [vmem:[%s6522_s11 + $0x688] sm:$0xff]  ;;  %1021 = vmatprep.subr.mxu1 %v829_v17  ;;  %v564_v22 = vld [vmem:[%s6522_s11 + $0x680] sm:$0xff]  ;;  %951 = vmatpush2.msra.mxu0 %v572_v18  ;;  %v470_v10 = vld [vmem:[%s6522_s11 + $0x390] sm:$0xff] }
  0x92   : > { %v821_v21 = vld [vmem:[%s6522_s11 + $0xe88] sm:$0xff]  ;;  %v820_v23 = vld [vmem:[%s6522_s11 + $0xe80] sm:$0xff]  ;;  %1022 = vmatpush2.msra.mxu1 %v828_v19  ;;  %952 = vmatprep.subr.mxu0 %v565_v20  ;;  %v726_v11 = vld [vmem:[%s6522_s11 + $0xb90] sm:$0xff] }
  0x93   : > { %v557_v24 = vld [vmem:[%s6522_s11 + $0x648] sm:$0xff]  ;;  %1023 = vmatprep.subr.mxu1 %v821_v21  ;;  %v556_v26 = vld [vmem:[%s6522_s11 + $0x640] sm:$0xff]  ;;  %953 = vmatpush2.msra.mxu0 %v564_v22  ;;  %v463_v12 = vld [vmem:[%s6522_s11 + $0x358] sm:$0xff] }
  0x94   : > { %v813_v25 = vld [vmem:[%s6522_s11 + $0xe48] sm:$0xff]  ;;  %v812_v27 = vld [vmem:[%s6522_s11 + $0xe40] sm:$0xff]  ;;  %1024 = vmatpush2.msra.mxu1 %v820_v23  ;;  %954 = vmatprep.subr.mxu0 %v557_v24  ;;  %v719_v13 = vld [vmem:[%s6522_s11 + $0xb58] sm:$0xff] }
  0x95   : > { %v549_v28 = vld [vmem:[%s6522_s11 + $0x608] sm:$0xff]  ;;  %1025 = vmatprep.subr.mxu1 %v813_v25  ;;  %v548_v30 = vld [vmem:[%s6522_s11 + $0x600] sm:$0xff]  ;;  %955 = vmatpush2.msra.mxu0 %v556_v26  ;;  %v462_v14 = vld [vmem:[%s6522_s11 + $0x350] sm:$0xff] }
  0x96   : > { %v805_v29 = vld [vmem:[%s6522_s11 + $0xe08] sm:$0xff]  ;;  %v804_v31 = vld [vmem:[%s6522_s11 + $0xe00] sm:$0xff]  ;;  %1026 = vmatpush2.msra.mxu1 %v812_v27  ;;  %956 = vmatprep.subr.mxu0 %v549_v28  ;;  %v718_v15 = vld [vmem:[%s6522_s11 + $0xb50] sm:$0xff] }
  0x97   : > { %v541_v32 = vld [vmem:[%s6522_s11 + $0x5c8] sm:$0xff]  ;;  %1027 = vmatprep.subr.mxu1 %v805_v29  ;;  %v540_v34 = vld [vmem:[%s6522_s11 + $0x5c0] sm:$0xff]  ;;  %957 = vmatpush2.msra.mxu0 %v548_v30  ;;  %v455_v16 = vld [vmem:[%s6522_s11 + $0x318] sm:$0xff] }
  0x98   : > { %v797_v33 = vld [vmem:[%s6522_s11 + $0xdc8] sm:$0xff]  ;;  %v796_v35 = vld [vmem:[%s6522_s11 + $0xdc0] sm:$0xff]  ;;  %1028 = vmatpush2.msra.mxu1 %v804_v31  ;;  %958 = vmatprep.subr.mxu0 %v541_v32  ;;  %v711_v17 = vld [vmem:[%s6522_s11 + $0xb18] sm:$0xff] }
  0x99   : > { %v533_v36 = vld [vmem:[%s6522_s11 + $0x588] sm:$0xff]  ;;  %1029 = vmatprep.subr.mxu1 %v797_v33  ;;  %v532_v38 = vld [vmem:[%s6522_s11 + $0x580] sm:$0xff]  ;;  %959 = vmatpush2.msra.mxu0 %v540_v34  ;;  %v454_v18 = vld [vmem:[%s6522_s11 + $0x310] sm:$0xff] }
  0x9a   : > { %v789_v37 = vld [vmem:[%s6522_s11 + $0xd88] sm:$0xff]  ;;  %v788_v39 = vld [vmem:[%s6522_s11 + $0xd80] sm:$0xff]  ;;  %1030 = vmatpush2.msra.mxu1 %v796_v35  ;;  %960 = vmatprep.subr.mxu0 %v533_v36  ;;  %v710_v19 = vld [vmem:[%s6522_s11 + $0xb10] sm:$0xff] }
  0x9b   : > { %v525_v40 = vld [vmem:[%s6522_s11 + $0x548] sm:$0xff]  ;;  %1031 = vmatprep.subr.mxu1 %v789_v37  ;;  %v524_v42 = vld [vmem:[%s6522_s11 + $0x540] sm:$0xff]  ;;  %961 = vmatpush2.msra.mxu0 %v532_v38  ;;  %v447_v20 = vld [vmem:[%s6522_s11 + $0x2d8] sm:$0xff] }
  0x9c   : > { %v781_v41 = vld [vmem:[%s6522_s11 + $0xd48] sm:$0xff]  ;;  %v780_v43 = vld [vmem:[%s6522_s11 + $0xd40] sm:$0xff]  ;;  %1032 = vmatpush2.msra.mxu1 %v788_v39  ;;  %962 = vmatprep.subr.mxu0 %v525_v40  ;;  %v703_v21 = vld [vmem:[%s6522_s11 + $0xad8] sm:$0xff] }
  0x9d   : > { %v517_v44 = vld [vmem:[%s6522_s11 + $0x508] sm:$0xff]  ;;  %1033 = vmatprep.subr.mxu1 %v781_v41  ;;  %v516_v46 = vld [vmem:[%s6522_s11 + $0x500] sm:$0xff]  ;;  %963 = vmatpush2.msra.mxu0 %v524_v42  ;;  %v446_v22 = vld [vmem:[%s6522_s11 + $0x2d0] sm:$0xff] }
  0x9e   : > { %v773_v45 = vld [vmem:[%s6522_s11 + $0xd08] sm:$0xff]  ;;  %v772_v47 = vld [vmem:[%s6522_s11 + $0xd00] sm:$0xff]  ;;  %1034 = vmatpush2.msra.mxu1 %v780_v43  ;;  %964 = vmatprep.subr.mxu0 %v517_v44  ;;  %v702_v23 = vld [vmem:[%s6522_s11 + $0xad0] sm:$0xff] }
  0x9f   : > { %v509_v48 = vld [vmem:[%s6522_s11 + $0x4c8] sm:$0xff]  ;;  %1035 = vmatprep.subr.mxu1 %v773_v45  ;;  %v508_v50 = vld [vmem:[%s6522_s11 + $0x4c0] sm:$0xff]  ;;  %965 = vmatpush2.msra.mxu0 %v516_v46  ;;  %v439_v24 = vld [vmem:[%s6522_s11 + $0x298] sm:$0xff] }
  0xa0   : > { %v765_v49 = vld [vmem:[%s6522_s11 + $0xcc8] sm:$0xff]  ;;  %v764_v51 = vld [vmem:[%s6522_s11 + $0xcc0] sm:$0xff]  ;;  %1036 = vmatpush2.msra.mxu1 %v772_v47  ;;  %966 = vmatprep.subr.mxu0 %v509_v48  ;;  %v695_v25 = vld [vmem:[%s6522_s11 + $0xa98] sm:$0xff] }
  0xa1   : > { %v501_v52 = vld [vmem:[%s6522_s11 + $0x488] sm:$0xff]  ;;  %1037 = vmatprep.subr.mxu1 %v765_v49  ;;  %v500_v54 = vld [vmem:[%s6522_s11 + $0x480] sm:$0xff]  ;;  %967 = vmatpush2.msra.mxu0 %v508_v50  ;;  %v438_v26 = vld [vmem:[%s6522_s11 + $0x290] sm:$0xff] }
  0xa2   : > { %v757_v53 = vld [vmem:[%s6522_s11 + $0xc88] sm:$0xff]  ;;  %v756_v55 = vld [vmem:[%s6522_s11 + $0xc80] sm:$0xff]  ;;  %1038 = vmatpush2.msra.mxu1 %v764_v51  ;;  %968 = vmatprep.subr.mxu0 %v501_v52  ;;  %v694_v27 = vld [vmem:[%s6522_s11 + $0xa90] sm:$0xff] }
  0xa3   : > { %v493_v56 = vld [vmem:[%s6522_s11 + $0x448] sm:$0xff]  ;;  %1039 = vmatprep.subr.mxu1 %v757_v53  ;;  %v492_v58 = vld [vmem:[%s6522_s11 + $0x440] sm:$0xff]  ;;  %969 = vmatpush2.msra.mxu0 %v500_v54  ;;  %v431_v28 = vld [vmem:[%s6522_s11 + $0x258] sm:$0xff] }
  0xa4   : > { %v749_v57 = vld [vmem:[%s6522_s11 + $0xc48] sm:$0xff]  ;;  %v748_v59 = vld [vmem:[%s6522_s11 + $0xc40] sm:$0xff]  ;;  %1040 = vmatpush2.msra.mxu1 %v756_v55  ;;  %970 = vmatprep.subr.mxu0 %v493_v56  ;;  %v687_v29 = vld [vmem:[%s6522_s11 + $0xa58] sm:$0xff] }
  0xa5   : > { %v485_v60 = vld [vmem:[%s6522_s11 + $0x408] sm:$0xff]  ;;  %1041 = vmatprep.subr.mxu1 %v749_v57  ;;  %v484_v62 = vld [vmem:[%s6522_s11 + $0x400] sm:$0xff]  ;;  %971 = vmatpush2.msra.mxu0 %v492_v58  ;;  %v430_v30 = vld [vmem:[%s6522_s11 + $0x250] sm:$0xff] }
  0xa6   : > { %v741_v61 = vld [vmem:[%s6522_s11 + $0xc08] sm:$0xff]  ;;  %1042 = vmatpush2.msra.mxu1 %v748_v59  ;;  %v740_v0 = vld [vmem:[%s6522_s11 + $0xc00] sm:$0xff]  ;;  %972 = vmatprep.subr.mxu0 %v485_v60  ;;  %v686_v31 = vld [vmem:[%s6522_s11 + $0xa50] sm:$0xff] }
  0xa7   : > { %v6666_v63 = vld [vmem:[#allocation2 + $0x8] sm:$0xff]  ;;  %v6669_v1 = vld [vmem:[#allocation2] sm:$0xff]  ;;  %1043 = vmatprep.subr.mxu1 %v741_v61  ;;  %973 = vmatpush2.msra.mxu0 %v484_v62  ;;  %v423_v32 = vld [vmem:[%s6522_s11 + $0x218] sm:$0xff] }
  0xa8   : > { %974 = vmatprep.mubr.f32.mxu0 %v6666_v63  ;;  %1044 = vmatpush2.msra.mxu1 %v740_v0  ;;  %v679_v33 = vld [vmem:[%s6522_s11 + $0xa18] sm:$0xff]  ;;  %v422_v34 = vld [vmem:[%s6522_s11 + $0x210] sm:$0xff] }
  0xa9   : > { %975 = vmatmul.mubr.f32.vlgmr.msra.gmra.mxu0 %v6669_v1  ;;  %1045 = vmatprep.mubr.f32.mxu1 %v6671_v2  ;;  %v678_v35 = vld [vmem:[%s6522_s11 + $0xa10] sm:$0xff]  ;;  %v415_v36 = vld [vmem:[%s6522_s11 + $0x1d8] sm:$0xff] }
  0xaa   : > { %1052 = vmatprep.subr.mxu0 %v479_v3  ;;  %1123 = vmatprep.subr.mxu1 %v735_v4  ;;  %v671_v37 = vld [vmem:[%s6522_s11 + $0x9d8] sm:$0xff]  ;;  %v414_v38 = vld [vmem:[%s6522_s11 + $0x1d0] sm:$0xff] }
  0xab   : > { %1046 = vmatmul.mubr.f32.vlgmr.msra.gmra.mxu1 %v6676_v5  ;;  %1053 = vmatpush1.msra.mxu0 %v478_v6  ;;  %v670_v39 = vld [vmem:[%s6522_s11 + $0x9d0] sm:$0xff]  ;;  %v407_v40 = vld [vmem:[%s6522_s11 + $0x198] sm:$0xff] }
  0xac   : > { %1124 = vmatpush1.msra.mxu1 %v734_v7  ;;  %1054 = vmatprep.subr.mxu0 %v471_v8  ;;  %v663_v41 = vld [vmem:[%s6522_s11 + $0x998] sm:$0xff]  ;;  %v406_v42 = vld [vmem:[%s6522_s11 + $0x190] sm:$0xff] }
  0xad   : > { %1125 = vmatprep.subr.mxu1 %v727_v9  ;;  %1055 = vmatpush1.msra.mxu0 %v470_v10  ;;  %v662_v43 = vld [vmem:[%s6522_s11 + $0x990] sm:$0xff]  ;;  %v399_v44 = vld [vmem:[%s6522_s11 + $0x158] sm:$0xff] }
  0xae   : > { %1126 = vmatpush1.msra.mxu1 %v726_v11  ;;  %1056 = vmatprep.subr.mxu0 %v463_v12  ;;  %v655_v45 = vld [vmem:[%s6522_s11 + $0x958] sm:$0xff]  ;;  %v398_v46 = vld [vmem:[%s6522_s11 + $0x150] sm:$0xff] }
  0xaf   : > { %1127 = vmatprep.subr.mxu1 %v719_v13  ;;  %1057 = vmatpush1.msra.mxu0 %v462_v14  ;;  %v654_v47 = vld [vmem:[%s6522_s11 + $0x950] sm:$0xff]  ;;  %v391_v48 = vld [vmem:[%s6522_s11 + $0x118] sm:$0xff] }
  0xb0   : > { %1128 = vmatpush1.msra.mxu1 %v718_v15  ;;  %1058 = vmatprep.subr.mxu0 %v455_v16  ;;  %v647_v49 = vld [vmem:[%s6522_s11 + $0x918] sm:$0xff]  ;;  %v390_v50 = vld [vmem:[%s6522_s11 + $0x110] sm:$0xff] }
  0xb1   : > { %1129 = vmatprep.subr.mxu1 %v711_v17  ;;  %1059 = vmatpush1.msra.mxu0 %v454_v18  ;;  %v646_v51 = vld [vmem:[%s6522_s11 + $0x910] sm:$0xff]  ;;  %v383_v52 = vld [vmem:[%s6522_s11 + $0xd8] sm:$0xff] }
  0xb2   : > { %1130 = vmatpush1.msra.mxu1 %v710_v19  ;;  %1060 = vmatprep.subr.mxu0 %v447_v20  ;;  %v639_v53 = vld [vmem:[%s6522_s11 + $0x8d8] sm:$0xff]  ;;  %v382_v54 = vld [vmem:[%s6522_s11 + $0xd0] sm:$0xff] }
  0xb3   : > { %1131 = vmatprep.subr.mxu1 %v703_v21  ;;  %1061 = vmatpush1.msra.mxu0 %v446_v22  ;;  %v638_v55 = vld [vmem:[%s6522_s11 + $0x8d0] sm:$0xff]  ;;  %v375_v56 = vld [vmem:[%s6522_s11 + $0x98] sm:$0xff] }
  0xb4   : > { %1132 = vmatpush1.msra.mxu1 %v702_v23  ;;  %1062 = vmatprep.subr.mxu0 %v439_v24  ;;  %v631_v57 = vld [vmem:[%s6522_s11 + $0x898] sm:$0xff]  ;;  %v374_v58 = vld [vmem:[%s6522_s11 + $0x90] sm:$0xff] }
  0xb5   : > { %1133 = vmatprep.subr.mxu1 %v695_v25  ;;  %1063 = vmatpush1.msra.mxu0 %v438_v26  ;;  %v630_v59 = vld [vmem:[%s6522_s11 + $0x890] sm:$0xff]  ;;  %v367_v60 = vld [vmem:[%s6522_s11 + $0x58] sm:$0xff] }
  0xb6   : > { %1134 = vmatpush1.msra.mxu1 %v694_v27  ;;  %1064 = vmatprep.subr.mxu0 %v431_v28  ;;  %v623_v61 = vld [vmem:[%s6522_s11 + $0x858] sm:$0xff]  ;;  %v366_v62 = vld [vmem:[%s6522_s11 + $0x50] sm:$0xff] }
  0xb7   : > { %1135 = vmatprep.subr.mxu1 %v687_v29  ;;  %1065 = vmatpush1.msra.mxu0 %v430_v30  ;;  %v622_v0 = vld [vmem:[%s6522_s11 + $0x850] sm:$0xff]  ;;  %v359_v3 = vld [vmem:[%s6522_s11 + $0x18] sm:$0xff] }
  0xb8   : > { %1136 = vmatpush1.msra.mxu1 %v686_v31  ;;  %1066 = vmatprep.subr.mxu0 %v423_v32  ;;  %v615_v4 = vld [vmem:[%s6522_s11 + $0x818] sm:$0xff]  ;;  %v358_v6 = vld [vmem:[%s6522_s11 + $0x10] sm:$0xff] }
  0xb9   : > { %1137 = vmatprep.subr.mxu1 %v679_v33  ;;  %1067 = vmatpush1.msra.mxu0 %v422_v34  ;;  %v614_v7 = vld [vmem:[%s6522_s11 + $0x810] sm:$0xff]  ;;  %v607_v8 = vld [vmem:[%s6522_s11 + $0x7d8] sm:$0xff] }
  0xba   : > { %1138 = vmatpush1.msra.mxu1 %v678_v35  ;;  %1068 = vmatprep.subr.mxu0 %v415_v36  ;;  %v863_v9 = vld [vmem:[%s6522_s11 + $0xfd8] sm:$0xff]  ;;  %v606_v10 = vld [vmem:[%s6522_s11 + $0x7d0] sm:$0xff] }
  0xbb   : > { %1139 = vmatprep.subr.mxu1 %v671_v37  ;;  %1069 = vmatpush1.msra.mxu0 %v414_v38  ;;  %v862_v11 = vld [vmem:[%s6522_s11 + $0xfd0] sm:$0xff]  ;;  %v599_v12 = vld [vmem:[%s6522_s11 + $0x798] sm:$0xff] }
  0xbc   : > { %1140 = vmatpush1.msra.mxu1 %v670_v39  ;;  %1070 = vmatprep.subr.mxu0 %v407_v40  ;;  %v855_v13 = vld [vmem:[%s6522_s11 + $0xf98] sm:$0xff]  ;;  %v598_v14 = vld [vmem:[%s6522_s11 + $0x790] sm:$0xff] }
  0xbd   : > { %1141 = vmatprep.subr.mxu1 %v663_v41  ;;  %1071 = vmatpush1.msra.mxu0 %v406_v42  ;;  %v854_v15 = vld [vmem:[%s6522_s11 + $0xf90] sm:$0xff]  ;;  %v591_v16 = vld [vmem:[%s6522_s11 + $0x758] sm:$0xff] }
  0xbe   : > { %1142 = vmatpush1.msra.mxu1 %v662_v43  ;;  %1072 = vmatprep.subr.mxu0 %v399_v44  ;;  %v847_v17 = vld [vmem:[%s6522_s11 + $0xf58] sm:$0xff]  ;;  %v590_v18 = vld [vmem:[%s6522_s11 + $0x750] sm:$0xff] }
  0xbf   : > { %1143 = vmatprep.subr.mxu1 %v655_v45  ;;  %1073 = vmatpush1.msra.mxu0 %v398_v46  ;;  %v846_v19 = vld [vmem:[%s6522_s11 + $0xf50] sm:$0xff]  ;;  %v583_v20 = vld [vmem:[%s6522_s11 + $0x718] sm:$0xff] }
  0xc0   : > { %1144 = vmatpush1.msra.mxu1 %v654_v47  ;;  %1074 = vmatprep.subr.mxu0 %v391_v48  ;;  %v839_v21 = vld [vmem:[%s6522_s11 + $0xf18] sm:$0xff]  ;;  %v582_v22 = vld [vmem:[%s6522_s11 + $0x710] sm:$0xff] }
  0xc1   : > { %1145 = vmatprep.subr.mxu1 %v647_v49  ;;  %1075 = vmatpush1.msra.mxu0 %v390_v50  ;;  %v838_v23 = vld [vmem:[%s6522_s11 + $0xf10] sm:$0xff]  ;;  %v575_v24 = vld [vmem:[%s6522_s11 + $0x6d8] sm:$0xff] }
  0xc2   : > { %1146 = vmatpush1.msra.mxu1 %v646_v51  ;;  %1076 = vmatprep.subr.mxu0 %v383_v52  ;;  %v831_v25 = vld [vmem:[%s6522_s11 + $0xed8] sm:$0xff]  ;;  %v574_v26 = vld [vmem:[%s6522_s11 + $0x6d0] sm:$0xff] }
  0xc3   : > { %1147 = vmatprep.subr.mxu1 %v639_v53  ;;  %1077 = vmatpush1.msra.mxu0 %v382_v54  ;;  %v830_v27 = vld [vmem:[%s6522_s11 + $0xed0] sm:$0xff]  ;;  %v567_v28 = vld [vmem:[%s6522_s11 + $0x698] sm:$0xff] }
  0xc4   : > { %1148 = vmatpush1.msra.mxu1 %v638_v55  ;;  %1078 = vmatprep.subr.mxu0 %v375_v56  ;;  %v823_v29 = vld [vmem:[%s6522_s11 + $0xe98] sm:$0xff]  ;;  %v566_v30 = vld [vmem:[%s6522_s11 + $0x690] sm:$0xff] }
  0xc5   : > { %1149 = vmatprep.subr.mxu1 %v631_v57  ;;  %1079 = vmatpush1.msra.mxu0 %v374_v58  ;;  %v822_v31 = vld [vmem:[%s6522_s11 + $0xe90] sm:$0xff]  ;;  %v559_v32 = vld [vmem:[%s6522_s11 + $0x658] sm:$0xff] }
  0xc6   : > { %1150 = vmatpush1.msra.mxu1 %v630_v59  ;;  %1080 = vmatprep.subr.mxu0 %v367_v60  ;;  %v815_v33 = vld [vmem:[%s6522_s11 + $0xe58] sm:$0xff]  ;;  %v558_v34 = vld [vmem:[%s6522_s11 + $0x650] sm:$0xff] }
  0xc7   : > { %1151 = vmatprep.subr.mxu1 %v623_v61  ;;  %1081 = vmatpush1.msra.mxu0 %v366_v62  ;;  %v814_v35 = vld [vmem:[%s6522_s11 + $0xe50] sm:$0xff]  ;;  %v551_v36 = vld [vmem:[%s6522_s11 + $0x618] sm:$0xff] }
  0xc8   : > { %1152 = vmatpush1.msra.mxu1 %v622_v0  ;;  %1082 = vmatprep.subr.mxu0 %v359_v3  ;;  %v807_v37 = vld [vmem:[%s6522_s11 + $0xe18] sm:$0xff]  ;;  %v550_v38 = vld [vmem:[%s6522_s11 + $0x610] sm:$0xff] }
  0xc9   : > { %1153 = vmatprep.subr.mxu1 %v615_v4  ;;  %1083 = vmatpush1.msra.mxu0 %v358_v6  ;;  %v806_v39 = vld [vmem:[%s6522_s11 + $0xe10] sm:$0xff]  ;;  %v543_v40 = vld [vmem:[%s6522_s11 + $0x5d8] sm:$0xff] }
  0xca   : > { %1154 = vmatpush1.msra.mxu1 %v614_v7  ;;  %1084 = vmatprep.subr.mxu0 %v607_v8  ;;  %v799_v41 = vld [vmem:[%s6522_s11 + $0xdd8] sm:$0xff]  ;;  %v542_v42 = vld [vmem:[%s6522_s11 + $0x5d0] sm:$0xff] }
  0xcb   : > { %1155 = vmatprep.subr.mxu1 %v863_v9  ;;  %1085 = vmatpush2.msra.mxu0 %v606_v10  ;;  %v798_v43 = vld [vmem:[%s6522_s11 + $0xdd0] sm:$0xff]  ;;  %v535_v44 = vld [vmem:[%s6522_s11 + $0x598] sm:$0xff] }
  0xcc   : > { %1156 = vmatpush2.msra.mxu1 %v862_v11  ;;  %1086 = vmatprep.subr.mxu0 %v599_v12  ;;  %v791_v45 = vld [vmem:[%s6522_s11 + $0xd98] sm:$0xff]  ;;  %v534_v46 = vld [vmem:[%s6522_s11 + $0x590] sm:$0xff]  ;;  %v481_v12 = vld [vmem:[%s6522_s11 + $0x3e8] sm:$0xff] }
  0xcd   : > { %1157 = vmatprep.subr.mxu1 %v855_v13  ;;  %1087 = vmatpush2.msra.mxu0 %v598_v14  ;;  %v790_v47 = vld [vmem:[%s6522_s11 + $0xd90] sm:$0xff]  ;;  %v527_v48 = vld [vmem:[%s6522_s11 + $0x558] sm:$0xff]  ;;  %v737_v13 = vld [vmem:[%s6522_s11 + $0xbe8] sm:$0xff] }
  0xce   : > { %1158 = vmatpush2.msra.mxu1 %v854_v15  ;;  %1088 = vmatprep.subr.mxu0 %v591_v16  ;;  %v783_v49 = vld [vmem:[%s6522_s11 + $0xd58] sm:$0xff]  ;;  %v526_v50 = vld [vmem:[%s6522_s11 + $0x550] sm:$0xff]  ;;  %v480_v14 = vld [vmem:[%s6522_s11 + $0x3e0] sm:$0xff] }
  0xcf   : > { %1159 = vmatprep.subr.mxu1 %v847_v17  ;;  %1089 = vmatpush2.msra.mxu0 %v590_v18  ;;  %v782_v51 = vld [vmem:[%s6522_s11 + $0xd50] sm:$0xff]  ;;  %v519_v52 = vld [vmem:[%s6522_s11 + $0x518] sm:$0xff]  ;;  %v736_v15 = vld [vmem:[%s6522_s11 + $0xbe0] sm:$0xff] }
  0xd0   : > { %1160 = vmatpush2.msra.mxu1 %v846_v19  ;;  %1090 = vmatprep.subr.mxu0 %v583_v20  ;;  %v775_v53 = vld [vmem:[%s6522_s11 + $0xd18] sm:$0xff]  ;;  %v518_v54 = vld [vmem:[%s6522_s11 + $0x510] sm:$0xff]  ;;  %v473_v16 = vld [vmem:[%s6522_s11 + $0x3a8] sm:$0xff] }
  0xd1   : > { %1161 = vmatprep.subr.mxu1 %v839_v21  ;;  %1091 = vmatpush2.msra.mxu0 %v582_v22  ;;  %v774_v55 = vld [vmem:[%s6522_s11 + $0xd10] sm:$0xff]  ;;  %v511_v56 = vld [vmem:[%s6522_s11 + $0x4d8] sm:$0xff]  ;;  %v729_v17 = vld [vmem:[%s6522_s11 + $0xba8] sm:$0xff] }
  0xd2   : > { %1162 = vmatpush2.msra.mxu1 %v838_v23  ;;  %1092 = vmatprep.subr.mxu0 %v575_v24  ;;  %v767_v57 = vld [vmem:[%s6522_s11 + $0xcd8] sm:$0xff]  ;;  %v510_v58 = vld [vmem:[%s6522_s11 + $0x4d0] sm:$0xff]  ;;  %v728_v18 = vld [vmem:[%s6522_s11 + $0xba0] sm:$0xff] }
  0xd3   : > { %1163 = vmatprep.subr.mxu1 %v831_v25  ;;  %1093 = vmatpush2.msra.mxu0 %v574_v26  ;;  %v766_v59 = vld [vmem:[%s6522_s11 + $0xcd0] sm:$0xff]  ;;  %v503_v60 = vld [vmem:[%s6522_s11 + $0x498] sm:$0xff]  ;;  %v721_v19 = vld [vmem:[%s6522_s11 + $0xb68] sm:$0xff] }
  0xd4   : > { %1164 = vmatpush2.msra.mxu1 %v830_v27  ;;  %1094 = vmatprep.subr.mxu0 %v567_v28  ;;  %v759_v61 = vld [vmem:[%s6522_s11 + $0xc98] sm:$0xff]  ;;  %v502_v62 = vld [vmem:[%s6522_s11 + $0x490] sm:$0xff]  ;;  %v720_v20 = vld [vmem:[%s6522_s11 + $0xb60] sm:$0xff] }
  0xd5   : > { %1165 = vmatprep.subr.mxu1 %v823_v29  ;;  %1095 = vmatpush2.msra.mxu0 %v566_v30  ;;  %v758_v0 = vld [vmem:[%s6522_s11 + $0xc90] sm:$0xff]  ;;  %v495_v3 = vld [vmem:[%s6522_s11 + $0x458] sm:$0xff]  ;;  %v457_v21 = vld [vmem:[%s6522_s11 + $0x328] sm:$0xff] }
  0xd6   : > { %1166 = vmatpush2.msra.mxu1 %v822_v31  ;;  %1096 = vmatprep.subr.mxu0 %v559_v32  ;;  %v751_v4 = vld [vmem:[%s6522_s11 + $0xc58] sm:$0xff]  ;;  %v494_v6 = vld [vmem:[%s6522_s11 + $0x450] sm:$0xff]  ;;  %v456_v22 = vld [vmem:[%s6522_s11 + $0x320] sm:$0xff] }
  0xd7   : > { %1167 = vmatprep.subr.mxu1 %v815_v33  ;;  %1097 = vmatpush2.msra.mxu0 %v558_v34  ;;  %v750_v7 = vld [vmem:[%s6522_s11 + $0xc50] sm:$0xff]  ;;  %v487_v8 = vld [vmem:[%s6522_s11 + $0x418] sm:$0xff]  ;;  %v712_v23 = vld [vmem:[%s6522_s11 + $0xb20] sm:$0xff] }
  0xd8   : > { %1168 = vmatpush2.msra.mxu1 %v814_v35  ;;  %1098 = vmatprep.subr.mxu0 %v551_v36  ;;  %v743_v9 = vld [vmem:[%s6522_s11 + $0xc18] sm:$0xff]  ;;  %v486_v10 = vld [vmem:[%s6522_s11 + $0x410] sm:$0xff]  ;;  %v449_v24 = vld [vmem:[%s6522_s11 + $0x2e8] sm:$0xff] }
  0xd9   : > { %1169 = vmatprep.subr.mxu1 %v807_v37  ;;  %1099 = vmatpush2.msra.mxu0 %v550_v38  ;;  %v742_v11 = vld [vmem:[%s6522_s11 + $0xc10] sm:$0xff]  ;;  %v705_v25 = vld [vmem:[%s6522_s11 + $0xae8] sm:$0xff]  ;;  %v448_v26 = vld [vmem:[%s6522_s11 + $0x2e0] sm:$0xff] }
  0xda   : > { %1170 = vmatpush2.msra.mxu1 %v806_v39  ;;  %1100 = vmatprep.subr.mxu0 %v543_v40  ;;  %v704_v27 = vld [vmem:[%s6522_s11 + $0xae0] sm:$0xff]  ;;  %v441_v28 = vld [vmem:[%s6522_s11 + $0x2a8] sm:$0xff] }
  0xdb   : > { %1171 = vmatprep.subr.mxu1 %v799_v41  ;;  %1101 = vmatpush2.msra.mxu0 %v542_v42  ;;  %v697_v29 = vld [vmem:[%s6522_s11 + $0xaa8] sm:$0xff]  ;;  %v440_v30 = vld [vmem:[%s6522_s11 + $0x2a0] sm:$0xff] }
  0xdc   : > { %1172 = vmatpush2.msra.mxu1 %v798_v43  ;;  %1102 = vmatprep.subr.mxu0 %v535_v44  ;;  %v696_v31 = vld [vmem:[%s6522_s11 + $0xaa0] sm:$0xff]  ;;  %v433_v32 = vld [vmem:[%s6522_s11 + $0x268] sm:$0xff] }
  0xdd   : > { %1173 = vmatprep.subr.mxu1 %v791_v45  ;;  %1103 = vmatpush2.msra.mxu0 %v534_v46  ;;  %v689_v33 = vld [vmem:[%s6522_s11 + $0xa68] sm:$0xff]  ;;  %v432_v34 = vld [vmem:[%s6522_s11 + $0x260] sm:$0xff] }
  0xde   : > { %1174 = vmatpush2.msra.mxu1 %v790_v47  ;;  %1104 = vmatprep.subr.mxu0 %v527_v48  ;;  %v688_v35 = vld [vmem:[%s6522_s11 + $0xa60] sm:$0xff]  ;;  %v425_v36 = vld [vmem:[%s6522_s11 + $0x228] sm:$0xff] }
  0xdf   : > { %1175 = vmatprep.subr.mxu1 %v783_v49  ;;  %1105 = vmatpush2.msra.mxu0 %v526_v50  ;;  %v681_v37 = vld [vmem:[%s6522_s11 + $0xa28] sm:$0xff]  ;;  %v424_v38 = vld [vmem:[%s6522_s11 + $0x220] sm:$0xff] }
  0xe0   : > { %1176 = vmatpush2.msra.mxu1 %v782_v51  ;;  %1106 = vmatprep.subr.mxu0 %v519_v52  ;;  %v680_v39 = vld [vmem:[%s6522_s11 + $0xa20] sm:$0xff]  ;;  %v417_v40 = vld [vmem:[%s6522_s11 + $0x1e8] sm:$0xff] }
  0xe1   : > { %1177 = vmatprep.subr.mxu1 %v775_v53  ;;  %1107 = vmatpush2.msra.mxu0 %v518_v54  ;;  %v673_v41 = vld [vmem:[%s6522_s11 + $0x9e8] sm:$0xff]  ;;  %v416_v42 = vld [vmem:[%s6522_s11 + $0x1e0] sm:$0xff] }
  0xe2   : > { %1178 = vmatpush2.msra.mxu1 %v774_v55  ;;  %1108 = vmatprep.subr.mxu0 %v511_v56  ;;  %v672_v43 = vld [vmem:[%s6522_s11 + $0x9e0] sm:$0xff]  ;;  %v409_v44 = vld [vmem:[%s6522_s11 + $0x1a8] sm:$0xff] }
  0xe3   : > { %1179 = vmatprep.subr.mxu1 %v767_v57  ;;  %1109 = vmatpush2.msra.mxu0 %v510_v58  ;;  %v665_v45 = vld [vmem:[%s6522_s11 + $0x9a8] sm:$0xff]  ;;  %v408_v46 = vld [vmem:[%s6522_s11 + $0x1a0] sm:$0xff] }
  0xe4   : > { %1180 = vmatpush2.msra.mxu1 %v766_v59  ;;  %1110 = vmatprep.subr.mxu0 %v503_v60  ;;  %v664_v47 = vld [vmem:[%s6522_s11 + $0x9a0] sm:$0xff]  ;;  %v401_v48 = vld [vmem:[%s6522_s11 + $0x168] sm:$0xff] }
  0xe5   : > { %1181 = vmatprep.subr.mxu1 %v759_v61  ;;  %1111 = vmatpush2.msra.mxu0 %v502_v62  ;;  %v657_v49 = vld [vmem:[%s6522_s11 + $0x968] sm:$0xff]  ;;  %v400_v50 = vld [vmem:[%s6522_s11 + $0x160] sm:$0xff] }
  0xe6   : > { %1182 = vmatpush2.msra.mxu1 %v758_v0  ;;  %1112 = vmatprep.subr.mxu0 %v495_v3  ;;  %v656_v51 = vld [vmem:[%s6522_s11 + $0x960] sm:$0xff]  ;;  %v393_v52 = vld [vmem:[%s6522_s11 + $0x128] sm:$0xff] }
  0xe7   : > { %1183 = vmatprep.subr.mxu1 %v751_v4  ;;  %1113 = vmatpush2.msra.mxu0 %v494_v6  ;;  %v649_v53 = vld [vmem:[%s6522_s11 + $0x928] sm:$0xff]  ;;  %v392_v54 = vld [vmem:[%s6522_s11 + $0x120] sm:$0xff] }
  0xe8   : > { %1184 = vmatpush2.msra.mxu1 %v750_v7  ;;  %1114 = vmatprep.subr.mxu0 %v487_v8  ;;  %v648_v55 = vld [vmem:[%s6522_s11 + $0x920] sm:$0xff]  ;;  %v385_v56 = vld [vmem:[%s6522_s11 + $0xe8] sm:$0xff] }
  0xe9   : > { %1185 = vmatprep.subr.mxu1 %v743_v9  ;;  %1115 = vmatpush2.msra.mxu0 %v486_v10  ;;  %v641_v57 = vld [vmem:[%s6522_s11 + $0x8e8] sm:$0xff]  ;;  %v384_v58 = vld [vmem:[%s6522_s11 + $0xe0] sm:$0xff] }
  0xea   : > { %1116 = vmatprep.mubr.f32.mxu0 %v6666_v63  ;;  %1186 = vmatpush2.msra.mxu1 %v742_v11  ;;  %v472_v63 = vld [vmem:[%s6522_s11 + $0x3a0] sm:$0xff]  ;;  %v377_v60 = vld [vmem:[%s6522_s11 + $0xa8] sm:$0xff] }
  0xeb   : > { %1117 = vmatmul.mubr.f32.vlgmr.msra.gmra.mxu0 %v6669_v1  ;;  %1187 = vmatprep.mubr.f32.mxu1 %v6671_v2  ;;  %v465_v1 = vld [vmem:[%s6522_s11 + $0x368] sm:$0xff]  ;;  %v464_v2 = vld [vmem:[%s6522_s11 + $0x360] sm:$0xff] }
  0xec   : > { %1194 = vmatprep.subr.mxu0 %v481_v12  ;;  %1265 = vmatprep.subr.mxu1 %v737_v13  ;;  %v640_v59 = vld [vmem:[%s6522_s11 + $0x8e0] sm:$0xff]  ;;  %v633_v61 = vld [vmem:[%s6522_s11 + $0x8a8] sm:$0xff] }
  0xed   : > { %1188 = vmatmul.mubr.f32.vlgmr.msra.gmra.mxu1 %v6676_v5  ;;  %1195 = vmatpush1.msra.mxu0 %v480_v14  ;;  %v713_v5 = vld [vmem:[%s6522_s11 + $0xb28] sm:$0xff]  ;;  %v376_v62 = vld [vmem:[%s6522_s11 + $0xa0] sm:$0xff] }
  0xee   : > { %1266 = vmatpush1.msra.mxu1 %v736_v15  ;;  %1196 = vmatprep.subr.mxu0 %v473_v16  ;;  %v632_v0 = vld [vmem:[%s6522_s11 + $0x8a0] sm:$0xff]  ;;  %v369_v3 = vld [vmem:[%s6522_s11 + $0x68] sm:$0xff] }
  0xef   : > { %1267 = vmatprep.subr.mxu1 %v729_v17  ;;  %1197 = vmatpush1.msra.mxu0 %v472_v63  ;;  %v625_v4 = vld [vmem:[%s6522_s11 + $0x868] sm:$0xff]  ;;  %v368_v6 = vld [vmem:[%s6522_s11 + $0x60] sm:$0xff] }
  0xf0   : > { %1268 = vmatpush1.msra.mxu1 %v728_v18  ;;  %1198 = vmatprep.subr.mxu0 %v465_v1  ;;  %v624_v7 = vld [vmem:[%s6522_s11 + $0x860] sm:$0xff]  ;;  %v361_v8 = vld [vmem:[%s6522_s11 + $0x28] sm:$0xff] }
  0xf1   : > { %1269 = vmatprep.subr.mxu1 %v721_v19  ;;  %1199 = vmatpush1.msra.mxu0 %v464_v2  ;;  %v617_v9 = vld [vmem:[%s6522_s11 + $0x828] sm:$0xff]  ;;  %v360_v10 = vld [vmem:[%s6522_s11 + $0x20] sm:$0xff] }
  0xf2   : > { %1270 = vmatpush1.msra.mxu1 %v720_v20  ;;  %1200 = vmatprep.subr.mxu0 %v457_v21  ;;  %v616_v11 = vld [vmem:[%s6522_s11 + $0x820] sm:$0xff]  ;;  %v609_v12 = vld [vmem:[%s6522_s11 + $0x7e8] sm:$0xff] }
  0xf3   : > { %1271 = vmatprep.subr.mxu1 %v713_v5  ;;  %1201 = vmatpush1.msra.mxu0 %v456_v22  ;;  %v865_v13 = vld [vmem:[%s6522_s11 + $0xfe8] sm:$0xff]  ;;  %v608_v14 = vld [vmem:[%s6522_s11 + $0x7e0] sm:$0xff] }
  0xf4   : > { %1272 = vmatpush1.msra.mxu1 %v712_v23  ;;  %1202 = vmatprep.subr.mxu0 %v449_v24  ;;  %v864_v15 = vld [vmem:[%s6522_s11 + $0xfe0] sm:$0xff]  ;;  %v601_v16 = vld [vmem:[%s6522_s11 + $0x7a8] sm:$0xff] }
  0xf5   : > { %1273 = vmatprep.subr.mxu1 %v705_v25  ;;  %1203 = vmatpush1.msra.mxu0 %v448_v26  ;;  %v857_v17 = vld [vmem:[%s6522_s11 + $0xfa8] sm:$0xff]  ;;  %v600_v63 = vld [vmem:[%s6522_s11 + $0x7a0] sm:$0xff] }
  0xf6   : > { %1274 = vmatpush1.msra.mxu1 %v704_v27  ;;  %1204 = vmatprep.subr.mxu0 %v441_v28  ;;  %v856_v18 = vld [vmem:[%s6522_s11 + $0xfa0] sm:$0xff]  ;;  %v593_v1 = vld [vmem:[%s6522_s11 + $0x768] sm:$0xff] }
  0xf7   : > { %1275 = vmatprep.subr.mxu1 %v697_v29  ;;  %1205 = vmatpush1.msra.mxu0 %v440_v30  ;;  %v849_v19 = vld [vmem:[%s6522_s11 + $0xf68] sm:$0xff]  ;;  %v592_v2 = vld [vmem:[%s6522_s11 + $0x760] sm:$0xff] }
  0xf8   : > { %1276 = vmatpush1.msra.mxu1 %v696_v31  ;;  %1206 = vmatprep.subr.mxu0 %v433_v32  ;;  %v848_v20 = vld [vmem:[%s6522_s11 + $0xf60] sm:$0xff]  ;;  %v585_v21 = vld [vmem:[%s6522_s11 + $0x728] sm:$0xff] }
  0xf9   : > { %1277 = vmatprep.subr.mxu1 %v689_v33  ;;  %1207 = vmatpush1.msra.mxu0 %v432_v34  ;;  %v841_v5 = vld [vmem:[%s6522_s11 + $0xf28] sm:$0xff]  ;;  %v584_v22 = vld [vmem:[%s6522_s11 + $0x720] sm:$0xff] }
  0xfa   : > { %1278 = vmatpush1.msra.mxu1 %v688_v35  ;;  %1208 = vmatprep.subr.mxu0 %v425_v36  ;;  %v840_v23 = vld [vmem:[%s6522_s11 + $0xf20] sm:$0xff]  ;;  %v577_v24 = vld [vmem:[%s6522_s11 + $0x6e8] sm:$0xff] }
  0xfb   : > { %1279 = vmatprep.subr.mxu1 %v681_v37  ;;  %1209 = vmatpush1.msra.mxu0 %v424_v38  ;;  %v833_v25 = vld [vmem:[%s6522_s11 + $0xee8] sm:$0xff]  ;;  %v576_v26 = vld [vmem:[%s6522_s11 + $0x6e0] sm:$0xff] }
  0xfc   : > { %1280 = vmatpush1.msra.mxu1 %v680_v39  ;;  %1210 = vmatprep.subr.mxu0 %v417_v40  ;;  %v832_v27 = vld [vmem:[%s6522_s11 + $0xee0] sm:$0xff]  ;;  %v569_v28 = vld [vmem:[%s6522_s11 + $0x6a8] sm:$0xff] }
  0xfd   : > { %1281 = vmatprep.subr.mxu1 %v673_v41  ;;  %1211 = vmatpush1.msra.mxu0 %v416_v42  ;;  %v825_v29 = vld [vmem:[%s6522_s11 + $0xea8] sm:$0xff]  ;;  %v568_v30 = vld [vmem:[%s6522_s11 + $0x6a0] sm:$0xff] }
  0xfe   : > { %1282 = vmatpush1.msra.mxu1 %v672_v43  ;;  %1212 = vmatprep.subr.mxu0 %v409_v44  ;;  %v824_v31 = vld [vmem:[%s6522_s11 + $0xea0] sm:$0xff]  ;;  %v561_v32 = vld [vmem:[%s6522_s11 + $0x668] sm:$0xff] }
  0xff   : > { %1283 = vmatprep.subr.mxu1 %v665_v45  ;;  %1213 = vmatpush1.msra.mxu0 %v408_v46  ;;  %v817_v33 = vld [vmem:[%s6522_s11 + $0xe68] sm:$0xff]  ;;  %v560_v34 = vld [vmem:[%s6522_s11 + $0x660] sm:$0xff] }
 0x100   : > { %1284 = vmatpush1.msra.mxu1 %v664_v47  ;;  %1214 = vmatprep.subr.mxu0 %v401_v48  ;;  %v816_v35 = vld [vmem:[%s6522_s11 + $0xe60] sm:$0xff]  ;;  %v553_v36 = vld [vmem:[%s6522_s11 + $0x628] sm:$0xff] }
 0x101   : > { %1285 = vmatprep.subr.mxu1 %v657_v49  ;;  %1215 = vmatpush1.msra.mxu0 %v400_v50  ;;  %v809_v37 = vld [vmem:[%s6522_s11 + $0xe28] sm:$0xff]  ;;  %v552_v38 = vld [vmem:[%s6522_s11 + $0x620] sm:$0xff] }
 0x102   : > { %1286 = vmatpush1.msra.mxu1 %v656_v51  ;;  %1216 = vmatprep.subr.mxu0 %v393_v52  ;;  %v808_v39 = vld [vmem:[%s6522_s11 + $0xe20] sm:$0xff]  ;;  %v545_v40 = vld [vmem:[%s6522_s11 + $0x5e8] sm:$0xff] }
 0x103   : > { %1287 = vmatprep.subr.mxu1 %v649_v53  ;;  %1217 = vmatpush1.msra.mxu0 %v392_v54  ;;  %v801_v41 = vld [vmem:[%s6522_s11 + $0xde8] sm:$0xff]  ;;  %v544_v42 = vld [vmem:[%s6522_s11 + $0x5e0] sm:$0xff] }
 0x104   : > { %1288 = vmatpush1.msra.mxu1 %v648_v55  ;;  %1218 = vmatprep.subr.mxu0 %v385_v56  ;;  %v800_v43 = vld [vmem:[%s6522_s11 + $0xde0] sm:$0xff]  ;;  %v537_v44 = vld [vmem:[%s6522_s11 + $0x5a8] sm:$0xff] }
 0x105   : > { %1289 = vmatprep.subr.mxu1 %v641_v57  ;;  %1219 = vmatpush1.msra.mxu0 %v384_v58  ;;  %v793_v45 = vld [vmem:[%s6522_s11 + $0xda8] sm:$0xff]  ;;  %v536_v46 = vld [vmem:[%s6522_s11 + $0x5a0] sm:$0xff] }
 0x106   : > { %1290 = vmatpush1.msra.mxu1 %v640_v59  ;;  %1220 = vmatprep.subr.mxu0 %v377_v60  ;;  %v792_v47 = vld [vmem:[%s6522_s11 + $0xda0] sm:$0xff]  ;;  %v529_v48 = vld [vmem:[%s6522_s11 + $0x568] sm:$0xff] }
 0x107   : > { %1291 = vmatprep.subr.mxu1 %v633_v61  ;;  %1221 = vmatpush1.msra.mxu0 %v376_v62  ;;  %v785_v49 = vld [vmem:[%s6522_s11 + $0xd68] sm:$0xff]  ;;  %v528_v50 = vld [vmem:[%s6522_s11 + $0x560] sm:$0xff] }
 0x108   : > { %1292 = vmatpush1.msra.mxu1 %v632_v0  ;;  %1222 = vmatprep.subr.mxu0 %v369_v3  ;;  %v784_v51 = vld [vmem:[%s6522_s11 + $0xd60] sm:$0xff]  ;;  %v521_v52 = vld [vmem:[%s6522_s11 + $0x528] sm:$0xff] }
 0x109   : > { %1293 = vmatprep.subr.mxu1 %v625_v4  ;;  %1223 = vmatpush1.msra.mxu0 %v368_v6  ;;  %v777_v53 = vld [vmem:[%s6522_s11 + $0xd28] sm:$0xff]  ;;  %v520_v54 = vld [vmem:[%s6522_s11 + $0x520] sm:$0xff] }
 0x10a   : > { %1294 = vmatpush1.msra.mxu1 %v624_v7  ;;  %1224 = vmatprep.subr.mxu0 %v361_v8  ;;  %v776_v55 = vld [vmem:[%s6522_s11 + $0xd20] sm:$0xff]  ;;  %v513_v56 = vld [vmem:[%s6522_s11 + $0x4e8] sm:$0xff] }
 0x10b   : > { %1295 = vmatprep.subr.mxu1 %v617_v9  ;;  %1225 = vmatpush1.msra.mxu0 %v360_v10  ;;  %v769_v57 = vld [vmem:[%s6522_s11 + $0xce8] sm:$0xff]  ;;  %v512_v58 = vld [vmem:[%s6522_s11 + $0x4e0] sm:$0xff] }
 0x10c   : > { %1296 = vmatpush1.msra.mxu1 %v616_v11  ;;  %1226 = vmatprep.subr.mxu0 %v609_v12  ;;  %v768_v59 = vld [vmem:[%s6522_s11 + $0xce0] sm:$0xff]  ;;  %v505_v60 = vld [vmem:[%s6522_s11 + $0x4a8] sm:$0xff]  ;;  %v483_v12 = vld [vmem:[%s6522_s11 + $0x3f8] sm:$0xff] }
 0x10d   : > { %1297 = vmatprep.subr.mxu1 %v865_v13  ;;  %1227 = vmatpush2.msra.mxu0 %v608_v14  ;;  %v761_v61 = vld [vmem:[%s6522_s11 + $0xca8] sm:$0xff]  ;;  %v504_v62 = vld [vmem:[%s6522_s11 + $0x4a0] sm:$0xff]  ;;  %v739_v14 = vld [vmem:[%s6522_s11 + $0xbf8] sm:$0xff] }
 0x10e   : > { %1298 = vmatpush2.msra.mxu1 %v864_v15  ;;  %1228 = vmatprep.subr.mxu0 %v601_v16  ;;  %v760_v0 = vld [vmem:[%s6522_s11 + $0xca0] sm:$0xff]  ;;  %v497_v3 = vld [vmem:[%s6522_s11 + $0x468] sm:$0xff]  ;;  %v482_v16 = vld [vmem:[%s6522_s11 + $0x3f0] sm:$0xff] }
 0x10f   : > { %1299 = vmatprep.subr.mxu1 %v857_v17  ;;  %1229 = vmatpush2.msra.mxu0 %v600_v63  ;;  %v753_v4 = vld [vmem:[%s6522_s11 + $0xc68] sm:$0xff]  ;;  %v496_v6 = vld [vmem:[%s6522_s11 + $0x460] sm:$0xff]  ;;  %v738_v17 = vld [vmem:[%s6522_s11 + $0xbf0] sm:$0xff] }
 0x110   : > { %1300 = vmatpush2.msra.mxu1 %v856_v18  ;;  %1230 = vmatprep.subr.mxu0 %v593_v1  ;;  %v752_v7 = vld [vmem:[%s6522_s11 + $0xc60] sm:$0xff]  ;;  %v489_v8 = vld [vmem:[%s6522_s11 + $0x428] sm:$0xff]  ;;  %v6949_v63 = vld [vmem:[#allocation2 + $0x18] sm:$0xff] }
 0x111   : > { %1301 = vmatprep.subr.mxu1 %v849_v19  ;;  %1231 = vmatpush2.msra.mxu0 %v592_v2  ;;  %v745_v9 = vld [vmem:[%s6522_s11 + $0xc28] sm:$0xff]  ;;  %v488_v10 = vld [vmem:[%s6522_s11 + $0x420] sm:$0xff]  ;;  %v475_v18 = vld [vmem:[%s6522_s11 + $0x3b8] sm:$0xff] }
 0x112   : > { %1302 = vmatpush2.msra.mxu1 %v848_v20  ;;  %1232 = vmatprep.subr.mxu0 %v585_v21  ;;  %v744_v11 = vld [vmem:[%s6522_s11 + $0xc20] sm:$0xff]  ;;  %v6940_v13 = vld [vmem:[#allocation2 + $0x8] sm:$0xff]  ;;  %v731_v1 = vld [vmem:[%s6522_s11 + $0xbb8] sm:$0xff] }
 0x113   : > { %1303 = vmatprep.subr.mxu1 %v841_v5  ;;  %1233 = vmatpush2.msra.mxu0 %v584_v22  ;;  %v6944_v15 = vld [vmem:[#allocation2] sm:$0xff]  ;;  %v6954_v19 = vld [vmem:[#allocation2 + $0x10] sm:$0xff]  ;;  %v467_v21 = vld [vmem:[%s6522_s11 + $0x378] sm:$0xff] }
 0x114   : > { %1304 = vmatpush2.msra.mxu1 %v840_v23  ;;  %1234 = vmatprep.subr.mxu0 %v577_v24  ;;  %v474_v2 = vld [vmem:[%s6522_s11 + $0x3b0] sm:$0xff]  ;;  %v723_v5 = vld [vmem:[%s6522_s11 + $0xb78] sm:$0xff] }
 0x115   : > { %1305 = vmatprep.subr.mxu1 %v833_v25  ;;  %1235 = vmatpush2.msra.mxu0 %v576_v26  ;;  %v730_v20 = vld [vmem:[%s6522_s11 + $0xbb0] sm:$0xff]  ;;  %v459_v24 = vld [vmem:[%s6522_s11 + $0x338] sm:$0xff] }
 0x116   : > { %1306 = vmatpush2.msra.mxu1 %v832_v27  ;;  %1236 = vmatprep.subr.mxu0 %v569_v28  ;;  %v466_v22 = vld [vmem:[%s6522_s11 + $0x370] sm:$0xff]  ;;  %v715_v25 = vld [vmem:[%s6522_s11 + $0xb38] sm:$0xff] }
 0x117   : > { %1307 = vmatprep.subr.mxu1 %v825_v29  ;;  %1237 = vmatpush2.msra.mxu0 %v568_v30  ;;  %v722_v23 = vld [vmem:[%s6522_s11 + $0xb70] sm:$0xff]  ;;  %v451_v28 = vld [vmem:[%s6522_s11 + $0x2f8] sm:$0xff] }
 0x118   : > { %1308 = vmatpush2.msra.mxu1 %v824_v31  ;;  %1238 = vmatprep.subr.mxu0 %v561_v32  ;;  %v458_v26 = vld [vmem:[%s6522_s11 + $0x330] sm:$0xff]  ;;  %v707_v29 = vld [vmem:[%s6522_s11 + $0xaf8] sm:$0xff] }
 0x119   : > { %1309 = vmatprep.subr.mxu1 %v817_v33  ;;  %1239 = vmatpush2.msra.mxu0 %v560_v34  ;;  %v714_v27 = vld [vmem:[%s6522_s11 + $0xb30] sm:$0xff]  ;;  %v443_v32 = vld [vmem:[%s6522_s11 + $0x2b8] sm:$0xff] }
 0x11a   : > { %1310 = vmatpush2.msra.mxu1 %v816_v35  ;;  %1240 = vmatprep.subr.mxu0 %v553_v36  ;;  %v450_v30 = vld [vmem:[%s6522_s11 + $0x2f0] sm:$0xff]  ;;  %v699_v33 = vld [vmem:[%s6522_s11 + $0xab8] sm:$0xff] }
 0x11b   : > { %1311 = vmatprep.subr.mxu1 %v809_v37  ;;  %1241 = vmatpush2.msra.mxu0 %v552_v38  ;;  %v706_v31 = vld [vmem:[%s6522_s11 + $0xaf0] sm:$0xff]  ;;  %v435_v36 = vld [vmem:[%s6522_s11 + $0x278] sm:$0xff] }
 0x11c   : > { %1312 = vmatpush2.msra.mxu1 %v808_v39  ;;  %1242 = vmatprep.subr.mxu0 %v545_v40  ;;  %v442_v34 = vld [vmem:[%s6522_s11 + $0x2b0] sm:$0xff]  ;;  %v691_v37 = vld [vmem:[%s6522_s11 + $0xa78] sm:$0xff] }
 0x11d   : > { %1313 = vmatprep.subr.mxu1 %v801_v41  ;;  %1243 = vmatpush2.msra.mxu0 %v544_v42  ;;  %v698_v35 = vld [vmem:[%s6522_s11 + $0xab0] sm:$0xff]  ;;  %v427_v40 = vld [vmem:[%s6522_s11 + $0x238] sm:$0xff] }
 0x11e   : > { %1314 = vmatpush2.msra.mxu1 %v800_v43  ;;  %1244 = vmatprep.subr.mxu0 %v537_v44  ;;  %v434_v38 = vld [vmem:[%s6522_s11 + $0x270] sm:$0xff]  ;;  %v683_v41 = vld [vmem:[%s6522_s11 + $0xa38] sm:$0xff] }
 0x11f   : > { %1315 = vmatprep.subr.mxu1 %v793_v45  ;;  %1245 = vmatpush2.msra.mxu0 %v536_v46  ;;  %v690_v39 = vld [vmem:[%s6522_s11 + $0xa70] sm:$0xff]  ;;  %v419_v44 = vld [vmem:[%s6522_s11 + $0x1f8] sm:$0xff] }
 0x120   : > { %1316 = vmatpush2.msra.mxu1 %v792_v47  ;;  %1246 = vmatprep.subr.mxu0 %v529_v48  ;;  %v426_v42 = vld [vmem:[%s6522_s11 + $0x230] sm:$0xff]  ;;  %v675_v45 = vld [vmem:[%s6522_s11 + $0x9f8] sm:$0xff] }
 0x121   : > { %1317 = vmatprep.subr.mxu1 %v785_v49  ;;  %1247 = vmatpush2.msra.mxu0 %v528_v50  ;;  %v682_v43 = vld [vmem:[%s6522_s11 + $0xa30] sm:$0xff]  ;;  %v411_v48 = vld [vmem:[%s6522_s11 + $0x1b8] sm:$0xff] }
 0x122   : > { %1318 = vmatpush2.msra.mxu1 %v784_v51  ;;  %1248 = vmatprep.subr.mxu0 %v521_v52  ;;  %v418_v46 = vld [vmem:[%s6522_s11 + $0x1f0] sm:$0xff]  ;;  %v667_v49 = vld [vmem:[%s6522_s11 + $0x9b8] sm:$0xff] }
 0x123   : > { %1319 = vmatprep.subr.mxu1 %v777_v53  ;;  %1249 = vmatpush2.msra.mxu0 %v520_v54  ;;  %v674_v47 = vld [vmem:[%s6522_s11 + $0x9f0] sm:$0xff]  ;;  %v403_v52 = vld [vmem:[%s6522_s11 + $0x178] sm:$0xff] }
 0x124   : > { %1320 = vmatpush2.msra.mxu1 %v776_v55  ;;  %1250 = vmatprep.subr.mxu0 %v513_v56  ;;  %v410_v50 = vld [vmem:[%s6522_s11 + $0x1b0] sm:$0xff]  ;;  %v659_v53 = vld [vmem:[%s6522_s11 + $0x978] sm:$0xff] }
 0x125   : > { %1321 = vmatprep.subr.mxu1 %v769_v57  ;;  %1251 = vmatpush2.msra.mxu0 %v512_v58  ;;  %v666_v51 = vld [vmem:[%s6522_s11 + $0x9b0] sm:$0xff]  ;;  %v395_v56 = vld [vmem:[%s6522_s11 + $0x138] sm:$0xff] }
 0x126   : > { %1322 = vmatpush2.msra.mxu1 %v768_v59  ;;  %1252 = vmatprep.subr.mxu0 %v505_v60  ;;  %v402_v54 = vld [vmem:[%s6522_s11 + $0x170] sm:$0xff]  ;;  %v651_v57 = vld [vmem:[%s6522_s11 + $0x938] sm:$0xff] }
 0x127   : > { %1323 = vmatprep.subr.mxu1 %v761_v61  ;;  %1253 = vmatpush2.msra.mxu0 %v504_v62  ;;  %v658_v55 = vld [vmem:[%s6522_s11 + $0x970] sm:$0xff]  ;;  %v387_v60 = vld [vmem:[%s6522_s11 + $0xf8] sm:$0xff] }
 0x128   : > { %1324 = vmatpush2.msra.mxu1 %v760_v0  ;;  %1254 = vmatprep.subr.mxu0 %v497_v3  ;;  %v394_v58 = vld [vmem:[%s6522_s11 + $0x130] sm:$0xff]  ;;  %v643_v61 = vld [vmem:[%s6522_s11 + $0x8f8] sm:$0xff] }
 0x129   : > { %1325 = vmatprep.subr.mxu1 %v753_v4  ;;  %1255 = vmatpush2.msra.mxu0 %v496_v6  ;;  %v650_v59 = vld [vmem:[%s6522_s11 + $0x930] sm:$0xff]  ;;  %v379_v3 = vld [vmem:[%s6522_s11 + $0xb8] sm:$0xff] }
 0x12a   : > { %1326 = vmatpush2.msra.mxu1 %v752_v7  ;;  %1256 = vmatprep.subr.mxu0 %v489_v8  ;;  %v386_v62 = vld [vmem:[%s6522_s11 + $0xf0] sm:$0xff]  ;;  %v635_v4 = vld [vmem:[%s6522_s11 + $0x8b8] sm:$0xff] }
 0x12b   : > { %1327 = vmatprep.subr.mxu1 %v745_v9  ;;  %1257 = vmatpush2.msra.mxu0 %v488_v10  ;;  %v642_v0 = vld [vmem:[%s6522_s11 + $0x8f0] sm:$0xff]  ;;  %v371_v8 = vld [vmem:[%s6522_s11 + $0x78] sm:$0xff] }
 0x12c   : > { %1258 = vmatprep.mubr.f32.mxu0 %v6940_v13  ;;  %1328 = vmatpush2.msra.mxu1 %v744_v11  ;;  %v378_v6 = vld [vmem:[%s6522_s11 + $0xb0] sm:$0xff]  ;;  %v627_v9 = vld [vmem:[%s6522_s11 + $0x878] sm:$0xff] }
 0x12d   : > { %1259 = vmatmul.mubr.f32.vlgmr.msra.gmra.mxu0 %v6944_v15  ;;  %1329 = vmatprep.mubr.f32.mxu1 %v6949_v63  ;;  %v634_v7 = vld [vmem:[%s6522_s11 + $0x8b0] sm:$0xff] }
 0x12e   : > { %1336 = vmatprep.subr.mxu0 %v483_v12  ;;  %1407 = vmatprep.subr.mxu1 %v739_v14  ;;  %v370_v10 = vld [vmem:[%s6522_s11 + $0x70] sm:$0xff]  ;;  %v363_v12 = vld [vmem:[%s6522_s11 + $0x38] sm:$0xff] }
 0x12f   : > { %1330 = vmatmul.mubr.f32.vlgmr.msra.gmra.mxu1 %v6954_v19  ;;  %1337 = vmatpush1.msra.mxu0 %v482_v16  ;;  %v626_v11 = vld [vmem:[%s6522_s11 + $0x870] sm:$0xff]  ;;  %v619_v14 = vld [vmem:[%s6522_s11 + $0x838] sm:$0xff] }
 0x130   : > { %1408 = vmatpush1.msra.mxu1 %v738_v17  ;;  %1338 = vmatprep.subr.mxu0 %v475_v18  ;;  %v362_v16 = vld [vmem:[%s6522_s11 + $0x30] sm:$0xff]  ;;  %v611_v18 = vld [vmem:[%s6522_s11 + $0x7f8] sm:$0xff] }
 0x131   : > { %1409 = vmatprep.subr.mxu1 %v731_v1  ;;  %1339 = vmatpush1.msra.mxu0 %v474_v2  ;;  %v618_v17 = vld [vmem:[%s6522_s11 + $0x830] sm:$0xff]  ;;  %v867_v1 = vld [vmem:[%s6522_s11 + $0xff8] sm:$0xff] }
 0x132   : > { %1410 = vmatpush1.msra.mxu1 %v730_v20  ;;  %1340 = vmatprep.subr.mxu0 %v467_v21  ;;  %v610_v2 = vld [vmem:[%s6522_s11 + $0x7f0] sm:$0xff]  ;;  %v603_v21 = vld [vmem:[%s6522_s11 + $0x7b8] sm:$0xff] }
 0x133   : > { %1411 = vmatprep.subr.mxu1 %v723_v5  ;;  %1341 = vmatpush1.msra.mxu0 %v466_v22  ;;  %v866_v20 = vld [vmem:[%s6522_s11 + $0xff0] sm:$0xff]  ;;  %v859_v5 = vld [vmem:[%s6522_s11 + $0xfb8] sm:$0xff] }
 0x134   : > { %1412 = vmatpush1.msra.mxu1 %v722_v23  ;;  %1342 = vmatprep.subr.mxu0 %v459_v24  ;;  %v602_v22 = vld [vmem:[%s6522_s11 + $0x7b0] sm:$0xff]  ;;  %v595_v24 = vld [vmem:[%s6522_s11 + $0x778] sm:$0xff] }
 0x135   : > { %1413 = vmatprep.subr.mxu1 %v715_v25  ;;  %1343 = vmatpush1.msra.mxu0 %v458_v26  ;;  %v858_v23 = vld [vmem:[%s6522_s11 + $0xfb0] sm:$0xff]  ;;  %v851_v25 = vld [vmem:[%s6522_s11 + $0xf78] sm:$0xff] }
 0x136   : > { %1414 = vmatpush1.msra.mxu1 %v714_v27  ;;  %1344 = vmatprep.subr.mxu0 %v451_v28  ;;  %v594_v26 = vld [vmem:[%s6522_s11 + $0x770] sm:$0xff]  ;;  %v587_v28 = vld [vmem:[%s6522_s11 + $0x738] sm:$0xff] }
 0x137   : > { %1415 = vmatprep.subr.mxu1 %v707_v29  ;;  %1345 = vmatpush1.msra.mxu0 %v450_v30  ;;  %v850_v27 = vld [vmem:[%s6522_s11 + $0xf70] sm:$0xff]  ;;  %v843_v29 = vld [vmem:[%s6522_s11 + $0xf38] sm:$0xff] }
 0x138   : > { %1416 = vmatpush1.msra.mxu1 %v706_v31  ;;  %1346 = vmatprep.subr.mxu0 %v443_v32  ;;  %v586_v30 = vld [vmem:[%s6522_s11 + $0x730] sm:$0xff]  ;;  %v579_v32 = vld [vmem:[%s6522_s11 + $0x6f8] sm:$0xff] }
 0x139   : > { %1417 = vmatprep.subr.mxu1 %v699_v33  ;;  %1347 = vmatpush1.msra.mxu0 %v442_v34  ;;  %v842_v31 = vld [vmem:[%s6522_s11 + $0xf30] sm:$0xff]  ;;  %v835_v33 = vld [vmem:[%s6522_s11 + $0xef8] sm:$0xff] }
 0x13a   : > { %1418 = vmatpush1.msra.mxu1 %v698_v35  ;;  %1348 = vmatprep.subr.mxu0 %v435_v36  ;;  %v578_v34 = vld [vmem:[%s6522_s11 + $0x6f0] sm:$0xff]  ;;  %v571_v36 = vld [vmem:[%s6522_s11 + $0x6b8] sm:$0xff] }
 0x13b   : > { %1419 = vmatprep.subr.mxu1 %v691_v37  ;;  %1349 = vmatpush1.msra.mxu0 %v434_v38  ;;  %v834_v35 = vld [vmem:[%s6522_s11 + $0xef0] sm:$0xff]  ;;  %v827_v37 = vld [vmem:[%s6522_s11 + $0xeb8] sm:$0xff] }
 0x13c   : > { %1420 = vmatpush1.msra.mxu1 %v690_v39  ;;  %1350 = vmatprep.subr.mxu0 %v427_v40  ;;  %v570_v38 = vld [vmem:[%s6522_s11 + $0x6b0] sm:$0xff]  ;;  %v563_v40 = vld [vmem:[%s6522_s11 + $0x678] sm:$0xff] }
 0x13d   : > { %1421 = vmatprep.subr.mxu1 %v683_v41  ;;  %1351 = vmatpush1.msra.mxu0 %v426_v42  ;;  %v826_v39 = vld [vmem:[%s6522_s11 + $0xeb0] sm:$0xff]  ;;  %v819_v41 = vld [vmem:[%s6522_s11 + $0xe78] sm:$0xff] }
 0x13e   : > { %1422 = vmatpush1.msra.mxu1 %v682_v43  ;;  %1352 = vmatprep.subr.mxu0 %v419_v44  ;;  %v562_v42 = vld [vmem:[%s6522_s11 + $0x670] sm:$0xff]  ;;  %v555_v44 = vld [vmem:[%s6522_s11 + $0x638] sm:$0xff] }
 0x13f   : > { %1423 = vmatprep.subr.mxu1 %v675_v45  ;;  %1353 = vmatpush1.msra.mxu0 %v418_v46  ;;  %v818_v43 = vld [vmem:[%s6522_s11 + $0xe70] sm:$0xff]  ;;  %v811_v45 = vld [vmem:[%s6522_s11 + $0xe38] sm:$0xff]  ;;  %v870_v46 = vlaneseq }
 0x140   : > { %1424 = vmatpush1.msra.mxu1 %v674_v47  ;;  %1354 = vmatprep.subr.mxu0 %v411_v48  ;;  %v554_v47 = vld [vmem:[%s6522_s11 + $0x630] sm:$0xff] }
 0x141   : > { %1425 = vmatprep.subr.mxu1 %v667_v49  ;;  %1355 = vmatpush1.msra.mxu0 %v410_v50  ;;  %v810_v48 = vld [vmem:[%s6522_s11 + $0xe30] sm:$0xff]  ;;  %v547_v49 = vld [vmem:[%s6522_s11 + $0x5f8] sm:$0xff] }
 0x142   : > { %1426 = vmatpush1.msra.mxu1 %v666_v51  ;;  %1356 = vmatprep.subr.mxu0 %v403_v52  ;;  %v803_v50 = vld [vmem:[%s6522_s11 + $0xdf8] sm:$0xff]  ;;  %v546_v51 = vld [vmem:[%s6522_s11 + $0x5f0] sm:$0xff] }
 0x143   : > { %1427 = vmatprep.subr.mxu1 %v659_v53  ;;  %1357 = vmatpush1.msra.mxu0 %v402_v54  ;;  %v802_v52 = vld [vmem:[%s6522_s11 + $0xdf0] sm:$0xff]  ;;  %v539_v53 = vld [vmem:[%s6522_s11 + $0x5b8] sm:$0xff] }
 0x144   : > { %1428 = vmatpush1.msra.mxu1 %v658_v55  ;;  %1358 = vmatprep.subr.mxu0 %v395_v56  ;;  %v795_v54 = vld [vmem:[%s6522_s11 + $0xdb8] sm:$0xff]  ;;  %v7053_v55 = vshrl.u32 %v870_v46, 7  ;;  %v538_v56 = vld [vmem:[%s6522_s11 + $0x5b0] sm:$0xff] }
 0x145   : > { %1429 = vmatprep.subr.mxu1 %v651_v57  ;;  %1359 = vmatpush1.msra.mxu0 %v394_v58  ;;  %v794_v57 = vld [vmem:[%s6522_s11 + $0xdb0] sm:$0xff]  ;;  %v531_v58 = vld [vmem:[%s6522_s11 + $0x578] sm:$0xff] }
 0x146   : > { %1430 = vmatpush1.msra.mxu1 %v650_v59  ;;  %1360 = vmatprep.subr.mxu0 %v387_v60  ;;  %v787_v59 = vld [vmem:[%s6522_s11 + $0xd78] sm:$0xff]  ;;  %v530_v60 = vld [vmem:[%s6522_s11 + $0x570] sm:$0xff] }
 0x147   : > { %1431 = vmatprep.subr.mxu1 %v643_v61  ;;  %1361 = vmatpush1.msra.mxu0 %v386_v62  ;;  %v786_v61 = vld [vmem:[%s6522_s11 + $0xd70] sm:$0xff]  ;;  %v523_v62 = vld [vmem:[%s6522_s11 + $0x538] sm:$0xff] }
 0x148   : > { %1432 = vmatpush1.msra.mxu1 %v642_v0  ;;  %1362 = vmatprep.subr.mxu0 %v379_v3  ;;  %v779_v0 = vld [vmem:[%s6522_s11 + $0xd38] sm:$0xff]  ;;  %v872_v3 = vsub.s32 0, %v7053_v55 }
 0x149   : > { %1433 = vmatprep.subr.mxu1 %v635_v4  ;;  %1363 = vmatpush1.msra.mxu0 %v378_v6  ;;  %v522_v4 = vld [vmem:[%s6522_s11 + $0x530] sm:$0xff]  ;;  %v2207_v46 = vld [vmem:[%s6533_s22 + $0x1608] sm:$0xff] }
 0x14a   : > { %1434 = vmatpush1.msra.mxu1 %v634_v7  ;;  %1364 = vmatprep.subr.mxu0 %v371_v8  ;;  %v778_v6 = vld [vmem:[%s6522_s11 + $0xd30] sm:$0xff]  ;;  %v7067_v7 = vld [vmem:[%s6530_s13] sm:$0xff]  ;;  %v515_v8 = vld [vmem:[%s6522_s11 + $0x4f8] sm:$0xff] }
 0x14b   : > { %1435 = vmatprep.subr.mxu1 %v627_v9  ;;  %1365 = vmatpush1.msra.mxu0 %v370_v10  ;;  %v771_v9 = vld [vmem:[%s6522_s11 + $0xcf8] sm:$0xff]  ;;  %v876_v10 = vsub.s32 1, %v7053_v55 }
 0x14c   : > { %1436 = vmatpush1.msra.mxu1 %v626_v11  ;;  %1366 = vmatprep.subr.mxu0 %v363_v12  ;;  %v514_v11 = vld [vmem:[%s6522_s11 + $0x4f0] sm:$0xff] }
 0x14d   : > { %1437 = vmatprep.subr.mxu1 %v619_v14  ;;  %1367 = vmatpush1.msra.mxu0 %v362_v16  ;;  %v770_v12 = vld [vmem:[%s6522_s11 + $0xcf0] sm:$0xff]  ;;  %v507_v14 = vld [vmem:[%s6522_s11 + $0x4b8] sm:$0xff] }
 0x14e   : > { %1438 = vmatpush1.msra.mxu1 %v618_v17  ;;  %1368 = vmatprep.subr.mxu0 %v611_v18  ;;  %v763_v16 = vld [vmem:[%s6522_s11 + $0xcb8] sm:$0xff]  ;;  %v873_v17 = vrot.slane %v7067_v7, %v872_v3  ;;  %v506_v18 = vld [vmem:[%s6522_s11 + $0x4b0] sm:$0xff] }
 0x14f   : > { %1439 = vmatprep.subr.mxu1 %v867_v1  ;;  %1369 = vmatpush2.msra.mxu0 %v610_v2  ;;  %v762_v1 = vld [vmem:[%s6522_s11 + $0xcb0] sm:$0xff]  ;;  %v499_v2 = vld [vmem:[%s6522_s11 + $0x478] sm:$0xff] }
 0x150   : > { %1440 = vmatpush2.msra.mxu1 %v866_v20  ;;  %1370 = vmatprep.subr.mxu0 %v603_v21  ;;  %v755_v20 = vld [vmem:[%s6522_s11 + $0xc78] sm:$0xff]  ;;  %v877_v21 = vrot.slane %v7067_v7, %v876_v10  ;;  %v2126_v10 = vld [vmem:[%s6533_s22 + $0x1380] sm:$0xff] }
 0x151   : > { %1441 = vmatprep.subr.mxu1 %v859_v5  ;;  %1371 = vmatpush2.msra.mxu0 %v602_v22  ;;  %v498_v5 = vld [vmem:[%s6522_s11 + $0x470] sm:$0xff]  ;;  %v1615_v3 = vld [vmem:[%s6533_s22 + $0x388] sm:$0xff] }
 0x152   : > { %1442 = vmatpush2.msra.mxu1 %v858_v23  ;;  %1372 = vmatprep.subr.mxu0 %v595_v24  ;;  %v754_v22 = vld [vmem:[%s6522_s11 + $0xc70] sm:$0xff]  ;;  %v491_v24 = vld [vmem:[%s6522_s11 + $0x438] sm:$0xff] }
 0x153   : > { %1443 = vmatprep.subr.mxu1 %v851_v25  ;;  %1373 = vmatpush2.msra.mxu0 %v594_v26  ;;  %v747_v25 = vld [vmem:[%s6522_s11 + $0xc38] sm:$0xff] }
 0x154   : > { %1444 = vmatpush2.msra.mxu1 %v850_v27  ;;  %1374 = vmatprep.subr.mxu0 %v587_v28  ;;  %v490_v27 = vld [vmem:[%s6522_s11 + $0x430] sm:$0xff] }
 0x155   : > { %1445 = vmatprep.subr.mxu1 %v843_v29  ;;  %1375 = vmatpush2.msra.mxu0 %v586_v30  ;;  %v746_v30 = vld [vmem:[%s6522_s11 + $0xc30] sm:$0xff] }
 0x156   : > { %1446 = vmatpush2.msra.mxu1 %v842_v31  ;;  %1376 = vmatprep.subr.mxu0 %v579_v32 }
 0x157   : > { %1447 = vmatprep.subr.mxu1 %v835_v33  ;;  %1377 = vmatpush2.msra.mxu0 %v578_v34  ;;  %v1743_v34 = vld [vmem:[%s6533_s22 + $0x788] sm:$0xff] }
 0x158   : > { %1448 = vmatpush2.msra.mxu1 %v834_v35  ;;  %1378 = vmatprep.subr.mxu0 %v571_v36  ;;  %v2255_v36 = vld [vmem:[%s6533_s22 + $0x1788] sm:$0xff] }
 0x159   : > { %1449 = vmatprep.subr.mxu1 %v827_v37  ;;  %1379 = vmatpush2.msra.mxu0 %v570_v38  ;;  %v1742_v37 = vld [vmem:[%s6533_s22 + $0x780] sm:$0xff]  ;;  %v1727_v38 = vld [vmem:[%s6533_s22 + $0x708] sm:$0xff] }
 0x15a   : > { %1450 = vmatpush2.msra.mxu1 %v826_v39  ;;  %1380 = vmatprep.subr.mxu0 %v563_v40  ;;  %v1726_v40 = vld [vmem:[%s6533_s22 + $0x700] sm:$0xff] }
 0x15b   : > { %1451 = vmatprep.subr.mxu1 %v819_v41  ;;  %1381 = vmatpush2.msra.mxu0 %v562_v42  ;;  %v2239_v41 = vld [vmem:[%s6533_s22 + $0x1708] sm:$0xff] }
 0x15c   : > { %1452 = vmatpush2.msra.mxu1 %v818_v43  ;;  %1382 = vmatprep.subr.mxu0 %v555_v44  ;;  %v2223_v42 = vld [vmem:[%s6533_s22 + $0x1688] sm:$0xff]  ;;  %v2222_v44 = vld [vmem:[%s6533_s22 + $0x1680] sm:$0xff] }
 0x15d   : > { %1453 = vmatprep.subr.mxu1 %v811_v45  ;;  %1383 = vmatpush2.msra.mxu0 %v554_v47  ;;  %v1695_v43 = vld [vmem:[%s6533_s22 + $0x608] sm:$0xff]  ;;  %v1694_v45 = vld [vmem:[%s6533_s22 + $0x600] sm:$0xff] }
 0x15e   : > { %1454 = vmatpush2.msra.mxu1 %v810_v48  ;;  %1384 = vmatprep.subr.mxu0 %v547_v49  ;;  %v1679_v47 = vld [vmem:[%s6533_s22 + $0x588] sm:$0xff]  ;;  %v2206_v48 = vld [vmem:[%s6533_s22 + $0x1600] sm:$0xff] }
 0x15f   : > { %1455 = vmatprep.subr.mxu1 %v803_v50  ;;  %1385 = vmatpush2.msra.mxu0 %v546_v51  ;;  %v1678_v49 = vld [vmem:[%s6533_s22 + $0x580] sm:$0xff]  ;;  %v2191_v50 = vld [vmem:[%s6533_s22 + $0x1588] sm:$0xff] }
 0x160   : > { %1456 = vmatpush2.msra.mxu1 %v802_v52  ;;  %1386 = vmatprep.subr.mxu0 %v539_v53  ;;  %v1663_v51 = vld [vmem:[%s6533_s22 + $0x508] sm:$0xff]  ;;  %v2190_v52 = vld [vmem:[%s6533_s22 + $0x1580] sm:$0xff] }
 0x161   : > { %1457 = vmatprep.subr.mxu1 %v795_v54  ;;  %1387 = vmatpush2.msra.mxu0 %v538_v56  ;;  %v1662_v53 = vld [vmem:[%s6533_s22 + $0x500] sm:$0xff]  ;;  %v2175_v54 = vld [vmem:[%s6533_s22 + $0x1508] sm:$0xff] }
 0x162   : > { %1458 = vmatpush2.msra.mxu1 %v794_v57  ;;  %1388 = vmatprep.subr.mxu0 %v531_v58  ;;  %v1647_v56 = vld [vmem:[%s6533_s22 + $0x488] sm:$0xff]  ;;  %v2174_v57 = vld [vmem:[%s6533_s22 + $0x1500] sm:$0xff] }
 0x163   : > { %1459 = vmatprep.subr.mxu1 %v787_v59  ;;  %1389 = vmatpush2.msra.mxu0 %v530_v60  ;;  %v1646_v58 = vld [vmem:[%s6533_s22 + $0x480] sm:$0xff]  ;;  %v2159_v59 = vld [vmem:[%s6533_s22 + $0x1488] sm:$0xff] }
 0x164   : > { %1460 = vmatpush2.msra.mxu1 %v786_v61  ;;  %1390 = vmatprep.subr.mxu0 %v523_v62  ;;  %v1631_v60 = vld [vmem:[%s6533_s22 + $0x408] sm:$0xff]  ;;  %v2158_v61 = vld [vmem:[%s6533_s22 + $0x1480] sm:$0xff] }
 0x165   : > { %1461 = vmatprep.subr.mxu1 %v779_v0  ;;  %1391 = vmatpush2.msra.mxu0 %v522_v4  ;;  %v1630_v62 = vld [vmem:[%s6533_s22 + $0x400] sm:$0xff]  ;;  %v2143_v0 = vld [vmem:[%s6533_s22 + $0x1408] sm:$0xff] }
 0x166   : > { %1462 = vmatpush2.msra.mxu1 %v778_v6  ;;  %1392 = vmatprep.subr.mxu0 %v515_v8  ;;  %v2142_v4 = vld [vmem:[%s6533_s22 + $0x1400] sm:$0xff]  ;;  %v2127_v8 = vld [vmem:[%s6533_s22 + $0x1388] sm:$0xff] }
 0x167   : > { %1463 = vmatprep.subr.mxu1 %v771_v9  ;;  %1393 = vmatpush2.msra.mxu0 %v514_v11  ;;  %v1614_v6 = vld [vmem:[%s6533_s22 + $0x380] sm:$0xff]  ;;  %v1599_v9 = vld [vmem:[%s6533_s22 + $0x308] sm:$0xff] }
 0x168   : > { %1464 = vmatpush2.msra.mxu1 %v770_v12  ;;  %1394 = vmatprep.subr.mxu0 %v507_v14  ;;  %v1598_v11 = vld [vmem:[%s6533_s22 + $0x300] sm:$0xff]  ;;  %v2111_v12 = vld [vmem:[%s6533_s22 + $0x1308] sm:$0xff] }
 0x169   : > { %1465 = vmatprep.subr.mxu1 %v763_v16  ;;  %v976_v23 = vpop.f32.mrf.mxu0  ;;  %1395 = vmatpush2.msra.mxu0 %v506_v18  ;;  %v1583_v14 = vld [vmem:[%s6533_s22 + $0x288] sm:$0xff]  ;;  %v2110_v16 = vld [vmem:[%s6533_s22 + $0x1300] sm:$0xff] }
 0x16a   : > { %1466 = vmatpush2.msra.mxu1 %v762_v1  ;;  %v977_v26 = vadd.f32 %v976_v23, %v873_v17  ;;  %1396 = vmatprep.subr.mxu0 %v499_v2  ;;  %v1582_v17 = vld [vmem:[%s6533_s22 + $0x280] sm:$0xff]  ;;  %v2095_v18 = vld [vmem:[%s6533_s22 + $0x1288] sm:$0xff] }
 0x16b   : > { %1467 = vmatprep.subr.mxu1 %v755_v20  ;;  %v1047_v28 = vpop.f32.mrf.mxu1  ;;  %v978_v29 = vpop.f32.mrf.mxu0  ;;  %1397 = vmatpush2.msra.mxu0 %v498_v5  ;;  %v1567_v1 = vld [vmem:[%s6533_s22 + $0x208] sm:$0xff]  ;;  %v2094_v2 = vld [vmem:[%s6533_s22 + $0x1280] sm:$0xff] }
 0x16c   : > { %1468 = vmatpush2.msra.mxu1 %v754_v22  ;;  %v7088_v31 = vadd.f32 %v1047_v28, %v977_v26  ;;  %v979_v32 = vadd.f32 %v978_v29, %v877_v21  ;;  %1398 = vmatprep.subr.mxu0 %v491_v24  ;;  %v1566_v20 = vld [vmem:[%s6533_s22 + $0x200] sm:$0xff]  ;;  %v2079_v21 = vld [vmem:[%s6533_s22 + $0x1208] sm:$0xff] }
 0x16d   : > { %1469 = vmatprep.subr.mxu1 %v747_v25  ;;  %v1049_v33 = vpop.f32.mrf.mxu1  ;;  %1399 = vmatpush2.msra.mxu0 %v490_v27  ;;  %v1551_v5 = vld [vmem:[%s6533_s22 + $0x188] sm:$0xff]  ;;  %v2078_v22 = vld [vmem:[%s6533_s22 + $0x1200] sm:$0xff] }
 0x16e   : > { %1400 = vmatprep.mubr.f32.mxu0 %v6940_v13  ;;  %v1050_v35 = vadd.f32 %v1049_v33, %v979_v32  ;;  %1470 = vmatpush2.msra.mxu1 %v746_v30  ;;  %v2254_v13 = vld [vmem:[%s6533_s22 + $0x1780] sm:$0xff]  ;;  %v2063_v24 = vld [vmem:[%s6533_s22 + $0x1188] sm:$0xff] }
 0x16f   : > { %1471 = vmatprep.mubr.f32.mxu1 %v6949_v63  ;;  %1401 = vmatmul.mubr.f32.vlgmr.msra.gmra.mxu0 %v6944_v15  ;;  %v1711_v63 = vld [vmem:[%s6533_s22 + $0x688] sm:$0xff]  ;;  %v2238_v15 = vld [vmem:[%s6533_s22 + $0x1700] sm:$0xff] }
 0x170   : > { %1472 = vmatmul.mubr.f32.vlgmr.msra.gmra.mxu1 %v6954_v19  ;;  %v7098_v39 = vmax.f32 %v1050_v35, 0.0  ;;  %3550 = vmatprep.subr.mxu0 %v1743_v34  ;;  %v1710_v19 = vld [vmem:[%s6533_s22 + $0x680] sm:$0xff]  ;;  %v1535_v25 = vld [vmem:[%s6533_s22 + $0x108] sm:$0xff] }
 0x171   : > { %3621 = vmatprep.subr.mxu1 %v2255_v36  ;;  %3551 = vmatpush1.msra.mxu0 %v1742_v37  ;;  %v1550_v23 = vld [vmem:[%s6533_s22 + $0x180] sm:$0xff]  ;;  %v2047_v28 = vld [vmem:[%s6533_s22 + $0x1108] sm:$0xff] }
 0x172   : > { %3614 = vmatprep.mubr.f32.mxu0 %v7098_v39  ;;  %3552 = vmatprep.subr.mxu0 %v1727_v38  ;;  %v2062_v26 = vld [vmem:[%s6533_s22 + $0x1180] sm:$0xff]  ;;  %v1519_v29 = vld [vmem:[%s6533_s22 + $0x88] sm:$0xff] }
 0x173   : > { %3622 = vmatpush1.msra.mxu1 %v2254_v13  ;;  %3553 = vmatpush1.msra.mxu0 %v1726_v40  ;;  %v1534_v27 = vld [vmem:[%s6533_s22 + $0x100] sm:$0xff]  ;;  %v2031_v33 = vld [vmem:[%s6533_s22 + $0x1088] sm:$0xff] }
 0x174   : > { %3623 = vmatprep.subr.mxu1 %v2239_v41  ;;  %3554 = vmatprep.subr.mxu0 %v1711_v63  ;;  %v2046_v30 = vld [vmem:[%s6533_s22 + $0x1100] sm:$0xff]  ;;  %v1503_v34 = vld [vmem:[%s6533_s22 + $0x8] sm:$0xff] }
 0x175   : > { %3624 = vmatpush1.msra.mxu1 %v2238_v15  ;;  %3555 = vmatpush1.msra.mxu0 %v1710_v19  ;;  %v1518_v32 = vld [vmem:[%s6533_s22 + $0x80] sm:$0xff]  ;;  %v2015_v37 = vld [vmem:[%s6533_s22 + $0x1008] sm:$0xff] }
 0x176   : > { %3625 = vmatprep.subr.mxu1 %v2223_v42  ;;  %3556 = vmatprep.subr.mxu0 %v1695_v43  ;;  %v2030_v35 = vld [vmem:[%s6533_s22 + $0x1080] sm:$0xff]  ;;  %v1999_v38 = vld [vmem:[%s6533_s22 + $0xf88] sm:$0xff] }
 0x177   : > { %3626 = vmatpush1.msra.mxu1 %v2222_v44  ;;  %3557 = vmatpush1.msra.mxu0 %v1694_v45  ;;  %v1502_v36 = vld [vmem:[%s6533_s22] sm:$0xff]  ;;  %v2511_v41 = vld [vmem:[%s6533_s22 + $0x1f88] sm:$0xff] }
 0x178   : > { %3627 = vmatprep.subr.mxu1 %v2207_v46  ;;  %3558 = vmatprep.subr.mxu0 %v1679_v47  ;;  %v2014_v13 = vld [vmem:[%s6533_s22 + $0x1000] sm:$0xff]  ;;  %v1983_v63 = vld [vmem:[%s6533_s22 + $0xf08] sm:$0xff] }
 0x179   : > { %3628 = vmatpush1.msra.mxu1 %v2206_v48  ;;  %3559 = vmatpush1.msra.mxu0 %v1678_v49  ;;  %v1998_v40 = vld [vmem:[%s6533_s22 + $0xf80] sm:$0xff]  ;;  %v2495_v42 = vld [vmem:[%s6533_s22 + $0x1f08] sm:$0xff] }
 0x17a   : > { %3629 = vmatprep.subr.mxu1 %v2191_v50  ;;  %3560 = vmatprep.subr.mxu0 %v1663_v51  ;;  %v2510_v15 = vld [vmem:[%s6533_s22 + $0x1f80] sm:$0xff]  ;;  %v1967_v43 = vld [vmem:[%s6533_s22 + $0xe88] sm:$0xff] }
 0x17b   : > { %3630 = vmatpush1.msra.mxu1 %v2190_v52  ;;  %3561 = vmatpush1.msra.mxu0 %v1662_v53  ;;  %v1982_v19 = vld [vmem:[%s6533_s22 + $0xf00] sm:$0xff]  ;;  %v2479_v46 = vld [vmem:[%s6533_s22 + $0x1e88] sm:$0xff] }
 0x17c   : > { %3631 = vmatprep.subr.mxu1 %v2175_v54  ;;  %3562 = vmatprep.subr.mxu0 %v1647_v56  ;;  %v2494_v44 = vld [vmem:[%s6533_s22 + $0x1f00] sm:$0xff]  ;;  %v1951_v47 = vld [vmem:[%s6533_s22 + $0xe08] sm:$0xff] }
 0x17d   : > { %3632 = vmatpush1.msra.mxu1 %v2174_v57  ;;  %3563 = vmatpush1.msra.mxu0 %v1646_v58  ;;  %v1966_v45 = vld [vmem:[%s6533_s22 + $0xe80] sm:$0xff]  ;;  %v2463_v50 = vld [vmem:[%s6533_s22 + $0x1e08] sm:$0xff] }
 0x17e   : > { %3633 = vmatprep.subr.mxu1 %v2159_v59  ;;  %3564 = vmatprep.subr.mxu0 %v1631_v60  ;;  %v2478_v48 = vld [vmem:[%s6533_s22 + $0x1e80] sm:$0xff]  ;;  %v1935_v51 = vld [vmem:[%s6533_s22 + $0xd88] sm:$0xff] }
 0x17f   : > { %3634 = vmatpush1.msra.mxu1 %v2158_v61  ;;  %3565 = vmatpush1.msra.mxu0 %v1630_v62  ;;  %v1950_v49 = vld [vmem:[%s6533_s22 + $0xe00] sm:$0xff]  ;;  %v2447_v54 = vld [vmem:[%s6533_s22 + $0x1d88] sm:$0xff] }
 0x180   : > { %3635 = vmatprep.subr.mxu1 %v2143_v0  ;;  %3566 = vmatprep.subr.mxu0 %v1615_v3  ;;  %v2462_v52 = vld [vmem:[%s6533_s22 + $0x1e00] sm:$0xff]  ;;  %v1919_v56 = vld [vmem:[%s6533_s22 + $0xd08] sm:$0xff] }
 0x181   : > { %3636 = vmatpush1.msra.mxu1 %v2142_v4  ;;  %3567 = vmatpush1.msra.mxu0 %v1614_v6  ;;  %v1934_v53 = vld [vmem:[%s6533_s22 + $0xd80] sm:$0xff]  ;;  %v2431_v59 = vld [vmem:[%s6533_s22 + $0x1d08] sm:$0xff] }
 0x182   : > { %3637 = vmatprep.subr.mxu1 %v2127_v8  ;;  %3568 = vmatprep.subr.mxu0 %v1599_v9  ;;  %v2446_v57 = vld [vmem:[%s6533_s22 + $0x1d80] sm:$0xff]  ;;  %v1903_v60 = vld [vmem:[%s6533_s22 + $0xc88] sm:$0xff] }
 0x183   : > { %3638 = vmatpush1.msra.mxu1 %v2126_v10  ;;  %3569 = vmatpush1.msra.mxu0 %v1598_v11  ;;  %v1918_v58 = vld [vmem:[%s6533_s22 + $0xd00] sm:$0xff]  ;;  %v2415_v0 = vld [vmem:[%s6533_s22 + $0x1c88] sm:$0xff] }
 0x184   : > { %3639 = vmatprep.subr.mxu1 %v2111_v12  ;;  %3570 = vmatprep.subr.mxu0 %v1583_v14  ;;  %v2430_v61 = vld [vmem:[%s6533_s22 + $0x1d00] sm:$0xff]  ;;  %v1887_v3 = vld [vmem:[%s6533_s22 + $0xc08] sm:$0xff] }
 0x185   : > { %3640 = vmatpush1.msra.mxu1 %v2110_v16  ;;  %3571 = vmatpush1.msra.mxu0 %v1582_v17  ;;  %v1902_v62 = vld [vmem:[%s6533_s22 + $0xc80] sm:$0xff]  ;;  %v2399_v8 = vld [vmem:[%s6533_s22 + $0x1c08] sm:$0xff] }
 0x186   : > { %3641 = vmatprep.subr.mxu1 %v2095_v18  ;;  %3572 = vmatprep.subr.mxu0 %v1567_v1  ;;  %v2414_v4 = vld [vmem:[%s6533_s22 + $0x1c80] sm:$0xff]  ;;  %v1871_v9 = vld [vmem:[%s6533_s22 + $0xb88] sm:$0xff] }
 0x187   : > { %3642 = vmatpush1.msra.mxu1 %v2094_v2  ;;  %3573 = vmatpush1.msra.mxu0 %v1566_v20  ;;  %v1886_v6 = vld [vmem:[%s6533_s22 + $0xc00] sm:$0xff]  ;;  %v2383_v12 = vld [vmem:[%s6533_s22 + $0x1b88] sm:$0xff] }
 0x188   : > { %3643 = vmatprep.subr.mxu1 %v2079_v21  ;;  %3574 = vmatprep.subr.mxu0 %v1551_v5  ;;  %v2398_v10 = vld [vmem:[%s6533_s22 + $0x1c00] sm:$0xff]  ;;  %v1855_v14 = vld [vmem:[%s6533_s22 + $0xb08] sm:$0xff] }
 0x189   : > { %3644 = vmatpush1.msra.mxu1 %v2078_v22  ;;  %3575 = vmatpush1.msra.mxu0 %v1550_v23  ;;  %v1870_v11 = vld [vmem:[%s6533_s22 + $0xb80] sm:$0xff]  ;;  %v2367_v18 = vld [vmem:[%s6533_s22 + $0x1b08] sm:$0xff]  ;;  %v880_v23 = vsub.s32 2, %v7053_v55 }
 0x18a   : > { %3645 = vmatprep.subr.mxu1 %v2063_v24  ;;  %3576 = vmatprep.subr.mxu0 %v1535_v25  ;;  %v2382_v16 = vld [vmem:[%s6533_s22 + $0x1b80] sm:$0xff]  ;;  %v1839_v1 = vld [vmem:[%s6533_s22 + $0xa88] sm:$0xff] }
 0x18b   : > { %3646 = vmatpush1.msra.mxu1 %v2062_v26  ;;  %3577 = vmatpush1.msra.mxu0 %v1534_v27  ;;  %v1854_v17 = vld [vmem:[%s6533_s22 + $0xb00] sm:$0xff]  ;;  %v2351_v21 = vld [vmem:[%s6533_s22 + $0x1a88] sm:$0xff] }
 0x18c   : > { %3647 = vmatprep.subr.mxu1 %v2047_v28  ;;  %3578 = vmatprep.subr.mxu0 %v1519_v29  ;;  %v2366_v2 = vld [vmem:[%s6533_s22 + $0x1b00] sm:$0xff]  ;;  %v1823_v5 = vld [vmem:[%s6533_s22 + $0xa08] sm:$0xff]  ;;  %v884_v28 = vsub.s32 3, %v7053_v55 }
 0x18d   : > { %3648 = vmatpush1.msra.mxu1 %v2046_v30  ;;  %3579 = vmatpush1.msra.mxu0 %v1518_v32  ;;  %v1838_v20 = vld [vmem:[%s6533_s22 + $0xa80] sm:$0xff]  ;;  %v2335_v25 = vld [vmem:[%s6533_s22 + $0x1a08] sm:$0xff] }
 0x18e   : > { %3649 = vmatprep.subr.mxu1 %v2031_v33  ;;  %3580 = vmatprep.subr.mxu0 %v1503_v34  ;;  %v2350_v22 = vld [vmem:[%s6533_s22 + $0x1a80] sm:$0xff]  ;;  %v1807_v26 = vld [vmem:[%s6533_s22 + $0x988] sm:$0xff]  ;;  %v881_v33 = vrot.slane %v7067_v7, %v880_v23 }
 0x18f   : > { %3650 = vmatpush1.msra.mxu1 %v2030_v35  ;;  %3581 = vmatpush1.msra.mxu0 %v1502_v36  ;;  %v1822_v24 = vld [vmem:[%s6533_s22 + $0xa00] sm:$0xff]  ;;  %v2319_v30 = vld [vmem:[%s6533_s22 + $0x1988] sm:$0xff] }
 0x190   : > { %3651 = vmatprep.subr.mxu1 %v2015_v37  ;;  %3582 = vmatprep.subr.mxu0 %v1999_v38  ;;  %v2334_v27 = vld [vmem:[%s6533_s22 + $0x1a00] sm:$0xff]  ;;  %v1791_v32 = vld [vmem:[%s6533_s22 + $0x908] sm:$0xff]  ;;  %v885_v38 = vrot.slane %v7067_v7, %v884_v28 }
 0x191   : > { %3652 = vmatpush1.msra.mxu1 %v2014_v13  ;;  %3583 = vmatpush2.msra.mxu0 %v1998_v40  ;;  %v1806_v29 = vld [vmem:[%s6533_s22 + $0x980] sm:$0xff]  ;;  %v2303_v36 = vld [vmem:[%s6533_s22 + $0x1908] sm:$0xff] }
 0x192   : > { %3653 = vmatprep.subr.mxu1 %v2511_v41  ;;  %3584 = vmatprep.subr.mxu0 %v1983_v63  ;;  %v2318_v34 = vld [vmem:[%s6533_s22 + $0x1980] sm:$0xff]  ;;  %v1775_v37 = vld [vmem:[%s6533_s22 + $0x888] sm:$0xff] }
 0x193   : > { %3654 = vmatpush2.msra.mxu1 %v2510_v15  ;;  %3585 = vmatpush2.msra.mxu0 %v1982_v19  ;;  %v1790_v35 = vld [vmem:[%s6533_s22 + $0x900] sm:$0xff]  ;;  %v2287_v63 = vld [vmem:[%s6533_s22 + $0x1888] sm:$0xff] }
 0x194   : > { %3655 = vmatprep.subr.mxu1 %v2495_v42  ;;  %3586 = vmatprep.subr.mxu0 %v1967_v43  ;;  %v2302_v13 = vld [vmem:[%s6533_s22 + $0x1900] sm:$0xff]  ;;  %v1759_v15 = vld [vmem:[%s6533_s22 + $0x808] sm:$0xff] }
 0x195   : > { %3656 = vmatpush2.msra.mxu1 %v2494_v44  ;;  %3587 = vmatpush2.msra.mxu0 %v1966_v45  ;;  %v1774_v40 = vld [vmem:[%s6533_s22 + $0x880] sm:$0xff]  ;;  %v2271_v45 = vld [vmem:[%s6533_s22 + $0x1808] sm:$0xff] }
 0x196   : > { %3657 = vmatprep.subr.mxu1 %v2479_v46  ;;  %3588 = vmatprep.subr.mxu0 %v1951_v47  ;;  %v2286_v42 = vld [vmem:[%s6533_s22 + $0x1880] sm:$0xff]  ;;  %v3183_v23 = vld [vmem:[%s6533_s22 + $0x3488] sm:$0xff] }
 0x197   : > { %3658 = vmatpush2.msra.mxu1 %v2478_v48  ;;  %3589 = vmatpush2.msra.mxu0 %v1950_v49  ;;  %v1758_v43 = vld [vmem:[%s6533_s22 + $0x800] sm:$0xff]  ;;  %v7230_v48 = vmax.f32 %v7088_v31, 0.0  ;;  %v2751_v31 = vld [vmem:[%s6533_s22 + $0x2708] sm:$0xff] }
 0x198   : > { %3659 = vmatprep.subr.mxu1 %v2463_v50  ;;  %3590 = vmatprep.subr.mxu0 %v1935_v51  ;;  %v2270_v47 = vld [vmem:[%s6533_s22 + $0x1800] sm:$0xff]  ;;  %v2767_v51 = vld [vmem:[%s6533_s22 + $0x2788] sm:$0xff] }
 0x199   : > { %3660 = vmatpush2.msra.mxu1 %v2462_v52  ;;  %3591 = vmatpush2.msra.mxu0 %v1934_v53  ;;  %v3279_v52 = vld [vmem:[%s6533_s22 + $0x3788] sm:$0xff] }
 0x19a   : > { %3661 = vmatprep.subr.mxu1 %v2447_v54  ;;  %3592 = vmatprep.subr.mxu0 %v1919_v56  ;;  %v2766_v54 = vld [vmem:[%s6533_s22 + $0x2780] sm:$0xff]  ;;  %v2623_v28 = vld [vmem:[%s6533_s22 + $0x2308] sm:$0xff] }
 0x19b   : > { %3662 = vmatpush2.msra.mxu1 %v2446_v57  ;;  %3593 = vmatpush2.msra.mxu0 %v1918_v58  ;;  %v2750_v57 = vld [vmem:[%s6533_s22 + $0x2700] sm:$0xff] }
 0x19c   : > { %3663 = vmatprep.subr.mxu1 %v2431_v59  ;;  %3594 = vmatprep.subr.mxu0 %v1903_v60  ;;  %v2735_v59 = vld [vmem:[%s6533_s22 + $0x2688] sm:$0xff]  ;;  %v3278_v60 = vld [vmem:[%s6533_s22 + $0x3780] sm:$0xff] }
 0x19d   : > { %3664 = vmatpush2.msra.mxu1 %v2430_v61  ;;  %3595 = vmatpush2.msra.mxu0 %v1902_v62  ;;  %v2734_v61 = vld [vmem:[%s6533_s22 + $0x2680] sm:$0xff]  ;;  %v3263_v62 = vld [vmem:[%s6533_s22 + $0x3708] sm:$0xff] }
 0x19e   : > { %3665 = vmatprep.subr.mxu1 %v2415_v0  ;;  %3596 = vmatprep.subr.mxu0 %v1887_v3  ;;  %v2719_v0 = vld [vmem:[%s6533_s22 + $0x2608] sm:$0xff]  ;;  %v3262_v3 = vld [vmem:[%s6533_s22 + $0x3700] sm:$0xff] }
 0x19f   : > { %3666 = vmatpush2.msra.mxu1 %v2414_v4  ;;  %3597 = vmatpush2.msra.mxu0 %v1886_v6  ;;  %v2718_v4 = vld [vmem:[%s6533_s22 + $0x2600] sm:$0xff]  ;;  %v3247_v6 = vld [vmem:[%s6533_s22 + $0x3688] sm:$0xff] }
 0x1a0   : > { %3667 = vmatprep.subr.mxu1 %v2399_v8  ;;  %3598 = vmatprep.subr.mxu0 %v1871_v9  ;;  %v2703_v8 = vld [vmem:[%s6533_s22 + $0x2588] sm:$0xff]  ;;  %v3246_v9 = vld [vmem:[%s6533_s22 + $0x3680] sm:$0xff] }
 0x1a1   : > { %3668 = vmatpush2.msra.mxu1 %v2398_v10  ;;  %3599 = vmatpush2.msra.mxu0 %v1870_v11  ;;  %v2702_v10 = vld [vmem:[%s6533_s22 + $0x2580] sm:$0xff]  ;;  %v3231_v11 = vld [vmem:[%s6533_s22 + $0x3608] sm:$0xff] }
 0x1a2   : > { %3669 = vmatprep.subr.mxu1 %v2383_v12  ;;  %3600 = vmatprep.subr.mxu0 %v1855_v14  ;;  %v2687_v12 = vld [vmem:[%s6533_s22 + $0x2508] sm:$0xff]  ;;  %v3230_v14 = vld [vmem:[%s6533_s22 + $0x3600] sm:$0xff] }
 0x1a3   : > { %3670 = vmatpush2.msra.mxu1 %v2382_v16  ;;  %3601 = vmatpush2.msra.mxu0 %v1854_v17  ;;  %v2686_v16 = vld [vmem:[%s6533_s22 + $0x2500] sm:$0xff]  ;;  %v3215_v17 = vld [vmem:[%s6533_s22 + $0x3588] sm:$0xff] }
 0x1a4   : > { %3671 = vmatprep.subr.mxu1 %v2367_v18  ;;  %3602 = vmatprep.subr.mxu0 %v1839_v1  ;;  %v2671_v18 = vld [vmem:[%s6533_s22 + $0x2488] sm:$0xff]  ;;  %v3214_v1 = vld [vmem:[%s6533_s22 + $0x3580] sm:$0xff] }
 0x1a5   : > { %3672 = vmatpush2.msra.mxu1 %v2366_v2  ;;  %3603 = vmatpush2.msra.mxu0 %v1838_v20  ;;  %v2670_v2 = vld [vmem:[%s6533_s22 + $0x2480] sm:$0xff]  ;;  %v3199_v20 = vld [vmem:[%s6533_s22 + $0x3508] sm:$0xff] }
 0x1a6   : > { %3673 = vmatprep.subr.mxu1 %v2351_v21  ;;  %3604 = vmatprep.subr.mxu0 %v1823_v5  ;;  %v2655_v21 = vld [vmem:[%s6533_s22 + $0x2408] sm:$0xff]  ;;  %v3198_v5 = vld [vmem:[%s6533_s22 + $0x3500] sm:$0xff] }
 0x1a7   : > { %3674 = vmatpush2.msra.mxu1 %v2350_v22  ;;  %3605 = vmatpush2.msra.mxu0 %v1822_v24  ;;  %v2654_v22 = vld [vmem:[%s6533_s22 + $0x2400] sm:$0xff]  ;;  %v2639_v24 = vld [vmem:[%s6533_s22 + $0x2388] sm:$0xff] }
 0x1a8   : > { %3675 = vmatprep.subr.mxu1 %v2335_v25  ;;  %3606 = vmatprep.subr.mxu0 %v1807_v26  ;;  %v3182_v25 = vld [vmem:[%s6533_s22 + $0x3480] sm:$0xff] }
 0x1a9   : > { %3676 = vmatpush2.msra.mxu1 %v2334_v27  ;;  %3607 = vmatpush2.msra.mxu0 %v1806_v29  ;;  %v2638_v26 = vld [vmem:[%s6533_s22 + $0x2380] sm:$0xff]  ;;  %v3167_v27 = vld [vmem:[%s6533_s22 + $0x3408] sm:$0xff] }
 0x1aa   : > { %3677 = vmatprep.subr.mxu1 %v2319_v30  ;;  %3608 = vmatprep.subr.mxu0 %v1791_v32  ;;  %v3166_v29 = vld [vmem:[%s6533_s22 + $0x3400] sm:$0xff]  ;;  %v3151_v32 = vld [vmem:[%s6533_s22 + $0x3388] sm:$0xff] }
 0x1ab   : > { %v1118_v41 = vpop.f32.mrf.mxu0  ;;  %3678 = vmatpush2.msra.mxu1 %v2318_v34  ;;  %3609 = vmatpush2.msra.mxu0 %v1790_v35  ;;  %v2622_v30 = vld [vmem:[%s6533_s22 + $0x2300] sm:$0xff] }
 0x1ac   : > { %v1119_v19 = vadd.f32 %v1118_v41, %v881_v33  ;;  %3679 = vmatprep.subr.mxu1 %v2303_v36  ;;  %3610 = vmatprep.subr.mxu0 %v1775_v37  ;;  %v2607_v33 = vld [vmem:[%s6533_s22 + $0x2288] sm:$0xff]  ;;  %v3150_v34 = vld [vmem:[%s6533_s22 + $0x3380] sm:$0xff] }
 0x1ad   : > { %v1189_v44 = vpop.f32.mrf.mxu1  ;;  %v1120_v7 = vpop.f32.mrf.mxu0  ;;  %3680 = vmatpush2.msra.mxu1 %v2302_v13  ;;  %3611 = vmatpush2.msra.mxu0 %v1774_v40  ;;  %v2606_v35 = vld [vmem:[%s6533_s22 + $0x2280] sm:$0xff]  ;;  %v3135_v36 = vld [vmem:[%s6533_s22 + $0x3308] sm:$0xff] }
 0x1ae   : > { %v1121_v46 = vadd.f32 %v1120_v7, %v885_v38  ;;  %3681 = vmatprep.subr.mxu1 %v2287_v63  ;;  %3612 = vmatprep.subr.mxu0 %v1759_v15  ;;  %v1190_v49 = vadd.f32 %v1189_v44, %v1119_v19  ;;  %v2591_v37 = vld [vmem:[%s6533_s22 + $0x2208] sm:$0xff]  ;;  %v3134_v38 = vld [vmem:[%s6533_s22 + $0x3300] sm:$0xff] }
 0x1af   : > { %v1191_v50 = vpop.f32.mrf.mxu1  ;;  %3682 = vmatpush2.msra.mxu1 %v2286_v42  ;;  %3613 = vmatpush2.msra.mxu0 %v1758_v43  ;;  %v2590_v13 = vld [vmem:[%s6533_s22 + $0x2200] sm:$0xff]  ;;  %v3119_v40 = vld [vmem:[%s6533_s22 + $0x3288] sm:$0xff] }
 0x1b0   : > { %v1192_v53 = vadd.f32 %v1191_v50, %v1121_v46  ;;  %3683 = vmatprep.subr.mxu1 %v2271_v45  ;;  %3615 = vmatmul.mubr.f32.vlgmr.msra.gmra.mxu0 %v7230_v48  ;;  %v7240_v58 = vmax.f32 %v1190_v49, 0.0  ;;  %v2575_v41 = vld [vmem:[%s6533_s22 + $0x2188] sm:$0xff]  ;;  %v3118_v63 = vld [vmem:[%s6533_s22 + $0x3280] sm:$0xff] }
 0x1b1   : > { %3684 = vmatpush2.msra.mxu1 %v2270_v47  ;;  %3692 = vmatprep.subr.mxu0 %v2767_v51  ;;  %v2574_v15 = vld [vmem:[%s6533_s22 + $0x2180] sm:$0xff]  ;;  %v3103_v19 = vld [vmem:[%s6533_s22 + $0x3208] sm:$0xff] }
 0x1b2   : > { %v7237_v56 = vmax.f32 %v1192_v53, 0.0  ;;  %3763 = vmatprep.subr.mxu1 %v3279_v52  ;;  %3693 = vmatpush1.msra.mxu0 %v2766_v54  ;;  %v2559_v42 = vld [vmem:[%s6533_s22 + $0x2108] sm:$0xff]  ;;  %v3102_v43 = vld [vmem:[%s6533_s22 + $0x3200] sm:$0xff] }
 0x1b3   : > { %3694 = vmatprep.subr.mxu0 %v2751_v31  ;;  %v2558_v44 = vld [vmem:[%s6533_s22 + $0x2100] sm:$0xff]  ;;  %v3087_v7 = vld [vmem:[%s6533_s22 + $0x3188] sm:$0xff] }
 0x1b4   : > { %3685 = vmatprep.mubr.f32.mxu1 %v7237_v56  ;;  %3695 = vmatpush1.msra.mxu0 %v2750_v57  ;;  %v2543_v45 = vld [vmem:[%s6533_s22 + $0x2088] sm:$0xff]  ;;  %v3086_v46 = vld [vmem:[%s6533_s22 + $0x3180] sm:$0xff] }
 0x1b5   : > { %3686 = vmatmul.mubr.f32.vlgmr.msra.gmra.mxu1 %v7240_v58  ;;  %3696 = vmatprep.subr.mxu0 %v2735_v59  ;;  %v2542_v47 = vld [vmem:[%s6533_s22 + $0x2080] sm:$0xff]  ;;  %v3071_v49 = vld [vmem:[%s6533_s22 + $0x3108] sm:$0xff] }
 0x1b6   : > { %3764 = vmatpush1.msra.mxu1 %v3278_v60  ;;  %3697 = vmatpush1.msra.mxu0 %v2734_v61  ;;  %v2527_v50 = vld [vmem:[%s6533_s22 + $0x2008] sm:$0xff]  ;;  %v3070_v51 = vld [vmem:[%s6533_s22 + $0x3100] sm:$0xff] }
 0x1b7   : > { %3765 = vmatprep.subr.mxu1 %v3263_v62  ;;  %3698 = vmatprep.subr.mxu0 %v2719_v0  ;;  %v2526_v52 = vld [vmem:[%s6533_s22 + $0x2000] sm:$0xff]  ;;  %v3055_v53 = vld [vmem:[%s6533_s22 + $0x3088] sm:$0xff] }
 0x1b8   : > { %3766 = vmatpush1.msra.mxu1 %v3262_v3  ;;  %3699 = vmatpush1.msra.mxu0 %v2718_v4  ;;  %v3023_v54 = vld [vmem:[%s6533_s22 + $0x2f88] sm:$0xff]  ;;  %v3054_v31 = vld [vmem:[%s6533_s22 + $0x3080] sm:$0xff] }
 0x1b9   : > { %3767 = vmatprep.subr.mxu1 %v3247_v6  ;;  %3700 = vmatprep.subr.mxu0 %v2703_v8  ;;  %v3022_v57 = vld [vmem:[%s6533_s22 + $0x2f80] sm:$0xff]  ;;  %v3039_v59 = vld [vmem:[%s6533_s22 + $0x3008] sm:$0xff] }
 0x1ba   : > { %3768 = vmatpush1.msra.mxu1 %v3246_v9  ;;  %3701 = vmatpush1.msra.mxu0 %v2702_v10  ;;  %v3007_v60 = vld [vmem:[%s6533_s22 + $0x2f08] sm:$0xff]  ;;  %v3038_v61 = vld [vmem:[%s6533_s22 + $0x3000] sm:$0xff] }
 0x1bb   : > { %3769 = vmatprep.subr.mxu1 %v3231_v11  ;;  %3702 = vmatprep.subr.mxu0 %v2687_v12  ;;  %v3006_v62 = vld [vmem:[%s6533_s22 + $0x2f00] sm:$0xff]  ;;  %v3535_v0 = vld [vmem:[%s6533_s22 + $0x3f88] sm:$0xff] }
 0x1bc   : > { %3770 = vmatpush1.msra.mxu1 %v3230_v14  ;;  %3703 = vmatpush1.msra.mxu0 %v2686_v16  ;;  %v2991_v3 = vld [vmem:[%s6533_s22 + $0x2e88] sm:$0xff]  ;;  %v3534_v4 = vld [vmem:[%s6533_s22 + $0x3f80] sm:$0xff] }
 0x1bd   : > { %3771 = vmatprep.subr.mxu1 %v3215_v17  ;;  %3704 = vmatprep.subr.mxu0 %v2671_v18  ;;  %v2990_v6 = vld [vmem:[%s6533_s22 + $0x2e80] sm:$0xff]  ;;  %v3519_v8 = vld [vmem:[%s6533_s22 + $0x3f08] sm:$0xff] }
 0x1be   : > { %3772 = vmatpush1.msra.mxu1 %v3214_v1  ;;  %3705 = vmatpush1.msra.mxu0 %v2670_v2  ;;  %v2975_v9 = vld [vmem:[%s6533_s22 + $0x2e08] sm:$0xff]  ;;  %v3518_v10 = vld [vmem:[%s6533_s22 + $0x3f00] sm:$0xff] }
 0x1bf   : > { %3773 = vmatprep.subr.mxu1 %v3199_v20  ;;  %3706 = vmatprep.subr.mxu0 %v2655_v21  ;;  %v2974_v11 = vld [vmem:[%s6533_s22 + $0x2e00] sm:$0xff]  ;;  %v3503_v12 = vld [vmem:[%s6533_s22 + $0x3e88] sm:$0xff] }
 0x1c0   : > { %3774 = vmatpush1.msra.mxu1 %v3198_v5  ;;  %3707 = vmatpush1.msra.mxu0 %v2654_v22  ;;  %v2959_v14 = vld [vmem:[%s6533_s22 + $0x2d88] sm:$0xff]  ;;  %v3502_v16 = vld [vmem:[%s6533_s22 + $0x3e80] sm:$0xff] }
 0x1c1   : > { %3775 = vmatprep.subr.mxu1 %v3183_v23  ;;  %3708 = vmatprep.subr.mxu0 %v2639_v24  ;;  %v2958_v17 = vld [vmem:[%s6533_s22 + $0x2d80] sm:$0xff]  ;;  %v3487_v18 = vld [vmem:[%s6533_s22 + $0x3e08] sm:$0xff] }
 0x1c2   : > { %3776 = vmatpush1.msra.mxu1 %v3182_v25  ;;  %3709 = vmatpush1.msra.mxu0 %v2638_v26  ;;  %v2943_v1 = vld [vmem:[%s6533_s22 + $0x2d08] sm:$0xff]  ;;  %v3486_v2 = vld [vmem:[%s6533_s22 + $0x3e00] sm:$0xff] }
 0x1c3   : > { %3777 = vmatprep.subr.mxu1 %v3167_v27  ;;  %3710 = vmatprep.subr.mxu0 %v2623_v28  ;;  %v2942_v20 = vld [vmem:[%s6533_s22 + $0x2d00] sm:$0xff]  ;;  %v3471_v21 = vld [vmem:[%s6533_s22 + $0x3d88] sm:$0xff] }
 0x1c4   : > { %3778 = vmatpush1.msra.mxu1 %v3166_v29  ;;  %3711 = vmatpush1.msra.mxu0 %v2622_v30  ;;  %v2927_v5 = vld [vmem:[%s6533_s22 + $0x2c88] sm:$0xff]  ;;  %v3470_v22 = vld [vmem:[%s6533_s22 + $0x3d80] sm:$0xff] }
 0x1c5   : > { %3779 = vmatprep.subr.mxu1 %v3151_v32  ;;  %3712 = vmatprep.subr.mxu0 %v2607_v33  ;;  %v2926_v23 = vld [vmem:[%s6533_s22 + $0x2c80] sm:$0xff]  ;;  %v3455_v24 = vld [vmem:[%s6533_s22 + $0x3d08] sm:$0xff] }
 0x1c6   : > { %3780 = vmatpush1.msra.mxu1 %v3150_v34  ;;  %3713 = vmatpush1.msra.mxu0 %v2606_v35  ;;  %v2911_v25 = vld [vmem:[%s6533_s22 + $0x2c08] sm:$0xff]  ;;  %v3454_v26 = vld [vmem:[%s6533_s22 + $0x3d00] sm:$0xff] }
 0x1c7   : > { %3781 = vmatprep.subr.mxu1 %v3135_v36  ;;  %3714 = vmatprep.subr.mxu0 %v2591_v37  ;;  %v2910_v27 = vld [vmem:[%s6533_s22 + $0x2c00] sm:$0xff]  ;;  %v3439_v28 = vld [vmem:[%s6533_s22 + $0x3c88] sm:$0xff] }
 0x1c8   : > { %3782 = vmatpush1.msra.mxu1 %v3134_v38  ;;  %3715 = vmatpush1.msra.mxu0 %v2590_v13  ;;  %v2895_v29 = vld [vmem:[%s6533_s22 + $0x2b88] sm:$0xff]  ;;  %v3438_v30 = vld [vmem:[%s6533_s22 + $0x3c80] sm:$0xff] }
 0x1c9   : > { %3783 = vmatprep.subr.mxu1 %v3119_v40  ;;  %3716 = vmatprep.subr.mxu0 %v2575_v41  ;;  %v2894_v32 = vld [vmem:[%s6533_s22 + $0x2b80] sm:$0xff]  ;;  %v3423_v33 = vld [vmem:[%s6533_s22 + $0x3c08] sm:$0xff] }
 0x1ca   : > { %3784 = vmatpush1.msra.mxu1 %v3118_v63  ;;  %3717 = vmatpush1.msra.mxu0 %v2574_v15  ;;  %v2879_v34 = vld [vmem:[%s6533_s22 + $0x2b08] sm:$0xff]  ;;  %v3422_v35 = vld [vmem:[%s6533_s22 + $0x3c00] sm:$0xff] }
 0x1cb   : > { %3785 = vmatprep.subr.mxu1 %v3103_v19  ;;  %3718 = vmatprep.subr.mxu0 %v2559_v42  ;;  %v2878_v36 = vld [vmem:[%s6533_s22 + $0x2b00] sm:$0xff]  ;;  %v3407_v37 = vld [vmem:[%s6533_s22 + $0x3b88] sm:$0xff]  ;;  %v888_v19 = vsub.s32 4, %v7053_v55 }
 0x1cc   : > { %3786 = vmatpush1.msra.mxu1 %v3102_v43  ;;  %3719 = vmatpush1.msra.mxu0 %v2558_v44  ;;  %v2863_v38 = vld [vmem:[%s6533_s22 + $0x2a88] sm:$0xff]  ;;  %v3406_v13 = vld [vmem:[%s6533_s22 + $0x3b80] sm:$0xff] }
 0x1cd   : > { %3787 = vmatprep.subr.mxu1 %v3087_v7  ;;  %3720 = vmatprep.subr.mxu0 %v2543_v45  ;;  %v2862_v40 = vld [vmem:[%s6533_s22 + $0x2a80] sm:$0xff]  ;;  %v3391_v41 = vld [vmem:[%s6533_s22 + $0x3b08] sm:$0xff]  ;;  %v892_v45 = vsub.s32 5, %v7053_v55 }
 0x1ce   : > { %3788 = vmatpush1.msra.mxu1 %v3086_v46  ;;  %3721 = vmatpush1.msra.mxu0 %v2542_v47  ;;  %v2847_v63 = vld [vmem:[%s6533_s22 + $0x2a08] sm:$0xff]  ;;  %v3390_v15 = vld [vmem:[%s6533_s22 + $0x3b00] sm:$0xff] }
 0x1cf   : > { %3789 = vmatprep.subr.mxu1 %v3071_v49  ;;  %3722 = vmatprep.subr.mxu0 %v2527_v50  ;;  %v2846_v42 = vld [vmem:[%s6533_s22 + $0x2a00] sm:$0xff]  ;;  %v3375_v43 = vld [vmem:[%s6533_s22 + $0x3a88] sm:$0xff] }
 0x1d0   : > { %3790 = vmatpush1.msra.mxu1 %v3070_v51  ;;  %3723 = vmatpush1.msra.mxu0 %v2526_v52  ;;  %v2831_v44 = vld [vmem:[%s6533_s22 + $0x2988] sm:$0xff]  ;;  %v3374_v7 = vld [vmem:[%s6533_s22 + $0x3a80] sm:$0xff]  ;;  %v7357_v51 = vld [vmem:[%s6530_s13] sm:$0xff] }
 0x1d1   : > { %3791 = vmatprep.subr.mxu1 %v3055_v53  ;;  %3724 = vmatprep.subr.mxu0 %v3023_v54  ;;  %v2830_v46 = vld [vmem:[%s6533_s22 + $0x2980] sm:$0xff]  ;;  %v3359_v47 = vld [vmem:[%s6533_s22 + $0x3a08] sm:$0xff]  ;;  %v889_v52 = vrot.slane %v7357_v51, %v888_v19  ;;  %v1569_v19 = vld [vmem:[%s6533_s22 + $0x218] sm:$0xff] }
 0x1d2   : > { %3792 = vmatpush1.msra.mxu1 %v3054_v31  ;;  %3725 = vmatpush2.msra.mxu0 %v3022_v57  ;;  %v2815_v49 = vld [vmem:[%s6533_s22 + $0x2908] sm:$0xff]  ;;  %v3358_v50 = vld [vmem:[%s6533_s22 + $0x3a00] sm:$0xff] }
 0x1d3   : > { %3793 = vmatprep.subr.mxu1 %v3039_v59  ;;  %3726 = vmatprep.subr.mxu0 %v3007_v60  ;;  %v2814_v53 = vld [vmem:[%s6533_s22 + $0x2900] sm:$0xff]  ;;  %v3343_v54 = vld [vmem:[%s6533_s22 + $0x3988] sm:$0xff]  ;;  %v893_v59 = vrot.slane %v7357_v51, %v892_v45  ;;  %v1536_v45 = vld [vmem:[%s6533_s22 + $0x110] sm:$0xff] }
 0x1d4   : > { %3794 = vmatpush1.msra.mxu1 %v3038_v61  ;;  %3727 = vmatpush2.msra.mxu0 %v3006_v62  ;;  %v2799_v31 = vld [vmem:[%s6533_s22 + $0x2888] sm:$0xff]  ;;  %v3342_v57 = vld [vmem:[%s6533_s22 + $0x3980] sm:$0xff] }
 0x1d5   : > { %3795 = vmatprep.subr.mxu1 %v3535_v0  ;;  %3728 = vmatprep.subr.mxu0 %v2991_v3  ;;  %v2798_v60 = vld [vmem:[%s6533_s22 + $0x2880] sm:$0xff]  ;;  %v3327_v61 = vld [vmem:[%s6533_s22 + $0x3908] sm:$0xff] }
 0x1d6   : > { %3796 = vmatpush2.msra.mxu1 %v3534_v4  ;;  %3729 = vmatpush2.msra.mxu0 %v2990_v6  ;;  %v2783_v0 = vld [vmem:[%s6533_s22 + $0x2808] sm:$0xff]  ;;  %v3326_v3 = vld [vmem:[%s6533_s22 + $0x3900] sm:$0xff] }
 0x1d7   : > { %3797 = vmatprep.subr.mxu1 %v3519_v8  ;;  %3730 = vmatprep.subr.mxu0 %v2975_v9  ;;  %v2782_v6 = vld [vmem:[%s6533_s22 + $0x2800] sm:$0xff]  ;;  %v3311_v8 = vld [vmem:[%s6533_s22 + $0x3888] sm:$0xff] }
 0x1d8   : > { %3798 = vmatpush2.msra.mxu1 %v3518_v10  ;;  %3731 = vmatpush2.msra.mxu0 %v2974_v11  ;;  %v1745_v11 = vld [vmem:[%s6533_s22 + $0x798] sm:$0xff] }
 0x1d9   : > { %3799 = vmatprep.subr.mxu1 %v3503_v12  ;;  %3732 = vmatprep.subr.mxu0 %v2959_v14  ;;  %v3310_v12 = vld [vmem:[%s6533_s22 + $0x3880] sm:$0xff] }
 0x1da   : > { %3800 = vmatpush2.msra.mxu1 %v3502_v16  ;;  %3733 = vmatpush2.msra.mxu0 %v2958_v17  ;;  %v3295_v16 = vld [vmem:[%s6533_s22 + $0x3808] sm:$0xff] }
 0x1db   : > { %3801 = vmatprep.subr.mxu1 %v3487_v18  ;;  %3734 = vmatprep.subr.mxu0 %v2943_v1  ;;  %v3294_v1 = vld [vmem:[%s6533_s22 + $0x3800] sm:$0xff] }
 0x1dc   : > { %3802 = vmatpush2.msra.mxu1 %v3486_v2  ;;  %3735 = vmatpush2.msra.mxu0 %v2942_v20  ;;  %v2257_v20 = vld [vmem:[%s6533_s22 + $0x1798] sm:$0xff] }
 0x1dd   : > { %3803 = vmatprep.subr.mxu1 %v3471_v21  ;;  %3736 = vmatprep.subr.mxu0 %v2927_v5 }
 0x1de   : > { %3804 = vmatpush2.msra.mxu1 %v3470_v22  ;;  %3737 = vmatpush2.msra.mxu0 %v2926_v23  ;;  %v1744_v22 = vld [vmem:[%s6533_s22 + $0x790] sm:$0xff]  ;;  %v1729_v23 = vld [vmem:[%s6533_s22 + $0x718] sm:$0xff] }
 0x1df   : > { %3805 = vmatprep.subr.mxu1 %v3455_v24  ;;  %3738 = vmatprep.subr.mxu0 %v2911_v25  ;;  %v1728_v24 = vld [vmem:[%s6533_s22 + $0x710] sm:$0xff]  ;;  %v1713_v25 = vld [vmem:[%s6533_s22 + $0x698] sm:$0xff] }
 0x1e0   : > { %3806 = vmatpush2.msra.mxu1 %v3454_v26  ;;  %3739 = vmatpush2.msra.mxu0 %v2910_v27  ;;  %v1712_v26 = vld [vmem:[%s6533_s22 + $0x690] sm:$0xff]  ;;  %v1697_v27 = vld [vmem:[%s6533_s22 + $0x618] sm:$0xff] }
 0x1e1   : > { %3807 = vmatprep.subr.mxu1 %v3439_v28  ;;  %3740 = vmatprep.subr.mxu0 %v2895_v29  ;;  %v1696_v28 = vld [vmem:[%s6533_s22 + $0x610] sm:$0xff]  ;;  %v1681_v29 = vld [vmem:[%s6533_s22 + $0x598] sm:$0xff] }
 0x1e2   : > { %3808 = vmatpush2.msra.mxu1 %v3438_v30  ;;  %3741 = vmatpush2.msra.mxu0 %v2894_v32  ;;  %v1680_v30 = vld [vmem:[%s6533_s22 + $0x590] sm:$0xff]  ;;  %v1665_v32 = vld [vmem:[%s6533_s22 + $0x518] sm:$0xff] }
 0x1e3   : > { %3809 = vmatprep.subr.mxu1 %v3423_v33  ;;  %3742 = vmatprep.subr.mxu0 %v2879_v34  ;;  %v1664_v33 = vld [vmem:[%s6533_s22 + $0x510] sm:$0xff]  ;;  %v1649_v34 = vld [vmem:[%s6533_s22 + $0x498] sm:$0xff] }
 0x1e4   : > { %3810 = vmatpush2.msra.mxu1 %v3422_v35  ;;  %3743 = vmatpush2.msra.mxu0 %v2878_v36  ;;  %v1648_v35 = vld [vmem:[%s6533_s22 + $0x490] sm:$0xff]  ;;  %v1633_v36 = vld [vmem:[%s6533_s22 + $0x418] sm:$0xff] }
 0x1e5   : > { %3811 = vmatprep.subr.mxu1 %v3407_v37  ;;  %3744 = vmatprep.subr.mxu0 %v2863_v38  ;;  %v1632_v37 = vld [vmem:[%s6533_s22 + $0x410] sm:$0xff]  ;;  %v1617_v38 = vld [vmem:[%s6533_s22 + $0x398] sm:$0xff] }
 0x1e6   : > { %3812 = vmatpush2.msra.mxu1 %v3406_v13  ;;  %3745 = vmatpush2.msra.mxu0 %v2862_v40  ;;  %v1616_v13 = vld [vmem:[%s6533_s22 + $0x390] sm:$0xff]  ;;  %v1601_v40 = vld [vmem:[%s6533_s22 + $0x318] sm:$0xff] }
 0x1e7   : > { %3813 = vmatprep.subr.mxu1 %v3391_v41  ;;  %3746 = vmatprep.subr.mxu0 %v2847_v63  ;;  %v1600_v41 = vld [vmem:[%s6533_s22 + $0x310] sm:$0xff]  ;;  %v1585_v63 = vld [vmem:[%s6533_s22 + $0x298] sm:$0xff] }
 0x1e8   : > { %3814 = vmatpush2.msra.mxu1 %v3390_v15  ;;  %3747 = vmatpush2.msra.mxu0 %v2846_v42  ;;  %v1584_v15 = vld [vmem:[%s6533_s22 + $0x290] sm:$0xff] }
 0x1e9   : > { %3815 = vmatprep.subr.mxu1 %v3375_v43  ;;  %3748 = vmatprep.subr.mxu0 %v2831_v44  ;;  %v1568_v42 = vld [vmem:[%s6533_s22 + $0x210] sm:$0xff]  ;;  %v1553_v43 = vld [vmem:[%s6533_s22 + $0x198] sm:$0xff] }
 0x1ea   : > { %3816 = vmatpush2.msra.mxu1 %v3374_v7  ;;  %3749 = vmatpush2.msra.mxu0 %v2830_v46  ;;  %v1552_v44 = vld [vmem:[%s6533_s22 + $0x190] sm:$0xff]  ;;  %v1537_v7 = vld [vmem:[%s6533_s22 + $0x118] sm:$0xff] }
 0x1eb   : > { %3817 = vmatprep.subr.mxu1 %v3359_v47  ;;  %3750 = vmatprep.subr.mxu0 %v2815_v49  ;;  %v1521_v46 = vld [vmem:[%s6533_s22 + $0x98] sm:$0xff]  ;;  %v1520_v47 = vld [vmem:[%s6533_s22 + $0x90] sm:$0xff] }
 0x1ec   : > { %3818 = vmatpush2.msra.mxu1 %v3358_v50  ;;  %3751 = vmatpush2.msra.mxu0 %v2814_v53  ;;  %v1505_v49 = vld [vmem:[%s6533_s22 + $0x18] sm:$0xff]  ;;  %v1504_v50 = vld [vmem:[%s6533_s22 + $0x10] sm:$0xff] }
 0x1ed   : > { %v1260_v62 = vpop.f32.mrf.mxu0  ;;  %3819 = vmatprep.subr.mxu1 %v3343_v54  ;;  %3752 = vmatprep.subr.mxu0 %v2799_v31  ;;  %v2000_v53 = vld [vmem:[%s6533_s22 + $0xf90] sm:$0xff]  ;;  %v1985_v54 = vld [vmem:[%s6533_s22 + $0xf18] sm:$0xff] }
 0x1ee   : > { %v1261_v4 = vadd.f32 %v1260_v62, %v889_v52  ;;  %3820 = vmatpush2.msra.mxu1 %v3342_v57  ;;  %3753 = vmatpush2.msra.mxu0 %v2798_v60  ;;  %v2001_v52 = vld [vmem:[%s6533_s22 + $0xf98] sm:$0xff]  ;;  %v1984_v31 = vld [vmem:[%s6533_s22 + $0xf10] sm:$0xff] }
 0x1ef   : > { %v1331_v9 = vpop.f32.mrf.mxu1  ;;  %v1262_v10 = vpop.f32.mrf.mxu0  ;;  %3821 = vmatprep.subr.mxu1 %v3327_v61  ;;  %3754 = vmatprep.subr.mxu0 %v2783_v0  ;;  %v1969_v57 = vld [vmem:[%s6533_s22 + $0xe98] sm:$0xff]  ;;  %v1952_v61 = vld [vmem:[%s6533_s22 + $0xe10] sm:$0xff] }
 0x1f0   : > { %v1263_v14 = vadd.f32 %v1262_v10, %v893_v59  ;;  %3822 = vmatpush2.msra.mxu1 %v3326_v3  ;;  %v1332_v17 = vadd.f32 %v1331_v9, %v1261_v4  ;;  %3755 = vmatpush2.msra.mxu0 %v2782_v6  ;;  %v1968_v59 = vld [vmem:[%s6533_s22 + $0xe90] sm:$0xff]  ;;  %v1953_v60 = vld [vmem:[%s6533_s22 + $0xe18] sm:$0xff] }
 0x1f1   : > { %v1333_v18 = vpop.f32.mrf.mxu1  ;;  %3823 = vmatprep.subr.mxu1 %v3311_v8  ;;  %3834 = vmatprep.subr.mxu0 %v1745_v11  ;;  %v1937_v62 = vld [vmem:[%s6533_s22 + $0xd98] sm:$0xff]  ;;  %v1936_v0 = vld [vmem:[%s6533_s22 + $0xd90] sm:$0xff] }
 0x1f2   : > { %v1334_v2 = vadd.f32 %v1333_v18, %v1263_v14  ;;  %3824 = vmatpush2.msra.mxu1 %v3310_v12  ;;  %v7378_v5 = vmax.f32 %v1332_v17, 0.0  ;;  %v1921_v3 = vld [vmem:[%s6533_s22 + $0xd18] sm:$0xff]  ;;  %v1920_v4 = vld [vmem:[%s6533_s22 + $0xd10] sm:$0xff] }
 0x1f3   : > { %3825 = vmatprep.subr.mxu1 %v3295_v16  ;;  %v1905_v6 = vld [vmem:[%s6533_s22 + $0xc98] sm:$0xff]  ;;  %v1904_v8 = vld [vmem:[%s6533_s22 + $0xc90] sm:$0xff] }
 0x1f4   : > { %v7376_v21 = vmax.f32 %v1334_v2, 0.0  ;;  %3826 = vmatpush2.msra.mxu1 %v3294_v1  ;;  %v1889_v9 = vld [vmem:[%s6533_s22 + $0xc18] sm:$0xff]  ;;  %v1888_v10 = vld [vmem:[%s6533_s22 + $0xc10] sm:$0xff]  ;;  %v896_v1 = vsub.s32 6, %v7053_v55 }
 0x1f5   : > { %3905 = vmatprep.subr.mxu1 %v2257_v20  ;;  %v1873_v11 = vld [vmem:[%s6533_s22 + $0xb98] sm:$0xff]  ;;  %v1872_v12 = vld [vmem:[%s6533_s22 + $0xb90] sm:$0xff] }
 0x1f6   : > { %3756 = vmatprep.mubr.f32.mxu0 %v7376_v21  ;;  %v1857_v14 = vld [vmem:[%s6533_s22 + $0xb18] sm:$0xff]  ;;  %v1856_v16 = vld [vmem:[%s6533_s22 + $0xb10] sm:$0xff] }
 0x1f7   : > { %3757 = vmatmul.mubr.f32.vlgmr.msra.gmra.mxu0 %v7378_v5  ;;  %v1841_v17 = vld [vmem:[%s6533_s22 + $0xa98] sm:$0xff]  ;;  %v1840_v18 = vld [vmem:[%s6533_s22 + $0xa90] sm:$0xff] }
 0x1f8   : > { %3835 = vmatpush1.msra.mxu0 %v1744_v22  ;;  %3898 = vmatprep.mubr.f32.mxu0 %v7098_v39  ;;  %v1825_v2 = vld [vmem:[%s6533_s22 + $0xa18] sm:$0xff]  ;;  %v1824_v20 = vld [vmem:[%s6533_s22 + $0xa10] sm:$0xff]  ;;  %v900_v22 = vsub.s32 7, %v7053_v55 }
 0x1f9   : > { %3836 = vmatprep.subr.mxu0 %v1729_v23  ;;  %v1809_v23 = vld [vmem:[%s6533_s22 + $0x998] sm:$0xff] }
 0x1fa   : > { %3837 = vmatpush1.msra.mxu0 %v1728_v24  ;;  %v897_v24 = vrot.slane %v7357_v51, %v896_v1  ;;  %v1777_v55 = vld [vmem:[%s6533_s22 + $0x898] sm:$0xff] }
 0x1fb   : > { %3838 = vmatprep.subr.mxu0 %v1713_v25  ;;  %v1808_v25 = vld [vmem:[%s6533_s22 + $0x990] sm:$0xff]  ;;  %v2625_v1 = vld [vmem:[%s6533_s22 + $0x2318] sm:$0xff] }
 0x1fc   : > { %3839 = vmatpush1.msra.mxu0 %v1712_v26  ;;  %v1793_v26 = vld [vmem:[%s6533_s22 + $0x918] sm:$0xff] }
 0x1fd   : > { %3840 = vmatprep.subr.mxu0 %v1697_v27  ;;  %v901_v27 = vrot.slane %v7357_v51, %v900_v22  ;;  %v2113_v22 = vld [vmem:[%s6533_s22 + $0x1318] sm:$0xff] }
 0x1fe   : > { %3841 = vmatpush1.msra.mxu0 %v1696_v28  ;;  %v1792_v28 = vld [vmem:[%s6533_s22 + $0x910] sm:$0xff] }
 0x1ff   : > { %3842 = vmatprep.subr.mxu0 %v1681_v29 }
 0x200   : > { %3843 = vmatpush1.msra.mxu0 %v1680_v30 }
 0x201   : > { %3844 = vmatprep.subr.mxu0 %v1665_v32 }
 0x202   : > { %3845 = vmatpush1.msra.mxu0 %v1664_v33  ;;  %v1776_v33 = vld [vmem:[%s6533_s22 + $0x890] sm:$0xff] }
 0x203   : > { %3846 = vmatprep.subr.mxu0 %v1649_v34 }
 0x204   : > { %3847 = vmatpush1.msra.mxu0 %v1648_v35  ;;  %v1761_v35 = vld [vmem:[%s6533_s22 + $0x818] sm:$0xff] }
 0x205   : > { %3848 = vmatprep.subr.mxu0 %v1633_v36 }
 0x206   : > { %3849 = vmatpush1.msra.mxu0 %v1632_v37  ;;  %v1760_v37 = vld [vmem:[%s6533_s22 + $0x810] sm:$0xff] }
 0x207   : > { %3850 = vmatprep.subr.mxu0 %v1617_v38 }
 0x208   : > { %3851 = vmatpush1.msra.mxu0 %v1616_v13  ;;  %v2769_v13 = vld [vmem:[%s6533_s22 + $0x2798] sm:$0xff] }
 0x209   : > { %3852 = vmatprep.subr.mxu0 %v1601_v40 }
 0x20a   : > { %3853 = vmatpush1.msra.mxu0 %v1600_v41  ;;  %v2768_v41 = vld [vmem:[%s6533_s22 + $0x2790] sm:$0xff] }
 0x20b   : > { %3854 = vmatprep.subr.mxu0 %v1585_v63  ;;  %v2753_v63 = vld [vmem:[%s6533_s22 + $0x2718] sm:$0xff] }
 0x20c   : > { %3855 = vmatpush1.msra.mxu0 %v1584_v15 }
 0x20d   : > { %3856 = vmatprep.subr.mxu0 %v1569_v19  ;;  %v2752_v19 = vld [vmem:[%s6533_s22 + $0x2710] sm:$0xff] }
 0x20e   : > { %3857 = vmatpush1.msra.mxu0 %v1568_v42 }
 0x20f   : > { %3858 = vmatprep.subr.mxu0 %v1553_v43  ;;  %v2256_v43 = vld [vmem:[%s6533_s22 + $0x1790] sm:$0xff] }
 0x210   : > { %3859 = vmatpush1.msra.mxu0 %v1552_v44  ;;  %v2241_v44 = vld [vmem:[%s6533_s22 + $0x1718] sm:$0xff] }
 0x211   : > { %3860 = vmatprep.subr.mxu0 %v1537_v7  ;;  %v2737_v7 = vld [vmem:[%s6533_s22 + $0x2698] sm:$0xff] }
 0x212   : > { %3861 = vmatpush1.msra.mxu0 %v1536_v45  ;;  %v2240_v45 = vld [vmem:[%s6533_s22 + $0x1710] sm:$0xff] }
 0x213   : > { %3862 = vmatprep.subr.mxu0 %v1521_v46  ;;  %v2736_v46 = vld [vmem:[%s6533_s22 + $0x2690] sm:$0xff] }
 0x214   : > { %3863 = vmatpush1.msra.mxu0 %v1520_v47  ;;  %v2225_v47 = vld [vmem:[%s6533_s22 + $0x1698] sm:$0xff] }
 0x215   : > { %3864 = vmatprep.subr.mxu0 %v1505_v49  ;;  %v2721_v49 = vld [vmem:[%s6533_s22 + $0x2618] sm:$0xff] }
 0x216   : > { %3865 = vmatpush1.msra.mxu0 %v1504_v50  ;;  %v2224_v50 = vld [vmem:[%s6533_s22 + $0x1690] sm:$0xff] }
 0x217   : > { %3866 = vmatprep.subr.mxu0 %v2001_v52  ;;  %v2720_v52 = vld [vmem:[%s6533_s22 + $0x2610] sm:$0xff] }
 0x218   : > { %3867 = vmatpush2.msra.mxu0 %v2000_v53  ;;  %v2209_v53 = vld [vmem:[%s6533_s22 + $0x1618] sm:$0xff] }
 0x219   : > { %3868 = vmatprep.subr.mxu0 %v1985_v54  ;;  %v2705_v54 = vld [vmem:[%s6533_s22 + $0x2598] sm:$0xff] }
 0x21a   : > { %3869 = vmatpush2.msra.mxu0 %v1984_v31  ;;  %v2208_v31 = vld [vmem:[%s6533_s22 + $0x1610] sm:$0xff] }
 0x21b   : > { %3870 = vmatprep.subr.mxu0 %v1969_v57  ;;  %v2704_v57 = vld [vmem:[%s6533_s22 + $0x2590] sm:$0xff] }
 0x21c   : > { %3871 = vmatpush2.msra.mxu0 %v1968_v59  ;;  %v2193_v59 = vld [vmem:[%s6533_s22 + $0x1598] sm:$0xff] }
 0x21d   : > { %3872 = vmatprep.subr.mxu0 %v1953_v60  ;;  %v2689_v60 = vld [vmem:[%s6533_s22 + $0x2518] sm:$0xff] }
 0x21e   : > { %3873 = vmatpush2.msra.mxu0 %v1952_v61  ;;  %v2192_v61 = vld [vmem:[%s6533_s22 + $0x1590] sm:$0xff] }
 0x21f   : > { %3874 = vmatprep.subr.mxu0 %v1937_v62  ;;  %v2688_v62 = vld [vmem:[%s6533_s22 + $0x2510] sm:$0xff] }
 0x220   : > { %3875 = vmatpush2.msra.mxu0 %v1936_v0  ;;  %v2177_v0 = vld [vmem:[%s6533_s22 + $0x1518] sm:$0xff] }
 0x221   : > { %3876 = vmatprep.subr.mxu0 %v1921_v3  ;;  %v2673_v3 = vld [vmem:[%s6533_s22 + $0x2498] sm:$0xff] }
 0x222   : > { %3877 = vmatpush2.msra.mxu0 %v1920_v4  ;;  %v2176_v4 = vld [vmem:[%s6533_s22 + $0x1510] sm:$0xff] }
 0x223   : > { %3878 = vmatprep.subr.mxu0 %v1905_v6  ;;  %v2672_v6 = vld [vmem:[%s6533_s22 + $0x2490] sm:$0xff] }
 0x224   : > { %3879 = vmatpush2.msra.mxu0 %v1904_v8  ;;  %v2161_v8 = vld [vmem:[%s6533_s22 + $0x1498] sm:$0xff] }
 0x225   : > { %3880 = vmatprep.subr.mxu0 %v1889_v9  ;;  %v2657_v9 = vld [vmem:[%s6533_s22 + $0x2418] sm:$0xff] }
 0x226   : > { %3881 = vmatpush2.msra.mxu0 %v1888_v10  ;;  %v2160_v10 = vld [vmem:[%s6533_s22 + $0x1490] sm:$0xff] }
 0x227   : > { %3882 = vmatprep.subr.mxu0 %v1873_v11  ;;  %v2656_v11 = vld [vmem:[%s6533_s22 + $0x2410] sm:$0xff] }
 0x228   : > { %3883 = vmatpush2.msra.mxu0 %v1872_v12  ;;  %v2145_v12 = vld [vmem:[%s6533_s22 + $0x1418] sm:$0xff] }
 0x229   : > { %3884 = vmatprep.subr.mxu0 %v1857_v14  ;;  %v2641_v14 = vld [vmem:[%s6533_s22 + $0x2398] sm:$0xff] }
 0x22a   : > { %3885 = vmatpush2.msra.mxu0 %v1856_v16  ;;  %v2144_v16 = vld [vmem:[%s6533_s22 + $0x1410] sm:$0xff] }
 0x22b   : > { %3886 = vmatprep.subr.mxu0 %v1841_v17  ;;  %v2640_v17 = vld [vmem:[%s6533_s22 + $0x2390] sm:$0xff] }
 0x22c   : > { %3887 = vmatpush2.msra.mxu0 %v1840_v18  ;;  %v2129_v18 = vld [vmem:[%s6533_s22 + $0x1398] sm:$0xff] }
 0x22d   : > { %3888 = vmatprep.subr.mxu0 %v1825_v2  ;;  %v2128_v2 = vld [vmem:[%s6533_s22 + $0x1390] sm:$0xff] }
 0x22e   : > { %3889 = vmatpush2.msra.mxu0 %v1824_v20  ;;  %v2624_v20 = vld [vmem:[%s6533_s22 + $0x2310] sm:$0xff] }
 0x22f   : > { %3890 = vmatprep.subr.mxu0 %v1809_v23  ;;  %v1402_v29 = vpop.f32.mrf.mxu0  ;;  %v2609_v23 = vld [vmem:[%s6533_s22 + $0x2298] sm:$0xff] }
 0x230   : > { %v1473_v30 = vpop.f32.mrf.mxu1  ;;  %3891 = vmatpush2.msra.mxu0 %v1808_v25  ;;  %v1403_v32 = vadd.f32 %v1402_v29, %v897_v24  ;;  %v2112_v24 = vld [vmem:[%s6533_s22 + $0x1310] sm:$0xff] }
 0x231   : > { %3892 = vmatprep.subr.mxu0 %v1793_v26  ;;  %v1404_v34 = vpop.f32.mrf.mxu0  ;;  %v2608_v25 = vld [vmem:[%s6533_s22 + $0x2290] sm:$0xff]  ;;  %v2097_v26 = vld [vmem:[%s6533_s22 + $0x1298] sm:$0xff] }
 0x232   : > { %3893 = vmatpush2.msra.mxu0 %v1792_v28  ;;  %v1405_v36 = vadd.f32 %v1404_v34, %v901_v27  ;;  %v1474_v51 = vadd.f32 %v1473_v30, %v1403_v32  ;;  %v1475_v38 = vpop.f32.mrf.mxu1  ;;  %v2593_v27 = vld [vmem:[%s6533_s22 + $0x2218] sm:$0xff]  ;;  %v2096_v28 = vld [vmem:[%s6533_s22 + $0x1290] sm:$0xff] }
 0x233   : > { %3894 = vmatprep.subr.mxu0 %v1777_v55  ;;  %v2592_v29 = vld [vmem:[%s6533_s22 + $0x2210] sm:$0xff]  ;;  %v2081_v30 = vld [vmem:[%s6533_s22 + $0x1218] sm:$0xff] }
 0x234   : > { %3895 = vmatpush2.msra.mxu0 %v1776_v33  ;;  %v1476_v40 = vadd.f32 %v1475_v38, %v1405_v36  ;;  %v7457_v42 = vmax.f32 %v1474_v51, 0.0  ;;  %v2577_v55 = vld [vmem:[%s6533_s22 + $0x2198] sm:$0xff]  ;;  %v2080_v32 = vld [vmem:[%s6533_s22 + $0x1210] sm:$0xff] }
 0x235   : > { %3896 = vmatprep.subr.mxu0 %v1761_v35  ;;  %v2576_v33 = vld [vmem:[%s6533_s22 + $0x2190] sm:$0xff]  ;;  %v2065_v34 = vld [vmem:[%s6533_s22 + $0x1198] sm:$0xff] }
 0x236   : > { %3897 = vmatpush2.msra.mxu0 %v1760_v37  ;;  %v7453_v15 = vmax.f32 %v1476_v40, 0.0  ;;  %v2561_v35 = vld [vmem:[%s6533_s22 + $0x2118] sm:$0xff]  ;;  %v2064_v36 = vld [vmem:[%s6533_s22 + $0x1190] sm:$0xff] }
 0x237   : > { %3899 = vmatmul.mubr.f32.vlgmr.msra.gmra.mxu0 %v7230_v48  ;;  %3976 = vmatprep.subr.mxu0 %v2769_v13  ;;  %v2560_v37 = vld [vmem:[%s6533_s22 + $0x2110] sm:$0xff]  ;;  %v2049_v51 = vld [vmem:[%s6533_s22 + $0x1118] sm:$0xff] }
 0x238   : > { %3977 = vmatpush1.msra.mxu0 %v2768_v41  ;;  %4040 = vmatprep.mubr.f32.mxu0 %v7376_v21  ;;  %v2545_v38 = vld [vmem:[%s6533_s22 + $0x2098] sm:$0xff]  ;;  %v2048_v13 = vld [vmem:[%s6533_s22 + $0x1110] sm:$0xff] }
 0x239   : > { %3827 = vmatprep.mubr.f32.mxu1 %v7453_v15  ;;  %3978 = vmatprep.subr.mxu0 %v2753_v63  ;;  %v2544_v40 = vld [vmem:[%s6533_s22 + $0x2090] sm:$0xff]  ;;  %v2033_v41 = vld [vmem:[%s6533_s22 + $0x1098] sm:$0xff] }
 0x23a   : > { %3828 = vmatmul.mubr.f32.vlgmr.msra.gmra.mxu1 %v7457_v42  ;;  %3979 = vmatpush1.msra.mxu0 %v2752_v19  ;;  %v2529_v63 = vld [vmem:[%s6533_s22 + $0x2018] sm:$0xff]  ;;  %v2032_v19 = vld [vmem:[%s6533_s22 + $0x1090] sm:$0xff] }
 0x23b   : > { %3906 = vmatpush1.msra.mxu1 %v2256_v43  ;;  %3969 = vmatprep.mubr.f32.mxu1 %v7237_v56  ;;  %v2528_v43 = vld [vmem:[%s6533_s22 + $0x2010] sm:$0xff] }
 0x23c   : > { %3907 = vmatprep.subr.mxu1 %v2241_v44  ;;  %3980 = vmatprep.subr.mxu0 %v2737_v7  ;;  %v2017_v44 = vld [vmem:[%s6533_s22 + $0x1018] sm:$0xff] }
 0x23d   : > { %3908 = vmatpush1.msra.mxu1 %v2240_v45  ;;  %3981 = vmatpush1.msra.mxu0 %v2736_v46  ;;  %v3025_v7 = vld [vmem:[%s6533_s22 + $0x2f98] sm:$0xff]  ;;  %v2016_v45 = vld [vmem:[%s6533_s22 + $0x1010] sm:$0xff] }
 0x23e   : > { %3909 = vmatprep.subr.mxu1 %v2225_v47  ;;  %3982 = vmatprep.subr.mxu0 %v2721_v49  ;;  %v3024_v46 = vld [vmem:[%s6533_s22 + $0x2f90] sm:$0xff]  ;;  %v2513_v47 = vld [vmem:[%s6533_s22 + $0x1f98] sm:$0xff] }
 0x23f   : > { %3910 = vmatpush1.msra.mxu1 %v2224_v50  ;;  %3983 = vmatpush1.msra.mxu0 %v2720_v52  ;;  %v3009_v49 = vld [vmem:[%s6533_s22 + $0x2f18] sm:$0xff]  ;;  %v2512_v50 = vld [vmem:[%s6533_s22 + $0x1f90] sm:$0xff] }
 0x240   : > { %3911 = vmatprep.subr.mxu1 %v2209_v53  ;;  %3984 = vmatprep.subr.mxu0 %v2705_v54  ;;  %v3008_v52 = vld [vmem:[%s6533_s22 + $0x2f10] sm:$0xff]  ;;  %v2497_v53 = vld [vmem:[%s6533_s22 + $0x1f18] sm:$0xff] }
 0x241   : > { %3912 = vmatpush1.msra.mxu1 %v2208_v31  ;;  %3985 = vmatpush1.msra.mxu0 %v2704_v57  ;;  %v2993_v54 = vld [vmem:[%s6533_s22 + $0x2e98] sm:$0xff]  ;;  %v2496_v31 = vld [vmem:[%s6533_s22 + $0x1f10] sm:$0xff] }
 0x242   : > { %3913 = vmatprep.subr.mxu1 %v2193_v59  ;;  %3986 = vmatprep.subr.mxu0 %v2689_v60  ;;  %v2992_v57 = vld [vmem:[%s6533_s22 + $0x2e90] sm:$0xff]  ;;  %v2481_v59 = vld [vmem:[%s6533_s22 + $0x1e98] sm:$0xff] }
 0x243   : > { %3914 = vmatpush1.msra.mxu1 %v2192_v61  ;;  %3987 = vmatpush1.msra.mxu0 %v2688_v62  ;;  %v2977_v60 = vld [vmem:[%s6533_s22 + $0x2e18] sm:$0xff]  ;;  %v2480_v61 = vld [vmem:[%s6533_s22 + $0x1e90] sm:$0xff] }
 0x244   : > { %3915 = vmatprep.subr.mxu1 %v2177_v0  ;;  %3988 = vmatprep.subr.mxu0 %v2673_v3  ;;  %v2976_v62 = vld [vmem:[%s6533_s22 + $0x2e10] sm:$0xff]  ;;  %v2465_v0 = vld [vmem:[%s6533_s22 + $0x1e18] sm:$0xff] }
 0x245   : > { %3916 = vmatpush1.msra.mxu1 %v2176_v4  ;;  %3989 = vmatpush1.msra.mxu0 %v2672_v6  ;;  %v2961_v3 = vld [vmem:[%s6533_s22 + $0x2d98] sm:$0xff]  ;;  %v2464_v4 = vld [vmem:[%s6533_s22 + $0x1e10] sm:$0xff] }
 0x246   : > { %3917 = vmatprep.subr.mxu1 %v2161_v8  ;;  %3990 = vmatprep.subr.mxu0 %v2657_v9  ;;  %v2960_v6 = vld [vmem:[%s6533_s22 + $0x2d90] sm:$0xff]  ;;  %v2449_v8 = vld [vmem:[%s6533_s22 + $0x1d98] sm:$0xff] }
 0x247   : > { %3918 = vmatpush1.msra.mxu1 %v2160_v10  ;;  %3991 = vmatpush1.msra.mxu0 %v2656_v11  ;;  %v2945_v9 = vld [vmem:[%s6533_s22 + $0x2d18] sm:$0xff]  ;;  %v2448_v10 = vld [vmem:[%s6533_s22 + $0x1d90] sm:$0xff] }
 0x248   : > { %3919 = vmatprep.subr.mxu1 %v2145_v12  ;;  %3992 = vmatprep.subr.mxu0 %v2641_v14  ;;  %v2944_v11 = vld [vmem:[%s6533_s22 + $0x2d10] sm:$0xff]  ;;  %v2433_v12 = vld [vmem:[%s6533_s22 + $0x1d18] sm:$0xff] }
 0x249   : > { %3920 = vmatpush1.msra.mxu1 %v2144_v16  ;;  %3993 = vmatpush1.msra.mxu0 %v2640_v17  ;;  %v2929_v14 = vld [vmem:[%s6533_s22 + $0x2c98] sm:$0xff]  ;;  %v2432_v16 = vld [vmem:[%s6533_s22 + $0x1d10] sm:$0xff] }
 0x24a   : > { %3921 = vmatprep.subr.mxu1 %v2129_v18  ;;  %3994 = vmatprep.subr.mxu0 %v2625_v1  ;;  %v2928_v17 = vld [vmem:[%s6533_s22 + $0x2c90] sm:$0xff]  ;;  %v2417_v18 = vld [vmem:[%s6533_s22 + $0x1c98] sm:$0xff] }
 0x24b   : > { %3922 = vmatpush1.msra.mxu1 %v2128_v2  ;;  %3995 = vmatpush1.msra.mxu0 %v2624_v20  ;;  %v2913_v1 = vld [vmem:[%s6533_s22 + $0x2c18] sm:$0xff]  ;;  %v2416_v2 = vld [vmem:[%s6533_s22 + $0x1c90] sm:$0xff] }
 0x24c   : > { %3923 = vmatprep.subr.mxu1 %v2113_v22  ;;  %3996 = vmatprep.subr.mxu0 %v2609_v23  ;;  %v2912_v20 = vld [vmem:[%s6533_s22 + $0x2c10] sm:$0xff]  ;;  %v2401_v22 = vld [vmem:[%s6533_s22 + $0x1c18] sm:$0xff] }
 0x24d   : > { %3924 = vmatpush1.msra.mxu1 %v2112_v24  ;;  %3997 = vmatpush1.msra.mxu0 %v2608_v25  ;;  %v2897_v23 = vld [vmem:[%s6533_s22 + $0x2b98] sm:$0xff]  ;;  %v2400_v24 = vld [vmem:[%s6533_s22 + $0x1c10] sm:$0xff] }
 0x24e   : > { %3925 = vmatprep.subr.mxu1 %v2097_v26  ;;  %3998 = vmatprep.subr.mxu0 %v2593_v27  ;;  %v2896_v25 = vld [vmem:[%s6533_s22 + $0x2b90] sm:$0xff]  ;;  %v2385_v26 = vld [vmem:[%s6533_s22 + $0x1b98] sm:$0xff] }
 0x24f   : > { %3926 = vmatpush1.msra.mxu1 %v2096_v28  ;;  %3999 = vmatpush1.msra.mxu0 %v2592_v29  ;;  %v2881_v27 = vld [vmem:[%s6533_s22 + $0x2b18] sm:$0xff]  ;;  %v2384_v28 = vld [vmem:[%s6533_s22 + $0x1b90] sm:$0xff] }
 0x250   : > { %3927 = vmatprep.subr.mxu1 %v2081_v30  ;;  %4000 = vmatprep.subr.mxu0 %v2577_v55  ;;  %v2880_v29 = vld [vmem:[%s6533_s22 + $0x2b10] sm:$0xff]  ;;  %v2369_v30 = vld [vmem:[%s6533_s22 + $0x1b18] sm:$0xff] }
 0x251   : > { %3928 = vmatpush1.msra.mxu1 %v2080_v32  ;;  %4001 = vmatpush1.msra.mxu0 %v2576_v33  ;;  %v2865_v55 = vld [vmem:[%s6533_s22 + $0x2a98] sm:$0xff]  ;;  %v2368_v32 = vld [vmem:[%s6533_s22 + $0x1b10] sm:$0xff] }
 0x252   : > { %3929 = vmatprep.subr.mxu1 %v2065_v34  ;;  %4002 = vmatprep.subr.mxu0 %v2561_v35  ;;  %v2864_v33 = vld [vmem:[%s6533_s22 + $0x2a90] sm:$0xff]  ;;  %v2353_v34 = vld [vmem:[%s6533_s22 + $0x1a98] sm:$0xff] }
 0x253   : > { %3930 = vmatpush1.msra.mxu1 %v2064_v36  ;;  %4003 = vmatpush1.msra.mxu0 %v2560_v37  ;;  %v2849_v35 = vld [vmem:[%s6533_s22 + $0x2a18] sm:$0xff]  ;;  %v2352_v36 = vld [vmem:[%s6533_s22 + $0x1a90] sm:$0xff] }
 0x254   : > { %3931 = vmatprep.subr.mxu1 %v2049_v51  ;;  %4004 = vmatprep.subr.mxu0 %v2545_v38  ;;  %v2848_v37 = vld [vmem:[%s6533_s22 + $0x2a10] sm:$0xff]  ;;  %v2337_v51 = vld [vmem:[%s6533_s22 + $0x1a18] sm:$0xff] }
 0x255   : > { %3932 = vmatpush1.msra.mxu1 %v2048_v13  ;;  %4005 = vmatpush1.msra.mxu0 %v2544_v40  ;;  %v2833_v38 = vld [vmem:[%s6533_s22 + $0x2998] sm:$0xff]  ;;  %v2336_v13 = vld [vmem:[%s6533_s22 + $0x1a10] sm:$0xff] }
 0x256   : > { %3933 = vmatprep.subr.mxu1 %v2033_v41  ;;  %4006 = vmatprep.subr.mxu0 %v2529_v63  ;;  %v2832_v40 = vld [vmem:[%s6533_s22 + $0x2990] sm:$0xff]  ;;  %v2321_v41 = vld [vmem:[%s6533_s22 + $0x1998] sm:$0xff] }
 0x257   : > { %3934 = vmatpush1.msra.mxu1 %v2032_v19  ;;  %4007 = vmatpush1.msra.mxu0 %v2528_v43  ;;  %v2817_v63 = vld [vmem:[%s6533_s22 + $0x2918] sm:$0xff]  ;;  %v2320_v19 = vld [vmem:[%s6533_s22 + $0x1990] sm:$0xff] }
 0x258   : > { %3935 = vmatprep.subr.mxu1 %v2017_v44  ;;  %4008 = vmatprep.subr.mxu0 %v3025_v7  ;;  %v2816_v43 = vld [vmem:[%s6533_s22 + $0x2910] sm:$0xff]  ;;  %v2305_v44 = vld [vmem:[%s6533_s22 + $0x1918] sm:$0xff] }
 0x259   : > { %3936 = vmatpush1.msra.mxu1 %v2016_v45  ;;  %4009 = vmatpush2.msra.mxu0 %v3024_v46  ;;  %v2801_v7 = vld [vmem:[%s6533_s22 + $0x2898] sm:$0xff]  ;;  %v2304_v45 = vld [vmem:[%s6533_s22 + $0x1910] sm:$0xff] }
 0x25a   : > { %3937 = vmatprep.subr.mxu1 %v2513_v47  ;;  %4010 = vmatprep.subr.mxu0 %v3009_v49  ;;  %v2800_v46 = vld [vmem:[%s6533_s22 + $0x2890] sm:$0xff]  ;;  %v2289_v47 = vld [vmem:[%s6533_s22 + $0x1898] sm:$0xff] }
 0x25b   : > { %3938 = vmatpush2.msra.mxu1 %v2512_v50  ;;  %4011 = vmatpush2.msra.mxu0 %v3008_v52  ;;  %v2785_v49 = vld [vmem:[%s6533_s22 + $0x2818] sm:$0xff]  ;;  %v2288_v50 = vld [vmem:[%s6533_s22 + $0x1890] sm:$0xff] }
 0x25c   : > { %3939 = vmatprep.subr.mxu1 %v2497_v53  ;;  %4012 = vmatprep.subr.mxu0 %v2993_v54  ;;  %v2784_v52 = vld [vmem:[%s6533_s22 + $0x2810] sm:$0xff]  ;;  %v2273_v53 = vld [vmem:[%s6533_s22 + $0x1818] sm:$0xff] }
 0x25d   : > { %3940 = vmatpush2.msra.mxu1 %v2496_v31  ;;  %4013 = vmatpush2.msra.mxu0 %v2992_v57  ;;  %v2272_v54 = vld [vmem:[%s6533_s22 + $0x1810] sm:$0xff]  ;;  %v1747_v31 = vld [vmem:[%s6533_s22 + $0x7a8] sm:$0xff]  ;;  %v3281_v57 = vld [vmem:[%s6533_s22 + $0x3798] sm:$0xff] }
 0x25e   : > { %3941 = vmatprep.subr.mxu1 %v2481_v59  ;;  %4014 = vmatprep.subr.mxu0 %v2977_v60  ;;  %v3280_v59 = vld [vmem:[%s6533_s22 + $0x3790] sm:$0xff]  ;;  %v1746_v60 = vld [vmem:[%s6533_s22 + $0x7a0] sm:$0xff] }
 0x25f   : > { %3942 = vmatpush2.msra.mxu1 %v2480_v61  ;;  %4015 = vmatpush2.msra.mxu0 %v2976_v62  ;;  %v3265_v61 = vld [vmem:[%s6533_s22 + $0x3718] sm:$0xff]  ;;  %v1731_v62 = vld [vmem:[%s6533_s22 + $0x728] sm:$0xff] }
 0x260   : > { %3943 = vmatprep.subr.mxu1 %v2465_v0  ;;  %4016 = vmatprep.subr.mxu0 %v2961_v3  ;;  %v3264_v0 = vld [vmem:[%s6533_s22 + $0x3710] sm:$0xff]  ;;  %v1730_v3 = vld [vmem:[%s6533_s22 + $0x720] sm:$0xff] }
 0x261   : > { %3944 = vmatpush2.msra.mxu1 %v2464_v4  ;;  %4017 = vmatpush2.msra.mxu0 %v2960_v6  ;;  %v3249_v4 = vld [vmem:[%s6533_s22 + $0x3698] sm:$0xff]  ;;  %v1715_v6 = vld [vmem:[%s6533_s22 + $0x6a8] sm:$0xff] }
 0x262   : > { %3945 = vmatprep.subr.mxu1 %v2449_v8  ;;  %4018 = vmatprep.subr.mxu0 %v2945_v9  ;;  %v3248_v8 = vld [vmem:[%s6533_s22 + $0x3690] sm:$0xff]  ;;  %v1714_v9 = vld [vmem:[%s6533_s22 + $0x6a0] sm:$0xff] }
 0x263   : > { %3946 = vmatpush2.msra.mxu1 %v2448_v10  ;;  %4019 = vmatpush2.msra.mxu0 %v2944_v11  ;;  %v3233_v10 = vld [vmem:[%s6533_s22 + $0x3618] sm:$0xff]  ;;  %v1699_v11 = vld [vmem:[%s6533_s22 + $0x628] sm:$0xff] }
 0x264   : > { %3947 = vmatprep.subr.mxu1 %v2433_v12  ;;  %4020 = vmatprep.subr.mxu0 %v2929_v14  ;;  %v3232_v12 = vld [vmem:[%s6533_s22 + $0x3610] sm:$0xff]  ;;  %v1698_v14 = vld [vmem:[%s6533_s22 + $0x620] sm:$0xff] }
 0x265   : > { %3948 = vmatpush2.msra.mxu1 %v2432_v16  ;;  %4021 = vmatpush2.msra.mxu0 %v2928_v17  ;;  %v3217_v16 = vld [vmem:[%s6533_s22 + $0x3598] sm:$0xff]  ;;  %v1683_v17 = vld [vmem:[%s6533_s22 + $0x5a8] sm:$0xff] }
 0x266   : > { %3949 = vmatprep.subr.mxu1 %v2417_v18  ;;  %4022 = vmatprep.subr.mxu0 %v2913_v1  ;;  %v3216_v18 = vld [vmem:[%s6533_s22 + $0x3590] sm:$0xff]  ;;  %v1682_v1 = vld [vmem:[%s6533_s22 + $0x5a0] sm:$0xff] }
 0x267   : > { %3950 = vmatpush2.msra.mxu1 %v2416_v2  ;;  %4023 = vmatpush2.msra.mxu0 %v2912_v20  ;;  %v3201_v2 = vld [vmem:[%s6533_s22 + $0x3518] sm:$0xff]  ;;  %v1667_v20 = vld [vmem:[%s6533_s22 + $0x528] sm:$0xff] }
 0x268   : > { %3951 = vmatprep.subr.mxu1 %v2401_v22  ;;  %4024 = vmatprep.subr.mxu0 %v2897_v23  ;;  %v3200_v22 = vld [vmem:[%s6533_s22 + $0x3510] sm:$0xff]  ;;  %v1666_v23 = vld [vmem:[%s6533_s22 + $0x520] sm:$0xff] }
 0x269   : > { %3952 = vmatpush2.msra.mxu1 %v2400_v24  ;;  %4025 = vmatpush2.msra.mxu0 %v2896_v25  ;;  %v3185_v24 = vld [vmem:[%s6533_s22 + $0x3498] sm:$0xff]  ;;  %v1651_v25 = vld [vmem:[%s6533_s22 + $0x4a8] sm:$0xff] }
 0x26a   : > { %3953 = vmatprep.subr.mxu1 %v2385_v26  ;;  %4026 = vmatprep.subr.mxu0 %v2881_v27  ;;  %v3184_v26 = vld [vmem:[%s6533_s22 + $0x3490] sm:$0xff]  ;;  %v1650_v27 = vld [vmem:[%s6533_s22 + $0x4a0] sm:$0xff] }
 0x26b   : > { %3954 = vmatpush2.msra.mxu1 %v2384_v28  ;;  %4027 = vmatpush2.msra.mxu0 %v2880_v29  ;;  %v3169_v28 = vld [vmem:[%s6533_s22 + $0x3418] sm:$0xff]  ;;  %v1635_v29 = vld [vmem:[%s6533_s22 + $0x428] sm:$0xff] }
 0x26c   : > { %3955 = vmatprep.subr.mxu1 %v2369_v30  ;;  %4028 = vmatprep.subr.mxu0 %v2865_v55  ;;  %v3168_v30 = vld [vmem:[%s6533_s22 + $0x3410] sm:$0xff]  ;;  %v1634_v55 = vld [vmem:[%s6533_s22 + $0x420] sm:$0xff] }
 0x26d   : > { %3956 = vmatpush2.msra.mxu1 %v2368_v32  ;;  %4029 = vmatpush2.msra.mxu0 %v2864_v33  ;;  %v3153_v32 = vld [vmem:[%s6533_s22 + $0x3398] sm:$0xff]  ;;  %v1619_v33 = vld [vmem:[%s6533_s22 + $0x3a8] sm:$0xff] }
 0x26e   : > { %3957 = vmatprep.subr.mxu1 %v2353_v34  ;;  %4030 = vmatprep.subr.mxu0 %v2849_v35  ;;  %v3152_v34 = vld [vmem:[%s6533_s22 + $0x3390] sm:$0xff]  ;;  %v1618_v35 = vld [vmem:[%s6533_s22 + $0x3a0] sm:$0xff] }
 0x26f   : > { %3958 = vmatpush2.msra.mxu1 %v2352_v36  ;;  %4031 = vmatpush2.msra.mxu0 %v2848_v37  ;;  %v3137_v36 = vld [vmem:[%s6533_s22 + $0x3318] sm:$0xff]  ;;  %v1603_v37 = vld [vmem:[%s6533_s22 + $0x328] sm:$0xff] }
 0x270   : > { %3959 = vmatprep.subr.mxu1 %v2337_v51  ;;  %4032 = vmatprep.subr.mxu0 %v2833_v38  ;;  %v3136_v51 = vld [vmem:[%s6533_s22 + $0x3310] sm:$0xff]  ;;  %v1602_v38 = vld [vmem:[%s6533_s22 + $0x320] sm:$0xff] }
 0x271   : > { %3960 = vmatpush2.msra.mxu1 %v2336_v13  ;;  %4033 = vmatpush2.msra.mxu0 %v2832_v40  ;;  %v3121_v13 = vld [vmem:[%s6533_s22 + $0x3298] sm:$0xff]  ;;  %v1587_v40 = vld [vmem:[%s6533_s22 + $0x2a8] sm:$0xff] }
 0x272   : > { %3961 = vmatprep.subr.mxu1 %v2321_v41  ;;  %4034 = vmatprep.subr.mxu0 %v2817_v63  ;;  %v3120_v41 = vld [vmem:[%s6533_s22 + $0x3290] sm:$0xff]  ;;  %v1586_v63 = vld [vmem:[%s6533_s22 + $0x2a0] sm:$0xff] }
 0x273   : > { %3962 = vmatpush2.msra.mxu1 %v2320_v19  ;;  %4035 = vmatpush2.msra.mxu0 %v2816_v43  ;;  %v3105_v19 = vld [vmem:[%s6533_s22 + $0x3218] sm:$0xff]  ;;  %v1571_v43 = vld [vmem:[%s6533_s22 + $0x228] sm:$0xff] }
 0x274   : > { %3963 = vmatprep.subr.mxu1 %v2305_v44  ;;  %4036 = vmatprep.subr.mxu0 %v2801_v7  ;;  %v3104_v44 = vld [vmem:[%s6533_s22 + $0x3210] sm:$0xff]  ;;  %v1570_v7 = vld [vmem:[%s6533_s22 + $0x220] sm:$0xff] }
 0x275   : > { %3964 = vmatpush2.msra.mxu1 %v2304_v45  ;;  %4037 = vmatpush2.msra.mxu0 %v2800_v46  ;;  %v3089_v45 = vld [vmem:[%s6533_s22 + $0x3198] sm:$0xff]  ;;  %v1555_v46 = vld [vmem:[%s6533_s22 + $0x1a8] sm:$0xff] }
 0x276   : > { %3965 = vmatprep.subr.mxu1 %v2289_v47  ;;  %4038 = vmatprep.subr.mxu0 %v2785_v49  ;;  %v3088_v47 = vld [vmem:[%s6533_s22 + $0x3190] sm:$0xff]  ;;  %v1554_v49 = vld [vmem:[%s6533_s22 + $0x1a0] sm:$0xff] }
 0x277   : > { %3966 = vmatpush2.msra.mxu1 %v2288_v50  ;;  %4039 = vmatpush2.msra.mxu0 %v2784_v52  ;;  %v3073_v50 = vld [vmem:[%s6533_s22 + $0x3118] sm:$0xff]  ;;  %v1539_v52 = vld [vmem:[%s6533_s22 + $0x128] sm:$0xff] }
 0x278   : > { %3967 = vmatprep.subr.mxu1 %v2273_v53  ;;  %4041 = vmatmul.mubr.f32.vlgmr.msra.gmra.mxu0 %v7378_v5  ;;  %v3072_v53 = vld [vmem:[%s6533_s22 + $0x3110] sm:$0xff] }
 0x279   : > { %3968 = vmatpush2.msra.mxu1 %v2272_v54  ;;  %4118 = vmatprep.subr.mxu0 %v1747_v31  ;;  %v1538_v54 = vld [vmem:[%s6533_s22 + $0x120] sm:$0xff]  ;;  %v3057_v31 = vld [vmem:[%s6533_s22 + $0x3098] sm:$0xff] }
 0x27a   : > { %3970 = vmatmul.mubr.f32.vlgmr.msra.gmra.mxu1 %v7240_v58  ;;  %4047 = vmatprep.subr.mxu1 %v3281_v57  ;;  %v1523_v57 = vld [vmem:[%s6533_s22 + $0xa8] sm:$0xff] }
 0x27b   : > { %4048 = vmatpush1.msra.mxu1 %v3280_v59  ;;  %4111 = vmatprep.mubr.f32.mxu1 %v7453_v15  ;;  %v3056_v59 = vld [vmem:[%s6533_s22 + $0x3090] sm:$0xff] }
 0x27c   : > { %4119 = vmatpush1.msra.mxu0 %v1746_v60  ;;  %4182 = vmatprep.mubr.f32.mxu0 %v7098_v39  ;;  %v1522_v60 = vld [vmem:[%s6533_s22 + $0xa0] sm:$0xff] }
 0x27d   : > { %4049 = vmatprep.subr.mxu1 %v3265_v61  ;;  %4120 = vmatprep.subr.mxu0 %v1731_v62  ;;  %v3041_v61 = vld [vmem:[%s6533_s22 + $0x3018] sm:$0xff]  ;;  %v1507_v62 = vld [vmem:[%s6533_s22 + $0x28] sm:$0xff] }
 0x27e   : > { %4050 = vmatpush1.msra.mxu1 %v3264_v0  ;;  %4121 = vmatpush1.msra.mxu0 %v1730_v3  ;;  %v3040_v0 = vld [vmem:[%s6533_s22 + $0x3010] sm:$0xff]  ;;  %v1506_v3 = vld [vmem:[%s6533_s22 + $0x20] sm:$0xff] }
 0x27f   : > { %4051 = vmatprep.subr.mxu1 %v3249_v4  ;;  %4122 = vmatprep.subr.mxu0 %v1715_v6  ;;  %v3537_v4 = vld [vmem:[%s6533_s22 + $0x3f98] sm:$0xff]  ;;  %v2003_v6 = vld [vmem:[%s6533_s22 + $0xfa8] sm:$0xff] }
 0x280   : > { %4052 = vmatpush1.msra.mxu1 %v3248_v8  ;;  %4123 = vmatpush1.msra.mxu0 %v1714_v9  ;;  %v3536_v8 = vld [vmem:[%s6533_s22 + $0x3f90] sm:$0xff]  ;;  %v2002_v9 = vld [vmem:[%s6533_s22 + $0xfa0] sm:$0xff] }
 0x281   : > { %4053 = vmatprep.subr.mxu1 %v3233_v10  ;;  %4124 = vmatprep.subr.mxu0 %v1699_v11  ;;  %v3521_v10 = vld [vmem:[%s6533_s22 + $0x3f18] sm:$0xff]  ;;  %v1987_v11 = vld [vmem:[%s6533_s22 + $0xf28] sm:$0xff] }
 0x282   : > { %4054 = vmatpush1.msra.mxu1 %v3232_v12  ;;  %4125 = vmatpush1.msra.mxu0 %v1698_v14  ;;  %v3520_v12 = vld [vmem:[%s6533_s22 + $0x3f10] sm:$0xff]  ;;  %v1986_v14 = vld [vmem:[%s6533_s22 + $0xf20] sm:$0xff] }
 0x283   : > { %4055 = vmatprep.subr.mxu1 %v3217_v16  ;;  %4126 = vmatprep.subr.mxu0 %v1683_v17  ;;  %v3505_v16 = vld [vmem:[%s6533_s22 + $0x3e98] sm:$0xff]  ;;  %v1971_v17 = vld [vmem:[%s6533_s22 + $0xea8] sm:$0xff] }
 0x284   : > { %4056 = vmatpush1.msra.mxu1 %v3216_v18  ;;  %4127 = vmatpush1.msra.mxu0 %v1682_v1  ;;  %v3504_v18 = vld [vmem:[%s6533_s22 + $0x3e90] sm:$0xff]  ;;  %v1970_v1 = vld [vmem:[%s6533_s22 + $0xea0] sm:$0xff] }
 0x285   : > { %4057 = vmatprep.subr.mxu1 %v3201_v2  ;;  %4128 = vmatprep.subr.mxu0 %v1667_v20  ;;  %v3489_v2 = vld [vmem:[%s6533_s22 + $0x3e18] sm:$0xff]  ;;  %v1955_v20 = vld [vmem:[%s6533_s22 + $0xe28] sm:$0xff] }
 0x286   : > { %4058 = vmatpush1.msra.mxu1 %v3200_v22  ;;  %4129 = vmatpush1.msra.mxu0 %v1666_v23  ;;  %v3488_v22 = vld [vmem:[%s6533_s22 + $0x3e10] sm:$0xff]  ;;  %v1954_v23 = vld [vmem:[%s6533_s22 + $0xe20] sm:$0xff] }
 0x287   : > { %4059 = vmatprep.subr.mxu1 %v3185_v24  ;;  %4130 = vmatprep.subr.mxu0 %v1651_v25  ;;  %v3473_v24 = vld [vmem:[%s6533_s22 + $0x3d98] sm:$0xff]  ;;  %v1939_v25 = vld [vmem:[%s6533_s22 + $0xda8] sm:$0xff] }
 0x288   : > { %4060 = vmatpush1.msra.mxu1 %v3184_v26  ;;  %4131 = vmatpush1.msra.mxu0 %v1650_v27  ;;  %v3472_v26 = vld [vmem:[%s6533_s22 + $0x3d90] sm:$0xff]  ;;  %v1938_v27 = vld [vmem:[%s6533_s22 + $0xda0] sm:$0xff] }
 0x289   : > { %4061 = vmatprep.subr.mxu1 %v3169_v28  ;;  %4132 = vmatprep.subr.mxu0 %v1635_v29  ;;  %v3457_v28 = vld [vmem:[%s6533_s22 + $0x3d18] sm:$0xff]  ;;  %v1923_v29 = vld [vmem:[%s6533_s22 + $0xd28] sm:$0xff] }
 0x28a   : > { %4062 = vmatpush1.msra.mxu1 %v3168_v30  ;;  %4133 = vmatpush1.msra.mxu0 %v1634_v55  ;;  %v3456_v30 = vld [vmem:[%s6533_s22 + $0x3d10] sm:$0xff]  ;;  %v1922_v55 = vld [vmem:[%s6533_s22 + $0xd20] sm:$0xff] }
 0x28b   : > { %4063 = vmatprep.subr.mxu1 %v3153_v32  ;;  %4134 = vmatprep.subr.mxu0 %v1619_v33  ;;  %v3441_v32 = vld [vmem:[%s6533_s22 + $0x3c98] sm:$0xff]  ;;  %v1907_v33 = vld [vmem:[%s6533_s22 + $0xca8] sm:$0xff] }
 0x28c   : > { %4064 = vmatpush1.msra.mxu1 %v3152_v34  ;;  %4135 = vmatpush1.msra.mxu0 %v1618_v35  ;;  %v3440_v34 = vld [vmem:[%s6533_s22 + $0x3c90] sm:$0xff]  ;;  %v1906_v35 = vld [vmem:[%s6533_s22 + $0xca0] sm:$0xff] }
 0x28d   : > { %4065 = vmatprep.subr.mxu1 %v3137_v36  ;;  %4136 = vmatprep.subr.mxu0 %v1603_v37  ;;  %v3425_v36 = vld [vmem:[%s6533_s22 + $0x3c18] sm:$0xff]  ;;  %v1891_v37 = vld [vmem:[%s6533_s22 + $0xc28] sm:$0xff] }
 0x28e   : > { %4066 = vmatpush1.msra.mxu1 %v3136_v51  ;;  %4137 = vmatpush1.msra.mxu0 %v1602_v38  ;;  %v3424_v51 = vld [vmem:[%s6533_s22 + $0x3c10] sm:$0xff]  ;;  %v1890_v38 = vld [vmem:[%s6533_s22 + $0xc20] sm:$0xff] }
 0x28f   : > { %4067 = vmatprep.subr.mxu1 %v3121_v13  ;;  %4138 = vmatprep.subr.mxu0 %v1587_v40  ;;  %v3409_v13 = vld [vmem:[%s6533_s22 + $0x3b98] sm:$0xff]  ;;  %v1875_v40 = vld [vmem:[%s6533_s22 + $0xba8] sm:$0xff] }
 0x290   : > { %4068 = vmatpush1.msra.mxu1 %v3120_v41  ;;  %4139 = vmatpush1.msra.mxu0 %v1586_v63  ;;  %v3408_v41 = vld [vmem:[%s6533_s22 + $0x3b90] sm:$0xff]  ;;  %v1874_v63 = vld [vmem:[%s6533_s22 + $0xba0] sm:$0xff] }
 0x291   : > { %4069 = vmatprep.subr.mxu1 %v3105_v19  ;;  %4140 = vmatprep.subr.mxu0 %v1571_v43  ;;  %v3393_v19 = vld [vmem:[%s6533_s22 + $0x3b18] sm:$0xff]  ;;  %v1859_v43 = vld [vmem:[%s6533_s22 + $0xb28] sm:$0xff] }
 0x292   : > { %4070 = vmatpush1.msra.mxu1 %v3104_v44  ;;  %4141 = vmatpush1.msra.mxu0 %v1570_v7  ;;  %v3392_v44 = vld [vmem:[%s6533_s22 + $0x3b10] sm:$0xff]  ;;  %v1858_v7 = vld [vmem:[%s6533_s22 + $0xb20] sm:$0xff] }
 0x293   : > { %4071 = vmatprep.subr.mxu1 %v3089_v45  ;;  %4142 = vmatprep.subr.mxu0 %v1555_v46  ;;  %v3377_v45 = vld [vmem:[%s6533_s22 + $0x3a98] sm:$0xff]  ;;  %v1843_v46 = vld [vmem:[%s6533_s22 + $0xaa8] sm:$0xff] }
 0x294   : > { %4072 = vmatpush1.msra.mxu1 %v3088_v47  ;;  %4143 = vmatpush1.msra.mxu0 %v1554_v49  ;;  %v3376_v47 = vld [vmem:[%s6533_s22 + $0x3a90] sm:$0xff]  ;;  %v1842_v49 = vld [vmem:[%s6533_s22 + $0xaa0] sm:$0xff] }
 0x295   : > { %4073 = vmatprep.subr.mxu1 %v3073_v50  ;;  %4144 = vmatprep.subr.mxu0 %v1539_v52  ;;  %v3361_v50 = vld [vmem:[%s6533_s22 + $0x3a18] sm:$0xff]  ;;  %v1827_v52 = vld [vmem:[%s6533_s22 + $0xa28] sm:$0xff] }
 0x296   : > { %4074 = vmatpush1.msra.mxu1 %v3072_v53  ;;  %4145 = vmatpush1.msra.mxu0 %v1538_v54  ;;  %v3360_v53 = vld [vmem:[%s6533_s22 + $0x3a10] sm:$0xff]  ;;  %v1826_v54 = vld [vmem:[%s6533_s22 + $0xa20] sm:$0xff] }
 0x297   : > { %4075 = vmatprep.subr.mxu1 %v3057_v31  ;;  %4146 = vmatprep.subr.mxu0 %v1523_v57  ;;  %v3345_v31 = vld [vmem:[%s6533_s22 + $0x3998] sm:$0xff]  ;;  %v1811_v57 = vld [vmem:[%s6533_s22 + $0x9a8] sm:$0xff] }
 0x298   : > { %4076 = vmatpush1.msra.mxu1 %v3056_v59  ;;  %4147 = vmatpush1.msra.mxu0 %v1522_v60  ;;  %v3344_v59 = vld [vmem:[%s6533_s22 + $0x3990] sm:$0xff]  ;;  %v1810_v60 = vld [vmem:[%s6533_s22 + $0x9a0] sm:$0xff] }
 0x299   : > { %4077 = vmatprep.subr.mxu1 %v3041_v61  ;;  %4148 = vmatprep.subr.mxu0 %v1507_v62  ;;  %v3329_v61 = vld [vmem:[%s6533_s22 + $0x3918] sm:$0xff]  ;;  %v1795_v62 = vld [vmem:[%s6533_s22 + $0x928] sm:$0xff] }
 0x29a   : > { %4078 = vmatpush1.msra.mxu1 %v3040_v0  ;;  %4149 = vmatpush1.msra.mxu0 %v1506_v3  ;;  %v3328_v0 = vld [vmem:[%s6533_s22 + $0x3910] sm:$0xff]  ;;  %v1794_v3 = vld [vmem:[%s6533_s22 + $0x920] sm:$0xff] }
 0x29b   : > { %4079 = vmatprep.subr.mxu1 %v3537_v4  ;;  %4150 = vmatprep.subr.mxu0 %v2003_v6  ;;  %v3313_v4 = vld [vmem:[%s6533_s22 + $0x3898] sm:$0xff]  ;;  %v1779_v6 = vld [vmem:[%s6533_s22 + $0x8a8] sm:$0xff] }
 0x29c   : > { %4080 = vmatpush2.msra.mxu1 %v3536_v8  ;;  %4151 = vmatpush2.msra.mxu0 %v2002_v9  ;;  %v3312_v8 = vld [vmem:[%s6533_s22 + $0x3890] sm:$0xff]  ;;  %v1778_v9 = vld [vmem:[%s6533_s22 + $0x8a0] sm:$0xff] }
 0x29d   : > { %4081 = vmatprep.subr.mxu1 %v3521_v10  ;;  %4152 = vmatprep.subr.mxu0 %v1987_v11  ;;  %v3297_v10 = vld [vmem:[%s6533_s22 + $0x3818] sm:$0xff]  ;;  %v1763_v11 = vld [vmem:[%s6533_s22 + $0x828] sm:$0xff] }
 0x29e   : > { %4082 = vmatpush2.msra.mxu1 %v3520_v12  ;;  %4153 = vmatpush2.msra.mxu0 %v1986_v14  ;;  %v3296_v12 = vld [vmem:[%s6533_s22 + $0x3810] sm:$0xff]  ;;  %v1762_v14 = vld [vmem:[%s6533_s22 + $0x820] sm:$0xff] }
 0x29f   : > { %4083 = vmatprep.subr.mxu1 %v3505_v16  ;;  %4154 = vmatprep.subr.mxu0 %v1971_v17  ;;  %v2259_v16 = vld [vmem:[%s6533_s22 + $0x17a8] sm:$0xff] }
 0x2a0   : > { %4084 = vmatpush2.msra.mxu1 %v3504_v18  ;;  %4155 = vmatpush2.msra.mxu0 %v1970_v1  ;;  %v2771_v17 = vld [vmem:[%s6533_s22 + $0x27a8] sm:$0xff]  ;;  %v2258_v18 = vld [vmem:[%s6533_s22 + $0x17a0] sm:$0xff] }
 0x2a1   : > { %4085 = vmatprep.subr.mxu1 %v3489_v2  ;;  %4156 = vmatprep.subr.mxu0 %v1955_v20  ;;  %v2770_v1 = vld [vmem:[%s6533_s22 + $0x27a0] sm:$0xff]  ;;  %v2243_v2 = vld [vmem:[%s6533_s22 + $0x1728] sm:$0xff] }
 0x2a2   : > { %4086 = vmatpush2.msra.mxu1 %v3488_v22  ;;  %4157 = vmatpush2.msra.mxu0 %v1954_v23  ;;  %v2755_v20 = vld [vmem:[%s6533_s22 + $0x2728] sm:$0xff]  ;;  %v2242_v22 = vld [vmem:[%s6533_s22 + $0x1720] sm:$0xff] }
 0x2a3   : > { %4087 = vmatprep.subr.mxu1 %v3473_v24  ;;  %4158 = vmatprep.subr.mxu0 %v1939_v25  ;;  %v2754_v23 = vld [vmem:[%s6533_s22 + $0x2720] sm:$0xff]  ;;  %v2227_v24 = vld [vmem:[%s6533_s22 + $0x16a8] sm:$0xff] }
 0x2a4   : > { %4088 = vmatpush2.msra.mxu1 %v3472_v26  ;;  %4159 = vmatpush2.msra.mxu0 %v1938_v27  ;;  %v2739_v25 = vld [vmem:[%s6533_s22 + $0x26a8] sm:$0xff]  ;;  %v2226_v26 = vld [vmem:[%s6533_s22 + $0x16a0] sm:$0xff] }
 0x2a5   : > { %4089 = vmatprep.subr.mxu1 %v3457_v28  ;;  %4160 = vmatprep.subr.mxu0 %v1923_v29  ;;  %v2738_v27 = vld [vmem:[%s6533_s22 + $0x26a0] sm:$0xff]  ;;  %v2211_v28 = vld [vmem:[%s6533_s22 + $0x1628] sm:$0xff] }
 0x2a6   : > { %4090 = vmatpush2.msra.mxu1 %v3456_v30  ;;  %4161 = vmatpush2.msra.mxu0 %v1922_v55  ;;  %v2723_v29 = vld [vmem:[%s6533_s22 + $0x2628] sm:$0xff]  ;;  %v2210_v30 = vld [vmem:[%s6533_s22 + $0x1620] sm:$0xff] }
 0x2a7   : > { %4091 = vmatprep.subr.mxu1 %v3441_v32  ;;  %4162 = vmatprep.subr.mxu0 %v1907_v33  ;;  %v2722_v55 = vld [vmem:[%s6533_s22 + $0x2620] sm:$0xff]  ;;  %v2195_v32 = vld [vmem:[%s6533_s22 + $0x15a8] sm:$0xff] }
 0x2a8   : > { %4092 = vmatpush2.msra.mxu1 %v3440_v34  ;;  %4163 = vmatpush2.msra.mxu0 %v1906_v35  ;;  %v2707_v33 = vld [vmem:[%s6533_s22 + $0x25a8] sm:$0xff]  ;;  %v2194_v34 = vld [vmem:[%s6533_s22 + $0x15a0] sm:$0xff] }
 0x2a9   : > { %4093 = vmatprep.subr.mxu1 %v3425_v36  ;;  %4164 = vmatprep.subr.mxu0 %v1891_v37  ;;  %v2706_v35 = vld [vmem:[%s6533_s22 + $0x25a0] sm:$0xff]  ;;  %v2179_v36 = vld [vmem:[%s6533_s22 + $0x1528] sm:$0xff] }
 0x2aa   : > { %4094 = vmatpush2.msra.mxu1 %v3424_v51  ;;  %4165 = vmatpush2.msra.mxu0 %v1890_v38  ;;  %v2691_v37 = vld [vmem:[%s6533_s22 + $0x2528] sm:$0xff]  ;;  %v2178_v51 = vld [vmem:[%s6533_s22 + $0x1520] sm:$0xff] }
 0x2ab   : > { %4095 = vmatprep.subr.mxu1 %v3409_v13  ;;  %4166 = vmatprep.subr.mxu0 %v1875_v40  ;;  %v2690_v38 = vld [vmem:[%s6533_s22 + $0x2520] sm:$0xff]  ;;  %v2163_v13 = vld [vmem:[%s6533_s22 + $0x14a8] sm:$0xff] }
 0x2ac   : > { %4096 = vmatpush2.msra.mxu1 %v3408_v41  ;;  %4167 = vmatpush2.msra.mxu0 %v1874_v63  ;;  %v2675_v40 = vld [vmem:[%s6533_s22 + $0x24a8] sm:$0xff]  ;;  %v2162_v41 = vld [vmem:[%s6533_s22 + $0x14a0] sm:$0xff] }
 0x2ad   : > { %4097 = vmatprep.subr.mxu1 %v3393_v19  ;;  %4168 = vmatprep.subr.mxu0 %v1859_v43  ;;  %v2674_v63 = vld [vmem:[%s6533_s22 + $0x24a0] sm:$0xff]  ;;  %v2147_v19 = vld [vmem:[%s6533_s22 + $0x1428] sm:$0xff] }
 0x2ae   : > { %4098 = vmatpush2.msra.mxu1 %v3392_v44  ;;  %4169 = vmatpush2.msra.mxu0 %v1858_v7  ;;  %v2659_v43 = vld [vmem:[%s6533_s22 + $0x2428] sm:$0xff]  ;;  %v2146_v44 = vld [vmem:[%s6533_s22 + $0x1420] sm:$0xff] }
 0x2af   : > { %4099 = vmatprep.subr.mxu1 %v3377_v45  ;;  %4170 = vmatprep.subr.mxu0 %v1843_v46  ;;  %v2658_v7 = vld [vmem:[%s6533_s22 + $0x2420] sm:$0xff]  ;;  %v2131_v45 = vld [vmem:[%s6533_s22 + $0x13a8] sm:$0xff] }
 0x2b0   : > { %4100 = vmatpush2.msra.mxu1 %v3376_v47  ;;  %4171 = vmatpush2.msra.mxu0 %v1842_v49  ;;  %v2643_v46 = vld [vmem:[%s6533_s22 + $0x23a8] sm:$0xff]  ;;  %v2130_v47 = vld [vmem:[%s6533_s22 + $0x13a0] sm:$0xff] }
 0x2b1   : > { %4101 = vmatprep.subr.mxu1 %v3361_v50  ;;  %4172 = vmatprep.subr.mxu0 %v1827_v52  ;;  %v2642_v49 = vld [vmem:[%s6533_s22 + $0x23a0] sm:$0xff]  ;;  %v2115_v50 = vld [vmem:[%s6533_s22 + $0x1328] sm:$0xff] }
 0x2b2   : > { %4102 = vmatpush2.msra.mxu1 %v3360_v53  ;;  %4173 = vmatpush2.msra.mxu0 %v1826_v54  ;;  %v2627_v52 = vld [vmem:[%s6533_s22 + $0x2328] sm:$0xff]  ;;  %v2114_v53 = vld [vmem:[%s6533_s22 + $0x1320] sm:$0xff] }
 0x2b3   : > { %4103 = vmatprep.subr.mxu1 %v3345_v31  ;;  %4174 = vmatprep.subr.mxu0 %v1811_v57  ;;  %v2626_v54 = vld [vmem:[%s6533_s22 + $0x2320] sm:$0xff]  ;;  %v2099_v31 = vld [vmem:[%s6533_s22 + $0x12a8] sm:$0xff] }
 0x2b4   : > { %4104 = vmatpush2.msra.mxu1 %v3344_v59  ;;  %4175 = vmatpush2.msra.mxu0 %v1810_v60  ;;  %v2611_v57 = vld [vmem:[%s6533_s22 + $0x22a8] sm:$0xff]  ;;  %v2098_v59 = vld [vmem:[%s6533_s22 + $0x12a0] sm:$0xff] }
 0x2b5   : > { %4105 = vmatprep.subr.mxu1 %v3329_v61  ;;  %4176 = vmatprep.subr.mxu0 %v1795_v62  ;;  %v2610_v60 = vld [vmem:[%s6533_s22 + $0x22a0] sm:$0xff]  ;;  %v2083_v61 = vld [vmem:[%s6533_s22 + $0x1228] sm:$0xff] }
 0x2b6   : > { %4106 = vmatpush2.msra.mxu1 %v3328_v0  ;;  %4177 = vmatpush2.msra.mxu0 %v1794_v3  ;;  %v2595_v62 = vld [vmem:[%s6533_s22 + $0x2228] sm:$0xff]  ;;  %v2082_v0 = vld [vmem:[%s6533_s22 + $0x1220] sm:$0xff] }
 0x2b7   : > { %4107 = vmatprep.subr.mxu1 %v3313_v4  ;;  %4178 = vmatprep.subr.mxu0 %v1779_v6  ;;  %v2594_v3 = vld [vmem:[%s6533_s22 + $0x2220] sm:$0xff]  ;;  %v2067_v4 = vld [vmem:[%s6533_s22 + $0x11a8] sm:$0xff] }
 0x2b8   : > { %4108 = vmatpush2.msra.mxu1 %v3312_v8  ;;  %4179 = vmatpush2.msra.mxu0 %v1778_v9  ;;  %v2579_v6 = vld [vmem:[%s6533_s22 + $0x21a8] sm:$0xff]  ;;  %v2066_v8 = vld [vmem:[%s6533_s22 + $0x11a0] sm:$0xff] }
 0x2b9   : > { %4109 = vmatprep.subr.mxu1 %v3297_v10  ;;  %4180 = vmatprep.subr.mxu0 %v1763_v11  ;;  %v2578_v9 = vld [vmem:[%s6533_s22 + $0x21a0] sm:$0xff]  ;;  %v2051_v10 = vld [vmem:[%s6533_s22 + $0x1128] sm:$0xff] }
 0x2ba   : > { %4110 = vmatpush2.msra.mxu1 %v3296_v12  ;;  %4181 = vmatpush2.msra.mxu0 %v1762_v14  ;;  %v2563_v11 = vld [vmem:[%s6533_s22 + $0x2128] sm:$0xff]  ;;  %v2050_v12 = vld [vmem:[%s6533_s22 + $0x1120] sm:$0xff] }
 0x2bb   : > { %4112 = vmatmul.mubr.f32.vlgmr.msra.gmra.mxu1 %v7457_v42  ;;  %4183 = vmatmul.mubr.f32.vlgmr.msra.gmra.mxu0 %v7230_v48  ;;  %v2562_v14 = vld [vmem:[%s6533_s22 + $0x2120] sm:$0xff] }
 0x2bc   : > { %4189 = vmatprep.subr.mxu1 %v2259_v16  ;;  %4260 = vmatprep.subr.mxu0 %v2771_v17  ;;  %v2035_v16 = vld [vmem:[%s6533_s22 + $0x10a8] sm:$0xff] }
 0x2bd   : > { %4190 = vmatpush1.msra.mxu1 %v2258_v18  ;;  %4253 = vmatprep.mubr.f32.mxu1 %v7237_v56  ;;  %v2547_v17 = vld [vmem:[%s6533_s22 + $0x20a8] sm:$0xff]  ;;  %v2034_v18 = vld [vmem:[%s6533_s22 + $0x10a0] sm:$0xff] }
 0x2be   : > { %4261 = vmatpush1.msra.mxu0 %v2770_v1  ;;  %4324 = vmatprep.mubr.f32.mxu0 %v7376_v21  ;;  %v2546_v1 = vld [vmem:[%s6533_s22 + $0x20a0] sm:$0xff] }
 0x2bf   : > { %4191 = vmatprep.subr.mxu1 %v2243_v2  ;;  %4262 = vmatprep.subr.mxu0 %v2755_v20  ;;  %v2019_v2 = vld [vmem:[%s6533_s22 + $0x1028] sm:$0xff] }
 0x2c0   : > { %4192 = vmatpush1.msra.mxu1 %v2242_v22  ;;  %4263 = vmatpush1.msra.mxu0 %v2754_v23  ;;  %v2531_v20 = vld [vmem:[%s6533_s22 + $0x2028] sm:$0xff]  ;;  %v2018_v22 = vld [vmem:[%s6533_s22 + $0x1020] sm:$0xff] }
 0x2c1   : > { %4193 = vmatprep.subr.mxu1 %v2227_v24  ;;  %4264 = vmatprep.subr.mxu0 %v2739_v25  ;;  %v2530_v23 = vld [vmem:[%s6533_s22 + $0x2020] sm:$0xff]  ;;  %v2515_v24 = vld [vmem:[%s6533_s22 + $0x1fa8] sm:$0xff] }
 0x2c2   : > { %4194 = vmatpush1.msra.mxu1 %v2226_v26  ;;  %4265 = vmatpush1.msra.mxu0 %v2738_v27  ;;  %v3027_v25 = vld [vmem:[%s6533_s22 + $0x2fa8] sm:$0xff]  ;;  %v2514_v26 = vld [vmem:[%s6533_s22 + $0x1fa0] sm:$0xff] }
 0x2c3   : > { %4195 = vmatprep.subr.mxu1 %v2211_v28  ;;  %4266 = vmatprep.subr.mxu0 %v2723_v29  ;;  %v3026_v27 = vld [vmem:[%s6533_s22 + $0x2fa0] sm:$0xff]  ;;  %v2499_v28 = vld [vmem:[%s6533_s22 + $0x1f28] sm:$0xff] }
 0x2c4   : > { %4196 = vmatpush1.msra.mxu1 %v2210_v30  ;;  %4267 = vmatpush1.msra.mxu0 %v2722_v55  ;;  %v3011_v29 = vld [vmem:[%s6533_s22 + $0x2f28] sm:$0xff]  ;;  %v2498_v30 = vld [vmem:[%s6533_s22 + $0x1f20] sm:$0xff] }
 0x2c5   : > { %4197 = vmatprep.subr.mxu1 %v2195_v32  ;;  %4268 = vmatprep.subr.mxu0 %v2707_v33  ;;  %v3010_v55 = vld [vmem:[%s6533_s22 + $0x2f20] sm:$0xff]  ;;  %v2483_v32 = vld [vmem:[%s6533_s22 + $0x1ea8] sm:$0xff] }
 0x2c6   : > { %4198 = vmatpush1.msra.mxu1 %v2194_v34  ;;  %4269 = vmatpush1.msra.mxu0 %v2706_v35  ;;  %v2995_v33 = vld [vmem:[%s6533_s22 + $0x2ea8] sm:$0xff]  ;;  %v2482_v34 = vld [vmem:[%s6533_s22 + $0x1ea0] sm:$0xff] }
 0x2c7   : > { %4199 = vmatprep.subr.mxu1 %v2179_v36  ;;  %4270 = vmatprep.subr.mxu0 %v2691_v37  ;;  %v2994_v35 = vld [vmem:[%s6533_s22 + $0x2ea0] sm:$0xff]  ;;  %v2467_v36 = vld [vmem:[%s6533_s22 + $0x1e28] sm:$0xff] }
 0x2c8   : > { %4200 = vmatpush1.msra.mxu1 %v2178_v51  ;;  %4271 = vmatpush1.msra.mxu0 %v2690_v38  ;;  %v2979_v37 = vld [vmem:[%s6533_s22 + $0x2e28] sm:$0xff]  ;;  %v2466_v51 = vld [vmem:[%s6533_s22 + $0x1e20] sm:$0xff] }
 0x2c9   : > { %4201 = vmatprep.subr.mxu1 %v2163_v13  ;;  %4272 = vmatprep.subr.mxu0 %v2675_v40  ;;  %v2978_v38 = vld [vmem:[%s6533_s22 + $0x2e20] sm:$0xff]  ;;  %v2451_v13 = vld [vmem:[%s6533_s22 + $0x1da8] sm:$0xff] }
 0x2ca   : > { %4202 = vmatpush1.msra.mxu1 %v2162_v41  ;;  %4273 = vmatpush1.msra.mxu0 %v2674_v63  ;;  %v2963_v40 = vld [vmem:[%s6533_s22 + $0x2da8] sm:$0xff]  ;;  %v2450_v41 = vld [vmem:[%s6533_s22 + $0x1da0] sm:$0xff] }
 0x2cb   : > { %4203 = vmatprep.subr.mxu1 %v2147_v19  ;;  %4274 = vmatprep.subr.mxu0 %v2659_v43  ;;  %v2962_v63 = vld [vmem:[%s6533_s22 + $0x2da0] sm:$0xff]  ;;  %v2435_v19 = vld [vmem:[%s6533_s22 + $0x1d28] sm:$0xff] }
 0x2cc   : > { %4204 = vmatpush1.msra.mxu1 %v2146_v44  ;;  %4275 = vmatpush1.msra.mxu0 %v2658_v7  ;;  %v2947_v43 = vld [vmem:[%s6533_s22 + $0x2d28] sm:$0xff]  ;;  %v2434_v44 = vld [vmem:[%s6533_s22 + $0x1d20] sm:$0xff] }
 0x2cd   : > { %4205 = vmatprep.subr.mxu1 %v2131_v45  ;;  %4276 = vmatprep.subr.mxu0 %v2643_v46  ;;  %v2946_v7 = vld [vmem:[%s6533_s22 + $0x2d20] sm:$0xff]  ;;  %v2419_v45 = vld [vmem:[%s6533_s22 + $0x1ca8] sm:$0xff] }
 0x2ce   : > { %4206 = vmatpush1.msra.mxu1 %v2130_v47  ;;  %4277 = vmatpush1.msra.mxu0 %v2642_v49  ;;  %v2931_v46 = vld [vmem:[%s6533_s22 + $0x2ca8] sm:$0xff]  ;;  %v2418_v47 = vld [vmem:[%s6533_s22 + $0x1ca0] sm:$0xff] }
 0x2cf   : > { %4207 = vmatprep.subr.mxu1 %v2115_v50  ;;  %4278 = vmatprep.subr.mxu0 %v2627_v52  ;;  %v2930_v49 = vld [vmem:[%s6533_s22 + $0x2ca0] sm:$0xff]  ;;  %v2403_v50 = vld [vmem:[%s6533_s22 + $0x1c28] sm:$0xff] }
 0x2d0   : > { %4208 = vmatpush1.msra.mxu1 %v2114_v53  ;;  %4279 = vmatpush1.msra.mxu0 %v2626_v54  ;;  %v2915_v52 = vld [vmem:[%s6533_s22 + $0x2c28] sm:$0xff]  ;;  %v2402_v53 = vld [vmem:[%s6533_s22 + $0x1c20] sm:$0xff] }
 0x2d1   : > { %4209 = vmatprep.subr.mxu1 %v2099_v31  ;;  %4280 = vmatprep.subr.mxu0 %v2611_v57  ;;  %v2914_v54 = vld [vmem:[%s6533_s22 + $0x2c20] sm:$0xff]  ;;  %v2387_v31 = vld [vmem:[%s6533_s22 + $0x1ba8] sm:$0xff] }
 0x2d2   : > { %4210 = vmatpush1.msra.mxu1 %v2098_v59  ;;  %4281 = vmatpush1.msra.mxu0 %v2610_v60  ;;  %v2899_v57 = vld [vmem:[%s6533_s22 + $0x2ba8] sm:$0xff]  ;;  %v2386_v59 = vld [vmem:[%s6533_s22 + $0x1ba0] sm:$0xff] }
 0x2d3   : > { %4211 = vmatprep.subr.mxu1 %v2083_v61  ;;  %4282 = vmatprep.subr.mxu0 %v2595_v62  ;;  %v2898_v60 = vld [vmem:[%s6533_s22 + $0x2ba0] sm:$0xff]  ;;  %v2371_v61 = vld [vmem:[%s6533_s22 + $0x1b28] sm:$0xff] }
 0x2d4   : > { %4212 = vmatpush1.msra.mxu1 %v2082_v0  ;;  %4283 = vmatpush1.msra.mxu0 %v2594_v3  ;;  %v2883_v62 = vld [vmem:[%s6533_s22 + $0x2b28] sm:$0xff]  ;;  %v2370_v0 = vld [vmem:[%s6533_s22 + $0x1b20] sm:$0xff] }
 0x2d5   : > { %4213 = vmatprep.subr.mxu1 %v2067_v4  ;;  %4284 = vmatprep.subr.mxu0 %v2579_v6  ;;  %v2882_v3 = vld [vmem:[%s6533_s22 + $0x2b20] sm:$0xff]  ;;  %v3616_v4 = vpop.f32.mrf.mxu0  ;;  %v2355_v6 = vld [vmem:[%s6533_s22 + $0x1aa8] sm:$0xff] }
 0x2d6   : > { %4214 = vmatpush1.msra.mxu1 %v2066_v8  ;;  %4285 = vmatpush1.msra.mxu0 %v2578_v9  ;;  %v2867_v8 = vld [vmem:[%s6533_s22 + $0x2aa8] sm:$0xff]  ;;  %v2354_v9 = vld [vmem:[%s6533_s22 + $0x1aa0] sm:$0xff] }
 0x2d7   : > { %4215 = vmatprep.subr.mxu1 %v2051_v10  ;;  %4286 = vmatprep.subr.mxu0 %v2563_v11  ;;  %v2866_v10 = vld [vmem:[%s6533_s22 + $0x2aa0] sm:$0xff]  ;;  %v2339_v11 = vld [vmem:[%s6533_s22 + $0x1a28] sm:$0xff] }
 0x2d8   : > { %4216 = vmatpush1.msra.mxu1 %v2050_v12  ;;  %4287 = vmatpush1.msra.mxu0 %v2562_v14  ;;  %v2851_v12 = vld [vmem:[%s6533_s22 + $0x2a28] sm:$0xff]  ;;  %v2338_v14 = vld [vmem:[%s6533_s22 + $0x1a20] sm:$0xff] }
 0x2d9   : > { %4217 = vmatprep.subr.mxu1 %v2035_v16  ;;  %4288 = vmatprep.subr.mxu0 %v2547_v17  ;;  %v2850_v16 = vld [vmem:[%s6533_s22 + $0x2a20] sm:$0xff]  ;;  %v3618_v17 = vpop.f32.mrf.mxu0 }
 0x2da   : > { %4218 = vmatpush1.msra.mxu1 %v2034_v18  ;;  %4289 = vmatpush1.msra.mxu0 %v2546_v1  ;;  %v3687_v18 = vpop.f32.mrf.mxu1  ;;  %v2323_v1 = vld [vmem:[%s6533_s22 + $0x19a8] sm:$0xff] }
 0x2db   : > { %4219 = vmatprep.subr.mxu1 %v2019_v2  ;;  %4290 = vmatprep.subr.mxu0 %v2531_v20  ;;  %v2835_v2 = vld [vmem:[%s6533_s22 + $0x29a8] sm:$0xff]  ;;  %v2322_v20 = vld [vmem:[%s6533_s22 + $0x19a0] sm:$0xff] }
 0x2dc   : > { %4220 = vmatpush1.msra.mxu1 %v2018_v22  ;;  %4291 = vmatpush1.msra.mxu0 %v2530_v23  ;;  %v2834_v22 = vld [vmem:[%s6533_s22 + $0x29a0] sm:$0xff]  ;;  %v3758_v23 = vpop.f32.mrf.mxu0 }
 0x2dd   : > { %4221 = vmatprep.subr.mxu1 %v2515_v24  ;;  %4292 = vmatprep.subr.mxu0 %v3027_v25  ;;  %v2307_v24 = vld [vmem:[%s6533_s22 + $0x1928] sm:$0xff] }
 0x2de   : > { %4222 = vmatpush2.msra.mxu1 %v2514_v26  ;;  %4293 = vmatpush2.msra.mxu0 %v3026_v27  ;;  %v2819_v25 = vld [vmem:[%s6533_s22 + $0x2928] sm:$0xff]  ;;  %v2306_v26 = vld [vmem:[%s6533_s22 + $0x1920] sm:$0xff] }
 0x2df   : > { %4223 = vmatprep.subr.mxu1 %v2499_v28  ;;  %4294 = vmatprep.subr.mxu0 %v3011_v29  ;;  %v2818_v27 = vld [vmem:[%s6533_s22 + $0x2920] sm:$0xff]  ;;  %v3689_v28 = vpop.f32.mrf.mxu1  ;;  %v2291_v29 = vld [vmem:[%s6533_s22 + $0x18a8] sm:$0xff] }
 0x2e0   : > { %4224 = vmatpush2.msra.mxu1 %v2498_v30  ;;  %4295 = vmatpush2.msra.mxu0 %v3010_v55  ;;  %v2803_v30 = vld [vmem:[%s6533_s22 + $0x28a8] sm:$0xff]  ;;  %v3688_v55 = vadd.f32 %v3687_v18, %v3616_v4  ;;  %v3218_v4 = vld [vmem:[%s6533_s22 + $0x35a0] sm:$0xff] }
 0x2e1   : > { %4225 = vmatprep.subr.mxu1 %v2483_v32  ;;  %4296 = vmatprep.subr.mxu0 %v2995_v33  ;;  %v2290_v32 = vld [vmem:[%s6533_s22 + $0x18a0] sm:$0xff]  ;;  %v3171_v18 = vld [vmem:[%s6533_s22 + $0x3428] sm:$0xff] }
 0x2e2   : > { %4226 = vmatpush2.msra.mxu1 %v2482_v34  ;;  %4297 = vmatpush2.msra.mxu0 %v2994_v35  ;;  %v2802_v33 = vld [vmem:[%s6533_s22 + $0x28a0] sm:$0xff]  ;;  %v3760_v34 = vpop.f32.mrf.mxu0  ;;  %v2275_v35 = vld [vmem:[%s6533_s22 + $0x1828] sm:$0xff] }
 0x2e3   : > { %4227 = vmatprep.subr.mxu1 %v2467_v36  ;;  %4298 = vmatprep.subr.mxu0 %v2979_v37  ;;  %v2787_v36 = vld [vmem:[%s6533_s22 + $0x2828] sm:$0xff]  ;;  %v3690_v37 = vadd.f32 %v3689_v28, %v3618_v17  ;;  %v1652_v17 = vld [vmem:[%s6533_s22 + $0x4b0] sm:$0xff]  ;;  %v3138_v28 = vld [vmem:[%s6533_s22 + $0x3320] sm:$0xff] }
 0x2e4   : > { %4228 = vmatpush2.msra.mxu1 %v2466_v51  ;;  %4299 = vmatpush2.msra.mxu0 %v2978_v38  ;;  %v3759_v51 = vadd.f32 %v3758_v23, %v3688_v55  ;;  %v2274_v38 = vld [vmem:[%s6533_s22 + $0x1820] sm:$0xff]  ;;  %v1621_v23 = vld [vmem:[%s6533_s22 + $0x3b8] sm:$0xff] }
 0x2e5   : > { %4229 = vmatprep.subr.mxu1 %v2451_v13  ;;  %4300 = vmatprep.subr.mxu0 %v2963_v40  ;;  %v2786_v13 = vld [vmem:[%s6533_s22 + $0x2820] sm:$0xff]  ;;  %v1589_v55 = vld [vmem:[%s6533_s22 + $0x2b8] sm:$0xff] }
 0x2e6   : > { %4230 = vmatpush2.msra.mxu1 %v2450_v41  ;;  %4301 = vmatpush2.msra.mxu0 %v2962_v63  ;;  %v3761_v41 = vadd.f32 %v3760_v34, %v3690_v37  ;;  %v3283_v63 = vld [vmem:[%s6533_s22 + $0x37a8] sm:$0xff]  ;;  %v1572_v37 = vld [vmem:[%s6533_s22 + $0x230] sm:$0xff] }
 0x2e7   : > { %4231 = vmatprep.subr.mxu1 %v2435_v19  ;;  %4302 = vmatprep.subr.mxu0 %v2947_v43  ;;  %v1749_v19 = vld [vmem:[%s6533_s22 + $0x7b8] sm:$0xff]  ;;  %v3107_v34 = vld [vmem:[%s6533_s22 + $0x3228] sm:$0xff] }
 0x2e8   : > { %4232 = vmatpush2.msra.mxu1 %v2434_v44  ;;  %4303 = vmatpush2.msra.mxu0 %v2946_v7  ;;  %v3282_v44 = vld [vmem:[%s6533_s22 + $0x37a0] sm:$0xff] }
 0x2e9   : > { %4233 = vmatprep.subr.mxu1 %v2419_v45  ;;  %4304 = vmatprep.subr.mxu0 %v2931_v46  ;;  %v1748_v45 = vld [vmem:[%s6533_s22 + $0x7b0] sm:$0xff] }
 0x2ea   : > { %4234 = vmatpush2.msra.mxu1 %v2418_v47  ;;  %4305 = vmatpush2.msra.mxu0 %v2930_v49  ;;  %v3267_v47 = vld [vmem:[%s6533_s22 + $0x3728] sm:$0xff]  ;;  %v1733_v49 = vld [vmem:[%s6533_s22 + $0x738] sm:$0xff] }
 0x2eb   : > { %4235 = vmatprep.subr.mxu1 %v2403_v50  ;;  %4306 = vmatprep.subr.mxu0 %v2915_v52  ;;  %v3266_v50 = vld [vmem:[%s6533_s22 + $0x3720] sm:$0xff]  ;;  %v1732_v52 = vld [vmem:[%s6533_s22 + $0x730] sm:$0xff] }
 0x2ec   : > { %4236 = vmatpush2.msra.mxu1 %v2402_v53  ;;  %4307 = vmatpush2.msra.mxu0 %v2914_v54  ;;  %v3251_v53 = vld [vmem:[%s6533_s22 + $0x36a8] sm:$0xff]  ;;  %v1717_v54 = vld [vmem:[%s6533_s22 + $0x6b8] sm:$0xff] }
 0x2ed   : > { %4237 = vmatprep.subr.mxu1 %v2387_v31  ;;  %4308 = vmatprep.subr.mxu0 %v2899_v57  ;;  %v3250_v31 = vld [vmem:[%s6533_s22 + $0x36a0] sm:$0xff]  ;;  %v1716_v57 = vld [vmem:[%s6533_s22 + $0x6b0] sm:$0xff] }
 0x2ee   : > { %4238 = vmatpush2.msra.mxu1 %v2386_v59  ;;  %4309 = vmatpush2.msra.mxu0 %v2898_v60  ;;  %v3235_v59 = vld [vmem:[%s6533_s22 + $0x3628] sm:$0xff]  ;;  %v1701_v60 = vld [vmem:[%s6533_s22 + $0x638] sm:$0xff] }
 0x2ef   : > { %4239 = vmatprep.subr.mxu1 %v2371_v61  ;;  %4310 = vmatprep.subr.mxu0 %v2883_v62  ;;  %v3234_v61 = vld [vmem:[%s6533_s22 + $0x3620] sm:$0xff]  ;;  %v1700_v62 = vld [vmem:[%s6533_s22 + $0x630] sm:$0xff] }
 0x2f0   : > { %4240 = vmatpush2.msra.mxu1 %v2370_v0  ;;  %4311 = vmatpush2.msra.mxu0 %v2882_v3  ;;  %v3219_v0 = vld [vmem:[%s6533_s22 + $0x35a8] sm:$0xff]  ;;  %v1685_v3 = vld [vmem:[%s6533_s22 + $0x5b8] sm:$0xff] }
 0x2f1   : > { %4241 = vmatprep.subr.mxu1 %v2355_v6  ;;  %4312 = vmatprep.subr.mxu0 %v2867_v8  ;;  %v1684_v6 = vld [vmem:[%s6533_s22 + $0x5b0] sm:$0xff]  ;;  %v3203_v8 = vld [vmem:[%s6533_s22 + $0x3528] sm:$0xff] }
 0x2f2   : > { %4242 = vmatpush2.msra.mxu1 %v2354_v9  ;;  %4313 = vmatpush2.msra.mxu0 %v2866_v10  ;;  %v1669_v9 = vld [vmem:[%s6533_s22 + $0x538] sm:$0xff]  ;;  %v3202_v10 = vld [vmem:[%s6533_s22 + $0x3520] sm:$0xff] }
 0x2f3   : > { %4243 = vmatprep.subr.mxu1 %v2339_v11  ;;  %4314 = vmatprep.subr.mxu0 %v2851_v12  ;;  %v1668_v11 = vld [vmem:[%s6533_s22 + $0x530] sm:$0xff]  ;;  %v3187_v12 = vld [vmem:[%s6533_s22 + $0x34a8] sm:$0xff] }
 0x2f4   : > { %4244 = vmatpush2.msra.mxu1 %v2338_v14  ;;  %4315 = vmatpush2.msra.mxu0 %v2850_v16  ;;  %v1653_v14 = vld [vmem:[%s6533_s22 + $0x4b8] sm:$0xff]  ;;  %v3186_v16 = vld [vmem:[%s6533_s22 + $0x34a0] sm:$0xff] }
 0x2f5   : > { %4245 = vmatprep.subr.mxu1 %v2323_v1  ;;  %4316 = vmatprep.subr.mxu0 %v2835_v2  ;;  %v1637_v1 = vld [vmem:[%s6533_s22 + $0x438] sm:$0xff]  ;;  %v3170_v2 = vld [vmem:[%s6533_s22 + $0x3420] sm:$0xff] }
 0x2f6   : > { %4246 = vmatpush2.msra.mxu1 %v2322_v20  ;;  %4317 = vmatpush2.msra.mxu0 %v2834_v22  ;;  %v1636_v20 = vld [vmem:[%s6533_s22 + $0x430] sm:$0xff]  ;;  %v3155_v22 = vld [vmem:[%s6533_s22 + $0x33a8] sm:$0xff] }
 0x2f7   : > { %4247 = vmatprep.subr.mxu1 %v2307_v24  ;;  %4318 = vmatprep.subr.mxu0 %v2819_v25  ;;  %v3154_v24 = vld [vmem:[%s6533_s22 + $0x33a0] sm:$0xff]  ;;  %v1620_v25 = vld [vmem:[%s6533_s22 + $0x3b0] sm:$0xff] }
 0x2f8   : > { %4248 = vmatpush2.msra.mxu1 %v2306_v26  ;;  %4319 = vmatpush2.msra.mxu0 %v2818_v27  ;;  %v3139_v26 = vld [vmem:[%s6533_s22 + $0x3328] sm:$0xff]  ;;  %v1605_v27 = vld [vmem:[%s6533_s22 + $0x338] sm:$0xff] }
 0x2f9   : > { %4249 = vmatprep.subr.mxu1 %v2291_v29  ;;  %4320 = vmatprep.subr.mxu0 %v2803_v30  ;;  %v1604_v29 = vld [vmem:[%s6533_s22 + $0x330] sm:$0xff]  ;;  %v3123_v30 = vld [vmem:[%s6533_s22 + $0x32a8] sm:$0xff] }
 0x2fa   : > { %4250 = vmatpush2.msra.mxu1 %v2290_v32  ;;  %4321 = vmatpush2.msra.mxu0 %v2802_v33  ;;  %v3829_v40 = vpop.f32.mrf.mxu1  ;;  %v3122_v32 = vld [vmem:[%s6533_s22 + $0x32a0] sm:$0xff]  ;;  %v1588_v33 = vld [vmem:[%s6533_s22 + $0x2b0] sm:$0xff] }
 0x2fb   : > { %4251 = vmatprep.subr.mxu1 %v2275_v35  ;;  %4322 = vmatprep.subr.mxu0 %v2787_v36  ;;  %v3830_v43 = vadd.f32 %v3829_v40, %v3759_v51  ;;  %v1573_v35 = vld [vmem:[%s6533_s22 + $0x238] sm:$0xff]  ;;  %v3106_v36 = vld [vmem:[%s6533_s22 + $0x3220] sm:$0xff]  ;;  %v3091_v51 = vld [vmem:[%s6533_s22 + $0x31a8] sm:$0xff] }
 0x2fc   : > { %4252 = vmatpush2.msra.mxu1 %v2274_v38  ;;  %4323 = vmatpush2.msra.mxu0 %v2786_v13  ;;  %v3831_v7 = vpop.f32.mrf.mxu1  ;;  %v1557_v38 = vld [vmem:[%s6533_s22 + $0x1b8] sm:$0xff]  ;;  %v3090_v13 = vld [vmem:[%s6533_s22 + $0x31a0] sm:$0xff]  ;;  %v1556_v40 = vld [vmem:[%s6533_s22 + $0x1b0] sm:$0xff] }
 0x2fd   : > { %4254 = vmatmul.mubr.f32.vlgmr.msra.gmra.mxu1 %v7240_v58  ;;  %4325 = vmatmul.mubr.f32.vlgmr.msra.gmra.mxu0 %v7378_v5  ;;  %v3832_v46 = vadd.f32 %v3831_v7, %v3761_v41  ;;  %5838 = vst [vmem:[%s7859_s23] sm:$0xff] %v3830_v43  ;;  %v3075_v41 = vld [vmem:[%s6533_s22 + $0x3128] sm:$0xff]  ;;  %v1540_v43 = vld [vmem:[%s6533_s22 + $0x130] sm:$0xff]  ;;  %v1525_v7 = vld [vmem:[%s6533_s22 + $0xb8] sm:$0xff] }
 0x2fe   : > { %4331 = vmatprep.subr.mxu1 %v3283_v63  ;;  %4402 = vmatprep.subr.mxu0 %v1749_v19  ;;  %v1541_v63 = vld [vmem:[%s6533_s22 + $0x138] sm:$0xff]  ;;  %v3074_v19 = vld [vmem:[%s6533_s22 + $0x3120] sm:$0xff] }
 0x2ff   : > { %4332 = vmatpush1.msra.mxu1 %v3282_v44  ;;  %4395 = vmatprep.mubr.f32.mxu1 %v7453_v15  ;;  %5839 = vst [vmem:[%s7859_s23 + $0x8] sm:$0xff] %v3832_v46  ;;  %v3059_v44 = vld [vmem:[%s6533_s22 + $0x30a8] sm:$0xff]  ;;  %v1524_v46 = vld [vmem:[%s6533_s22 + $0xb0] sm:$0xff] }
 0x300   : > { %4403 = vmatpush1.msra.mxu0 %v1748_v45  ;;  %4466 = vmatprep.mubr.f32.mxu0 %v7098_v39  ;;  %v3058_v45 = vld [vmem:[%s6533_s22 + $0x30a0] sm:$0xff] }
 0x301   : > { %4333 = vmatprep.subr.mxu1 %v3267_v47  ;;  %4404 = vmatprep.subr.mxu0 %v1733_v49  ;;  %v3043_v47 = vld [vmem:[%s6533_s22 + $0x3028] sm:$0xff]  ;;  %v1509_v49 = vld [vmem:[%s6533_s22 + $0x38] sm:$0xff] }
 0x302   : > { %4334 = vmatpush1.msra.mxu1 %v3266_v50  ;;  %4405 = vmatpush1.msra.mxu0 %v1732_v52  ;;  %v3042_v50 = vld [vmem:[%s6533_s22 + $0x3020] sm:$0xff]  ;;  %v1508_v52 = vld [vmem:[%s6533_s22 + $0x30] sm:$0xff] }
 0x303   : > { %4335 = vmatprep.subr.mxu1 %v3251_v53  ;;  %4406 = vmatprep.subr.mxu0 %v1717_v54  ;;  %v3539_v53 = vld [vmem:[%s6533_s22 + $0x3fa8] sm:$0xff]  ;;  %v2005_v54 = vld [vmem:[%s6533_s22 + $0xfb8] sm:$0xff] }
 0x304   : > { %4336 = vmatpush1.msra.mxu1 %v3250_v31  ;;  %4407 = vmatpush1.msra.mxu0 %v1716_v57  ;;  %v3538_v31 = vld [vmem:[%s6533_s22 + $0x3fa0] sm:$0xff]  ;;  %v2004_v57 = vld [vmem:[%s6533_s22 + $0xfb0] sm:$0xff] }
 0x305   : > { %4337 = vmatprep.subr.mxu1 %v3235_v59  ;;  %4408 = vmatprep.subr.mxu0 %v1701_v60  ;;  %v3523_v59 = vld [vmem:[%s6533_s22 + $0x3f28] sm:$0xff]  ;;  %v1989_v60 = vld [vmem:[%s6533_s22 + $0xf38] sm:$0xff] }
 0x306   : > { %4338 = vmatpush1.msra.mxu1 %v3234_v61  ;;  %4409 = vmatpush1.msra.mxu0 %v1700_v62  ;;  %v3522_v61 = vld [vmem:[%s6533_s22 + $0x3f20] sm:$0xff]  ;;  %v1988_v62 = vld [vmem:[%s6533_s22 + $0xf30] sm:$0xff] }
 0x307   : > { %4339 = vmatprep.subr.mxu1 %v3219_v0  ;;  %4410 = vmatprep.subr.mxu0 %v1685_v3  ;;  %v3507_v0 = vld [vmem:[%s6533_s22 + $0x3ea8] sm:$0xff]  ;;  %v1973_v3 = vld [vmem:[%s6533_s22 + $0xeb8] sm:$0xff] }
 0x308   : > { %4340 = vmatpush1.msra.mxu1 %v3218_v4  ;;  %4411 = vmatpush1.msra.mxu0 %v1684_v6  ;;  %v3506_v4 = vld [vmem:[%s6533_s22 + $0x3ea0] sm:$0xff]  ;;  %v1972_v6 = vld [vmem:[%s6533_s22 + $0xeb0] sm:$0xff] }
 0x309   : > { %4341 = vmatprep.subr.mxu1 %v3203_v8  ;;  %4412 = vmatprep.subr.mxu0 %v1669_v9  ;;  %v3491_v8 = vld [vmem:[%s6533_s22 + $0x3e28] sm:$0xff]  ;;  %v1957_v9 = vld [vmem:[%s6533_s22 + $0xe38] sm:$0xff] }
 0x30a   : > { %4342 = vmatpush1.msra.mxu1 %v3202_v10  ;;  %4413 = vmatpush1.msra.mxu0 %v1668_v11  ;;  %v3490_v10 = vld [vmem:[%s6533_s22 + $0x3e20] sm:$0xff]  ;;  %v1956_v11 = vld [vmem:[%s6533_s22 + $0xe30] sm:$0xff] }
 0x30b   : > { %4343 = vmatprep.subr.mxu1 %v3187_v12  ;;  %4414 = vmatprep.subr.mxu0 %v1653_v14  ;;  %v3475_v12 = vld [vmem:[%s6533_s22 + $0x3da8] sm:$0xff]  ;;  %v1941_v14 = vld [vmem:[%s6533_s22 + $0xdb8] sm:$0xff] }
 0x30c   : > { %4344 = vmatpush1.msra.mxu1 %v3186_v16  ;;  %4415 = vmatpush1.msra.mxu0 %v1652_v17  ;;  %v3474_v16 = vld [vmem:[%s6533_s22 + $0x3da0] sm:$0xff]  ;;  %v1940_v17 = vld [vmem:[%s6533_s22 + $0xdb0] sm:$0xff] }
 0x30d   : > { %4345 = vmatprep.subr.mxu1 %v3171_v18  ;;  %4416 = vmatprep.subr.mxu0 %v1637_v1  ;;  %v3459_v18 = vld [vmem:[%s6533_s22 + $0x3d28] sm:$0xff]  ;;  %v1925_v1 = vld [vmem:[%s6533_s22 + $0xd38] sm:$0xff] }
 0x30e   : > { %4346 = vmatpush1.msra.mxu1 %v3170_v2  ;;  %4417 = vmatpush1.msra.mxu0 %v1636_v20  ;;  %v3458_v2 = vld [vmem:[%s6533_s22 + $0x3d20] sm:$0xff]  ;;  %v1924_v20 = vld [vmem:[%s6533_s22 + $0xd30] sm:$0xff] }
 0x30f   : > { %4347 = vmatprep.subr.mxu1 %v3155_v22  ;;  %4418 = vmatprep.subr.mxu0 %v1621_v23  ;;  %v3443_v22 = vld [vmem:[%s6533_s22 + $0x3ca8] sm:$0xff]  ;;  %v1909_v23 = vld [vmem:[%s6533_s22 + $0xcb8] sm:$0xff] }
 0x310   : > { %4348 = vmatpush1.msra.mxu1 %v3154_v24  ;;  %4419 = vmatpush1.msra.mxu0 %v1620_v25  ;;  %v3442_v24 = vld [vmem:[%s6533_s22 + $0x3ca0] sm:$0xff]  ;;  %v1908_v25 = vld [vmem:[%s6533_s22 + $0xcb0] sm:$0xff] }
 0x311   : > { %4349 = vmatprep.subr.mxu1 %v3139_v26  ;;  %4420 = vmatprep.subr.mxu0 %v1605_v27  ;;  %v3427_v26 = vld [vmem:[%s6533_s22 + $0x3c28] sm:$0xff]  ;;  %v1893_v27 = vld [vmem:[%s6533_s22 + $0xc38] sm:$0xff] }
 0x312   : > { %4350 = vmatpush1.msra.mxu1 %v3138_v28  ;;  %4421 = vmatpush1.msra.mxu0 %v1604_v29  ;;  %v3426_v28 = vld [vmem:[%s6533_s22 + $0x3c20] sm:$0xff]  ;;  %v1892_v29 = vld [vmem:[%s6533_s22 + $0xc30] sm:$0xff] }
 0x313   : > { %4351 = vmatprep.subr.mxu1 %v3123_v30  ;;  %4422 = vmatprep.subr.mxu0 %v1589_v55  ;;  %v3411_v30 = vld [vmem:[%s6533_s22 + $0x3ba8] sm:$0xff]  ;;  %v1877_v55 = vld [vmem:[%s6533_s22 + $0xbb8] sm:$0xff] }
 0x314   : > { %4352 = vmatpush1.msra.mxu1 %v3122_v32  ;;  %4423 = vmatpush1.msra.mxu0 %v1588_v33  ;;  %v3410_v32 = vld [vmem:[%s6533_s22 + $0x3ba0] sm:$0xff]  ;;  %v1876_v33 = vld [vmem:[%s6533_s22 + $0xbb0] sm:$0xff] }
 0x315   : > { %4353 = vmatprep.subr.mxu1 %v3107_v34  ;;  %4424 = vmatprep.subr.mxu0 %v1573_v35  ;;  %v3395_v34 = vld [vmem:[%s6533_s22 + $0x3b28] sm:$0xff]  ;;  %v1861_v35 = vld [vmem:[%s6533_s22 + $0xb38] sm:$0xff] }
 0x316   : > { %4354 = vmatpush1.msra.mxu1 %v3106_v36  ;;  %4425 = vmatpush1.msra.mxu0 %v1572_v37  ;;  %v3394_v36 = vld [vmem:[%s6533_s22 + $0x3b20] sm:$0xff]  ;;  %v1860_v37 = vld [vmem:[%s6533_s22 + $0xb30] sm:$0xff] }
 0x317   : > { %4355 = vmatprep.subr.mxu1 %v3091_v51  ;;  %4426 = vmatprep.subr.mxu0 %v1557_v38  ;;  %v3379_v51 = vld [vmem:[%s6533_s22 + $0x3aa8] sm:$0xff]  ;;  %v1845_v38 = vld [vmem:[%s6533_s22 + $0xab8] sm:$0xff] }
 0x318   : > { %4356 = vmatpush1.msra.mxu1 %v3090_v13  ;;  %4427 = vmatpush1.msra.mxu0 %v1556_v40  ;;  %v3378_v13 = vld [vmem:[%s6533_s22 + $0x3aa0] sm:$0xff]  ;;  %v1844_v40 = vld [vmem:[%s6533_s22 + $0xab0] sm:$0xff] }
 0x319   : > { %4357 = vmatprep.subr.mxu1 %v3075_v41  ;;  %4428 = vmatprep.subr.mxu0 %v1541_v63  ;;  %v3363_v41 = vld [vmem:[%s6533_s22 + $0x3a28] sm:$0xff]  ;;  %v1829_v63 = vld [vmem:[%s6533_s22 + $0xa38] sm:$0xff] }
 0x31a   : > { %4358 = vmatpush1.msra.mxu1 %v3074_v19  ;;  %4429 = vmatpush1.msra.mxu0 %v1540_v43  ;;  %v3362_v19 = vld [vmem:[%s6533_s22 + $0x3a20] sm:$0xff]  ;;  %v1828_v43 = vld [vmem:[%s6533_s22 + $0xa30] sm:$0xff] }
 0x31b   : > { %4359 = vmatprep.subr.mxu1 %v3059_v44  ;;  %4430 = vmatprep.subr.mxu0 %v1525_v7  ;;  %v3347_v44 = vld [vmem:[%s6533_s22 + $0x39a8] sm:$0xff]  ;;  %v1813_v7 = vld [vmem:[%s6533_s22 + $0x9b8] sm:$0xff] }
 0x31c   : > { %4360 = vmatpush1.msra.mxu1 %v3058_v45  ;;  %4431 = vmatpush1.msra.mxu0 %v1524_v46  ;;  %v3346_v45 = vld [vmem:[%s6533_s22 + $0x39a0] sm:$0xff]  ;;  %v1812_v46 = vld [vmem:[%s6533_s22 + $0x9b0] sm:$0xff] }
 0x31d   : > { %4361 = vmatprep.subr.mxu1 %v3043_v47  ;;  %4432 = vmatprep.subr.mxu0 %v1509_v49  ;;  %v3331_v47 = vld [vmem:[%s6533_s22 + $0x3928] sm:$0xff]  ;;  %v1797_v49 = vld [vmem:[%s6533_s22 + $0x938] sm:$0xff] }
 0x31e   : > { %4362 = vmatpush1.msra.mxu1 %v3042_v50  ;;  %4433 = vmatpush1.msra.mxu0 %v1508_v52  ;;  %v3330_v50 = vld [vmem:[%s6533_s22 + $0x3920] sm:$0xff]  ;;  %v1796_v52 = vld [vmem:[%s6533_s22 + $0x930] sm:$0xff] }
 0x31f   : > { %4363 = vmatprep.subr.mxu1 %v3539_v53  ;;  %4434 = vmatprep.subr.mxu0 %v2005_v54  ;;  %v3315_v53 = vld [vmem:[%s6533_s22 + $0x38a8] sm:$0xff]  ;;  %v1781_v54 = vld [vmem:[%s6533_s22 + $0x8b8] sm:$0xff] }
 0x320   : > { %4364 = vmatpush2.msra.mxu1 %v3538_v31  ;;  %4435 = vmatpush2.msra.mxu0 %v2004_v57  ;;  %v3314_v31 = vld [vmem:[%s6533_s22 + $0x38a0] sm:$0xff]  ;;  %v1780_v57 = vld [vmem:[%s6533_s22 + $0x8b0] sm:$0xff] }
 0x321   : > { %4365 = vmatprep.subr.mxu1 %v3523_v59  ;;  %4436 = vmatprep.subr.mxu0 %v1989_v60  ;;  %v3299_v59 = vld [vmem:[%s6533_s22 + $0x3828] sm:$0xff]  ;;  %v1765_v60 = vld [vmem:[%s6533_s22 + $0x838] sm:$0xff] }
 0x322   : > { %4366 = vmatpush2.msra.mxu1 %v3522_v61  ;;  %4437 = vmatpush2.msra.mxu0 %v1988_v62  ;;  %v3298_v61 = vld [vmem:[%s6533_s22 + $0x3820] sm:$0xff]  ;;  %v1764_v62 = vld [vmem:[%s6533_s22 + $0x830] sm:$0xff] }
 0x323   : > { %4367 = vmatprep.subr.mxu1 %v3507_v0  ;;  %4438 = vmatprep.subr.mxu0 %v1973_v3  ;;  %v2261_v0 = vld [vmem:[%s6533_s22 + $0x17b8] sm:$0xff] }
 0x324   : > { %4368 = vmatpush2.msra.mxu1 %v3506_v4  ;;  %4439 = vmatpush2.msra.mxu0 %v1972_v6  ;;  %v2773_v3 = vld [vmem:[%s6533_s22 + $0x27b8] sm:$0xff]  ;;  %v2260_v4 = vld [vmem:[%s6533_s22 + $0x17b0] sm:$0xff] }
 0x325   : > { %4369 = vmatprep.subr.mxu1 %v3491_v8  ;;  %4440 = vmatprep.subr.mxu0 %v1957_v9  ;;  %v2772_v6 = vld [vmem:[%s6533_s22 + $0x27b0] sm:$0xff]  ;;  %v2245_v8 = vld [vmem:[%s6533_s22 + $0x1738] sm:$0xff] }
 0x326   : > { %4370 = vmatpush2.msra.mxu1 %v3490_v10  ;;  %4441 = vmatpush2.msra.mxu0 %v1956_v11  ;;  %v2757_v9 = vld [vmem:[%s6533_s22 + $0x2738] sm:$0xff]  ;;  %v2244_v10 = vld [vmem:[%s6533_s22 + $0x1730] sm:$0xff] }
 0x327   : > { %4371 = vmatprep.subr.mxu1 %v3475_v12  ;;  %4442 = vmatprep.subr.mxu0 %v1941_v14  ;;  %v2756_v11 = vld [vmem:[%s6533_s22 + $0x2730] sm:$0xff]  ;;  %v2229_v12 = vld [vmem:[%s6533_s22 + $0x16b8] sm:$0xff] }
 0x328   : > { %4372 = vmatpush2.msra.mxu1 %v3474_v16  ;;  %4443 = vmatpush2.msra.mxu0 %v1940_v17  ;;  %v2741_v14 = vld [vmem:[%s6533_s22 + $0x26b8] sm:$0xff]  ;;  %v2228_v16 = vld [vmem:[%s6533_s22 + $0x16b0] sm:$0xff] }
 0x329   : > { %4373 = vmatprep.subr.mxu1 %v3459_v18  ;;  %4444 = vmatprep.subr.mxu0 %v1925_v1  ;;  %v2740_v17 = vld [vmem:[%s6533_s22 + $0x26b0] sm:$0xff]  ;;  %v2213_v18 = vld [vmem:[%s6533_s22 + $0x1638] sm:$0xff] }
 0x32a   : > { %4374 = vmatpush2.msra.mxu1 %v3458_v2  ;;  %4445 = vmatpush2.msra.mxu0 %v1924_v20  ;;  %v2725_v1 = vld [vmem:[%s6533_s22 + $0x2638] sm:$0xff]  ;;  %v2212_v2 = vld [vmem:[%s6533_s22 + $0x1630] sm:$0xff] }
 0x32b   : > { %4375 = vmatprep.subr.mxu1 %v3443_v22  ;;  %4446 = vmatprep.subr.mxu0 %v1909_v23  ;;  %v2724_v20 = vld [vmem:[%s6533_s22 + $0x2630] sm:$0xff]  ;;  %v2197_v22 = vld [vmem:[%s6533_s22 + $0x15b8] sm:$0xff] }
 0x32c   : > { %4376 = vmatpush2.msra.mxu1 %v3442_v24  ;;  %4447 = vmatpush2.msra.mxu0 %v1908_v25  ;;  %v2709_v23 = vld [vmem:[%s6533_s22 + $0x25b8] sm:$0xff]  ;;  %v2196_v24 = vld [vmem:[%s6533_s22 + $0x15b0] sm:$0xff] }
 0x32d   : > { %4377 = vmatprep.subr.mxu1 %v3427_v26  ;;  %4448 = vmatprep.subr.mxu0 %v1893_v27  ;;  %v2708_v25 = vld [vmem:[%s6533_s22 + $0x25b0] sm:$0xff]  ;;  %v2181_v26 = vld [vmem:[%s6533_s22 + $0x1538] sm:$0xff] }
 0x32e   : > { %4378 = vmatpush2.msra.mxu1 %v3426_v28  ;;  %4449 = vmatpush2.msra.mxu0 %v1892_v29  ;;  %v2693_v27 = vld [vmem:[%s6533_s22 + $0x2538] sm:$0xff]  ;;  %v2180_v28 = vld [vmem:[%s6533_s22 + $0x1530] sm:$0xff] }
 0x32f   : > { %4379 = vmatprep.subr.mxu1 %v3411_v30  ;;  %4450 = vmatprep.subr.mxu0 %v1877_v55  ;;  %v2692_v29 = vld [vmem:[%s6533_s22 + $0x2530] sm:$0xff]  ;;  %v2165_v30 = vld [vmem:[%s6533_s22 + $0x14b8] sm:$0xff] }
 0x330   : > { %4380 = vmatpush2.msra.mxu1 %v3410_v32  ;;  %4451 = vmatpush2.msra.mxu0 %v1876_v33  ;;  %v2677_v55 = vld [vmem:[%s6533_s22 + $0x24b8] sm:$0xff]  ;;  %v2164_v32 = vld [vmem:[%s6533_s22 + $0x14b0] sm:$0xff] }
 0x331   : > { %4381 = vmatprep.subr.mxu1 %v3395_v34  ;;  %4452 = vmatprep.subr.mxu0 %v1861_v35  ;;  %v2676_v33 = vld [vmem:[%s6533_s22 + $0x24b0] sm:$0xff]  ;;  %v2149_v34 = vld [vmem:[%s6533_s22 + $0x1438] sm:$0xff] }
 0x332   : > { %4382 = vmatpush2.msra.mxu1 %v3394_v36  ;;  %4453 = vmatpush2.msra.mxu0 %v1860_v37  ;;  %v2661_v35 = vld [vmem:[%s6533_s22 + $0x2438] sm:$0xff]  ;;  %v2148_v36 = vld [vmem:[%s6533_s22 + $0x1430] sm:$0xff] }
 0x333   : > { %4383 = vmatprep.subr.mxu1 %v3379_v51  ;;  %4454 = vmatprep.subr.mxu0 %v1845_v38  ;;  %v2660_v37 = vld [vmem:[%s6533_s22 + $0x2430] sm:$0xff]  ;;  %v2133_v51 = vld [vmem:[%s6533_s22 + $0x13b8] sm:$0xff] }
 0x334   : > { %4384 = vmatpush2.msra.mxu1 %v3378_v13  ;;  %4455 = vmatpush2.msra.mxu0 %v1844_v40  ;;  %v2645_v38 = vld [vmem:[%s6533_s22 + $0x23b8] sm:$0xff]  ;;  %v2132_v13 = vld [vmem:[%s6533_s22 + $0x13b0] sm:$0xff] }
 0x335   : > { %4385 = vmatprep.subr.mxu1 %v3363_v41  ;;  %4456 = vmatprep.subr.mxu0 %v1829_v63  ;;  %v2644_v40 = vld [vmem:[%s6533_s22 + $0x23b0] sm:$0xff]  ;;  %v2117_v41 = vld [vmem:[%s6533_s22 + $0x1338] sm:$0xff] }
 0x336   : > { %4386 = vmatpush2.msra.mxu1 %v3362_v19  ;;  %4457 = vmatpush2.msra.mxu0 %v1828_v43  ;;  %v2629_v63 = vld [vmem:[%s6533_s22 + $0x2338] sm:$0xff]  ;;  %v2116_v19 = vld [vmem:[%s6533_s22 + $0x1330] sm:$0xff] }
 0x337   : > { %4387 = vmatprep.subr.mxu1 %v3347_v44  ;;  %4458 = vmatprep.subr.mxu0 %v1813_v7  ;;  %v2628_v43 = vld [vmem:[%s6533_s22 + $0x2330] sm:$0xff]  ;;  %v2101_v44 = vld [vmem:[%s6533_s22 + $0x12b8] sm:$0xff] }
 0x338   : > { %4388 = vmatpush2.msra.mxu1 %v3346_v45  ;;  %4459 = vmatpush2.msra.mxu0 %v1812_v46  ;;  %v2613_v7 = vld [vmem:[%s6533_s22 + $0x22b8] sm:$0xff]  ;;  %v2100_v45 = vld [vmem:[%s6533_s22 + $0x12b0] sm:$0xff] }
 0x339   : > { %4389 = vmatprep.subr.mxu1 %v3331_v47  ;;  %4460 = vmatprep.subr.mxu0 %v1797_v49  ;;  %v2612_v46 = vld [vmem:[%s6533_s22 + $0x22b0] sm:$0xff]  ;;  %v2085_v47 = vld [vmem:[%s6533_s22 + $0x1238] sm:$0xff] }
 0x33a   : > { %4390 = vmatpush2.msra.mxu1 %v3330_v50  ;;  %4461 = vmatpush2.msra.mxu0 %v1796_v52  ;;  %v2597_v49 = vld [vmem:[%s6533_s22 + $0x2238] sm:$0xff]  ;;  %v2084_v50 = vld [vmem:[%s6533_s22 + $0x1230] sm:$0xff] }
 0x33b   : > { %4391 = vmatprep.subr.mxu1 %v3315_v53  ;;  %4462 = vmatprep.subr.mxu0 %v1781_v54  ;;  %v2596_v52 = vld [vmem:[%s6533_s22 + $0x2230] sm:$0xff]  ;;  %v2069_v53 = vld [vmem:[%s6533_s22 + $0x11b8] sm:$0xff] }
 0x33c   : > { %4392 = vmatpush2.msra.mxu1 %v3314_v31  ;;  %4463 = vmatpush2.msra.mxu0 %v1780_v57  ;;  %v2581_v54 = vld [vmem:[%s6533_s22 + $0x21b8] sm:$0xff]  ;;  %v2068_v31 = vld [vmem:[%s6533_s22 + $0x11b0] sm:$0xff] }
 0x33d   : > { %4393 = vmatprep.subr.mxu1 %v3299_v59  ;;  %4464 = vmatprep.subr.mxu0 %v1765_v60  ;;  %v2580_v57 = vld [vmem:[%s6533_s22 + $0x21b0] sm:$0xff]  ;;  %v2053_v59 = vld [vmem:[%s6533_s22 + $0x1138] sm:$0xff] }
 0x33e   : > { %4394 = vmatpush2.msra.mxu1 %v3298_v61  ;;  %4465 = vmatpush2.msra.mxu0 %v1764_v62  ;;  %v2565_v60 = vld [vmem:[%s6533_s22 + $0x2138] sm:$0xff]  ;;  %v2052_v61 = vld [vmem:[%s6533_s22 + $0x1130] sm:$0xff] }
 0x33f   : > { %4396 = vmatmul.mubr.f32.vlgmr.msra.gmra.mxu1 %v7457_v42  ;;  %4467 = vmatmul.mubr.f32.vlgmr.msra.gmra.mxu0 %v7230_v48  ;;  %v2564_v62 = vld [vmem:[%s6533_s22 + $0x2130] sm:$0xff] }
 0x340   : > { %4473 = vmatprep.subr.mxu1 %v2261_v0  ;;  %4544 = vmatprep.subr.mxu0 %v2773_v3  ;;  %v2037_v0 = vld [vmem:[%s6533_s22 + $0x10b8] sm:$0xff] }
 0x341   : > { %4474 = vmatpush1.msra.mxu1 %v2260_v4  ;;  %4537 = vmatprep.mubr.f32.mxu1 %v7237_v56  ;;  %v2549_v3 = vld [vmem:[%s6533_s22 + $0x20b8] sm:$0xff]  ;;  %v2036_v4 = vld [vmem:[%s6533_s22 + $0x10b0] sm:$0xff] }
 0x342   : > { %4545 = vmatpush1.msra.mxu0 %v2772_v6  ;;  %4608 = vmatprep.mubr.f32.mxu0 %v7376_v21  ;;  %v2548_v6 = vld [vmem:[%s6533_s22 + $0x20b0] sm:$0xff] }
 0x343   : > { %4475 = vmatprep.subr.mxu1 %v2245_v8  ;;  %4546 = vmatprep.subr.mxu0 %v2757_v9  ;;  %v2021_v8 = vld [vmem:[%s6533_s22 + $0x1038] sm:$0xff] }
 0x344   : > { %4476 = vmatpush1.msra.mxu1 %v2244_v10  ;;  %4547 = vmatpush1.msra.mxu0 %v2756_v11  ;;  %v2533_v9 = vld [vmem:[%s6533_s22 + $0x2038] sm:$0xff]  ;;  %v2020_v10 = vld [vmem:[%s6533_s22 + $0x1030] sm:$0xff] }
 0x345   : > { %4477 = vmatprep.subr.mxu1 %v2229_v12  ;;  %4548 = vmatprep.subr.mxu0 %v2741_v14  ;;  %v2532_v11 = vld [vmem:[%s6533_s22 + $0x2030] sm:$0xff]  ;;  %v2517_v12 = vld [vmem:[%s6533_s22 + $0x1fb8] sm:$0xff] }
 0x346   : > { %4478 = vmatpush1.msra.mxu1 %v2228_v16  ;;  %4549 = vmatpush1.msra.mxu0 %v2740_v17  ;;  %v3029_v14 = vld [vmem:[%s6533_s22 + $0x2fb8] sm:$0xff]  ;;  %v2516_v16 = vld [vmem:[%s6533_s22 + $0x1fb0] sm:$0xff] }
 0x347   : > { %4479 = vmatprep.subr.mxu1 %v2213_v18  ;;  %4550 = vmatprep.subr.mxu0 %v2725_v1  ;;  %v3028_v17 = vld [vmem:[%s6533_s22 + $0x2fb0] sm:$0xff]  ;;  %v2501_v18 = vld [vmem:[%s6533_s22 + $0x1f38] sm:$0xff] }
 0x348   : > { %4480 = vmatpush1.msra.mxu1 %v2212_v2  ;;  %4551 = vmatpush1.msra.mxu0 %v2724_v20  ;;  %v3013_v1 = vld [vmem:[%s6533_s22 + $0x2f38] sm:$0xff]  ;;  %v2500_v2 = vld [vmem:[%s6533_s22 + $0x1f30] sm:$0xff] }
 0x349   : > { %4481 = vmatprep.subr.mxu1 %v2197_v22  ;;  %4552 = vmatprep.subr.mxu0 %v2709_v23  ;;  %v3012_v20 = vld [vmem:[%s6533_s22 + $0x2f30] sm:$0xff]  ;;  %v2485_v22 = vld [vmem:[%s6533_s22 + $0x1eb8] sm:$0xff] }
 0x34a   : > { %4482 = vmatpush1.msra.mxu1 %v2196_v24  ;;  %4553 = vmatpush1.msra.mxu0 %v2708_v25  ;;  %v2997_v23 = vld [vmem:[%s6533_s22 + $0x2eb8] sm:$0xff]  ;;  %v2484_v24 = vld [vmem:[%s6533_s22 + $0x1eb0] sm:$0xff] }
 0x34b   : > { %4483 = vmatprep.subr.mxu1 %v2181_v26  ;;  %4554 = vmatprep.subr.mxu0 %v2693_v27  ;;  %v2996_v25 = vld [vmem:[%s6533_s22 + $0x2eb0] sm:$0xff]  ;;  %v2469_v26 = vld [vmem:[%s6533_s22 + $0x1e38] sm:$0xff] }
 0x34c   : > { %4484 = vmatpush1.msra.mxu1 %v2180_v28  ;;  %4555 = vmatpush1.msra.mxu0 %v2692_v29  ;;  %v2981_v27 = vld [vmem:[%s6533_s22 + $0x2e38] sm:$0xff]  ;;  %v2468_v28 = vld [vmem:[%s6533_s22 + $0x1e30] sm:$0xff] }
 0x34d   : > { %4485 = vmatprep.subr.mxu1 %v2165_v30  ;;  %4556 = vmatprep.subr.mxu0 %v2677_v55  ;;  %v2980_v29 = vld [vmem:[%s6533_s22 + $0x2e30] sm:$0xff]  ;;  %v2453_v30 = vld [vmem:[%s6533_s22 + $0x1db8] sm:$0xff] }
 0x34e   : > { %4486 = vmatpush1.msra.mxu1 %v2164_v32  ;;  %4557 = vmatpush1.msra.mxu0 %v2676_v33  ;;  %v2965_v55 = vld [vmem:[%s6533_s22 + $0x2db8] sm:$0xff]  ;;  %v2452_v32 = vld [vmem:[%s6533_s22 + $0x1db0] sm:$0xff] }
 0x34f   : > { %4487 = vmatprep.subr.mxu1 %v2149_v34  ;;  %4558 = vmatprep.subr.mxu0 %v2661_v35  ;;  %v2964_v33 = vld [vmem:[%s6533_s22 + $0x2db0] sm:$0xff]  ;;  %v2437_v34 = vld [vmem:[%s6533_s22 + $0x1d38] sm:$0xff] }
 0x350   : > { %4488 = vmatpush1.msra.mxu1 %v2148_v36  ;;  %4559 = vmatpush1.msra.mxu0 %v2660_v37  ;;  %v2949_v35 = vld [vmem:[%s6533_s22 + $0x2d38] sm:$0xff]  ;;  %v2436_v36 = vld [vmem:[%s6533_s22 + $0x1d30] sm:$0xff] }
 0x351   : > { %4489 = vmatprep.subr.mxu1 %v2133_v51  ;;  %4560 = vmatprep.subr.mxu0 %v2645_v38  ;;  %v2948_v37 = vld [vmem:[%s6533_s22 + $0x2d30] sm:$0xff]  ;;  %v2421_v51 = vld [vmem:[%s6533_s22 + $0x1cb8] sm:$0xff] }
 0x352   : > { %4490 = vmatpush1.msra.mxu1 %v2132_v13  ;;  %4561 = vmatpush1.msra.mxu0 %v2644_v40  ;;  %v2933_v38 = vld [vmem:[%s6533_s22 + $0x2cb8] sm:$0xff]  ;;  %v2420_v13 = vld [vmem:[%s6533_s22 + $0x1cb0] sm:$0xff] }
 0x353   : > { %4491 = vmatprep.subr.mxu1 %v2117_v41  ;;  %4562 = vmatprep.subr.mxu0 %v2629_v63  ;;  %v2932_v40 = vld [vmem:[%s6533_s22 + $0x2cb0] sm:$0xff]  ;;  %v2405_v41 = vld [vmem:[%s6533_s22 + $0x1c38] sm:$0xff] }
 0x354   : > { %4492 = vmatpush1.msra.mxu1 %v2116_v19  ;;  %4563 = vmatpush1.msra.mxu0 %v2628_v43  ;;  %v2917_v63 = vld [vmem:[%s6533_s22 + $0x2c38] sm:$0xff]  ;;  %v2404_v19 = vld [vmem:[%s6533_s22 + $0x1c30] sm:$0xff] }
 0x355   : > { %4493 = vmatprep.subr.mxu1 %v2101_v44  ;;  %4564 = vmatprep.subr.mxu0 %v2613_v7  ;;  %v2916_v43 = vld [vmem:[%s6533_s22 + $0x2c30] sm:$0xff]  ;;  %v2389_v44 = vld [vmem:[%s6533_s22 + $0x1bb8] sm:$0xff] }
 0x356   : > { %4494 = vmatpush1.msra.mxu1 %v2100_v45  ;;  %4565 = vmatpush1.msra.mxu0 %v2612_v46  ;;  %v2901_v7 = vld [vmem:[%s6533_s22 + $0x2bb8] sm:$0xff]  ;;  %v2388_v45 = vld [vmem:[%s6533_s22 + $0x1bb0] sm:$0xff] }
 0x357   : > { %4495 = vmatprep.subr.mxu1 %v2085_v47  ;;  %4566 = vmatprep.subr.mxu0 %v2597_v49  ;;  %v2900_v46 = vld [vmem:[%s6533_s22 + $0x2bb0] sm:$0xff]  ;;  %v2373_v47 = vld [vmem:[%s6533_s22 + $0x1b38] sm:$0xff] }
 0x358   : > { %4496 = vmatpush1.msra.mxu1 %v2084_v50  ;;  %4567 = vmatpush1.msra.mxu0 %v2596_v52  ;;  %v2885_v49 = vld [vmem:[%s6533_s22 + $0x2b38] sm:$0xff]  ;;  %v3900_v50 = vpop.f32.mrf.mxu0  ;;  %v3971_v52 = vpop.f32.mrf.mxu1 }
 0x359   : > { %4497 = vmatprep.subr.mxu1 %v2069_v53  ;;  %4568 = vmatprep.subr.mxu0 %v2581_v54  ;;  %v2372_v53 = vld [vmem:[%s6533_s22 + $0x1b30] sm:$0xff] }
 0x35a   : > { %4498 = vmatpush1.msra.mxu1 %v2068_v31  ;;  %4569 = vmatpush1.msra.mxu0 %v2580_v57  ;;  %v2884_v54 = vld [vmem:[%s6533_s22 + $0x2b30] sm:$0xff]  ;;  %v2357_v31 = vld [vmem:[%s6533_s22 + $0x1ab8] sm:$0xff] }
 0x35b   : > { %4499 = vmatprep.subr.mxu1 %v2053_v59  ;;  %4570 = vmatprep.subr.mxu0 %v2565_v60  ;;  %v2869_v57 = vld [vmem:[%s6533_s22 + $0x2ab8] sm:$0xff]  ;;  %v2356_v59 = vld [vmem:[%s6533_s22 + $0x1ab0] sm:$0xff] }
 0x35c   : > { %4500 = vmatpush1.msra.mxu1 %v2052_v61  ;;  %4571 = vmatpush1.msra.mxu0 %v2564_v62  ;;  %v2868_v60 = vld [vmem:[%s6533_s22 + $0x2ab0] sm:$0xff]  ;;  %v2341_v61 = vld [vmem:[%s6533_s22 + $0x1a38] sm:$0xff] }
 0x35d   : > { %4501 = vmatprep.subr.mxu1 %v2037_v0  ;;  %4572 = vmatprep.subr.mxu0 %v2549_v3  ;;  %v2853_v62 = vld [vmem:[%s6533_s22 + $0x2a38] sm:$0xff]  ;;  %v3902_v0 = vpop.f32.mrf.mxu0  ;;  %v3973_v3 = vpop.f32.mrf.mxu1 }
 0x35e   : > { %4502 = vmatpush1.msra.mxu1 %v2036_v4  ;;  %4573 = vmatpush1.msra.mxu0 %v2548_v6  ;;  %v2340_v4 = vld [vmem:[%s6533_s22 + $0x1a30] sm:$0xff] }
 0x35f   : > { %4503 = vmatprep.subr.mxu1 %v2021_v8  ;;  %4574 = vmatprep.subr.mxu0 %v2533_v9  ;;  %v2852_v6 = vld [vmem:[%s6533_s22 + $0x2a30] sm:$0xff]  ;;  %v3972_v8 = vadd.f32 %v3971_v52, %v3900_v50  ;;  %v2325_v9 = vld [vmem:[%s6533_s22 + $0x19b8] sm:$0xff]  ;;  %v1687_v52 = vld [vmem:[%s6533_s22 + $0x5c8] sm:$0xff] }
 0x360   : > { %4504 = vmatpush1.msra.mxu1 %v2020_v10  ;;  %4575 = vmatpush1.msra.mxu0 %v2532_v11  ;;  %v2837_v10 = vld [vmem:[%s6533_s22 + $0x29b8] sm:$0xff]  ;;  %v4042_v11 = vpop.f32.mrf.mxu0 }
 0x361   : > { %4505 = vmatprep.subr.mxu1 %v2517_v12  ;;  %4576 = vmatprep.subr.mxu0 %v3029_v14  ;;  %v2324_v12 = vld [vmem:[%s6533_s22 + $0x19b0] sm:$0xff]  ;;  %v3221_v50 = vld [vmem:[%s6533_s22 + $0x35b8] sm:$0xff] }
 0x362   : > { %4506 = vmatpush2.msra.mxu1 %v2516_v16  ;;  %4577 = vmatpush2.msra.mxu0 %v3028_v17  ;;  %v2836_v14 = vld [vmem:[%s6533_s22 + $0x29b0] sm:$0xff]  ;;  %v3974_v16 = vadd.f32 %v3973_v3, %v3902_v0  ;;  %v2309_v17 = vld [vmem:[%s6533_s22 + $0x1938] sm:$0xff]  ;;  %v1654_v3 = vld [vmem:[%s6533_s22 + $0x4c0] sm:$0xff] }
 0x363   : > { %4507 = vmatprep.subr.mxu1 %v2501_v18  ;;  %4578 = vmatprep.subr.mxu0 %v3013_v1  ;;  %v2821_v18 = vld [vmem:[%s6533_s22 + $0x2938] sm:$0xff]  ;;  %v2308_v1 = vld [vmem:[%s6533_s22 + $0x1930] sm:$0xff] }
 0x364   : > { %4508 = vmatpush2.msra.mxu1 %v2500_v2  ;;  %4579 = vmatpush2.msra.mxu0 %v3012_v20  ;;  %v2820_v2 = vld [vmem:[%s6533_s22 + $0x2930] sm:$0xff]  ;;  %v4043_v20 = vadd.f32 %v4042_v11, %v3972_v8  ;;  %v1623_v11 = vld [vmem:[%s6533_s22 + $0x3c8] sm:$0xff] }
 0x365   : > { %4509 = vmatprep.subr.mxu1 %v2485_v22  ;;  %4580 = vmatprep.subr.mxu0 %v2997_v23  ;;  %v2293_v22 = vld [vmem:[%s6533_s22 + $0x18b8] sm:$0xff]  ;;  %v3188_v0 = vld [vmem:[%s6533_s22 + $0x34b0] sm:$0xff] }
 0x366   : > { %4510 = vmatpush2.msra.mxu1 %v2484_v24  ;;  %4581 = vmatpush2.msra.mxu0 %v2996_v25  ;;  %v2805_v23 = vld [vmem:[%s6533_s22 + $0x28b8] sm:$0xff]  ;;  %v4044_v24 = vpop.f32.mrf.mxu0  ;;  %v2292_v25 = vld [vmem:[%s6533_s22 + $0x18b0] sm:$0xff] }
 0x367   : > { %4511 = vmatprep.subr.mxu1 %v2469_v26  ;;  %4582 = vmatprep.subr.mxu0 %v2981_v27  ;;  %v2804_v26 = vld [vmem:[%s6533_s22 + $0x28b0] sm:$0xff] }
 0x368   : > { %4512 = vmatpush2.msra.mxu1 %v2468_v28  ;;  %4583 = vmatpush2.msra.mxu0 %v2980_v29  ;;  %v4045_v28 = vadd.f32 %v4044_v24, %v3974_v16  ;;  %v2277_v29 = vld [vmem:[%s6533_s22 + $0x1838] sm:$0xff]  ;;  %v3172_v8 = vld [vmem:[%s6533_s22 + $0x3430] sm:$0xff] }
 0x369   : > { %4513 = vmatprep.subr.mxu1 %v2453_v30  ;;  %4584 = vmatprep.subr.mxu0 %v2965_v55  ;;  %v2789_v30 = vld [vmem:[%s6533_s22 + $0x2838] sm:$0xff] }
 0x36a   : > { %4514 = vmatpush2.msra.mxu1 %v2452_v32  ;;  %4585 = vmatpush2.msra.mxu0 %v2964_v33  ;;  %v2276_v32 = vld [vmem:[%s6533_s22 + $0x1830] sm:$0xff]  ;;  %v3141_v16 = vld [vmem:[%s6533_s22 + $0x3338] sm:$0xff] }
 0x36b   : > { %4515 = vmatprep.subr.mxu1 %v2437_v34  ;;  %4586 = vmatprep.subr.mxu0 %v2949_v35  ;;  %v2788_v33 = vld [vmem:[%s6533_s22 + $0x2830] sm:$0xff]  ;;  %v3109_v24 = vld [vmem:[%s6533_s22 + $0x3238] sm:$0xff] }
 0x36c   : > { %4516 = vmatpush2.msra.mxu1 %v2436_v36  ;;  %4587 = vmatpush2.msra.mxu0 %v2948_v37  ;;  %v3285_v36 = vld [vmem:[%s6533_s22 + $0x37b8] sm:$0xff]  ;;  %v1751_v37 = vld [vmem:[%s6533_s22 + $0x7c8] sm:$0xff] }
 0x36d   : > { %4517 = vmatprep.subr.mxu1 %v2421_v51  ;;  %4588 = vmatprep.subr.mxu0 %v2933_v38  ;;  %v3284_v51 = vld [vmem:[%s6533_s22 + $0x37b0] sm:$0xff]  ;;  %v1750_v38 = vld [vmem:[%s6533_s22 + $0x7c0] sm:$0xff] }
 0x36e   : > { %4518 = vmatpush2.msra.mxu1 %v2420_v13  ;;  %4589 = vmatpush2.msra.mxu0 %v2932_v40  ;;  %v3269_v13 = vld [vmem:[%s6533_s22 + $0x3738] sm:$0xff]  ;;  %v1735_v40 = vld [vmem:[%s6533_s22 + $0x748] sm:$0xff] }
 0x36f   : > { %4519 = vmatprep.subr.mxu1 %v2405_v41  ;;  %4590 = vmatprep.subr.mxu0 %v2917_v63  ;;  %v3268_v41 = vld [vmem:[%s6533_s22 + $0x3730] sm:$0xff]  ;;  %v1734_v63 = vld [vmem:[%s6533_s22 + $0x740] sm:$0xff] }
 0x370   : > { %4520 = vmatpush2.msra.mxu1 %v2404_v19  ;;  %4591 = vmatpush2.msra.mxu0 %v2916_v43  ;;  %v3253_v19 = vld [vmem:[%s6533_s22 + $0x36b8] sm:$0xff]  ;;  %v1719_v43 = vld [vmem:[%s6533_s22 + $0x6c8] sm:$0xff] }
 0x371   : > { %4521 = vmatprep.subr.mxu1 %v2389_v44  ;;  %4592 = vmatprep.subr.mxu0 %v2901_v7  ;;  %v3252_v44 = vld [vmem:[%s6533_s22 + $0x36b0] sm:$0xff]  ;;  %v1718_v7 = vld [vmem:[%s6533_s22 + $0x6c0] sm:$0xff] }
 0x372   : > { %4522 = vmatpush2.msra.mxu1 %v2388_v45  ;;  %4593 = vmatpush2.msra.mxu0 %v2900_v46  ;;  %v3237_v45 = vld [vmem:[%s6533_s22 + $0x3638] sm:$0xff]  ;;  %v1703_v46 = vld [vmem:[%s6533_s22 + $0x648] sm:$0xff] }
 0x373   : > { %4523 = vmatprep.subr.mxu1 %v2373_v47  ;;  %4594 = vmatprep.subr.mxu0 %v2885_v49  ;;  %v3236_v47 = vld [vmem:[%s6533_s22 + $0x3630] sm:$0xff]  ;;  %v1702_v49 = vld [vmem:[%s6533_s22 + $0x640] sm:$0xff] }
 0x374   : > { %4524 = vmatpush2.msra.mxu1 %v2372_v53  ;;  %4595 = vmatpush2.msra.mxu0 %v2884_v54  ;;  %v3220_v53 = vld [vmem:[%s6533_s22 + $0x35b0] sm:$0xff]  ;;  %v1686_v54 = vld [vmem:[%s6533_s22 + $0x5c0] sm:$0xff] }
 0x375   : > { %4525 = vmatprep.subr.mxu1 %v2357_v31  ;;  %4596 = vmatprep.subr.mxu0 %v2869_v57  ;;  %v3205_v31 = vld [vmem:[%s6533_s22 + $0x3538] sm:$0xff]  ;;  %v1671_v57 = vld [vmem:[%s6533_s22 + $0x548] sm:$0xff] }
 0x376   : > { %4526 = vmatpush2.msra.mxu1 %v2356_v59  ;;  %4597 = vmatpush2.msra.mxu0 %v2868_v60  ;;  %v3204_v59 = vld [vmem:[%s6533_s22 + $0x3530] sm:$0xff]  ;;  %v1670_v60 = vld [vmem:[%s6533_s22 + $0x540] sm:$0xff] }
 0x377   : > { %4527 = vmatprep.subr.mxu1 %v2341_v61  ;;  %4598 = vmatprep.subr.mxu0 %v2853_v62  ;;  %v3189_v61 = vld [vmem:[%s6533_s22 + $0x34b8] sm:$0xff]  ;;  %v1655_v62 = vld [vmem:[%s6533_s22 + $0x4c8] sm:$0xff] }
 0x378   : > { %4528 = vmatpush2.msra.mxu1 %v2340_v4  ;;  %4599 = vmatpush2.msra.mxu0 %v2852_v6  ;;  %v3173_v4 = vld [vmem:[%s6533_s22 + $0x3438] sm:$0xff]  ;;  %v1639_v6 = vld [vmem:[%s6533_s22 + $0x448] sm:$0xff] }
 0x379   : > { %4529 = vmatprep.subr.mxu1 %v2325_v9  ;;  %4600 = vmatprep.subr.mxu0 %v2837_v10  ;;  %v1638_v9 = vld [vmem:[%s6533_s22 + $0x440] sm:$0xff]  ;;  %v3157_v10 = vld [vmem:[%s6533_s22 + $0x33b8] sm:$0xff] }
 0x37a   : > { %4530 = vmatpush2.msra.mxu1 %v2324_v12  ;;  %4601 = vmatpush2.msra.mxu0 %v2836_v14  ;;  %v3156_v12 = vld [vmem:[%s6533_s22 + $0x33b0] sm:$0xff]  ;;  %v1622_v14 = vld [vmem:[%s6533_s22 + $0x3c0] sm:$0xff] }
 0x37b   : > { %4531 = vmatprep.subr.mxu1 %v2309_v17  ;;  %4602 = vmatprep.subr.mxu0 %v2821_v18  ;;  %v4113_v27 = vpop.f32.mrf.mxu1  ;;  %v1607_v17 = vld [vmem:[%s6533_s22 + $0x348] sm:$0xff]  ;;  %v3140_v18 = vld [vmem:[%s6533_s22 + $0x3330] sm:$0xff] }
 0x37c   : > { %4532 = vmatpush2.msra.mxu1 %v2308_v1  ;;  %4603 = vmatpush2.msra.mxu0 %v2820_v2  ;;  %v4114_v55 = vadd.f32 %v4113_v27, %v4043_v20  ;;  %v1606_v1 = vld [vmem:[%s6533_s22 + $0x340] sm:$0xff]  ;;  %v3125_v2 = vld [vmem:[%s6533_s22 + $0x32b8] sm:$0xff]  ;;  %v1591_v20 = vld [vmem:[%s6533_s22 + $0x2c8] sm:$0xff] }
 0x37d   : > { %4533 = vmatprep.subr.mxu1 %v2293_v22  ;;  %4604 = vmatprep.subr.mxu0 %v2805_v23  ;;  %v4115_v34 = vpop.f32.mrf.mxu1  ;;  %v3124_v22 = vld [vmem:[%s6533_s22 + $0x32b0] sm:$0xff]  ;;  %v1590_v23 = vld [vmem:[%s6533_s22 + $0x2c0] sm:$0xff] }
 0x37e   : > { %4534 = vmatpush2.msra.mxu1 %v2292_v25  ;;  %4605 = vmatpush2.msra.mxu0 %v2804_v26  ;;  %v4116_v35 = vadd.f32 %v4115_v34, %v4045_v28  ;;  %5840 = vst [vmem:[%s7859_s23 + $0x10] sm:$0xff] %v4114_v55  ;;  %v1575_v25 = vld [vmem:[%s6533_s22 + $0x248] sm:$0xff]  ;;  %v3108_v26 = vld [vmem:[%s6533_s22 + $0x3230] sm:$0xff]  ;;  %v1574_v27 = vld [vmem:[%s6533_s22 + $0x240] sm:$0xff] }
 0x37f   : > { %4535 = vmatprep.subr.mxu1 %v2277_v29  ;;  %4606 = vmatprep.subr.mxu0 %v2789_v30  ;;  %v3093_v28 = vld [vmem:[%s6533_s22 + $0x31b8] sm:$0xff]  ;;  %v1559_v29 = vld [vmem:[%s6533_s22 + $0x1c8] sm:$0xff]  ;;  %v3092_v30 = vld [vmem:[%s6533_s22 + $0x31b0] sm:$0xff] }
 0x380   : > { %4536 = vmatpush2.msra.mxu1 %v2276_v32  ;;  %4607 = vmatpush2.msra.mxu0 %v2788_v33  ;;  %5841 = vst [vmem:[%s7859_s23 + $0x18] sm:$0xff] %v4116_v35  ;;  %v1558_v55 = vld [vmem:[%s6533_s22 + $0x1c0] sm:$0xff]  ;;  %v3077_v32 = vld [vmem:[%s6533_s22 + $0x3138] sm:$0xff]  ;;  %v1543_v33 = vld [vmem:[%s6533_s22 + $0x148] sm:$0xff] }
 0x381   : > { %4538 = vmatmul.mubr.f32.vlgmr.msra.gmra.mxu1 %v7240_v58  ;;  %4609 = vmatmul.mubr.f32.vlgmr.msra.gmra.mxu0 %v7378_v5  ;;  %v3076_v34 = vld [vmem:[%s6533_s22 + $0x3130] sm:$0xff]  ;;  %v1542_v35 = vld [vmem:[%s6533_s22 + $0x140] sm:$0xff] }
 0x382   : > { %4615 = vmatprep.subr.mxu1 %v3285_v36  ;;  %4686 = vmatprep.subr.mxu0 %v1751_v37  ;;  %v3061_v36 = vld [vmem:[%s6533_s22 + $0x30b8] sm:$0xff]  ;;  %v1527_v37 = vld [vmem:[%s6533_s22 + $0xc8] sm:$0xff] }
 0x383   : > { %4616 = vmatpush1.msra.mxu1 %v3284_v51  ;;  %4679 = vmatprep.mubr.f32.mxu1 %v7453_v15  ;;  %v3060_v51 = vld [vmem:[%s6533_s22 + $0x30b0] sm:$0xff] }
 0x384   : > { %4687 = vmatpush1.msra.mxu0 %v1750_v38  ;;  %4750 = vmatprep.mubr.f32.mxu0 %v7098_v39  ;;  %v1526_v38 = vld [vmem:[%s6533_s22 + $0xc0] sm:$0xff] }
 0x385   : > { %4617 = vmatprep.subr.mxu1 %v3269_v13  ;;  %4688 = vmatprep.subr.mxu0 %v1735_v40  ;;  %v3045_v13 = vld [vmem:[%s6533_s22 + $0x3038] sm:$0xff]  ;;  %v1511_v40 = vld [vmem:[%s6533_s22 + $0x48] sm:$0xff] }
 0x386   : > { %4618 = vmatpush1.msra.mxu1 %v3268_v41  ;;  %4689 = vmatpush1.msra.mxu0 %v1734_v63  ;;  %v3044_v41 = vld [vmem:[%s6533_s22 + $0x3030] sm:$0xff]  ;;  %v1510_v63 = vld [vmem:[%s6533_s22 + $0x40] sm:$0xff] }
 0x387   : > { %4619 = vmatprep.subr.mxu1 %v3253_v19  ;;  %4690 = vmatprep.subr.mxu0 %v1719_v43  ;;  %v3541_v19 = vld [vmem:[%s6533_s22 + $0x3fb8] sm:$0xff]  ;;  %v2007_v43 = vld [vmem:[%s6533_s22 + $0xfc8] sm:$0xff] }
 0x388   : > { %4620 = vmatpush1.msra.mxu1 %v3252_v44  ;;  %4691 = vmatpush1.msra.mxu0 %v1718_v7  ;;  %v3540_v44 = vld [vmem:[%s6533_s22 + $0x3fb0] sm:$0xff]  ;;  %v2006_v7 = vld [vmem:[%s6533_s22 + $0xfc0] sm:$0xff] }
 0x389   : > { %4621 = vmatprep.subr.mxu1 %v3237_v45  ;;  %4692 = vmatprep.subr.mxu0 %v1703_v46  ;;  %v3525_v45 = vld [vmem:[%s6533_s22 + $0x3f38] sm:$0xff]  ;;  %v1991_v46 = vld [vmem:[%s6533_s22 + $0xf48] sm:$0xff] }
 0x38a   : > { %4622 = vmatpush1.msra.mxu1 %v3236_v47  ;;  %4693 = vmatpush1.msra.mxu0 %v1702_v49  ;;  %v3524_v47 = vld [vmem:[%s6533_s22 + $0x3f30] sm:$0xff]  ;;  %v1990_v49 = vld [vmem:[%s6533_s22 + $0xf40] sm:$0xff] }
 0x38b   : > { %4623 = vmatprep.subr.mxu1 %v3221_v50  ;;  %4694 = vmatprep.subr.mxu0 %v1687_v52  ;;  %v3509_v50 = vld [vmem:[%s6533_s22 + $0x3eb8] sm:$0xff]  ;;  %v1975_v52 = vld [vmem:[%s6533_s22 + $0xec8] sm:$0xff] }
 0x38c   : > { %4624 = vmatpush1.msra.mxu1 %v3220_v53  ;;  %4695 = vmatpush1.msra.mxu0 %v1686_v54  ;;  %v3508_v53 = vld [vmem:[%s6533_s22 + $0x3eb0] sm:$0xff]  ;;  %v1974_v54 = vld [vmem:[%s6533_s22 + $0xec0] sm:$0xff] }
 0x38d   : > { %4625 = vmatprep.subr.mxu1 %v3205_v31  ;;  %4696 = vmatprep.subr.mxu0 %v1671_v57  ;;  %v3493_v31 = vld [vmem:[%s6533_s22 + $0x3e38] sm:$0xff]  ;;  %v1959_v57 = vld [vmem:[%s6533_s22 + $0xe48] sm:$0xff] }
 0x38e   : > { %4626 = vmatpush1.msra.mxu1 %v3204_v59  ;;  %4697 = vmatpush1.msra.mxu0 %v1670_v60  ;;  %v3492_v59 = vld [vmem:[%s6533_s22 + $0x3e30] sm:$0xff]  ;;  %v1958_v60 = vld [vmem:[%s6533_s22 + $0xe40] sm:$0xff] }
 0x38f   : > { %4627 = vmatprep.subr.mxu1 %v3189_v61  ;;  %4698 = vmatprep.subr.mxu0 %v1655_v62  ;;  %v3477_v61 = vld [vmem:[%s6533_s22 + $0x3db8] sm:$0xff]  ;;  %v1943_v62 = vld [vmem:[%s6533_s22 + $0xdc8] sm:$0xff] }
 0x390   : > { %4628 = vmatpush1.msra.mxu1 %v3188_v0  ;;  %4699 = vmatpush1.msra.mxu0 %v1654_v3  ;;  %v3476_v0 = vld [vmem:[%s6533_s22 + $0x3db0] sm:$0xff]  ;;  %v1942_v3 = vld [vmem:[%s6533_s22 + $0xdc0] sm:$0xff] }
 0x391   : > { %4629 = vmatprep.subr.mxu1 %v3173_v4  ;;  %4700 = vmatprep.subr.mxu0 %v1639_v6  ;;  %v3461_v4 = vld [vmem:[%s6533_s22 + $0x3d38] sm:$0xff]  ;;  %v1927_v6 = vld [vmem:[%s6533_s22 + $0xd48] sm:$0xff] }
 0x392   : > { %4630 = vmatpush1.msra.mxu1 %v3172_v8  ;;  %4701 = vmatpush1.msra.mxu0 %v1638_v9  ;;  %v3460_v8 = vld [vmem:[%s6533_s22 + $0x3d30] sm:$0xff]  ;;  %v1926_v9 = vld [vmem:[%s6533_s22 + $0xd40] sm:$0xff] }
 0x393   : > { %4631 = vmatprep.subr.mxu1 %v3157_v10  ;;  %4702 = vmatprep.subr.mxu0 %v1623_v11  ;;  %v3445_v10 = vld [vmem:[%s6533_s22 + $0x3cb8] sm:$0xff]  ;;  %v1911_v11 = vld [vmem:[%s6533_s22 + $0xcc8] sm:$0xff] }
 0x394   : > { %4632 = vmatpush1.msra.mxu1 %v3156_v12  ;;  %4703 = vmatpush1.msra.mxu0 %v1622_v14  ;;  %v3444_v12 = vld [vmem:[%s6533_s22 + $0x3cb0] sm:$0xff]  ;;  %v1910_v14 = vld [vmem:[%s6533_s22 + $0xcc0] sm:$0xff] }
 0x395   : > { %4633 = vmatprep.subr.mxu1 %v3141_v16  ;;  %4704 = vmatprep.subr.mxu0 %v1607_v17  ;;  %v3429_v16 = vld [vmem:[%s6533_s22 + $0x3c38] sm:$0xff]  ;;  %v1895_v17 = vld [vmem:[%s6533_s22 + $0xc48] sm:$0xff] }
 0x396   : > { %4634 = vmatpush1.msra.mxu1 %v3140_v18  ;;  %4705 = vmatpush1.msra.mxu0 %v1606_v1  ;;  %v3428_v18 = vld [vmem:[%s6533_s22 + $0x3c30] sm:$0xff]  ;;  %v1894_v1 = vld [vmem:[%s6533_s22 + $0xc40] sm:$0xff] }
 0x397   : > { %4635 = vmatprep.subr.mxu1 %v3125_v2  ;;  %4706 = vmatprep.subr.mxu0 %v1591_v20  ;;  %v3413_v2 = vld [vmem:[%s6533_s22 + $0x3bb8] sm:$0xff]  ;;  %v1879_v20 = vld [vmem:[%s6533_s22 + $0xbc8] sm:$0xff] }
 0x398   : > { %4636 = vmatpush1.msra.mxu1 %v3124_v22  ;;  %4707 = vmatpush1.msra.mxu0 %v1590_v23  ;;  %v3412_v22 = vld [vmem:[%s6533_s22 + $0x3bb0] sm:$0xff]  ;;  %v1878_v23 = vld [vmem:[%s6533_s22 + $0xbc0] sm:$0xff] }
 0x399   : > { %4637 = vmatprep.subr.mxu1 %v3109_v24  ;;  %4708 = vmatprep.subr.mxu0 %v1575_v25  ;;  %v3397_v24 = vld [vmem:[%s6533_s22 + $0x3b38] sm:$0xff]  ;;  %v1863_v25 = vld [vmem:[%s6533_s22 + $0xb48] sm:$0xff] }
 0x39a   : > { %4638 = vmatpush1.msra.mxu1 %v3108_v26  ;;  %4709 = vmatpush1.msra.mxu0 %v1574_v27  ;;  %v3396_v26 = vld [vmem:[%s6533_s22 + $0x3b30] sm:$0xff]  ;;  %v1862_v27 = vld [vmem:[%s6533_s22 + $0xb40] sm:$0xff] }
 0x39b   : > { %4639 = vmatprep.subr.mxu1 %v3093_v28  ;;  %4710 = vmatprep.subr.mxu0 %v1559_v29  ;;  %v3381_v28 = vld [vmem:[%s6533_s22 + $0x3ab8] sm:$0xff]  ;;  %v1847_v29 = vld [vmem:[%s6533_s22 + $0xac8] sm:$0xff] }
 0x39c   : > { %4640 = vmatpush1.msra.mxu1 %v3092_v30  ;;  %4711 = vmatpush1.msra.mxu0 %v1558_v55  ;;  %v3380_v30 = vld [vmem:[%s6533_s22 + $0x3ab0] sm:$0xff]  ;;  %v1846_v55 = vld [vmem:[%s6533_s22 + $0xac0] sm:$0xff] }
 0x39d   : > { %4641 = vmatprep.subr.mxu1 %v3077_v32  ;;  %4712 = vmatprep.subr.mxu0 %v1543_v33  ;;  %v3365_v32 = vld [vmem:[%s6533_s22 + $0x3a38] sm:$0xff]  ;;  %v1831_v33 = vld [vmem:[%s6533_s22 + $0xa48] sm:$0xff] }
 0x39e   : > { %4642 = vmatpush1.msra.mxu1 %v3076_v34  ;;  %4713 = vmatpush1.msra.mxu0 %v1542_v35  ;;  %v3364_v34 = vld [vmem:[%s6533_s22 + $0x3a30] sm:$0xff]  ;;  %v1830_v35 = vld [vmem:[%s6533_s22 + $0xa40] sm:$0xff] }
 0x39f   : > { %4643 = vmatprep.subr.mxu1 %v3061_v36  ;;  %4714 = vmatprep.subr.mxu0 %v1527_v37  ;;  %v3349_v36 = vld [vmem:[%s6533_s22 + $0x39b8] sm:$0xff]  ;;  %v1815_v37 = vld [vmem:[%s6533_s22 + $0x9c8] sm:$0xff] }
 0x3a0   : > { %4644 = vmatpush1.msra.mxu1 %v3060_v51  ;;  %4715 = vmatpush1.msra.mxu0 %v1526_v38  ;;  %v3348_v51 = vld [vmem:[%s6533_s22 + $0x39b0] sm:$0xff]  ;;  %v1814_v38 = vld [vmem:[%s6533_s22 + $0x9c0] sm:$0xff] }
 0x3a1   : > { %4645 = vmatprep.subr.mxu1 %v3045_v13  ;;  %4716 = vmatprep.subr.mxu0 %v1511_v40  ;;  %v3333_v13 = vld [vmem:[%s6533_s22 + $0x3938] sm:$0xff]  ;;  %v1799_v40 = vld [vmem:[%s6533_s22 + $0x948] sm:$0xff] }
 0x3a2   : > { %4646 = vmatpush1.msra.mxu1 %v3044_v41  ;;  %4717 = vmatpush1.msra.mxu0 %v1510_v63  ;;  %v3332_v41 = vld [vmem:[%s6533_s22 + $0x3930] sm:$0xff]  ;;  %v1798_v63 = vld [vmem:[%s6533_s22 + $0x940] sm:$0xff] }
 0x3a3   : > { %4647 = vmatprep.subr.mxu1 %v3541_v19  ;;  %4718 = vmatprep.subr.mxu0 %v2007_v43  ;;  %v3317_v19 = vld [vmem:[%s6533_s22 + $0x38b8] sm:$0xff]  ;;  %v1783_v43 = vld [vmem:[%s6533_s22 + $0x8c8] sm:$0xff] }
 0x3a4   : > { %4648 = vmatpush2.msra.mxu1 %v3540_v44  ;;  %4719 = vmatpush2.msra.mxu0 %v2006_v7  ;;  %v3316_v44 = vld [vmem:[%s6533_s22 + $0x38b0] sm:$0xff]  ;;  %v1782_v7 = vld [vmem:[%s6533_s22 + $0x8c0] sm:$0xff] }
 0x3a5   : > { %4649 = vmatprep.subr.mxu1 %v3525_v45  ;;  %4720 = vmatprep.subr.mxu0 %v1991_v46  ;;  %v3301_v45 = vld [vmem:[%s6533_s22 + $0x3838] sm:$0xff]  ;;  %v1767_v46 = vld [vmem:[%s6533_s22 + $0x848] sm:$0xff] }
 0x3a6   : > { %4650 = vmatpush2.msra.mxu1 %v3524_v47  ;;  %4721 = vmatpush2.msra.mxu0 %v1990_v49  ;;  %v3300_v47 = vld [vmem:[%s6533_s22 + $0x3830] sm:$0xff]  ;;  %v1766_v49 = vld [vmem:[%s6533_s22 + $0x840] sm:$0xff] }
 0x3a7   : > { %4651 = vmatprep.subr.mxu1 %v3509_v50  ;;  %4722 = vmatprep.subr.mxu0 %v1975_v52  ;;  %v2263_v50 = vld [vmem:[%s6533_s22 + $0x17c8] sm:$0xff] }
 0x3a8   : > { %4652 = vmatpush2.msra.mxu1 %v3508_v53  ;;  %4723 = vmatpush2.msra.mxu0 %v1974_v54  ;;  %v2775_v52 = vld [vmem:[%s6533_s22 + $0x27c8] sm:$0xff]  ;;  %v2262_v53 = vld [vmem:[%s6533_s22 + $0x17c0] sm:$0xff] }
 0x3a9   : > { %4653 = vmatprep.subr.mxu1 %v3493_v31  ;;  %4724 = vmatprep.subr.mxu0 %v1959_v57  ;;  %v2774_v54 = vld [vmem:[%s6533_s22 + $0x27c0] sm:$0xff]  ;;  %v2247_v31 = vld [vmem:[%s6533_s22 + $0x1748] sm:$0xff] }
 0x3aa   : > { %4654 = vmatpush2.msra.mxu1 %v3492_v59  ;;  %4725 = vmatpush2.msra.mxu0 %v1958_v60  ;;  %v2759_v57 = vld [vmem:[%s6533_s22 + $0x2748] sm:$0xff]  ;;  %v2246_v59 = vld [vmem:[%s6533_s22 + $0x1740] sm:$0xff] }
 0x3ab   : > { %4655 = vmatprep.subr.mxu1 %v3477_v61  ;;  %4726 = vmatprep.subr.mxu0 %v1943_v62  ;;  %v2758_v60 = vld [vmem:[%s6533_s22 + $0x2740] sm:$0xff]  ;;  %v2231_v61 = vld [vmem:[%s6533_s22 + $0x16c8] sm:$0xff] }
 0x3ac   : > { %4656 = vmatpush2.msra.mxu1 %v3476_v0  ;;  %4727 = vmatpush2.msra.mxu0 %v1942_v3  ;;  %v2743_v62 = vld [vmem:[%s6533_s22 + $0x26c8] sm:$0xff]  ;;  %v2230_v0 = vld [vmem:[%s6533_s22 + $0x16c0] sm:$0xff] }
 0x3ad   : > { %4657 = vmatprep.subr.mxu1 %v3461_v4  ;;  %4728 = vmatprep.subr.mxu0 %v1927_v6  ;;  %v2742_v3 = vld [vmem:[%s6533_s22 + $0x26c0] sm:$0xff]  ;;  %v2215_v4 = vld [vmem:[%s6533_s22 + $0x1648] sm:$0xff] }
 0x3ae   : > { %4658 = vmatpush2.msra.mxu1 %v3460_v8  ;;  %4729 = vmatpush2.msra.mxu0 %v1926_v9  ;;  %v2727_v6 = vld [vmem:[%s6533_s22 + $0x2648] sm:$0xff]  ;;  %v2214_v8 = vld [vmem:[%s6533_s22 + $0x1640] sm:$0xff] }
 0x3af   : > { %4659 = vmatprep.subr.mxu1 %v3445_v10  ;;  %4730 = vmatprep.subr.mxu0 %v1911_v11  ;;  %v2726_v9 = vld [vmem:[%s6533_s22 + $0x2640] sm:$0xff]  ;;  %v2199_v10 = vld [vmem:[%s6533_s22 + $0x15c8] sm:$0xff] }
 0x3b0   : > { %4660 = vmatpush2.msra.mxu1 %v3444_v12  ;;  %4731 = vmatpush2.msra.mxu0 %v1910_v14  ;;  %v2711_v11 = vld [vmem:[%s6533_s22 + $0x25c8] sm:$0xff]  ;;  %v2198_v12 = vld [vmem:[%s6533_s22 + $0x15c0] sm:$0xff] }
 0x3b1   : > { %4661 = vmatprep.subr.mxu1 %v3429_v16  ;;  %4732 = vmatprep.subr.mxu0 %v1895_v17  ;;  %v2710_v14 = vld [vmem:[%s6533_s22 + $0x25c0] sm:$0xff]  ;;  %v2183_v16 = vld [vmem:[%s6533_s22 + $0x1548] sm:$0xff] }
 0x3b2   : > { %4662 = vmatpush2.msra.mxu1 %v3428_v18  ;;  %4733 = vmatpush2.msra.mxu0 %v1894_v1  ;;  %v2695_v17 = vld [vmem:[%s6533_s22 + $0x2548] sm:$0xff]  ;;  %v2182_v18 = vld [vmem:[%s6533_s22 + $0x1540] sm:$0xff] }
 0x3b3   : > { %4663 = vmatprep.subr.mxu1 %v3413_v2  ;;  %4734 = vmatprep.subr.mxu0 %v1879_v20  ;;  %v2694_v1 = vld [vmem:[%s6533_s22 + $0x2540] sm:$0xff]  ;;  %v2167_v2 = vld [vmem:[%s6533_s22 + $0x14c8] sm:$0xff] }
 0x3b4   : > { %4664 = vmatpush2.msra.mxu1 %v3412_v22  ;;  %4735 = vmatpush2.msra.mxu0 %v1878_v23  ;;  %v2679_v20 = vld [vmem:[%s6533_s22 + $0x24c8] sm:$0xff]  ;;  %v2166_v22 = vld [vmem:[%s6533_s22 + $0x14c0] sm:$0xff] }
 0x3b5   : > { %4665 = vmatprep.subr.mxu1 %v3397_v24  ;;  %4736 = vmatprep.subr.mxu0 %v1863_v25  ;;  %v2678_v23 = vld [vmem:[%s6533_s22 + $0x24c0] sm:$0xff]  ;;  %v2151_v24 = vld [vmem:[%s6533_s22 + $0x1448] sm:$0xff] }
 0x3b6   : > { %4666 = vmatpush2.msra.mxu1 %v3396_v26  ;;  %4737 = vmatpush2.msra.mxu0 %v1862_v27  ;;  %v2663_v25 = vld [vmem:[%s6533_s22 + $0x2448] sm:$0xff]  ;;  %v2150_v26 = vld [vmem:[%s6533_s22 + $0x1440] sm:$0xff] }
 0x3b7   : > { %4667 = vmatprep.subr.mxu1 %v3381_v28  ;;  %4738 = vmatprep.subr.mxu0 %v1847_v29  ;;  %v2662_v27 = vld [vmem:[%s6533_s22 + $0x2440] sm:$0xff]  ;;  %v2135_v28 = vld [vmem:[%s6533_s22 + $0x13c8] sm:$0xff] }
 0x3b8   : > { %4668 = vmatpush2.msra.mxu1 %v3380_v30  ;;  %4739 = vmatpush2.msra.mxu0 %v1846_v55  ;;  %v2647_v29 = vld [vmem:[%s6533_s22 + $0x23c8] sm:$0xff]  ;;  %v2134_v30 = vld [vmem:[%s6533_s22 + $0x13c0] sm:$0xff] }
 0x3b9   : > { %4669 = vmatprep.subr.mxu1 %v3365_v32  ;;  %4740 = vmatprep.subr.mxu0 %v1831_v33  ;;  %v2646_v55 = vld [vmem:[%s6533_s22 + $0x23c0] sm:$0xff]  ;;  %v2119_v32 = vld [vmem:[%s6533_s22 + $0x1348] sm:$0xff] }
 0x3ba   : > { %4670 = vmatpush2.msra.mxu1 %v3364_v34  ;;  %4741 = vmatpush2.msra.mxu0 %v1830_v35  ;;  %v2631_v33 = vld [vmem:[%s6533_s22 + $0x2348] sm:$0xff]  ;;  %v2118_v34 = vld [vmem:[%s6533_s22 + $0x1340] sm:$0xff] }
 0x3bb   : > { %4671 = vmatprep.subr.mxu1 %v3349_v36  ;;  %4742 = vmatprep.subr.mxu0 %v1815_v37  ;;  %v2630_v35 = vld [vmem:[%s6533_s22 + $0x2340] sm:$0xff]  ;;  %v2103_v36 = vld [vmem:[%s6533_s22 + $0x12c8] sm:$0xff] }
 0x3bc   : > { %4672 = vmatpush2.msra.mxu1 %v3348_v51  ;;  %4743 = vmatpush2.msra.mxu0 %v1814_v38  ;;  %v2615_v37 = vld [vmem:[%s6533_s22 + $0x22c8] sm:$0xff]  ;;  %v2102_v51 = vld [vmem:[%s6533_s22 + $0x12c0] sm:$0xff] }
 0x3bd   : > { %4673 = vmatprep.subr.mxu1 %v3333_v13  ;;  %4744 = vmatprep.subr.mxu0 %v1799_v40  ;;  %v2614_v38 = vld [vmem:[%s6533_s22 + $0x22c0] sm:$0xff]  ;;  %v2087_v13 = vld [vmem:[%s6533_s22 + $0x1248] sm:$0xff] }
 0x3be   : > { %4674 = vmatpush2.msra.mxu1 %v3332_v41  ;;  %4745 = vmatpush2.msra.mxu0 %v1798_v63  ;;  %v2599_v40 = vld [vmem:[%s6533_s22 + $0x2248] sm:$0xff]  ;;  %v2086_v41 = vld [vmem:[%s6533_s22 + $0x1240] sm:$0xff] }
 0x3bf   : > { %4675 = vmatprep.subr.mxu1 %v3317_v19  ;;  %4746 = vmatprep.subr.mxu0 %v1783_v43  ;;  %v2598_v63 = vld [vmem:[%s6533_s22 + $0x2240] sm:$0xff]  ;;  %v2071_v19 = vld [vmem:[%s6533_s22 + $0x11c8] sm:$0xff] }
 0x3c0   : > { %4676 = vmatpush2.msra.mxu1 %v3316_v44  ;;  %4747 = vmatpush2.msra.mxu0 %v1782_v7  ;;  %v2583_v43 = vld [vmem:[%s6533_s22 + $0x21c8] sm:$0xff]  ;;  %v2070_v44 = vld [vmem:[%s6533_s22 + $0x11c0] sm:$0xff] }
 0x3c1   : > { %4677 = vmatprep.subr.mxu1 %v3301_v45  ;;  %4748 = vmatprep.subr.mxu0 %v1767_v46  ;;  %v2582_v7 = vld [vmem:[%s6533_s22 + $0x21c0] sm:$0xff]  ;;  %v2055_v45 = vld [vmem:[%s6533_s22 + $0x1148] sm:$0xff] }
 0x3c2   : > { %4678 = vmatpush2.msra.mxu1 %v3300_v47  ;;  %4749 = vmatpush2.msra.mxu0 %v1766_v49  ;;  %v2567_v46 = vld [vmem:[%s6533_s22 + $0x2148] sm:$0xff]  ;;  %v2054_v47 = vld [vmem:[%s6533_s22 + $0x1140] sm:$0xff] }
 0x3c3   : > { %4680 = vmatmul.mubr.f32.vlgmr.msra.gmra.mxu1 %v7457_v42  ;;  %4751 = vmatmul.mubr.f32.vlgmr.msra.gmra.mxu0 %v7230_v48  ;;  %v2566_v49 = vld [vmem:[%s6533_s22 + $0x2140] sm:$0xff] }
 0x3c4   : > { %4757 = vmatprep.subr.mxu1 %v2263_v50  ;;  %4828 = vmatprep.subr.mxu0 %v2775_v52  ;;  %v2039_v50 = vld [vmem:[%s6533_s22 + $0x10c8] sm:$0xff] }
 0x3c5   : > { %4758 = vmatpush1.msra.mxu1 %v2262_v53  ;;  %4821 = vmatprep.mubr.f32.mxu1 %v7237_v56  ;;  %v2551_v52 = vld [vmem:[%s6533_s22 + $0x20c8] sm:$0xff]  ;;  %v2038_v53 = vld [vmem:[%s6533_s22 + $0x10c0] sm:$0xff] }
 0x3c6   : > { %4829 = vmatpush1.msra.mxu0 %v2774_v54  ;;  %4892 = vmatprep.mubr.f32.mxu0 %v7376_v21  ;;  %v2550_v54 = vld [vmem:[%s6533_s22 + $0x20c0] sm:$0xff] }
 0x3c7   : > { %4759 = vmatprep.subr.mxu1 %v2247_v31  ;;  %4830 = vmatprep.subr.mxu0 %v2759_v57  ;;  %v2023_v31 = vld [vmem:[%s6533_s22 + $0x1048] sm:$0xff] }
 0x3c8   : > { %4760 = vmatpush1.msra.mxu1 %v2246_v59  ;;  %4831 = vmatpush1.msra.mxu0 %v2758_v60  ;;  %v2535_v57 = vld [vmem:[%s6533_s22 + $0x2048] sm:$0xff]  ;;  %v2022_v59 = vld [vmem:[%s6533_s22 + $0x1040] sm:$0xff] }
 0x3c9   : > { %4761 = vmatprep.subr.mxu1 %v2231_v61  ;;  %4832 = vmatprep.subr.mxu0 %v2743_v62  ;;  %v2534_v60 = vld [vmem:[%s6533_s22 + $0x2040] sm:$0xff]  ;;  %v2519_v61 = vld [vmem:[%s6533_s22 + $0x1fc8] sm:$0xff] }
 0x3ca   : > { %4762 = vmatpush1.msra.mxu1 %v2230_v0  ;;  %4833 = vmatpush1.msra.mxu0 %v2742_v3  ;;  %v3031_v62 = vld [vmem:[%s6533_s22 + $0x2fc8] sm:$0xff]  ;;  %v2518_v0 = vld [vmem:[%s6533_s22 + $0x1fc0] sm:$0xff] }
 0x3cb   : > { %4763 = vmatprep.subr.mxu1 %v2215_v4  ;;  %4834 = vmatprep.subr.mxu0 %v2727_v6  ;;  %v3030_v3 = vld [vmem:[%s6533_s22 + $0x2fc0] sm:$0xff]  ;;  %v2503_v4 = vld [vmem:[%s6533_s22 + $0x1f48] sm:$0xff] }
 0x3cc   : > { %4764 = vmatpush1.msra.mxu1 %v2214_v8  ;;  %4835 = vmatpush1.msra.mxu0 %v2726_v9  ;;  %v3015_v6 = vld [vmem:[%s6533_s22 + $0x2f48] sm:$0xff]  ;;  %v2502_v8 = vld [vmem:[%s6533_s22 + $0x1f40] sm:$0xff] }
 0x3cd   : > { %4765 = vmatprep.subr.mxu1 %v2199_v10  ;;  %4836 = vmatprep.subr.mxu0 %v2711_v11  ;;  %v3014_v9 = vld [vmem:[%s6533_s22 + $0x2f40] sm:$0xff]  ;;  %v2487_v10 = vld [vmem:[%s6533_s22 + $0x1ec8] sm:$0xff] }
 0x3ce   : > { %4766 = vmatpush1.msra.mxu1 %v2198_v12  ;;  %4837 = vmatpush1.msra.mxu0 %v2710_v14  ;;  %v2999_v11 = vld [vmem:[%s6533_s22 + $0x2ec8] sm:$0xff]  ;;  %v2486_v12 = vld [vmem:[%s6533_s22 + $0x1ec0] sm:$0xff] }
 0x3cf   : > { %4767 = vmatprep.subr.mxu1 %v2183_v16  ;;  %4838 = vmatprep.subr.mxu0 %v2695_v17  ;;  %v2998_v14 = vld [vmem:[%s6533_s22 + $0x2ec0] sm:$0xff]  ;;  %v2471_v16 = vld [vmem:[%s6533_s22 + $0x1e48] sm:$0xff] }
 0x3d0   : > { %4768 = vmatpush1.msra.mxu1 %v2182_v18  ;;  %4839 = vmatpush1.msra.mxu0 %v2694_v1  ;;  %v2983_v17 = vld [vmem:[%s6533_s22 + $0x2e48] sm:$0xff]  ;;  %v2470_v18 = vld [vmem:[%s6533_s22 + $0x1e40] sm:$0xff] }
 0x3d1   : > { %4769 = vmatprep.subr.mxu1 %v2167_v2  ;;  %4840 = vmatprep.subr.mxu0 %v2679_v20  ;;  %v2982_v1 = vld [vmem:[%s6533_s22 + $0x2e40] sm:$0xff]  ;;  %v2455_v2 = vld [vmem:[%s6533_s22 + $0x1dc8] sm:$0xff] }
 0x3d2   : > { %4770 = vmatpush1.msra.mxu1 %v2166_v22  ;;  %4841 = vmatpush1.msra.mxu0 %v2678_v23  ;;  %v2967_v20 = vld [vmem:[%s6533_s22 + $0x2dc8] sm:$0xff]  ;;  %v2454_v22 = vld [vmem:[%s6533_s22 + $0x1dc0] sm:$0xff] }
 0x3d3   : > { %4771 = vmatprep.subr.mxu1 %v2151_v24  ;;  %4842 = vmatprep.subr.mxu0 %v2663_v25  ;;  %v2966_v23 = vld [vmem:[%s6533_s22 + $0x2dc0] sm:$0xff]  ;;  %v2439_v24 = vld [vmem:[%s6533_s22 + $0x1d48] sm:$0xff] }
 0x3d4   : > { %4772 = vmatpush1.msra.mxu1 %v2150_v26  ;;  %4843 = vmatpush1.msra.mxu0 %v2662_v27  ;;  %v2951_v25 = vld [vmem:[%s6533_s22 + $0x2d48] sm:$0xff]  ;;  %v2438_v26 = vld [vmem:[%s6533_s22 + $0x1d40] sm:$0xff] }
 0x3d5   : > { %4773 = vmatprep.subr.mxu1 %v2135_v28  ;;  %4844 = vmatprep.subr.mxu0 %v2647_v29  ;;  %v2950_v27 = vld [vmem:[%s6533_s22 + $0x2d40] sm:$0xff]  ;;  %v2423_v28 = vld [vmem:[%s6533_s22 + $0x1cc8] sm:$0xff] }
 0x3d6   : > { %4774 = vmatpush1.msra.mxu1 %v2134_v30  ;;  %4845 = vmatpush1.msra.mxu0 %v2646_v55  ;;  %v2935_v29 = vld [vmem:[%s6533_s22 + $0x2cc8] sm:$0xff]  ;;  %v2422_v30 = vld [vmem:[%s6533_s22 + $0x1cc0] sm:$0xff] }
 0x3d7   : > { %4775 = vmatprep.subr.mxu1 %v2119_v32  ;;  %4846 = vmatprep.subr.mxu0 %v2631_v33  ;;  %v2934_v55 = vld [vmem:[%s6533_s22 + $0x2cc0] sm:$0xff]  ;;  %v2407_v32 = vld [vmem:[%s6533_s22 + $0x1c48] sm:$0xff] }
 0x3d8   : > { %4776 = vmatpush1.msra.mxu1 %v2118_v34  ;;  %4847 = vmatpush1.msra.mxu0 %v2630_v35  ;;  %v2919_v33 = vld [vmem:[%s6533_s22 + $0x2c48] sm:$0xff]  ;;  %v2406_v34 = vld [vmem:[%s6533_s22 + $0x1c40] sm:$0xff] }
 0x3d9   : > { %4777 = vmatprep.subr.mxu1 %v2103_v36  ;;  %4848 = vmatprep.subr.mxu0 %v2615_v37  ;;  %v2918_v35 = vld [vmem:[%s6533_s22 + $0x2c40] sm:$0xff]  ;;  %v2391_v36 = vld [vmem:[%s6533_s22 + $0x1bc8] sm:$0xff] }
 0x3da   : > { %4778 = vmatpush1.msra.mxu1 %v2102_v51  ;;  %4849 = vmatpush1.msra.mxu0 %v2614_v38  ;;  %v2903_v37 = vld [vmem:[%s6533_s22 + $0x2bc8] sm:$0xff]  ;;  %v2390_v51 = vld [vmem:[%s6533_s22 + $0x1bc0] sm:$0xff] }
 0x3db   : > { %4779 = vmatprep.subr.mxu1 %v2087_v13  ;;  %4850 = vmatprep.subr.mxu0 %v2599_v40  ;;  %v2902_v38 = vld [vmem:[%s6533_s22 + $0x2bc0] sm:$0xff]  ;;  %v2375_v13 = vld [vmem:[%s6533_s22 + $0x1b48] sm:$0xff] }
 0x3dc   : > { %4780 = vmatpush1.msra.mxu1 %v2086_v41  ;;  %4851 = vmatpush1.msra.mxu0 %v2598_v63  ;;  %v2887_v40 = vld [vmem:[%s6533_s22 + $0x2b48] sm:$0xff]  ;;  %v4184_v41 = vpop.f32.mrf.mxu0  ;;  %v4255_v63 = vpop.f32.mrf.mxu1 }
 0x3dd   : > { %4781 = vmatprep.subr.mxu1 %v2071_v19  ;;  %4852 = vmatprep.subr.mxu0 %v2583_v43  ;;  %v2374_v19 = vld [vmem:[%s6533_s22 + $0x1b40] sm:$0xff] }
 0x3de   : > { %4782 = vmatpush1.msra.mxu1 %v2070_v44  ;;  %4853 = vmatpush1.msra.mxu0 %v2582_v7  ;;  %v2886_v43 = vld [vmem:[%s6533_s22 + $0x2b40] sm:$0xff]  ;;  %v2359_v44 = vld [vmem:[%s6533_s22 + $0x1ac8] sm:$0xff] }
 0x3df   : > { %4783 = vmatprep.subr.mxu1 %v2055_v45  ;;  %4854 = vmatprep.subr.mxu0 %v2567_v46  ;;  %v2871_v7 = vld [vmem:[%s6533_s22 + $0x2ac8] sm:$0xff]  ;;  %v2358_v45 = vld [vmem:[%s6533_s22 + $0x1ac0] sm:$0xff] }
 0x3e0   : > { %4784 = vmatpush1.msra.mxu1 %v2054_v47  ;;  %4855 = vmatpush1.msra.mxu0 %v2566_v49  ;;  %v2870_v46 = vld [vmem:[%s6533_s22 + $0x2ac0] sm:$0xff]  ;;  %v2343_v47 = vld [vmem:[%s6533_s22 + $0x1a48] sm:$0xff] }
 0x3e1   : > { %4785 = vmatprep.subr.mxu1 %v2039_v50  ;;  %4856 = vmatprep.subr.mxu0 %v2551_v52  ;;  %v2855_v49 = vld [vmem:[%s6533_s22 + $0x2a48] sm:$0xff]  ;;  %v4186_v50 = vpop.f32.mrf.mxu0  ;;  %v4257_v52 = vpop.f32.mrf.mxu1 }
 0x3e2   : > { %4786 = vmatpush1.msra.mxu1 %v2038_v53  ;;  %4857 = vmatpush1.msra.mxu0 %v2550_v54  ;;  %v2342_v53 = vld [vmem:[%s6533_s22 + $0x1a40] sm:$0xff] }
 0x3e3   : > { %4787 = vmatprep.subr.mxu1 %v2023_v31  ;;  %4858 = vmatprep.subr.mxu0 %v2535_v57  ;;  %v2854_v54 = vld [vmem:[%s6533_s22 + $0x2a40] sm:$0xff]  ;;  %v4256_v31 = vadd.f32 %v4255_v63, %v4184_v41  ;;  %v2327_v57 = vld [vmem:[%s6533_s22 + $0x19c8] sm:$0xff]  ;;  %v1689_v63 = vld [vmem:[%s6533_s22 + $0x5d8] sm:$0xff] }
 0x3e4   : > { %4788 = vmatpush1.msra.mxu1 %v2022_v59  ;;  %4859 = vmatpush1.msra.mxu0 %v2534_v60  ;;  %v2839_v59 = vld [vmem:[%s6533_s22 + $0x29c8] sm:$0xff]  ;;  %v4326_v60 = vpop.f32.mrf.mxu0 }
 0x3e5   : > { %4789 = vmatprep.subr.mxu1 %v2519_v61  ;;  %4860 = vmatprep.subr.mxu0 %v3031_v62  ;;  %v2326_v61 = vld [vmem:[%s6533_s22 + $0x19c0] sm:$0xff]  ;;  %v3223_v41 = vld [vmem:[%s6533_s22 + $0x35c8] sm:$0xff] }
 0x3e6   : > { %4790 = vmatpush2.msra.mxu1 %v2518_v0  ;;  %4861 = vmatpush2.msra.mxu0 %v3030_v3  ;;  %v2838_v62 = vld [vmem:[%s6533_s22 + $0x29c0] sm:$0xff]  ;;  %v4258_v0 = vadd.f32 %v4257_v52, %v4186_v50  ;;  %v2311_v3 = vld [vmem:[%s6533_s22 + $0x1948] sm:$0xff]  ;;  %v1656_v52 = vld [vmem:[%s6533_s22 + $0x4d0] sm:$0xff] }
 0x3e7   : > { %4791 = vmatprep.subr.mxu1 %v2503_v4  ;;  %4862 = vmatprep.subr.mxu0 %v3015_v6  ;;  %v2823_v4 = vld [vmem:[%s6533_s22 + $0x2948] sm:$0xff]  ;;  %v2310_v6 = vld [vmem:[%s6533_s22 + $0x1940] sm:$0xff] }
 0x3e8   : > { %4792 = vmatpush2.msra.mxu1 %v2502_v8  ;;  %4863 = vmatpush2.msra.mxu0 %v3014_v9  ;;  %v2822_v8 = vld [vmem:[%s6533_s22 + $0x2940] sm:$0xff]  ;;  %v4327_v9 = vadd.f32 %v4326_v60, %v4256_v31  ;;  %v1625_v60 = vld [vmem:[%s6533_s22 + $0x3d8] sm:$0xff] }
 0x3e9   : > { %4793 = vmatprep.subr.mxu1 %v2487_v10  ;;  %4864 = vmatprep.subr.mxu0 %v2999_v11  ;;  %v2295_v10 = vld [vmem:[%s6533_s22 + $0x18c8] sm:$0xff]  ;;  %v3190_v50 = vld [vmem:[%s6533_s22 + $0x34c0] sm:$0xff] }
 0x3ea   : > { %4794 = vmatpush2.msra.mxu1 %v2486_v12  ;;  %4865 = vmatpush2.msra.mxu0 %v2998_v14  ;;  %v2807_v11 = vld [vmem:[%s6533_s22 + $0x28c8] sm:$0xff]  ;;  %v4328_v12 = vpop.f32.mrf.mxu0  ;;  %v2294_v14 = vld [vmem:[%s6533_s22 + $0x18c0] sm:$0xff] }
 0x3eb   : > { %4795 = vmatprep.subr.mxu1 %v2471_v16  ;;  %4866 = vmatprep.subr.mxu0 %v2983_v17  ;;  %v2806_v16 = vld [vmem:[%s6533_s22 + $0x28c0] sm:$0xff] }
 0x3ec   : > { %4796 = vmatpush2.msra.mxu1 %v2470_v18  ;;  %4867 = vmatpush2.msra.mxu0 %v2982_v1  ;;  %v4329_v18 = vadd.f32 %v4328_v12, %v4258_v0  ;;  %v2279_v1 = vld [vmem:[%s6533_s22 + $0x1848] sm:$0xff]  ;;  %v3174_v31 = vld [vmem:[%s6533_s22 + $0x3440] sm:$0xff] }
 0x3ed   : > { %4797 = vmatprep.subr.mxu1 %v2455_v2  ;;  %4868 = vmatprep.subr.mxu0 %v2967_v20  ;;  %v2791_v2 = vld [vmem:[%s6533_s22 + $0x2848] sm:$0xff] }
 0x3ee   : > { %4798 = vmatpush2.msra.mxu1 %v2454_v22  ;;  %4869 = vmatpush2.msra.mxu0 %v2966_v23  ;;  %v2278_v22 = vld [vmem:[%s6533_s22 + $0x1840] sm:$0xff]  ;;  %v3143_v0 = vld [vmem:[%s6533_s22 + $0x3348] sm:$0xff] }
 0x3ef   : > { %4799 = vmatprep.subr.mxu1 %v2439_v24  ;;  %4870 = vmatprep.subr.mxu0 %v2951_v25  ;;  %v2790_v23 = vld [vmem:[%s6533_s22 + $0x2840] sm:$0xff]  ;;  %v3111_v12 = vld [vmem:[%s6533_s22 + $0x3248] sm:$0xff] }
 0x3f0   : > { %4800 = vmatpush2.msra.mxu1 %v2438_v26  ;;  %4871 = vmatpush2.msra.mxu0 %v2950_v27  ;;  %v3287_v26 = vld [vmem:[%s6533_s22 + $0x37c8] sm:$0xff]  ;;  %v1753_v27 = vld [vmem:[%s6533_s22 + $0x7d8] sm:$0xff] }
 0x3f1   : > { %4801 = vmatprep.subr.mxu1 %v2423_v28  ;;  %4872 = vmatprep.subr.mxu0 %v2935_v29  ;;  %v3286_v28 = vld [vmem:[%s6533_s22 + $0x37c0] sm:$0xff]  ;;  %v1752_v29 = vld [vmem:[%s6533_s22 + $0x7d0] sm:$0xff] }
 0x3f2   : > { %4802 = vmatpush2.msra.mxu1 %v2422_v30  ;;  %4873 = vmatpush2.msra.mxu0 %v2934_v55  ;;  %v3271_v30 = vld [vmem:[%s6533_s22 + $0x3748] sm:$0xff]  ;;  %v1737_v55 = vld [vmem:[%s6533_s22 + $0x758] sm:$0xff] }
 0x3f3   : > { %4803 = vmatprep.subr.mxu1 %v2407_v32  ;;  %4874 = vmatprep.subr.mxu0 %v2919_v33  ;;  %v3270_v32 = vld [vmem:[%s6533_s22 + $0x3740] sm:$0xff]  ;;  %v1736_v33 = vld [vmem:[%s6533_s22 + $0x750] sm:$0xff] }
 0x3f4   : > { %4804 = vmatpush2.msra.mxu1 %v2406_v34  ;;  %4875 = vmatpush2.msra.mxu0 %v2918_v35  ;;  %v3255_v34 = vld [vmem:[%s6533_s22 + $0x36c8] sm:$0xff]  ;;  %v1721_v35 = vld [vmem:[%s6533_s22 + $0x6d8] sm:$0xff] }
 0x3f5   : > { %4805 = vmatprep.subr.mxu1 %v2391_v36  ;;  %4876 = vmatprep.subr.mxu0 %v2903_v37  ;;  %v3254_v36 = vld [vmem:[%s6533_s22 + $0x36c0] sm:$0xff]  ;;  %v1720_v37 = vld [vmem:[%s6533_s22 + $0x6d0] sm:$0xff] }
 0x3f6   : > { %4806 = vmatpush2.msra.mxu1 %v2390_v51  ;;  %4877 = vmatpush2.msra.mxu0 %v2902_v38  ;;  %v3239_v51 = vld [vmem:[%s6533_s22 + $0x3648] sm:$0xff]  ;;  %v1705_v38 = vld [vmem:[%s6533_s22 + $0x658] sm:$0xff] }
 0x3f7   : > { %4807 = vmatprep.subr.mxu1 %v2375_v13  ;;  %4878 = vmatprep.subr.mxu0 %v2887_v40  ;;  %v3238_v13 = vld [vmem:[%s6533_s22 + $0x3640] sm:$0xff]  ;;  %v1704_v40 = vld [vmem:[%s6533_s22 + $0x650] sm:$0xff] }
 0x3f8   : > { %4808 = vmatpush2.msra.mxu1 %v2374_v19  ;;  %4879 = vmatpush2.msra.mxu0 %v2886_v43  ;;  %v3222_v19 = vld [vmem:[%s6533_s22 + $0x35c0] sm:$0xff]  ;;  %v1688_v43 = vld [vmem:[%s6533_s22 + $0x5d0] sm:$0xff] }
 0x3f9   : > { %4809 = vmatprep.subr.mxu1 %v2359_v44  ;;  %4880 = vmatprep.subr.mxu0 %v2871_v7  ;;  %v3207_v44 = vld [vmem:[%s6533_s22 + $0x3548] sm:$0xff]  ;;  %v1673_v7 = vld [vmem:[%s6533_s22 + $0x558] sm:$0xff] }
 0x3fa   : > { %4810 = vmatpush2.msra.mxu1 %v2358_v45  ;;  %4881 = vmatpush2.msra.mxu0 %v2870_v46  ;;  %v3206_v45 = vld [vmem:[%s6533_s22 + $0x3540] sm:$0xff]  ;;  %v1672_v46 = vld [vmem:[%s6533_s22 + $0x550] sm:$0xff] }
 0x3fb   : > { %4811 = vmatprep.subr.mxu1 %v2343_v47  ;;  %4882 = vmatprep.subr.mxu0 %v2855_v49  ;;  %v3191_v47 = vld [vmem:[%s6533_s22 + $0x34c8] sm:$0xff]  ;;  %v1657_v49 = vld [vmem:[%s6533_s22 + $0x4d8] sm:$0xff] }
 0x3fc   : > { %4812 = vmatpush2.msra.mxu1 %v2342_v53  ;;  %4883 = vmatpush2.msra.mxu0 %v2854_v54  ;;  %v3175_v53 = vld [vmem:[%s6533_s22 + $0x3448] sm:$0xff]  ;;  %v1641_v54 = vld [vmem:[%s6533_s22 + $0x458] sm:$0xff] }
 0x3fd   : > { %4813 = vmatprep.subr.mxu1 %v2327_v57  ;;  %4884 = vmatprep.subr.mxu0 %v2839_v59  ;;  %v1640_v57 = vld [vmem:[%s6533_s22 + $0x450] sm:$0xff]  ;;  %v3159_v59 = vld [vmem:[%s6533_s22 + $0x33c8] sm:$0xff] }
 0x3fe   : > { %4814 = vmatpush2.msra.mxu1 %v2326_v61  ;;  %4885 = vmatpush2.msra.mxu0 %v2838_v62  ;;  %v3158_v61 = vld [vmem:[%s6533_s22 + $0x33c0] sm:$0xff]  ;;  %v1624_v62 = vld [vmem:[%s6533_s22 + $0x3d0] sm:$0xff] }
 0x3ff   : > { %4815 = vmatprep.subr.mxu1 %v2311_v3  ;;  %4886 = vmatprep.subr.mxu0 %v2823_v4  ;;  %v4397_v17 = vpop.f32.mrf.mxu1  ;;  %v1609_v3 = vld [vmem:[%s6533_s22 + $0x358] sm:$0xff]  ;;  %v3142_v4 = vld [vmem:[%s6533_s22 + $0x3340] sm:$0xff] }
 0x400   : > { %4816 = vmatpush2.msra.mxu1 %v2310_v6  ;;  %4887 = vmatpush2.msra.mxu0 %v2822_v8  ;;  %v4398_v20 = vadd.f32 %v4397_v17, %v4327_v9  ;;  %v1608_v6 = vld [vmem:[%s6533_s22 + $0x350] sm:$0xff]  ;;  %v3127_v8 = vld [vmem:[%s6533_s22 + $0x32c8] sm:$0xff]  ;;  %v1593_v9 = vld [vmem:[%s6533_s22 + $0x2d8] sm:$0xff] }
 0x401   : > { %4817 = vmatprep.subr.mxu1 %v2295_v10  ;;  %4888 = vmatprep.subr.mxu0 %v2807_v11  ;;  %v4399_v24 = vpop.f32.mrf.mxu1  ;;  %v3126_v10 = vld [vmem:[%s6533_s22 + $0x32c0] sm:$0xff]  ;;  %v1592_v11 = vld [vmem:[%s6533_s22 + $0x2d0] sm:$0xff] }
 0x402   : > { %4818 = vmatpush2.msra.mxu1 %v2294_v14  ;;  %4889 = vmatpush2.msra.mxu0 %v2806_v16  ;;  %v4400_v25 = vadd.f32 %v4399_v24, %v4329_v18  ;;  %5842 = vst [vmem:[%s7859_s23 + $0x20] sm:$0xff] %v4398_v20  ;;  %v1577_v14 = vld [vmem:[%s6533_s22 + $0x258] sm:$0xff]  ;;  %v3110_v16 = vld [vmem:[%s6533_s22 + $0x3240] sm:$0xff]  ;;  %v1576_v17 = vld [vmem:[%s6533_s22 + $0x250] sm:$0xff] }
 0x403   : > { %4819 = vmatprep.subr.mxu1 %v2279_v1  ;;  %4890 = vmatprep.subr.mxu0 %v2791_v2  ;;  %v3095_v18 = vld [vmem:[%s6533_s22 + $0x31c8] sm:$0xff]  ;;  %v1561_v1 = vld [vmem:[%s6533_s22 + $0x1d8] sm:$0xff]  ;;  %v3094_v2 = vld [vmem:[%s6533_s22 + $0x31c0] sm:$0xff] }
 0x404   : > { %4820 = vmatpush2.msra.mxu1 %v2278_v22  ;;  %4891 = vmatpush2.msra.mxu0 %v2790_v23  ;;  %5843 = vst [vmem:[%s7859_s23 + $0x28] sm:$0xff] %v4400_v25  ;;  %v1560_v20 = vld [vmem:[%s6533_s22 + $0x1d0] sm:$0xff]  ;;  %v3079_v22 = vld [vmem:[%s6533_s22 + $0x3148] sm:$0xff]  ;;  %v1545_v23 = vld [vmem:[%s6533_s22 + $0x158] sm:$0xff] }
 0x405   : > { %4822 = vmatmul.mubr.f32.vlgmr.msra.gmra.mxu1 %v7240_v58  ;;  %4893 = vmatmul.mubr.f32.vlgmr.msra.gmra.mxu0 %v7378_v5  ;;  %v3078_v24 = vld [vmem:[%s6533_s22 + $0x3140] sm:$0xff]  ;;  %v1544_v25 = vld [vmem:[%s6533_s22 + $0x150] sm:$0xff] }
 0x406   : > { %4899 = vmatprep.subr.mxu1 %v3287_v26  ;;  %4970 = vmatprep.subr.mxu0 %v1753_v27  ;;  %v3063_v26 = vld [vmem:[%s6533_s22 + $0x30c8] sm:$0xff]  ;;  %v1529_v27 = vld [vmem:[%s6533_s22 + $0xd8] sm:$0xff] }
 0x407   : > { %4900 = vmatpush1.msra.mxu1 %v3286_v28  ;;  %4963 = vmatprep.mubr.f32.mxu1 %v7453_v15  ;;  %v3062_v28 = vld [vmem:[%s6533_s22 + $0x30c0] sm:$0xff] }
 0x408   : > { %4971 = vmatpush1.msra.mxu0 %v1752_v29  ;;  %5034 = vmatprep.mubr.f32.mxu0 %v7098_v39  ;;  %v1528_v29 = vld [vmem:[%s6533_s22 + $0xd0] sm:$0xff] }
 0x409   : > { %4901 = vmatprep.subr.mxu1 %v3271_v30  ;;  %4972 = vmatprep.subr.mxu0 %v1737_v55  ;;  %v3047_v30 = vld [vmem:[%s6533_s22 + $0x3048] sm:$0xff]  ;;  %v1513_v55 = vld [vmem:[%s6533_s22 + $0x58] sm:$0xff] }
 0x40a   : > { %4902 = vmatpush1.msra.mxu1 %v3270_v32  ;;  %4973 = vmatpush1.msra.mxu0 %v1736_v33  ;;  %v3046_v32 = vld [vmem:[%s6533_s22 + $0x3040] sm:$0xff]  ;;  %v1512_v33 = vld [vmem:[%s6533_s22 + $0x50] sm:$0xff] }
 0x40b   : > { %4903 = vmatprep.subr.mxu1 %v3255_v34  ;;  %4974 = vmatprep.subr.mxu0 %v1721_v35  ;;  %v3543_v34 = vld [vmem:[%s6533_s22 + $0x3fc8] sm:$0xff]  ;;  %v2009_v35 = vld [vmem:[%s6533_s22 + $0xfd8] sm:$0xff] }
 0x40c   : > { %4904 = vmatpush1.msra.mxu1 %v3254_v36  ;;  %4975 = vmatpush1.msra.mxu0 %v1720_v37  ;;  %v3542_v36 = vld [vmem:[%s6533_s22 + $0x3fc0] sm:$0xff]  ;;  %v2008_v37 = vld [vmem:[%s6533_s22 + $0xfd0] sm:$0xff] }
 0x40d   : > { %4905 = vmatprep.subr.mxu1 %v3239_v51  ;;  %4976 = vmatprep.subr.mxu0 %v1705_v38  ;;  %v3527_v51 = vld [vmem:[%s6533_s22 + $0x3f48] sm:$0xff]  ;;  %v1993_v38 = vld [vmem:[%s6533_s22 + $0xf58] sm:$0xff] }
 0x40e   : > { %4906 = vmatpush1.msra.mxu1 %v3238_v13  ;;  %4977 = vmatpush1.msra.mxu0 %v1704_v40  ;;  %v3526_v13 = vld [vmem:[%s6533_s22 + $0x3f40] sm:$0xff]  ;;  %v1992_v40 = vld [vmem:[%s6533_s22 + $0xf50] sm:$0xff] }
 0x40f   : > { %4907 = vmatprep.subr.mxu1 %v3223_v41  ;;  %4978 = vmatprep.subr.mxu0 %v1689_v63  ;;  %v3511_v41 = vld [vmem:[%s6533_s22 + $0x3ec8] sm:$0xff]  ;;  %v1977_v63 = vld [vmem:[%s6533_s22 + $0xed8] sm:$0xff] }
 0x410   : > { %4908 = vmatpush1.msra.mxu1 %v3222_v19  ;;  %4979 = vmatpush1.msra.mxu0 %v1688_v43  ;;  %v3510_v19 = vld [vmem:[%s6533_s22 + $0x3ec0] sm:$0xff]  ;;  %v1976_v43 = vld [vmem:[%s6533_s22 + $0xed0] sm:$0xff] }
 0x411   : > { %4909 = vmatprep.subr.mxu1 %v3207_v44  ;;  %4980 = vmatprep.subr.mxu0 %v1673_v7  ;;  %v3495_v44 = vld [vmem:[%s6533_s22 + $0x3e48] sm:$0xff]  ;;  %v1961_v7 = vld [vmem:[%s6533_s22 + $0xe58] sm:$0xff] }
 0x412   : > { %4910 = vmatpush1.msra.mxu1 %v3206_v45  ;;  %4981 = vmatpush1.msra.mxu0 %v1672_v46  ;;  %v3494_v45 = vld [vmem:[%s6533_s22 + $0x3e40] sm:$0xff]  ;;  %v1960_v46 = vld [vmem:[%s6533_s22 + $0xe50] sm:$0xff] }
 0x413   : > { %4911 = vmatprep.subr.mxu1 %v3191_v47  ;;  %4982 = vmatprep.subr.mxu0 %v1657_v49  ;;  %v3479_v47 = vld [vmem:[%s6533_s22 + $0x3dc8] sm:$0xff]  ;;  %v1945_v49 = vld [vmem:[%s6533_s22 + $0xdd8] sm:$0xff] }
 0x414   : > { %4912 = vmatpush1.msra.mxu1 %v3190_v50  ;;  %4983 = vmatpush1.msra.mxu0 %v1656_v52  ;;  %v3478_v50 = vld [vmem:[%s6533_s22 + $0x3dc0] sm:$0xff]  ;;  %v1944_v52 = vld [vmem:[%s6533_s22 + $0xdd0] sm:$0xff] }
 0x415   : > { %4913 = vmatprep.subr.mxu1 %v3175_v53  ;;  %4984 = vmatprep.subr.mxu0 %v1641_v54  ;;  %v3463_v53 = vld [vmem:[%s6533_s22 + $0x3d48] sm:$0xff]  ;;  %v1929_v54 = vld [vmem:[%s6533_s22 + $0xd58] sm:$0xff] }
 0x416   : > { %4914 = vmatpush1.msra.mxu1 %v3174_v31  ;;  %4985 = vmatpush1.msra.mxu0 %v1640_v57  ;;  %v3462_v31 = vld [vmem:[%s6533_s22 + $0x3d40] sm:$0xff]  ;;  %v1928_v57 = vld [vmem:[%s6533_s22 + $0xd50] sm:$0xff] }
 0x417   : > { %4915 = vmatprep.subr.mxu1 %v3159_v59  ;;  %4986 = vmatprep.subr.mxu0 %v1625_v60  ;;  %v3447_v59 = vld [vmem:[%s6533_s22 + $0x3cc8] sm:$0xff]  ;;  %v1913_v60 = vld [vmem:[%s6533_s22 + $0xcd8] sm:$0xff] }
 0x418   : > { %4916 = vmatpush1.msra.mxu1 %v3158_v61  ;;  %4987 = vmatpush1.msra.mxu0 %v1624_v62  ;;  %v3446_v61 = vld [vmem:[%s6533_s22 + $0x3cc0] sm:$0xff]  ;;  %v1912_v62 = vld [vmem:[%s6533_s22 + $0xcd0] sm:$0xff] }
 0x419   : > { %4917 = vmatprep.subr.mxu1 %v3143_v0  ;;  %4988 = vmatprep.subr.mxu0 %v1609_v3  ;;  %v3431_v0 = vld [vmem:[%s6533_s22 + $0x3c48] sm:$0xff]  ;;  %v1897_v3 = vld [vmem:[%s6533_s22 + $0xc58] sm:$0xff] }
 0x41a   : > { %4918 = vmatpush1.msra.mxu1 %v3142_v4  ;;  %4989 = vmatpush1.msra.mxu0 %v1608_v6  ;;  %v3430_v4 = vld [vmem:[%s6533_s22 + $0x3c40] sm:$0xff]  ;;  %v1896_v6 = vld [vmem:[%s6533_s22 + $0xc50] sm:$0xff] }
 0x41b   : > { %4919 = vmatprep.subr.mxu1 %v3127_v8  ;;  %4990 = vmatprep.subr.mxu0 %v1593_v9  ;;  %v3415_v8 = vld [vmem:[%s6533_s22 + $0x3bc8] sm:$0xff]  ;;  %v1881_v9 = vld [vmem:[%s6533_s22 + $0xbd8] sm:$0xff] }
 0x41c   : > { %4920 = vmatpush1.msra.mxu1 %v3126_v10  ;;  %4991 = vmatpush1.msra.mxu0 %v1592_v11  ;;  %v3414_v10 = vld [vmem:[%s6533_s22 + $0x3bc0] sm:$0xff]  ;;  %v1880_v11 = vld [vmem:[%s6533_s22 + $0xbd0] sm:$0xff] }
 0x41d   : > { %4921 = vmatprep.subr.mxu1 %v3111_v12  ;;  %4992 = vmatprep.subr.mxu0 %v1577_v14  ;;  %v3399_v12 = vld [vmem:[%s6533_s22 + $0x3b48] sm:$0xff]  ;;  %v1865_v14 = vld [vmem:[%s6533_s22 + $0xb58] sm:$0xff] }
 0x41e   : > { %4922 = vmatpush1.msra.mxu1 %v3110_v16  ;;  %4993 = vmatpush1.msra.mxu0 %v1576_v17  ;;  %v3398_v16 = vld [vmem:[%s6533_s22 + $0x3b40] sm:$0xff]  ;;  %v1864_v17 = vld [vmem:[%s6533_s22 + $0xb50] sm:$0xff] }
 0x41f   : > { %4923 = vmatprep.subr.mxu1 %v3095_v18  ;;  %4994 = vmatprep.subr.mxu0 %v1561_v1  ;;  %v3383_v18 = vld [vmem:[%s6533_s22 + $0x3ac8] sm:$0xff]  ;;  %v1849_v1 = vld [vmem:[%s6533_s22 + $0xad8] sm:$0xff] }
 0x420   : > { %4924 = vmatpush1.msra.mxu1 %v3094_v2  ;;  %4995 = vmatpush1.msra.mxu0 %v1560_v20  ;;  %v3382_v2 = vld [vmem:[%s6533_s22 + $0x3ac0] sm:$0xff]  ;;  %v1848_v20 = vld [vmem:[%s6533_s22 + $0xad0] sm:$0xff] }
 0x421   : > { %4925 = vmatprep.subr.mxu1 %v3079_v22  ;;  %4996 = vmatprep.subr.mxu0 %v1545_v23  ;;  %v3367_v22 = vld [vmem:[%s6533_s22 + $0x3a48] sm:$0xff]  ;;  %v1833_v23 = vld [vmem:[%s6533_s22 + $0xa58] sm:$0xff] }
 0x422   : > { %4926 = vmatpush1.msra.mxu1 %v3078_v24  ;;  %4997 = vmatpush1.msra.mxu0 %v1544_v25  ;;  %v3366_v24 = vld [vmem:[%s6533_s22 + $0x3a40] sm:$0xff]  ;;  %v1832_v25 = vld [vmem:[%s6533_s22 + $0xa50] sm:$0xff] }
 0x423   : > { %4927 = vmatprep.subr.mxu1 %v3063_v26  ;;  %4998 = vmatprep.subr.mxu0 %v1529_v27  ;;  %v3351_v26 = vld [vmem:[%s6533_s22 + $0x39c8] sm:$0xff]  ;;  %v1817_v27 = vld [vmem:[%s6533_s22 + $0x9d8] sm:$0xff] }
 0x424   : > { %4928 = vmatpush1.msra.mxu1 %v3062_v28  ;;  %4999 = vmatpush1.msra.mxu0 %v1528_v29  ;;  %v3350_v28 = vld [vmem:[%s6533_s22 + $0x39c0] sm:$0xff]  ;;  %v1816_v29 = vld [vmem:[%s6533_s22 + $0x9d0] sm:$0xff] }
 0x425   : > { %4929 = vmatprep.subr.mxu1 %v3047_v30  ;;  %5000 = vmatprep.subr.mxu0 %v1513_v55  ;;  %v3335_v30 = vld [vmem:[%s6533_s22 + $0x3948] sm:$0xff]  ;;  %v1801_v55 = vld [vmem:[%s6533_s22 + $0x958] sm:$0xff] }
 0x426   : > { %4930 = vmatpush1.msra.mxu1 %v3046_v32  ;;  %5001 = vmatpush1.msra.mxu0 %v1512_v33  ;;  %v3334_v32 = vld [vmem:[%s6533_s22 + $0x3940] sm:$0xff]  ;;  %v1800_v33 = vld [vmem:[%s6533_s22 + $0x950] sm:$0xff] }
 0x427   : > { %4931 = vmatprep.subr.mxu1 %v3543_v34  ;;  %5002 = vmatprep.subr.mxu0 %v2009_v35  ;;  %v3319_v34 = vld [vmem:[%s6533_s22 + $0x38c8] sm:$0xff]  ;;  %v1785_v35 = vld [vmem:[%s6533_s22 + $0x8d8] sm:$0xff] }
 0x428   : > { %4932 = vmatpush2.msra.mxu1 %v3542_v36  ;;  %5003 = vmatpush2.msra.mxu0 %v2008_v37  ;;  %v3318_v36 = vld [vmem:[%s6533_s22 + $0x38c0] sm:$0xff]  ;;  %v1784_v37 = vld [vmem:[%s6533_s22 + $0x8d0] sm:$0xff] }
 0x429   : > { %4933 = vmatprep.subr.mxu1 %v3527_v51  ;;  %5004 = vmatprep.subr.mxu0 %v1993_v38  ;;  %v3303_v51 = vld [vmem:[%s6533_s22 + $0x3848] sm:$0xff]  ;;  %v1769_v38 = vld [vmem:[%s6533_s22 + $0x858] sm:$0xff] }
 0x42a   : > { %4934 = vmatpush2.msra.mxu1 %v3526_v13  ;;  %5005 = vmatpush2.msra.mxu0 %v1992_v40  ;;  %v3302_v13 = vld [vmem:[%s6533_s22 + $0x3840] sm:$0xff]  ;;  %v1768_v40 = vld [vmem:[%s6533_s22 + $0x850] sm:$0xff] }
 0x42b   : > { %4935 = vmatprep.subr.mxu1 %v3511_v41  ;;  %5006 = vmatprep.subr.mxu0 %v1977_v63  ;;  %v2265_v41 = vld [vmem:[%s6533_s22 + $0x17d8] sm:$0xff] }
 0x42c   : > { %4936 = vmatpush2.msra.mxu1 %v3510_v19  ;;  %5007 = vmatpush2.msra.mxu0 %v1976_v43  ;;  %v2777_v63 = vld [vmem:[%s6533_s22 + $0x27d8] sm:$0xff]  ;;  %v2264_v19 = vld [vmem:[%s6533_s22 + $0x17d0] sm:$0xff] }
 0x42d   : > { %4937 = vmatprep.subr.mxu1 %v3495_v44  ;;  %5008 = vmatprep.subr.mxu0 %v1961_v7  ;;  %v2776_v43 = vld [vmem:[%s6533_s22 + $0x27d0] sm:$0xff]  ;;  %v2249_v44 = vld [vmem:[%s6533_s22 + $0x1758] sm:$0xff] }
 0x42e   : > { %4938 = vmatpush2.msra.mxu1 %v3494_v45  ;;  %5009 = vmatpush2.msra.mxu0 %v1960_v46  ;;  %v2761_v7 = vld [vmem:[%s6533_s22 + $0x2758] sm:$0xff]  ;;  %v2248_v45 = vld [vmem:[%s6533_s22 + $0x1750] sm:$0xff] }
 0x42f   : > { %4939 = vmatprep.subr.mxu1 %v3479_v47  ;;  %5010 = vmatprep.subr.mxu0 %v1945_v49  ;;  %v2760_v46 = vld [vmem:[%s6533_s22 + $0x2750] sm:$0xff]  ;;  %v2233_v47 = vld [vmem:[%s6533_s22 + $0x16d8] sm:$0xff] }
 0x430   : > { %4940 = vmatpush2.msra.mxu1 %v3478_v50  ;;  %5011 = vmatpush2.msra.mxu0 %v1944_v52  ;;  %v2745_v49 = vld [vmem:[%s6533_s22 + $0x26d8] sm:$0xff]  ;;  %v2232_v50 = vld [vmem:[%s6533_s22 + $0x16d0] sm:$0xff] }
 0x431   : > { %4941 = vmatprep.subr.mxu1 %v3463_v53  ;;  %5012 = vmatprep.subr.mxu0 %v1929_v54  ;;  %v2744_v52 = vld [vmem:[%s6533_s22 + $0x26d0] sm:$0xff]  ;;  %v2217_v53 = vld [vmem:[%s6533_s22 + $0x1658] sm:$0xff] }
 0x432   : > { %4942 = vmatpush2.msra.mxu1 %v3462_v31  ;;  %5013 = vmatpush2.msra.mxu0 %v1928_v57  ;;  %v2729_v54 = vld [vmem:[%s6533_s22 + $0x2658] sm:$0xff]  ;;  %v2216_v31 = vld [vmem:[%s6533_s22 + $0x1650] sm:$0xff] }
 0x433   : > { %4943 = vmatprep.subr.mxu1 %v3447_v59  ;;  %5014 = vmatprep.subr.mxu0 %v1913_v60  ;;  %v2728_v57 = vld [vmem:[%s6533_s22 + $0x2650] sm:$0xff]  ;;  %v2201_v59 = vld [vmem:[%s6533_s22 + $0x15d8] sm:$0xff] }
 0x434   : > { %4944 = vmatpush2.msra.mxu1 %v3446_v61  ;;  %5015 = vmatpush2.msra.mxu0 %v1912_v62  ;;  %v2713_v60 = vld [vmem:[%s6533_s22 + $0x25d8] sm:$0xff]  ;;  %v2200_v61 = vld [vmem:[%s6533_s22 + $0x15d0] sm:$0xff] }
 0x435   : > { %4945 = vmatprep.subr.mxu1 %v3431_v0  ;;  %5016 = vmatprep.subr.mxu0 %v1897_v3  ;;  %v2712_v62 = vld [vmem:[%s6533_s22 + $0x25d0] sm:$0xff]  ;;  %v2185_v0 = vld [vmem:[%s6533_s22 + $0x1558] sm:$0xff] }
 0x436   : > { %4946 = vmatpush2.msra.mxu1 %v3430_v4  ;;  %5017 = vmatpush2.msra.mxu0 %v1896_v6  ;;  %v2697_v3 = vld [vmem:[%s6533_s22 + $0x2558] sm:$0xff]  ;;  %v2184_v4 = vld [vmem:[%s6533_s22 + $0x1550] sm:$0xff] }
 0x437   : > { %4947 = vmatprep.subr.mxu1 %v3415_v8  ;;  %5018 = vmatprep.subr.mxu0 %v1881_v9  ;;  %v2696_v6 = vld [vmem:[%s6533_s22 + $0x2550] sm:$0xff]  ;;  %v2169_v8 = vld [vmem:[%s6533_s22 + $0x14d8] sm:$0xff] }
 0x438   : > { %4948 = vmatpush2.msra.mxu1 %v3414_v10  ;;  %5019 = vmatpush2.msra.mxu0 %v1880_v11  ;;  %v2681_v9 = vld [vmem:[%s6533_s22 + $0x24d8] sm:$0xff]  ;;  %v2168_v10 = vld [vmem:[%s6533_s22 + $0x14d0] sm:$0xff] }
 0x439   : > { %4949 = vmatprep.subr.mxu1 %v3399_v12  ;;  %5020 = vmatprep.subr.mxu0 %v1865_v14  ;;  %v2680_v11 = vld [vmem:[%s6533_s22 + $0x24d0] sm:$0xff]  ;;  %v2153_v12 = vld [vmem:[%s6533_s22 + $0x1458] sm:$0xff] }
 0x43a   : > { %4950 = vmatpush2.msra.mxu1 %v3398_v16  ;;  %5021 = vmatpush2.msra.mxu0 %v1864_v17  ;;  %v2665_v14 = vld [vmem:[%s6533_s22 + $0x2458] sm:$0xff]  ;;  %v2152_v16 = vld [vmem:[%s6533_s22 + $0x1450] sm:$0xff] }
 0x43b   : > { %4951 = vmatprep.subr.mxu1 %v3383_v18  ;;  %5022 = vmatprep.subr.mxu0 %v1849_v1  ;;  %v2664_v17 = vld [vmem:[%s6533_s22 + $0x2450] sm:$0xff]  ;;  %v2137_v18 = vld [vmem:[%s6533_s22 + $0x13d8] sm:$0xff] }
 0x43c   : > { %4952 = vmatpush2.msra.mxu1 %v3382_v2  ;;  %5023 = vmatpush2.msra.mxu0 %v1848_v20  ;;  %v2649_v1 = vld [vmem:[%s6533_s22 + $0x23d8] sm:$0xff]  ;;  %v2136_v2 = vld [vmem:[%s6533_s22 + $0x13d0] sm:$0xff] }
 0x43d   : > { %4953 = vmatprep.subr.mxu1 %v3367_v22  ;;  %5024 = vmatprep.subr.mxu0 %v1833_v23  ;;  %v2648_v20 = vld [vmem:[%s6533_s22 + $0x23d0] sm:$0xff]  ;;  %v2121_v22 = vld [vmem:[%s6533_s22 + $0x1358] sm:$0xff] }
 0x43e   : > { %4954 = vmatpush2.msra.mxu1 %v3366_v24  ;;  %5025 = vmatpush2.msra.mxu0 %v1832_v25  ;;  %v2633_v23 = vld [vmem:[%s6533_s22 + $0x2358] sm:$0xff]  ;;  %v2120_v24 = vld [vmem:[%s6533_s22 + $0x1350] sm:$0xff] }
 0x43f   : > { %4955 = vmatprep.subr.mxu1 %v3351_v26  ;;  %5026 = vmatprep.subr.mxu0 %v1817_v27  ;;  %v2632_v25 = vld [vmem:[%s6533_s22 + $0x2350] sm:$0xff]  ;;  %v2105_v26 = vld [vmem:[%s6533_s22 + $0x12d8] sm:$0xff] }
 0x440   : > { %4956 = vmatpush2.msra.mxu1 %v3350_v28  ;;  %5027 = vmatpush2.msra.mxu0 %v1816_v29  ;;  %v2617_v27 = vld [vmem:[%s6533_s22 + $0x22d8] sm:$0xff]  ;;  %v2104_v28 = vld [vmem:[%s6533_s22 + $0x12d0] sm:$0xff] }
 0x441   : > { %4957 = vmatprep.subr.mxu1 %v3335_v30  ;;  %5028 = vmatprep.subr.mxu0 %v1801_v55  ;;  %v2616_v29 = vld [vmem:[%s6533_s22 + $0x22d0] sm:$0xff]  ;;  %v2089_v30 = vld [vmem:[%s6533_s22 + $0x1258] sm:$0xff] }
 0x442   : > { %4958 = vmatpush2.msra.mxu1 %v3334_v32  ;;  %5029 = vmatpush2.msra.mxu0 %v1800_v33  ;;  %v2601_v55 = vld [vmem:[%s6533_s22 + $0x2258] sm:$0xff]  ;;  %v2088_v32 = vld [vmem:[%s6533_s22 + $0x1250] sm:$0xff] }
 0x443   : > { %4959 = vmatprep.subr.mxu1 %v3319_v34  ;;  %5030 = vmatprep.subr.mxu0 %v1785_v35  ;;  %v2600_v33 = vld [vmem:[%s6533_s22 + $0x2250] sm:$0xff]  ;;  %v2073_v34 = vld [vmem:[%s6533_s22 + $0x11d8] sm:$0xff] }
 0x444   : > { %4960 = vmatpush2.msra.mxu1 %v3318_v36  ;;  %5031 = vmatpush2.msra.mxu0 %v1784_v37  ;;  %v2585_v35 = vld [vmem:[%s6533_s22 + $0x21d8] sm:$0xff]  ;;  %v2072_v36 = vld [vmem:[%s6533_s22 + $0x11d0] sm:$0xff] }
 0x445   : > { %4961 = vmatprep.subr.mxu1 %v3303_v51  ;;  %5032 = vmatprep.subr.mxu0 %v1769_v38  ;;  %v2584_v37 = vld [vmem:[%s6533_s22 + $0x21d0] sm:$0xff]  ;;  %v2057_v51 = vld [vmem:[%s6533_s22 + $0x1158] sm:$0xff] }
 0x446   : > { %4962 = vmatpush2.msra.mxu1 %v3302_v13  ;;  %5033 = vmatpush2.msra.mxu0 %v1768_v40  ;;  %v2569_v38 = vld [vmem:[%s6533_s22 + $0x2158] sm:$0xff]  ;;  %v2056_v13 = vld [vmem:[%s6533_s22 + $0x1150] sm:$0xff] }
 0x447   : > { %4964 = vmatmul.mubr.f32.vlgmr.msra.gmra.mxu1 %v7457_v42  ;;  %5035 = vmatmul.mubr.f32.vlgmr.msra.gmra.mxu0 %v7230_v48  ;;  %v2568_v40 = vld [vmem:[%s6533_s22 + $0x2150] sm:$0xff] }
 0x448   : > { %5041 = vmatprep.subr.mxu1 %v2265_v41  ;;  %5112 = vmatprep.subr.mxu0 %v2777_v63  ;;  %v2041_v41 = vld [vmem:[%s6533_s22 + $0x10d8] sm:$0xff] }
 0x449   : > { %5042 = vmatpush1.msra.mxu1 %v2264_v19  ;;  %5105 = vmatprep.mubr.f32.mxu1 %v7237_v56  ;;  %v2553_v63 = vld [vmem:[%s6533_s22 + $0x20d8] sm:$0xff]  ;;  %v2040_v19 = vld [vmem:[%s6533_s22 + $0x10d0] sm:$0xff] }
 0x44a   : > { %5113 = vmatpush1.msra.mxu0 %v2776_v43  ;;  %5176 = vmatprep.mubr.f32.mxu0 %v7376_v21  ;;  %v2552_v43 = vld [vmem:[%s6533_s22 + $0x20d0] sm:$0xff] }
 0x44b   : > { %5043 = vmatprep.subr.mxu1 %v2249_v44  ;;  %5114 = vmatprep.subr.mxu0 %v2761_v7  ;;  %v2025_v44 = vld [vmem:[%s6533_s22 + $0x1058] sm:$0xff] }
 0x44c   : > { %5044 = vmatpush1.msra.mxu1 %v2248_v45  ;;  %5115 = vmatpush1.msra.mxu0 %v2760_v46  ;;  %v2537_v7 = vld [vmem:[%s6533_s22 + $0x2058] sm:$0xff]  ;;  %v2024_v45 = vld [vmem:[%s6533_s22 + $0x1050] sm:$0xff] }
 0x44d   : > { %5045 = vmatprep.subr.mxu1 %v2233_v47  ;;  %5116 = vmatprep.subr.mxu0 %v2745_v49  ;;  %v2536_v46 = vld [vmem:[%s6533_s22 + $0x2050] sm:$0xff]  ;;  %v2521_v47 = vld [vmem:[%s6533_s22 + $0x1fd8] sm:$0xff] }
 0x44e   : > { %5046 = vmatpush1.msra.mxu1 %v2232_v50  ;;  %5117 = vmatpush1.msra.mxu0 %v2744_v52  ;;  %v3033_v49 = vld [vmem:[%s6533_s22 + $0x2fd8] sm:$0xff]  ;;  %v2520_v50 = vld [vmem:[%s6533_s22 + $0x1fd0] sm:$0xff] }
 0x44f   : > { %5047 = vmatprep.subr.mxu1 %v2217_v53  ;;  %5118 = vmatprep.subr.mxu0 %v2729_v54  ;;  %v3032_v52 = vld [vmem:[%s6533_s22 + $0x2fd0] sm:$0xff]  ;;  %v2505_v53 = vld [vmem:[%s6533_s22 + $0x1f58] sm:$0xff] }
 0x450   : > { %5048 = vmatpush1.msra.mxu1 %v2216_v31  ;;  %5119 = vmatpush1.msra.mxu0 %v2728_v57  ;;  %v3017_v54 = vld [vmem:[%s6533_s22 + $0x2f58] sm:$0xff]  ;;  %v2504_v31 = vld [vmem:[%s6533_s22 + $0x1f50] sm:$0xff] }
 0x451   : > { %5049 = vmatprep.subr.mxu1 %v2201_v59  ;;  %5120 = vmatprep.subr.mxu0 %v2713_v60  ;;  %v3016_v57 = vld [vmem:[%s6533_s22 + $0x2f50] sm:$0xff]  ;;  %v2489_v59 = vld [vmem:[%s6533_s22 + $0x1ed8] sm:$0xff] }
 0x452   : > { %5050 = vmatpush1.msra.mxu1 %v2200_v61  ;;  %5121 = vmatpush1.msra.mxu0 %v2712_v62  ;;  %v3001_v60 = vld [vmem:[%s6533_s22 + $0x2ed8] sm:$0xff]  ;;  %v2488_v61 = vld [vmem:[%s6533_s22 + $0x1ed0] sm:$0xff] }
 0x453   : > { %5051 = vmatprep.subr.mxu1 %v2185_v0  ;;  %5122 = vmatprep.subr.mxu0 %v2697_v3  ;;  %v3000_v62 = vld [vmem:[%s6533_s22 + $0x2ed0] sm:$0xff]  ;;  %v2473_v0 = vld [vmem:[%s6533_s22 + $0x1e58] sm:$0xff] }
 0x454   : > { %5052 = vmatpush1.msra.mxu1 %v2184_v4  ;;  %5123 = vmatpush1.msra.mxu0 %v2696_v6  ;;  %v2985_v3 = vld [vmem:[%s6533_s22 + $0x2e58] sm:$0xff]  ;;  %v2472_v4 = vld [vmem:[%s6533_s22 + $0x1e50] sm:$0xff] }
 0x455   : > { %5053 = vmatprep.subr.mxu1 %v2169_v8  ;;  %5124 = vmatprep.subr.mxu0 %v2681_v9  ;;  %v2984_v6 = vld [vmem:[%s6533_s22 + $0x2e50] sm:$0xff]  ;;  %v2457_v8 = vld [vmem:[%s6533_s22 + $0x1dd8] sm:$0xff] }
 0x456   : > { %5054 = vmatpush1.msra.mxu1 %v2168_v10  ;;  %5125 = vmatpush1.msra.mxu0 %v2680_v11  ;;  %v2969_v9 = vld [vmem:[%s6533_s22 + $0x2dd8] sm:$0xff]  ;;  %v2456_v10 = vld [vmem:[%s6533_s22 + $0x1dd0] sm:$0xff] }
 0x457   : > { %5055 = vmatprep.subr.mxu1 %v2153_v12  ;;  %5126 = vmatprep.subr.mxu0 %v2665_v14  ;;  %v2968_v11 = vld [vmem:[%s6533_s22 + $0x2dd0] sm:$0xff]  ;;  %v2441_v12 = vld [vmem:[%s6533_s22 + $0x1d58] sm:$0xff] }
 0x458   : > { %5056 = vmatpush1.msra.mxu1 %v2152_v16  ;;  %5127 = vmatpush1.msra.mxu0 %v2664_v17  ;;  %v2953_v14 = vld [vmem:[%s6533_s22 + $0x2d58] sm:$0xff]  ;;  %v2440_v16 = vld [vmem:[%s6533_s22 + $0x1d50] sm:$0xff] }
 0x459   : > { %5057 = vmatprep.subr.mxu1 %v2137_v18  ;;  %5128 = vmatprep.subr.mxu0 %v2649_v1  ;;  %v2952_v17 = vld [vmem:[%s6533_s22 + $0x2d50] sm:$0xff]  ;;  %v2425_v18 = vld [vmem:[%s6533_s22 + $0x1cd8] sm:$0xff] }
 0x45a   : > { %5058 = vmatpush1.msra.mxu1 %v2136_v2  ;;  %5129 = vmatpush1.msra.mxu0 %v2648_v20  ;;  %v2937_v1 = vld [vmem:[%s6533_s22 + $0x2cd8] sm:$0xff]  ;;  %v2424_v2 = vld [vmem:[%s6533_s22 + $0x1cd0] sm:$0xff] }
 0x45b   : > { %5059 = vmatprep.subr.mxu1 %v2121_v22  ;;  %5130 = vmatprep.subr.mxu0 %v2633_v23  ;;  %v2936_v20 = vld [vmem:[%s6533_s22 + $0x2cd0] sm:$0xff]  ;;  %v2409_v22 = vld [vmem:[%s6533_s22 + $0x1c58] sm:$0xff] }
 0x45c   : > { %5060 = vmatpush1.msra.mxu1 %v2120_v24  ;;  %5131 = vmatpush1.msra.mxu0 %v2632_v25  ;;  %v2921_v23 = vld [vmem:[%s6533_s22 + $0x2c58] sm:$0xff]  ;;  %v2408_v24 = vld [vmem:[%s6533_s22 + $0x1c50] sm:$0xff] }
 0x45d   : > { %5061 = vmatprep.subr.mxu1 %v2105_v26  ;;  %5132 = vmatprep.subr.mxu0 %v2617_v27  ;;  %v2920_v25 = vld [vmem:[%s6533_s22 + $0x2c50] sm:$0xff]  ;;  %v2393_v26 = vld [vmem:[%s6533_s22 + $0x1bd8] sm:$0xff] }
 0x45e   : > { %5062 = vmatpush1.msra.mxu1 %v2104_v28  ;;  %5133 = vmatpush1.msra.mxu0 %v2616_v29  ;;  %v2905_v27 = vld [vmem:[%s6533_s22 + $0x2bd8] sm:$0xff]  ;;  %v2392_v28 = vld [vmem:[%s6533_s22 + $0x1bd0] sm:$0xff] }
 0x45f   : > { %5063 = vmatprep.subr.mxu1 %v2089_v30  ;;  %5134 = vmatprep.subr.mxu0 %v2601_v55  ;;  %v2904_v29 = vld [vmem:[%s6533_s22 + $0x2bd0] sm:$0xff]  ;;  %v2377_v30 = vld [vmem:[%s6533_s22 + $0x1b58] sm:$0xff] }
 0x460   : > { %5064 = vmatpush1.msra.mxu1 %v2088_v32  ;;  %5135 = vmatpush1.msra.mxu0 %v2600_v33  ;;  %v2889_v55 = vld [vmem:[%s6533_s22 + $0x2b58] sm:$0xff]  ;;  %v4468_v32 = vpop.f32.mrf.mxu0  ;;  %v4539_v33 = vpop.f32.mrf.mxu1 }
 0x461   : > { %5065 = vmatprep.subr.mxu1 %v2073_v34  ;;  %5136 = vmatprep.subr.mxu0 %v2585_v35  ;;  %v2376_v34 = vld [vmem:[%s6533_s22 + $0x1b50] sm:$0xff] }
 0x462   : > { %5066 = vmatpush1.msra.mxu1 %v2072_v36  ;;  %5137 = vmatpush1.msra.mxu0 %v2584_v37  ;;  %v2888_v35 = vld [vmem:[%s6533_s22 + $0x2b50] sm:$0xff]  ;;  %v2361_v36 = vld [vmem:[%s6533_s22 + $0x1ad8] sm:$0xff] }
 0x463   : > { %5067 = vmatprep.subr.mxu1 %v2057_v51  ;;  %5138 = vmatprep.subr.mxu0 %v2569_v38  ;;  %v2873_v37 = vld [vmem:[%s6533_s22 + $0x2ad8] sm:$0xff]  ;;  %v2360_v51 = vld [vmem:[%s6533_s22 + $0x1ad0] sm:$0xff] }
 0x464   : > { %5068 = vmatpush1.msra.mxu1 %v2056_v13  ;;  %5139 = vmatpush1.msra.mxu0 %v2568_v40  ;;  %v2872_v38 = vld [vmem:[%s6533_s22 + $0x2ad0] sm:$0xff]  ;;  %v2345_v13 = vld [vmem:[%s6533_s22 + $0x1a58] sm:$0xff] }
 0x465   : > { %5069 = vmatprep.subr.mxu1 %v2041_v41  ;;  %5140 = vmatprep.subr.mxu0 %v2553_v63  ;;  %v2857_v40 = vld [vmem:[%s6533_s22 + $0x2a58] sm:$0xff]  ;;  %v4470_v41 = vpop.f32.mrf.mxu0  ;;  %v4541_v63 = vpop.f32.mrf.mxu1 }
 0x466   : > { %5070 = vmatpush1.msra.mxu1 %v2040_v19  ;;  %5141 = vmatpush1.msra.mxu0 %v2552_v43  ;;  %v2344_v19 = vld [vmem:[%s6533_s22 + $0x1a50] sm:$0xff] }
 0x467   : > { %5071 = vmatprep.subr.mxu1 %v2025_v44  ;;  %5142 = vmatprep.subr.mxu0 %v2537_v7  ;;  %v2856_v43 = vld [vmem:[%s6533_s22 + $0x2a50] sm:$0xff]  ;;  %v4540_v44 = vadd.f32 %v4539_v33, %v4468_v32  ;;  %v2329_v7 = vld [vmem:[%s6533_s22 + $0x19d8] sm:$0xff]  ;;  %v1691_v33 = vld [vmem:[%s6533_s22 + $0x5e8] sm:$0xff] }
 0x468   : > { %5072 = vmatpush1.msra.mxu1 %v2024_v45  ;;  %5143 = vmatpush1.msra.mxu0 %v2536_v46  ;;  %v2841_v45 = vld [vmem:[%s6533_s22 + $0x29d8] sm:$0xff]  ;;  %v4610_v46 = vpop.f32.mrf.mxu0 }
 0x469   : > { %5073 = vmatprep.subr.mxu1 %v2521_v47  ;;  %5144 = vmatprep.subr.mxu0 %v3033_v49  ;;  %v2328_v47 = vld [vmem:[%s6533_s22 + $0x19d0] sm:$0xff]  ;;  %v3225_v32 = vld [vmem:[%s6533_s22 + $0x35d8] sm:$0xff] }
 0x46a   : > { %5074 = vmatpush2.msra.mxu1 %v2520_v50  ;;  %5145 = vmatpush2.msra.mxu0 %v3032_v52  ;;  %v2840_v49 = vld [vmem:[%s6533_s22 + $0x29d0] sm:$0xff]  ;;  %v4542_v50 = vadd.f32 %v4541_v63, %v4470_v41  ;;  %v2313_v52 = vld [vmem:[%s6533_s22 + $0x1958] sm:$0xff]  ;;  %v1658_v63 = vld [vmem:[%s6533_s22 + $0x4e0] sm:$0xff] }
 0x46b   : > { %5075 = vmatprep.subr.mxu1 %v2505_v53  ;;  %5146 = vmatprep.subr.mxu0 %v3017_v54  ;;  %v2825_v53 = vld [vmem:[%s6533_s22 + $0x2958] sm:$0xff]  ;;  %v2312_v54 = vld [vmem:[%s6533_s22 + $0x1950] sm:$0xff] }
 0x46c   : > { %5076 = vmatpush2.msra.mxu1 %v2504_v31  ;;  %5147 = vmatpush2.msra.mxu0 %v3016_v57  ;;  %v2824_v31 = vld [vmem:[%s6533_s22 + $0x2950] sm:$0xff]  ;;  %v4611_v57 = vadd.f32 %v4610_v46, %v4540_v44  ;;  %v1627_v46 = vld [vmem:[%s6533_s22 + $0x3e8] sm:$0xff] }
 0x46d   : > { %5077 = vmatprep.subr.mxu1 %v2489_v59  ;;  %5148 = vmatprep.subr.mxu0 %v3001_v60  ;;  %v2297_v59 = vld [vmem:[%s6533_s22 + $0x18d8] sm:$0xff]  ;;  %v3192_v41 = vld [vmem:[%s6533_s22 + $0x34d0] sm:$0xff] }
 0x46e   : > { %5078 = vmatpush2.msra.mxu1 %v2488_v61  ;;  %5149 = vmatpush2.msra.mxu0 %v3000_v62  ;;  %v2809_v60 = vld [vmem:[%s6533_s22 + $0x28d8] sm:$0xff]  ;;  %v4612_v61 = vpop.f32.mrf.mxu0  ;;  %v2296_v62 = vld [vmem:[%s6533_s22 + $0x18d0] sm:$0xff] }
 0x46f   : > { %5079 = vmatprep.subr.mxu1 %v2473_v0  ;;  %5150 = vmatprep.subr.mxu0 %v2985_v3  ;;  %v2808_v0 = vld [vmem:[%s6533_s22 + $0x28d0] sm:$0xff] }
 0x470   : > { %5080 = vmatpush2.msra.mxu1 %v2472_v4  ;;  %5151 = vmatpush2.msra.mxu0 %v2984_v6  ;;  %v4613_v4 = vadd.f32 %v4612_v61, %v4542_v50  ;;  %v2281_v6 = vld [vmem:[%s6533_s22 + $0x1858] sm:$0xff]  ;;  %v3176_v44 = vld [vmem:[%s6533_s22 + $0x3450] sm:$0xff] }
 0x471   : > { %5081 = vmatprep.subr.mxu1 %v2457_v8  ;;  %5152 = vmatprep.subr.mxu0 %v2969_v9  ;;  %v2793_v8 = vld [vmem:[%s6533_s22 + $0x2858] sm:$0xff] }
 0x472   : > { %5082 = vmatpush2.msra.mxu1 %v2456_v10  ;;  %5153 = vmatpush2.msra.mxu0 %v2968_v11  ;;  %v2280_v10 = vld [vmem:[%s6533_s22 + $0x1850] sm:$0xff]  ;;  %v3145_v50 = vld [vmem:[%s6533_s22 + $0x3358] sm:$0xff] }
 0x473   : > { %5083 = vmatprep.subr.mxu1 %v2441_v12  ;;  %5154 = vmatprep.subr.mxu0 %v2953_v14  ;;  %v2792_v11 = vld [vmem:[%s6533_s22 + $0x2850] sm:$0xff]  ;;  %v3113_v61 = vld [vmem:[%s6533_s22 + $0x3258] sm:$0xff] }
 0x474   : > { %5084 = vmatpush2.msra.mxu1 %v2440_v16  ;;  %5155 = vmatpush2.msra.mxu0 %v2952_v17  ;;  %v3289_v16 = vld [vmem:[%s6533_s22 + $0x37d8] sm:$0xff]  ;;  %v1755_v17 = vld [vmem:[%s6533_s22 + $0x7e8] sm:$0xff] }
 0x475   : > { %5085 = vmatprep.subr.mxu1 %v2425_v18  ;;  %5156 = vmatprep.subr.mxu0 %v2937_v1  ;;  %v3288_v18 = vld [vmem:[%s6533_s22 + $0x37d0] sm:$0xff]  ;;  %v1754_v1 = vld [vmem:[%s6533_s22 + $0x7e0] sm:$0xff] }
 0x476   : > { %5086 = vmatpush2.msra.mxu1 %v2424_v2  ;;  %5157 = vmatpush2.msra.mxu0 %v2936_v20  ;;  %v3273_v2 = vld [vmem:[%s6533_s22 + $0x3758] sm:$0xff]  ;;  %v1739_v20 = vld [vmem:[%s6533_s22 + $0x768] sm:$0xff] }
 0x477   : > { %5087 = vmatprep.subr.mxu1 %v2409_v22  ;;  %5158 = vmatprep.subr.mxu0 %v2921_v23  ;;  %v3272_v22 = vld [vmem:[%s6533_s22 + $0x3750] sm:$0xff]  ;;  %v1738_v23 = vld [vmem:[%s6533_s22 + $0x760] sm:$0xff] }
 0x478   : > { %5088 = vmatpush2.msra.mxu1 %v2408_v24  ;;  %5159 = vmatpush2.msra.mxu0 %v2920_v25  ;;  %v3257_v24 = vld [vmem:[%s6533_s22 + $0x36d8] sm:$0xff]  ;;  %v1723_v25 = vld [vmem:[%s6533_s22 + $0x6e8] sm:$0xff] }
 0x479   : > { %5089 = vmatprep.subr.mxu1 %v2393_v26  ;;  %5160 = vmatprep.subr.mxu0 %v2905_v27  ;;  %v3256_v26 = vld [vmem:[%s6533_s22 + $0x36d0] sm:$0xff]  ;;  %v1722_v27 = vld [vmem:[%s6533_s22 + $0x6e0] sm:$0xff] }
 0x47a   : > { %5090 = vmatpush2.msra.mxu1 %v2392_v28  ;;  %5161 = vmatpush2.msra.mxu0 %v2904_v29  ;;  %v3241_v28 = vld [vmem:[%s6533_s22 + $0x3658] sm:$0xff]  ;;  %v1707_v29 = vld [vmem:[%s6533_s22 + $0x668] sm:$0xff] }
 0x47b   : > { %5091 = vmatprep.subr.mxu1 %v2377_v30  ;;  %5162 = vmatprep.subr.mxu0 %v2889_v55  ;;  %v3240_v30 = vld [vmem:[%s6533_s22 + $0x3650] sm:$0xff]  ;;  %v1706_v55 = vld [vmem:[%s6533_s22 + $0x660] sm:$0xff] }
 0x47c   : > { %5092 = vmatpush2.msra.mxu1 %v2376_v34  ;;  %5163 = vmatpush2.msra.mxu0 %v2888_v35  ;;  %v3224_v34 = vld [vmem:[%s6533_s22 + $0x35d0] sm:$0xff]  ;;  %v1690_v35 = vld [vmem:[%s6533_s22 + $0x5e0] sm:$0xff] }
 0x47d   : > { %5093 = vmatprep.subr.mxu1 %v2361_v36  ;;  %5164 = vmatprep.subr.mxu0 %v2873_v37  ;;  %v3209_v36 = vld [vmem:[%s6533_s22 + $0x3558] sm:$0xff]  ;;  %v1675_v37 = vld [vmem:[%s6533_s22 + $0x568] sm:$0xff] }
 0x47e   : > { %5094 = vmatpush2.msra.mxu1 %v2360_v51  ;;  %5165 = vmatpush2.msra.mxu0 %v2872_v38  ;;  %v3208_v51 = vld [vmem:[%s6533_s22 + $0x3550] sm:$0xff]  ;;  %v1674_v38 = vld [vmem:[%s6533_s22 + $0x560] sm:$0xff] }
 0x47f   : > { %5095 = vmatprep.subr.mxu1 %v2345_v13  ;;  %5166 = vmatprep.subr.mxu0 %v2857_v40  ;;  %v3193_v13 = vld [vmem:[%s6533_s22 + $0x34d8] sm:$0xff]  ;;  %v1659_v40 = vld [vmem:[%s6533_s22 + $0x4e8] sm:$0xff] }
 0x480   : > { %5096 = vmatpush2.msra.mxu1 %v2344_v19  ;;  %5167 = vmatpush2.msra.mxu0 %v2856_v43  ;;  %v3177_v19 = vld [vmem:[%s6533_s22 + $0x3458] sm:$0xff]  ;;  %v1643_v43 = vld [vmem:[%s6533_s22 + $0x468] sm:$0xff] }
 0x481   : > { %5097 = vmatprep.subr.mxu1 %v2329_v7  ;;  %5168 = vmatprep.subr.mxu0 %v2841_v45  ;;  %v1642_v7 = vld [vmem:[%s6533_s22 + $0x460] sm:$0xff]  ;;  %v3161_v45 = vld [vmem:[%s6533_s22 + $0x33d8] sm:$0xff] }
 0x482   : > { %5098 = vmatpush2.msra.mxu1 %v2328_v47  ;;  %5169 = vmatpush2.msra.mxu0 %v2840_v49  ;;  %v3160_v47 = vld [vmem:[%s6533_s22 + $0x33d0] sm:$0xff]  ;;  %v1626_v49 = vld [vmem:[%s6533_s22 + $0x3e0] sm:$0xff] }
 0x483   : > { %5099 = vmatprep.subr.mxu1 %v2313_v52  ;;  %5170 = vmatprep.subr.mxu0 %v2825_v53  ;;  %v4681_v3 = vpop.f32.mrf.mxu1  ;;  %v1611_v52 = vld [vmem:[%s6533_s22 + $0x368] sm:$0xff]  ;;  %v3144_v53 = vld [vmem:[%s6533_s22 + $0x3350] sm:$0xff] }
 0x484   : > { %5100 = vmatpush2.msra.mxu1 %v2312_v54  ;;  %5171 = vmatpush2.msra.mxu0 %v2824_v31  ;;  %v4682_v9 = vadd.f32 %v4681_v3, %v4611_v57  ;;  %v1610_v54 = vld [vmem:[%s6533_s22 + $0x360] sm:$0xff]  ;;  %v3129_v31 = vld [vmem:[%s6533_s22 + $0x32d8] sm:$0xff]  ;;  %v1595_v57 = vld [vmem:[%s6533_s22 + $0x2e8] sm:$0xff] }
 0x485   : > { %5101 = vmatprep.subr.mxu1 %v2297_v59  ;;  %5172 = vmatprep.subr.mxu0 %v2809_v60  ;;  %v4683_v12 = vpop.f32.mrf.mxu1  ;;  %v3128_v59 = vld [vmem:[%s6533_s22 + $0x32d0] sm:$0xff]  ;;  %v1594_v60 = vld [vmem:[%s6533_s22 + $0x2e0] sm:$0xff] }
 0x486   : > { %5102 = vmatpush2.msra.mxu1 %v2296_v62  ;;  %5173 = vmatpush2.msra.mxu0 %v2808_v0  ;;  %v4684_v14 = vadd.f32 %v4683_v12, %v4613_v4  ;;  %5844 = vst [vmem:[%s7859_s23 + $0x30] sm:$0xff] %v4682_v9  ;;  %v1579_v62 = vld [vmem:[%s6533_s22 + $0x268] sm:$0xff]  ;;  %v3112_v0 = vld [vmem:[%s6533_s22 + $0x3250] sm:$0xff]  ;;  %v1578_v3 = vld [vmem:[%s6533_s22 + $0x260] sm:$0xff] }
 0x487   : > { %5103 = vmatprep.subr.mxu1 %v2281_v6  ;;  %5174 = vmatprep.subr.mxu0 %v2793_v8  ;;  %v3097_v4 = vld [vmem:[%s6533_s22 + $0x31d8] sm:$0xff]  ;;  %v1563_v6 = vld [vmem:[%s6533_s22 + $0x1e8] sm:$0xff]  ;;  %v3096_v8 = vld [vmem:[%s6533_s22 + $0x31d0] sm:$0xff] }
 0x488   : > { %5104 = vmatpush2.msra.mxu1 %v2280_v10  ;;  %5175 = vmatpush2.msra.mxu0 %v2792_v11  ;;  %5845 = vst [vmem:[%s7859_s23 + $0x38] sm:$0xff] %v4684_v14  ;;  %v1562_v9 = vld [vmem:[%s6533_s22 + $0x1e0] sm:$0xff]  ;;  %v3081_v10 = vld [vmem:[%s6533_s22 + $0x3158] sm:$0xff]  ;;  %v1547_v11 = vld [vmem:[%s6533_s22 + $0x168] sm:$0xff] }
 0x489   : > { %5106 = vmatmul.mubr.f32.vlgmr.msra.gmra.mxu1 %v7240_v58  ;;  %5177 = vmatmul.mubr.f32.vlgmr.msra.gmra.mxu0 %v7378_v5  ;;  %v3080_v12 = vld [vmem:[%s6533_s22 + $0x3150] sm:$0xff]  ;;  %v1546_v14 = vld [vmem:[%s6533_s22 + $0x160] sm:$0xff] }
 0x48a   : > { %5183 = vmatprep.subr.mxu1 %v3289_v16  ;;  %5254 = vmatprep.subr.mxu0 %v1755_v17  ;;  %v3065_v16 = vld [vmem:[%s6533_s22 + $0x30d8] sm:$0xff]  ;;  %v1531_v17 = vld [vmem:[%s6533_s22 + $0xe8] sm:$0xff] }
 0x48b   : > { %5184 = vmatpush1.msra.mxu1 %v3288_v18  ;;  %5247 = vmatprep.mubr.f32.mxu1 %v7453_v15  ;;  %v3064_v18 = vld [vmem:[%s6533_s22 + $0x30d0] sm:$0xff] }
 0x48c   : > { %5255 = vmatpush1.msra.mxu0 %v1754_v1  ;;  %5318 = vmatprep.mubr.f32.mxu0 %v7098_v39  ;;  %v1530_v1 = vld [vmem:[%s6533_s22 + $0xe0] sm:$0xff] }
 0x48d   : > { %5185 = vmatprep.subr.mxu1 %v3273_v2  ;;  %5256 = vmatprep.subr.mxu0 %v1739_v20  ;;  %v3049_v2 = vld [vmem:[%s6533_s22 + $0x3058] sm:$0xff]  ;;  %v1515_v20 = vld [vmem:[%s6533_s22 + $0x68] sm:$0xff] }
 0x48e   : > { %5186 = vmatpush1.msra.mxu1 %v3272_v22  ;;  %5257 = vmatpush1.msra.mxu0 %v1738_v23  ;;  %v3048_v22 = vld [vmem:[%s6533_s22 + $0x3050] sm:$0xff]  ;;  %v1514_v23 = vld [vmem:[%s6533_s22 + $0x60] sm:$0xff] }
 0x48f   : > { %5187 = vmatprep.subr.mxu1 %v3257_v24  ;;  %5258 = vmatprep.subr.mxu0 %v1723_v25  ;;  %v3545_v24 = vld [vmem:[%s6533_s22 + $0x3fd8] sm:$0xff]  ;;  %v2011_v25 = vld [vmem:[%s6533_s22 + $0xfe8] sm:$0xff] }
 0x490   : > { %5188 = vmatpush1.msra.mxu1 %v3256_v26  ;;  %5259 = vmatpush1.msra.mxu0 %v1722_v27  ;;  %v3544_v26 = vld [vmem:[%s6533_s22 + $0x3fd0] sm:$0xff]  ;;  %v2010_v27 = vld [vmem:[%s6533_s22 + $0xfe0] sm:$0xff] }
 0x491   : > { %5189 = vmatprep.subr.mxu1 %v3241_v28  ;;  %5260 = vmatprep.subr.mxu0 %v1707_v29  ;;  %v3529_v28 = vld [vmem:[%s6533_s22 + $0x3f58] sm:$0xff]  ;;  %v1995_v29 = vld [vmem:[%s6533_s22 + $0xf68] sm:$0xff] }
 0x492   : > { %5190 = vmatpush1.msra.mxu1 %v3240_v30  ;;  %5261 = vmatpush1.msra.mxu0 %v1706_v55  ;;  %v3528_v30 = vld [vmem:[%s6533_s22 + $0x3f50] sm:$0xff]  ;;  %v1994_v55 = vld [vmem:[%s6533_s22 + $0xf60] sm:$0xff] }
 0x493   : > { %5191 = vmatprep.subr.mxu1 %v3225_v32  ;;  %5262 = vmatprep.subr.mxu0 %v1691_v33  ;;  %v3513_v32 = vld [vmem:[%s6533_s22 + $0x3ed8] sm:$0xff]  ;;  %v1979_v33 = vld [vmem:[%s6533_s22 + $0xee8] sm:$0xff] }
 0x494   : > { %5192 = vmatpush1.msra.mxu1 %v3224_v34  ;;  %5263 = vmatpush1.msra.mxu0 %v1690_v35  ;;  %v3512_v34 = vld [vmem:[%s6533_s22 + $0x3ed0] sm:$0xff]  ;;  %v1978_v35 = vld [vmem:[%s6533_s22 + $0xee0] sm:$0xff] }
 0x495   : > { %5193 = vmatprep.subr.mxu1 %v3209_v36  ;;  %5264 = vmatprep.subr.mxu0 %v1675_v37  ;;  %v3497_v36 = vld [vmem:[%s6533_s22 + $0x3e58] sm:$0xff]  ;;  %v1963_v37 = vld [vmem:[%s6533_s22 + $0xe68] sm:$0xff] }
 0x496   : > { %5194 = vmatpush1.msra.mxu1 %v3208_v51  ;;  %5265 = vmatpush1.msra.mxu0 %v1674_v38  ;;  %v3496_v51 = vld [vmem:[%s6533_s22 + $0x3e50] sm:$0xff]  ;;  %v1962_v38 = vld [vmem:[%s6533_s22 + $0xe60] sm:$0xff] }
 0x497   : > { %5195 = vmatprep.subr.mxu1 %v3193_v13  ;;  %5266 = vmatprep.subr.mxu0 %v1659_v40  ;;  %v3481_v13 = vld [vmem:[%s6533_s22 + $0x3dd8] sm:$0xff]  ;;  %v1947_v40 = vld [vmem:[%s6533_s22 + $0xde8] sm:$0xff] }
 0x498   : > { %5196 = vmatpush1.msra.mxu1 %v3192_v41  ;;  %5267 = vmatpush1.msra.mxu0 %v1658_v63  ;;  %v3480_v41 = vld [vmem:[%s6533_s22 + $0x3dd0] sm:$0xff]  ;;  %v1946_v63 = vld [vmem:[%s6533_s22 + $0xde0] sm:$0xff] }
 0x499   : > { %5197 = vmatprep.subr.mxu1 %v3177_v19  ;;  %5268 = vmatprep.subr.mxu0 %v1643_v43  ;;  %v3465_v19 = vld [vmem:[%s6533_s22 + $0x3d58] sm:$0xff]  ;;  %v1931_v43 = vld [vmem:[%s6533_s22 + $0xd68] sm:$0xff] }
 0x49a   : > { %5198 = vmatpush1.msra.mxu1 %v3176_v44  ;;  %5269 = vmatpush1.msra.mxu0 %v1642_v7  ;;  %v3464_v44 = vld [vmem:[%s6533_s22 + $0x3d50] sm:$0xff]  ;;  %v1930_v7 = vld [vmem:[%s6533_s22 + $0xd60] sm:$0xff] }
 0x49b   : > { %5199 = vmatprep.subr.mxu1 %v3161_v45  ;;  %5270 = vmatprep.subr.mxu0 %v1627_v46  ;;  %v3449_v45 = vld [vmem:[%s6533_s22 + $0x3cd8] sm:$0xff]  ;;  %v1915_v46 = vld [vmem:[%s6533_s22 + $0xce8] sm:$0xff] }
 0x49c   : > { %5200 = vmatpush1.msra.mxu1 %v3160_v47  ;;  %5271 = vmatpush1.msra.mxu0 %v1626_v49  ;;  %v3448_v47 = vld [vmem:[%s6533_s22 + $0x3cd0] sm:$0xff]  ;;  %v1914_v49 = vld [vmem:[%s6533_s22 + $0xce0] sm:$0xff] }
 0x49d   : > { %5201 = vmatprep.subr.mxu1 %v3145_v50  ;;  %5272 = vmatprep.subr.mxu0 %v1611_v52  ;;  %v3433_v50 = vld [vmem:[%s6533_s22 + $0x3c58] sm:$0xff]  ;;  %v1899_v52 = vld [vmem:[%s6533_s22 + $0xc68] sm:$0xff] }
 0x49e   : > { %5202 = vmatpush1.msra.mxu1 %v3144_v53  ;;  %5273 = vmatpush1.msra.mxu0 %v1610_v54  ;;  %v3432_v53 = vld [vmem:[%s6533_s22 + $0x3c50] sm:$0xff]  ;;  %v1898_v54 = vld [vmem:[%s6533_s22 + $0xc60] sm:$0xff] }
 0x49f   : > { %5203 = vmatprep.subr.mxu1 %v3129_v31  ;;  %5274 = vmatprep.subr.mxu0 %v1595_v57  ;;  %v3417_v31 = vld [vmem:[%s6533_s22 + $0x3bd8] sm:$0xff]  ;;  %v1883_v57 = vld [vmem:[%s6533_s22 + $0xbe8] sm:$0xff] }
 0x4a0   : > { %5204 = vmatpush1.msra.mxu1 %v3128_v59  ;;  %5275 = vmatpush1.msra.mxu0 %v1594_v60  ;;  %v3416_v59 = vld [vmem:[%s6533_s22 + $0x3bd0] sm:$0xff]  ;;  %v1882_v60 = vld [vmem:[%s6533_s22 + $0xbe0] sm:$0xff] }
 0x4a1   : > { %5205 = vmatprep.subr.mxu1 %v3113_v61  ;;  %5276 = vmatprep.subr.mxu0 %v1579_v62  ;;  %v3401_v61 = vld [vmem:[%s6533_s22 + $0x3b58] sm:$0xff]  ;;  %v1867_v62 = vld [vmem:[%s6533_s22 + $0xb68] sm:$0xff] }
 0x4a2   : > { %5206 = vmatpush1.msra.mxu1 %v3112_v0  ;;  %5277 = vmatpush1.msra.mxu0 %v1578_v3  ;;  %v3400_v0 = vld [vmem:[%s6533_s22 + $0x3b50] sm:$0xff]  ;;  %v1866_v3 = vld [vmem:[%s6533_s22 + $0xb60] sm:$0xff] }
 0x4a3   : > { %5207 = vmatprep.subr.mxu1 %v3097_v4  ;;  %5278 = vmatprep.subr.mxu0 %v1563_v6  ;;  %v3385_v4 = vld [vmem:[%s6533_s22 + $0x3ad8] sm:$0xff]  ;;  %v1851_v6 = vld [vmem:[%s6533_s22 + $0xae8] sm:$0xff] }
 0x4a4   : > { %5208 = vmatpush1.msra.mxu1 %v3096_v8  ;;  %5279 = vmatpush1.msra.mxu0 %v1562_v9  ;;  %v3384_v8 = vld [vmem:[%s6533_s22 + $0x3ad0] sm:$0xff]  ;;  %v1850_v9 = vld [vmem:[%s6533_s22 + $0xae0] sm:$0xff] }
 0x4a5   : > { %5209 = vmatprep.subr.mxu1 %v3081_v10  ;;  %5280 = vmatprep.subr.mxu0 %v1547_v11  ;;  %v3369_v10 = vld [vmem:[%s6533_s22 + $0x3a58] sm:$0xff]  ;;  %v1835_v11 = vld [vmem:[%s6533_s22 + $0xa68] sm:$0xff] }
 0x4a6   : > { %5210 = vmatpush1.msra.mxu1 %v3080_v12  ;;  %5281 = vmatpush1.msra.mxu0 %v1546_v14  ;;  %v3368_v12 = vld [vmem:[%s6533_s22 + $0x3a50] sm:$0xff]  ;;  %v1834_v14 = vld [vmem:[%s6533_s22 + $0xa60] sm:$0xff] }
 0x4a7   : > { %5211 = vmatprep.subr.mxu1 %v3065_v16  ;;  %5282 = vmatprep.subr.mxu0 %v1531_v17  ;;  %v3353_v16 = vld [vmem:[%s6533_s22 + $0x39d8] sm:$0xff]  ;;  %v1819_v17 = vld [vmem:[%s6533_s22 + $0x9e8] sm:$0xff] }
 0x4a8   : > { %5212 = vmatpush1.msra.mxu1 %v3064_v18  ;;  %5283 = vmatpush1.msra.mxu0 %v1530_v1  ;;  %v3352_v18 = vld [vmem:[%s6533_s22 + $0x39d0] sm:$0xff]  ;;  %v1818_v1 = vld [vmem:[%s6533_s22 + $0x9e0] sm:$0xff] }
 0x4a9   : > { %5213 = vmatprep.subr.mxu1 %v3049_v2  ;;  %5284 = vmatprep.subr.mxu0 %v1515_v20  ;;  %v3337_v2 = vld [vmem:[%s6533_s22 + $0x3958] sm:$0xff]  ;;  %v1803_v20 = vld [vmem:[%s6533_s22 + $0x968] sm:$0xff] }
 0x4aa   : > { %5214 = vmatpush1.msra.mxu1 %v3048_v22  ;;  %5285 = vmatpush1.msra.mxu0 %v1514_v23  ;;  %v3336_v22 = vld [vmem:[%s6533_s22 + $0x3950] sm:$0xff]  ;;  %v1802_v23 = vld [vmem:[%s6533_s22 + $0x960] sm:$0xff] }
 0x4ab   : > { %5215 = vmatprep.subr.mxu1 %v3545_v24  ;;  %5286 = vmatprep.subr.mxu0 %v2011_v25  ;;  %v3321_v24 = vld [vmem:[%s6533_s22 + $0x38d8] sm:$0xff]  ;;  %v1787_v25 = vld [vmem:[%s6533_s22 + $0x8e8] sm:$0xff] }
 0x4ac   : > { %5216 = vmatpush2.msra.mxu1 %v3544_v26  ;;  %5287 = vmatpush2.msra.mxu0 %v2010_v27  ;;  %v3320_v26 = vld [vmem:[%s6533_s22 + $0x38d0] sm:$0xff]  ;;  %v1786_v27 = vld [vmem:[%s6533_s22 + $0x8e0] sm:$0xff] }
 0x4ad   : > { %5217 = vmatprep.subr.mxu1 %v3529_v28  ;;  %5288 = vmatprep.subr.mxu0 %v1995_v29  ;;  %v3305_v28 = vld [vmem:[%s6533_s22 + $0x3858] sm:$0xff]  ;;  %v1771_v29 = vld [vmem:[%s6533_s22 + $0x868] sm:$0xff] }
 0x4ae   : > { %5218 = vmatpush2.msra.mxu1 %v3528_v30  ;;  %5289 = vmatpush2.msra.mxu0 %v1994_v55  ;;  %v3304_v30 = vld [vmem:[%s6533_s22 + $0x3850] sm:$0xff]  ;;  %v1770_v55 = vld [vmem:[%s6533_s22 + $0x860] sm:$0xff] }
 0x4af   : > { %5219 = vmatprep.subr.mxu1 %v3513_v32  ;;  %5290 = vmatprep.subr.mxu0 %v1979_v33  ;;  %v2267_v32 = vld [vmem:[%s6533_s22 + $0x17e8] sm:$0xff] }
 0x4b0   : > { %5220 = vmatpush2.msra.mxu1 %v3512_v34  ;;  %5291 = vmatpush2.msra.mxu0 %v1978_v35  ;;  %v2779_v33 = vld [vmem:[%s6533_s22 + $0x27e8] sm:$0xff]  ;;  %v2266_v34 = vld [vmem:[%s6533_s22 + $0x17e0] sm:$0xff] }
 0x4b1   : > { %5221 = vmatprep.subr.mxu1 %v3497_v36  ;;  %5292 = vmatprep.subr.mxu0 %v1963_v37  ;;  %v2778_v35 = vld [vmem:[%s6533_s22 + $0x27e0] sm:$0xff]  ;;  %v2251_v36 = vld [vmem:[%s6533_s22 + $0x1768] sm:$0xff] }
 0x4b2   : > { %5222 = vmatpush2.msra.mxu1 %v3496_v51  ;;  %5293 = vmatpush2.msra.mxu0 %v1962_v38  ;;  %v2763_v37 = vld [vmem:[%s6533_s22 + $0x2768] sm:$0xff]  ;;  %v2250_v51 = vld [vmem:[%s6533_s22 + $0x1760] sm:$0xff] }
 0x4b3   : > { %5223 = vmatprep.subr.mxu1 %v3481_v13  ;;  %5294 = vmatprep.subr.mxu0 %v1947_v40  ;;  %v2762_v38 = vld [vmem:[%s6533_s22 + $0x2760] sm:$0xff]  ;;  %v2235_v13 = vld [vmem:[%s6533_s22 + $0x16e8] sm:$0xff] }
 0x4b4   : > { %5224 = vmatpush2.msra.mxu1 %v3480_v41  ;;  %5295 = vmatpush2.msra.mxu0 %v1946_v63  ;;  %v2747_v40 = vld [vmem:[%s6533_s22 + $0x26e8] sm:$0xff]  ;;  %v2234_v41 = vld [vmem:[%s6533_s22 + $0x16e0] sm:$0xff] }
 0x4b5   : > { %5225 = vmatprep.subr.mxu1 %v3465_v19  ;;  %5296 = vmatprep.subr.mxu0 %v1931_v43  ;;  %v2746_v63 = vld [vmem:[%s6533_s22 + $0x26e0] sm:$0xff]  ;;  %v2219_v19 = vld [vmem:[%s6533_s22 + $0x1668] sm:$0xff] }
 0x4b6   : > { %5226 = vmatpush2.msra.mxu1 %v3464_v44  ;;  %5297 = vmatpush2.msra.mxu0 %v1930_v7  ;;  %v2731_v43 = vld [vmem:[%s6533_s22 + $0x2668] sm:$0xff]  ;;  %v2218_v44 = vld [vmem:[%s6533_s22 + $0x1660] sm:$0xff] }
 0x4b7   : > { %5227 = vmatprep.subr.mxu1 %v3449_v45  ;;  %5298 = vmatprep.subr.mxu0 %v1915_v46  ;;  %v2730_v7 = vld [vmem:[%s6533_s22 + $0x2660] sm:$0xff]  ;;  %v2203_v45 = vld [vmem:[%s6533_s22 + $0x15e8] sm:$0xff] }
 0x4b8   : > { %5228 = vmatpush2.msra.mxu1 %v3448_v47  ;;  %5299 = vmatpush2.msra.mxu0 %v1914_v49  ;;  %v2715_v46 = vld [vmem:[%s6533_s22 + $0x25e8] sm:$0xff]  ;;  %v2202_v47 = vld [vmem:[%s6533_s22 + $0x15e0] sm:$0xff] }
 0x4b9   : > { %5229 = vmatprep.subr.mxu1 %v3433_v50  ;;  %5300 = vmatprep.subr.mxu0 %v1899_v52  ;;  %v2714_v49 = vld [vmem:[%s6533_s22 + $0x25e0] sm:$0xff]  ;;  %v2187_v50 = vld [vmem:[%s6533_s22 + $0x1568] sm:$0xff] }
 0x4ba   : > { %5230 = vmatpush2.msra.mxu1 %v3432_v53  ;;  %5301 = vmatpush2.msra.mxu0 %v1898_v54  ;;  %v2699_v52 = vld [vmem:[%s6533_s22 + $0x2568] sm:$0xff]  ;;  %v2186_v53 = vld [vmem:[%s6533_s22 + $0x1560] sm:$0xff] }
 0x4bb   : > { %5231 = vmatprep.subr.mxu1 %v3417_v31  ;;  %5302 = vmatprep.subr.mxu0 %v1883_v57  ;;  %v2698_v54 = vld [vmem:[%s6533_s22 + $0x2560] sm:$0xff]  ;;  %v2171_v31 = vld [vmem:[%s6533_s22 + $0x14e8] sm:$0xff] }
 0x4bc   : > { %5232 = vmatpush2.msra.mxu1 %v3416_v59  ;;  %5303 = vmatpush2.msra.mxu0 %v1882_v60  ;;  %v2683_v57 = vld [vmem:[%s6533_s22 + $0x24e8] sm:$0xff]  ;;  %v2170_v59 = vld [vmem:[%s6533_s22 + $0x14e0] sm:$0xff] }
 0x4bd   : > { %5233 = vmatprep.subr.mxu1 %v3401_v61  ;;  %5304 = vmatprep.subr.mxu0 %v1867_v62  ;;  %v2682_v60 = vld [vmem:[%s6533_s22 + $0x24e0] sm:$0xff]  ;;  %v2155_v61 = vld [vmem:[%s6533_s22 + $0x1468] sm:$0xff] }
 0x4be   : > { %5234 = vmatpush2.msra.mxu1 %v3400_v0  ;;  %5305 = vmatpush2.msra.mxu0 %v1866_v3  ;;  %v2667_v62 = vld [vmem:[%s6533_s22 + $0x2468] sm:$0xff]  ;;  %v2154_v0 = vld [vmem:[%s6533_s22 + $0x1460] sm:$0xff] }
 0x4bf   : > { %5235 = vmatprep.subr.mxu1 %v3385_v4  ;;  %5306 = vmatprep.subr.mxu0 %v1851_v6  ;;  %v2666_v3 = vld [vmem:[%s6533_s22 + $0x2460] sm:$0xff]  ;;  %v2139_v4 = vld [vmem:[%s6533_s22 + $0x13e8] sm:$0xff] }
 0x4c0   : > { %5236 = vmatpush2.msra.mxu1 %v3384_v8  ;;  %5307 = vmatpush2.msra.mxu0 %v1850_v9  ;;  %v2651_v6 = vld [vmem:[%s6533_s22 + $0x23e8] sm:$0xff]  ;;  %v2138_v8 = vld [vmem:[%s6533_s22 + $0x13e0] sm:$0xff] }
 0x4c1   : > { %5237 = vmatprep.subr.mxu1 %v3369_v10  ;;  %5308 = vmatprep.subr.mxu0 %v1835_v11  ;;  %v2650_v9 = vld [vmem:[%s6533_s22 + $0x23e0] sm:$0xff]  ;;  %v2123_v10 = vld [vmem:[%s6533_s22 + $0x1368] sm:$0xff] }
 0x4c2   : > { %5238 = vmatpush2.msra.mxu1 %v3368_v12  ;;  %5309 = vmatpush2.msra.mxu0 %v1834_v14  ;;  %v2635_v11 = vld [vmem:[%s6533_s22 + $0x2368] sm:$0xff]  ;;  %v2122_v12 = vld [vmem:[%s6533_s22 + $0x1360] sm:$0xff] }
 0x4c3   : > { %5239 = vmatprep.subr.mxu1 %v3353_v16  ;;  %5310 = vmatprep.subr.mxu0 %v1819_v17  ;;  %v2634_v14 = vld [vmem:[%s6533_s22 + $0x2360] sm:$0xff]  ;;  %v2107_v16 = vld [vmem:[%s6533_s22 + $0x12e8] sm:$0xff] }
 0x4c4   : > { %5240 = vmatpush2.msra.mxu1 %v3352_v18  ;;  %5311 = vmatpush2.msra.mxu0 %v1818_v1  ;;  %v2619_v17 = vld [vmem:[%s6533_s22 + $0x22e8] sm:$0xff]  ;;  %v2106_v18 = vld [vmem:[%s6533_s22 + $0x12e0] sm:$0xff] }
 0x4c5   : > { %5241 = vmatprep.subr.mxu1 %v3337_v2  ;;  %5312 = vmatprep.subr.mxu0 %v1803_v20  ;;  %v2618_v1 = vld [vmem:[%s6533_s22 + $0x22e0] sm:$0xff]  ;;  %v2091_v2 = vld [vmem:[%s6533_s22 + $0x1268] sm:$0xff] }
 0x4c6   : > { %5242 = vmatpush2.msra.mxu1 %v3336_v22  ;;  %5313 = vmatpush2.msra.mxu0 %v1802_v23  ;;  %v2603_v20 = vld [vmem:[%s6533_s22 + $0x2268] sm:$0xff]  ;;  %v2090_v22 = vld [vmem:[%s6533_s22 + $0x1260] sm:$0xff] }
 0x4c7   : > { %5243 = vmatprep.subr.mxu1 %v3321_v24  ;;  %5314 = vmatprep.subr.mxu0 %v1787_v25  ;;  %v2602_v23 = vld [vmem:[%s6533_s22 + $0x2260] sm:$0xff]  ;;  %v2075_v24 = vld [vmem:[%s6533_s22 + $0x11e8] sm:$0xff] }
 0x4c8   : > { %5244 = vmatpush2.msra.mxu1 %v3320_v26  ;;  %5315 = vmatpush2.msra.mxu0 %v1786_v27  ;;  %v2587_v25 = vld [vmem:[%s6533_s22 + $0x21e8] sm:$0xff]  ;;  %v2074_v26 = vld [vmem:[%s6533_s22 + $0x11e0] sm:$0xff] }
 0x4c9   : > { %5245 = vmatprep.subr.mxu1 %v3305_v28  ;;  %5316 = vmatprep.subr.mxu0 %v1771_v29  ;;  %v2586_v27 = vld [vmem:[%s6533_s22 + $0x21e0] sm:$0xff]  ;;  %v2059_v28 = vld [vmem:[%s6533_s22 + $0x1168] sm:$0xff] }
 0x4ca   : > { %5246 = vmatpush2.msra.mxu1 %v3304_v30  ;;  %5317 = vmatpush2.msra.mxu0 %v1770_v55  ;;  %v2571_v29 = vld [vmem:[%s6533_s22 + $0x2168] sm:$0xff]  ;;  %v2058_v30 = vld [vmem:[%s6533_s22 + $0x1160] sm:$0xff] }
 0x4cb   : > { %5248 = vmatmul.mubr.f32.vlgmr.msra.gmra.mxu1 %v7457_v42  ;;  %5319 = vmatmul.mubr.f32.vlgmr.msra.gmra.mxu0 %v7230_v48  ;;  %v2570_v55 = vld [vmem:[%s6533_s22 + $0x2160] sm:$0xff] }
 0x4cc   : > { %5325 = vmatprep.subr.mxu1 %v2267_v32  ;;  %5396 = vmatprep.subr.mxu0 %v2779_v33  ;;  %v2043_v32 = vld [vmem:[%s6533_s22 + $0x10e8] sm:$0xff] }
 0x4cd   : > { %5326 = vmatpush1.msra.mxu1 %v2266_v34  ;;  %5389 = vmatprep.mubr.f32.mxu1 %v7237_v56  ;;  %v2555_v33 = vld [vmem:[%s6533_s22 + $0x20e8] sm:$0xff]  ;;  %v2042_v34 = vld [vmem:[%s6533_s22 + $0x10e0] sm:$0xff] }
 0x4ce   : > { %5397 = vmatpush1.msra.mxu0 %v2778_v35  ;;  %5460 = vmatprep.mubr.f32.mxu0 %v7376_v21  ;;  %v2554_v35 = vld [vmem:[%s6533_s22 + $0x20e0] sm:$0xff] }
 0x4cf   : > { %5327 = vmatprep.subr.mxu1 %v2251_v36  ;;  %5398 = vmatprep.subr.mxu0 %v2763_v37  ;;  %v2027_v36 = vld [vmem:[%s6533_s22 + $0x1068] sm:$0xff] }
 0x4d0   : > { %5328 = vmatpush1.msra.mxu1 %v2250_v51  ;;  %5399 = vmatpush1.msra.mxu0 %v2762_v38  ;;  %v2539_v37 = vld [vmem:[%s6533_s22 + $0x2068] sm:$0xff]  ;;  %v2026_v51 = vld [vmem:[%s6533_s22 + $0x1060] sm:$0xff] }
 0x4d1   : > { %5329 = vmatprep.subr.mxu1 %v2235_v13  ;;  %5400 = vmatprep.subr.mxu0 %v2747_v40  ;;  %v2538_v38 = vld [vmem:[%s6533_s22 + $0x2060] sm:$0xff]  ;;  %v2523_v13 = vld [vmem:[%s6533_s22 + $0x1fe8] sm:$0xff] }
 0x4d2   : > { %5330 = vmatpush1.msra.mxu1 %v2234_v41  ;;  %5401 = vmatpush1.msra.mxu0 %v2746_v63  ;;  %v3035_v40 = vld [vmem:[%s6533_s22 + $0x2fe8] sm:$0xff]  ;;  %v2522_v41 = vld [vmem:[%s6533_s22 + $0x1fe0] sm:$0xff] }
 0x4d3   : > { %5331 = vmatprep.subr.mxu1 %v2219_v19  ;;  %5402 = vmatprep.subr.mxu0 %v2731_v43  ;;  %v3034_v63 = vld [vmem:[%s6533_s22 + $0x2fe0] sm:$0xff]  ;;  %v2507_v19 = vld [vmem:[%s6533_s22 + $0x1f68] sm:$0xff] }
 0x4d4   : > { %5332 = vmatpush1.msra.mxu1 %v2218_v44  ;;  %5403 = vmatpush1.msra.mxu0 %v2730_v7  ;;  %v3019_v43 = vld [vmem:[%s6533_s22 + $0x2f68] sm:$0xff]  ;;  %v2506_v44 = vld [vmem:[%s6533_s22 + $0x1f60] sm:$0xff] }
 0x4d5   : > { %5333 = vmatprep.subr.mxu1 %v2203_v45  ;;  %5404 = vmatprep.subr.mxu0 %v2715_v46  ;;  %v3018_v7 = vld [vmem:[%s6533_s22 + $0x2f60] sm:$0xff]  ;;  %v2491_v45 = vld [vmem:[%s6533_s22 + $0x1ee8] sm:$0xff] }
 0x4d6   : > { %5334 = vmatpush1.msra.mxu1 %v2202_v47  ;;  %5405 = vmatpush1.msra.mxu0 %v2714_v49  ;;  %v3003_v46 = vld [vmem:[%s6533_s22 + $0x2ee8] sm:$0xff]  ;;  %v2490_v47 = vld [vmem:[%s6533_s22 + $0x1ee0] sm:$0xff] }
 0x4d7   : > { %5335 = vmatprep.subr.mxu1 %v2187_v50  ;;  %5406 = vmatprep.subr.mxu0 %v2699_v52  ;;  %v3002_v49 = vld [vmem:[%s6533_s22 + $0x2ee0] sm:$0xff]  ;;  %v2475_v50 = vld [vmem:[%s6533_s22 + $0x1e68] sm:$0xff] }
 0x4d8   : > { %5336 = vmatpush1.msra.mxu1 %v2186_v53  ;;  %5407 = vmatpush1.msra.mxu0 %v2698_v54  ;;  %v2987_v52 = vld [vmem:[%s6533_s22 + $0x2e68] sm:$0xff]  ;;  %v2474_v53 = vld [vmem:[%s6533_s22 + $0x1e60] sm:$0xff] }
 0x4d9   : > { %5337 = vmatprep.subr.mxu1 %v2171_v31  ;;  %5408 = vmatprep.subr.mxu0 %v2683_v57  ;;  %v2986_v54 = vld [vmem:[%s6533_s22 + $0x2e60] sm:$0xff]  ;;  %v2459_v31 = vld [vmem:[%s6533_s22 + $0x1de8] sm:$0xff] }
 0x4da   : > { %5338 = vmatpush1.msra.mxu1 %v2170_v59  ;;  %5409 = vmatpush1.msra.mxu0 %v2682_v60  ;;  %v2971_v57 = vld [vmem:[%s6533_s22 + $0x2de8] sm:$0xff]  ;;  %v2458_v59 = vld [vmem:[%s6533_s22 + $0x1de0] sm:$0xff] }
 0x4db   : > { %5339 = vmatprep.subr.mxu1 %v2155_v61  ;;  %5410 = vmatprep.subr.mxu0 %v2667_v62  ;;  %v2970_v60 = vld [vmem:[%s6533_s22 + $0x2de0] sm:$0xff]  ;;  %v2443_v61 = vld [vmem:[%s6533_s22 + $0x1d68] sm:$0xff] }
 0x4dc   : > { %5340 = vmatpush1.msra.mxu1 %v2154_v0  ;;  %5411 = vmatpush1.msra.mxu0 %v2666_v3  ;;  %v2955_v62 = vld [vmem:[%s6533_s22 + $0x2d68] sm:$0xff]  ;;  %v2442_v0 = vld [vmem:[%s6533_s22 + $0x1d60] sm:$0xff] }
 0x4dd   : > { %5341 = vmatprep.subr.mxu1 %v2139_v4  ;;  %5412 = vmatprep.subr.mxu0 %v2651_v6  ;;  %v2954_v3 = vld [vmem:[%s6533_s22 + $0x2d60] sm:$0xff]  ;;  %v2427_v4 = vld [vmem:[%s6533_s22 + $0x1ce8] sm:$0xff] }
 0x4de   : > { %5342 = vmatpush1.msra.mxu1 %v2138_v8  ;;  %5413 = vmatpush1.msra.mxu0 %v2650_v9  ;;  %v2939_v6 = vld [vmem:[%s6533_s22 + $0x2ce8] sm:$0xff]  ;;  %v2426_v8 = vld [vmem:[%s6533_s22 + $0x1ce0] sm:$0xff] }
 0x4df   : > { %5343 = vmatprep.subr.mxu1 %v2123_v10  ;;  %5414 = vmatprep.subr.mxu0 %v2635_v11  ;;  %v2938_v9 = vld [vmem:[%s6533_s22 + $0x2ce0] sm:$0xff]  ;;  %v2411_v10 = vld [vmem:[%s6533_s22 + $0x1c68] sm:$0xff] }
 0x4e0   : > { %5344 = vmatpush1.msra.mxu1 %v2122_v12  ;;  %5415 = vmatpush1.msra.mxu0 %v2634_v14  ;;  %v2923_v11 = vld [vmem:[%s6533_s22 + $0x2c68] sm:$0xff]  ;;  %v2410_v12 = vld [vmem:[%s6533_s22 + $0x1c60] sm:$0xff] }
 0x4e1   : > { %5345 = vmatprep.subr.mxu1 %v2107_v16  ;;  %5416 = vmatprep.subr.mxu0 %v2619_v17  ;;  %v2922_v14 = vld [vmem:[%s6533_s22 + $0x2c60] sm:$0xff]  ;;  %v2395_v16 = vld [vmem:[%s6533_s22 + $0x1be8] sm:$0xff] }
 0x4e2   : > { %5346 = vmatpush1.msra.mxu1 %v2106_v18  ;;  %5417 = vmatpush1.msra.mxu0 %v2618_v1  ;;  %v2907_v17 = vld [vmem:[%s6533_s22 + $0x2be8] sm:$0xff]  ;;  %v2394_v18 = vld [vmem:[%s6533_s22 + $0x1be0] sm:$0xff] }
 0x4e3   : > { %5347 = vmatprep.subr.mxu1 %v2091_v2  ;;  %5418 = vmatprep.subr.mxu0 %v2603_v20  ;;  %v2906_v1 = vld [vmem:[%s6533_s22 + $0x2be0] sm:$0xff]  ;;  %v2379_v2 = vld [vmem:[%s6533_s22 + $0x1b68] sm:$0xff] }
 0x4e4   : > { %5348 = vmatpush1.msra.mxu1 %v2090_v22  ;;  %5419 = vmatpush1.msra.mxu0 %v2602_v23  ;;  %v2891_v20 = vld [vmem:[%s6533_s22 + $0x2b68] sm:$0xff]  ;;  %v4752_v22 = vpop.f32.mrf.mxu0  ;;  %v4823_v23 = vpop.f32.mrf.mxu1 }
 0x4e5   : > { %5349 = vmatprep.subr.mxu1 %v2075_v24  ;;  %5420 = vmatprep.subr.mxu0 %v2587_v25  ;;  %v2378_v24 = vld [vmem:[%s6533_s22 + $0x1b60] sm:$0xff] }
 0x4e6   : > { %5350 = vmatpush1.msra.mxu1 %v2074_v26  ;;  %5421 = vmatpush1.msra.mxu0 %v2586_v27  ;;  %v2890_v25 = vld [vmem:[%s6533_s22 + $0x2b60] sm:$0xff]  ;;  %v2363_v26 = vld [vmem:[%s6533_s22 + $0x1ae8] sm:$0xff] }
 0x4e7   : > { %5351 = vmatprep.subr.mxu1 %v2059_v28  ;;  %5422 = vmatprep.subr.mxu0 %v2571_v29  ;;  %v2875_v27 = vld [vmem:[%s6533_s22 + $0x2ae8] sm:$0xff]  ;;  %v2362_v28 = vld [vmem:[%s6533_s22 + $0x1ae0] sm:$0xff] }
 0x4e8   : > { %5352 = vmatpush1.msra.mxu1 %v2058_v30  ;;  %5423 = vmatpush1.msra.mxu0 %v2570_v55  ;;  %v2874_v29 = vld [vmem:[%s6533_s22 + $0x2ae0] sm:$0xff]  ;;  %v2347_v30 = vld [vmem:[%s6533_s22 + $0x1a68] sm:$0xff] }
 0x4e9   : > { %5353 = vmatprep.subr.mxu1 %v2043_v32  ;;  %5424 = vmatprep.subr.mxu0 %v2555_v33  ;;  %v2859_v55 = vld [vmem:[%s6533_s22 + $0x2a68] sm:$0xff]  ;;  %v4754_v32 = vpop.f32.mrf.mxu0  ;;  %v4825_v33 = vpop.f32.mrf.mxu1 }
 0x4ea   : > { %5354 = vmatpush1.msra.mxu1 %v2042_v34  ;;  %5425 = vmatpush1.msra.mxu0 %v2554_v35  ;;  %v2346_v34 = vld [vmem:[%s6533_s22 + $0x1a60] sm:$0xff] }
 0x4eb   : > { %5355 = vmatprep.subr.mxu1 %v2027_v36  ;;  %5426 = vmatprep.subr.mxu0 %v2539_v37  ;;  %v2858_v35 = vld [vmem:[%s6533_s22 + $0x2a60] sm:$0xff]  ;;  %v4824_v36 = vadd.f32 %v4823_v23, %v4752_v22  ;;  %v2331_v37 = vld [vmem:[%s6533_s22 + $0x19e8] sm:$0xff]  ;;  %v1693_v22 = vld [vmem:[%s6533_s22 + $0x5f8] sm:$0xff] }
 0x4ec   : > { %5356 = vmatpush1.msra.mxu1 %v2026_v51  ;;  %5427 = vmatpush1.msra.mxu0 %v2538_v38  ;;  %v2843_v51 = vld [vmem:[%s6533_s22 + $0x29e8] sm:$0xff]  ;;  %v4894_v38 = vpop.f32.mrf.mxu0  ;;  %v3226_v23 = vld [vmem:[%s6533_s22 + $0x35e0] sm:$0xff] }
 0x4ed   : > { %5357 = vmatprep.subr.mxu1 %v2523_v13  ;;  %5428 = vmatprep.subr.mxu0 %v3035_v40  ;;  %v2330_v13 = vld [vmem:[%s6533_s22 + $0x19e0] sm:$0xff] }
 0x4ee   : > { %5358 = vmatpush2.msra.mxu1 %v2522_v41  ;;  %5429 = vmatpush2.msra.mxu0 %v3034_v63  ;;  %v2842_v40 = vld [vmem:[%s6533_s22 + $0x29e0] sm:$0xff]  ;;  %v4826_v41 = vadd.f32 %v4825_v33, %v4754_v32  ;;  %v2315_v63 = vld [vmem:[%s6533_s22 + $0x1968] sm:$0xff]  ;;  %v1660_v32 = vld [vmem:[%s6533_s22 + $0x4f0] sm:$0xff] }
 0x4ef   : > { %5359 = vmatprep.subr.mxu1 %v2507_v19  ;;  %5430 = vmatprep.subr.mxu0 %v3019_v43  ;;  %v2827_v19 = vld [vmem:[%s6533_s22 + $0x2968] sm:$0xff]  ;;  %v2314_v43 = vld [vmem:[%s6533_s22 + $0x1960] sm:$0xff] }
 0x4f0   : > { %5360 = vmatpush2.msra.mxu1 %v2506_v44  ;;  %5431 = vmatpush2.msra.mxu0 %v3018_v7  ;;  %v2826_v44 = vld [vmem:[%s6533_s22 + $0x2960] sm:$0xff]  ;;  %v4895_v7 = vadd.f32 %v4894_v38, %v4824_v36  ;;  %v3179_v33 = vld [vmem:[%s6533_s22 + $0x3468] sm:$0xff]  ;;  %v1644_v36 = vld [vmem:[%s6533_s22 + $0x470] sm:$0xff] }
 0x4f1   : > { %5361 = vmatprep.subr.mxu1 %v2491_v45  ;;  %5432 = vmatprep.subr.mxu0 %v3003_v46  ;;  %v2299_v45 = vld [vmem:[%s6533_s22 + $0x18e8] sm:$0xff]  ;;  %v3162_v38 = vld [vmem:[%s6533_s22 + $0x33e0] sm:$0xff] }
 0x4f2   : > { %5362 = vmatpush2.msra.mxu1 %v2490_v47  ;;  %5433 = vmatpush2.msra.mxu0 %v3002_v49  ;;  %v2811_v46 = vld [vmem:[%s6533_s22 + $0x28e8] sm:$0xff]  ;;  %v4896_v47 = vpop.f32.mrf.mxu0  ;;  %v2298_v49 = vld [vmem:[%s6533_s22 + $0x18e0] sm:$0xff] }
 0x4f3   : > { %5363 = vmatprep.subr.mxu1 %v2475_v50  ;;  %5434 = vmatprep.subr.mxu0 %v2987_v52  ;;  %v2810_v50 = vld [vmem:[%s6533_s22 + $0x28e0] sm:$0xff] }
 0x4f4   : > { %5364 = vmatpush2.msra.mxu1 %v2474_v53  ;;  %5435 = vmatpush2.msra.mxu0 %v2986_v54  ;;  %v4897_v53 = vadd.f32 %v4896_v47, %v4826_v41  ;;  %v2283_v54 = vld [vmem:[%s6533_s22 + $0x1868] sm:$0xff]  ;;  %v1613_v41 = vld [vmem:[%s6533_s22 + $0x378] sm:$0xff] }
 0x4f5   : > { %5365 = vmatprep.subr.mxu1 %v2459_v31  ;;  %5436 = vmatprep.subr.mxu0 %v2971_v57  ;;  %v2795_v31 = vld [vmem:[%s6533_s22 + $0x2868] sm:$0xff]  ;;  %v1581_v47 = vld [vmem:[%s6533_s22 + $0x278] sm:$0xff] }
 0x4f6   : > { %5366 = vmatpush2.msra.mxu1 %v2458_v59  ;;  %5437 = vmatpush2.msra.mxu0 %v2970_v60  ;;  %v2282_v59 = vld [vmem:[%s6533_s22 + $0x1860] sm:$0xff] }
 0x4f7   : > { %5367 = vmatprep.subr.mxu1 %v2443_v61  ;;  %5438 = vmatprep.subr.mxu0 %v2955_v62  ;;  %v2794_v60 = vld [vmem:[%s6533_s22 + $0x2860] sm:$0xff] }
 0x4f8   : > { %5368 = vmatpush2.msra.mxu1 %v2442_v0  ;;  %5439 = vmatpush2.msra.mxu0 %v2954_v3  ;;  %v3291_v0 = vld [vmem:[%s6533_s22 + $0x37e8] sm:$0xff]  ;;  %v1757_v3 = vld [vmem:[%s6533_s22 + $0x7f8] sm:$0xff] }
 0x4f9   : > { %5369 = vmatprep.subr.mxu1 %v2427_v4  ;;  %5440 = vmatprep.subr.mxu0 %v2939_v6  ;;  %v3290_v4 = vld [vmem:[%s6533_s22 + $0x37e0] sm:$0xff]  ;;  %v1756_v6 = vld [vmem:[%s6533_s22 + $0x7f0] sm:$0xff] }
 0x4fa   : > { %5370 = vmatpush2.msra.mxu1 %v2426_v8  ;;  %5441 = vmatpush2.msra.mxu0 %v2938_v9  ;;  %v3275_v8 = vld [vmem:[%s6533_s22 + $0x3768] sm:$0xff]  ;;  %v1741_v9 = vld [vmem:[%s6533_s22 + $0x778] sm:$0xff] }
 0x4fb   : > { %5371 = vmatprep.subr.mxu1 %v2411_v10  ;;  %5442 = vmatprep.subr.mxu0 %v2923_v11  ;;  %v3274_v10 = vld [vmem:[%s6533_s22 + $0x3760] sm:$0xff]  ;;  %v1740_v11 = vld [vmem:[%s6533_s22 + $0x770] sm:$0xff] }
 0x4fc   : > { %5372 = vmatpush2.msra.mxu1 %v2410_v12  ;;  %5443 = vmatpush2.msra.mxu0 %v2922_v14  ;;  %v3259_v12 = vld [vmem:[%s6533_s22 + $0x36e8] sm:$0xff]  ;;  %v1725_v14 = vld [vmem:[%s6533_s22 + $0x6f8] sm:$0xff] }
 0x4fd   : > { %5373 = vmatprep.subr.mxu1 %v2395_v16  ;;  %5444 = vmatprep.subr.mxu0 %v2907_v17  ;;  %v3258_v16 = vld [vmem:[%s6533_s22 + $0x36e0] sm:$0xff]  ;;  %v1724_v17 = vld [vmem:[%s6533_s22 + $0x6f0] sm:$0xff] }
 0x4fe   : > { %5374 = vmatpush2.msra.mxu1 %v2394_v18  ;;  %5445 = vmatpush2.msra.mxu0 %v2906_v1  ;;  %v3243_v18 = vld [vmem:[%s6533_s22 + $0x3668] sm:$0xff]  ;;  %v1709_v1 = vld [vmem:[%s6533_s22 + $0x678] sm:$0xff] }
 0x4ff   : > { %5375 = vmatprep.subr.mxu1 %v2379_v2  ;;  %5446 = vmatprep.subr.mxu0 %v2891_v20  ;;  %v3242_v2 = vld [vmem:[%s6533_s22 + $0x3660] sm:$0xff]  ;;  %v3227_v20 = vld [vmem:[%s6533_s22 + $0x35e8] sm:$0xff] }
 0x500   : > { %5376 = vmatpush2.msra.mxu1 %v2378_v24  ;;  %5447 = vmatpush2.msra.mxu0 %v2890_v25  ;;  %v1692_v24 = vld [vmem:[%s6533_s22 + $0x5f0] sm:$0xff]  ;;  %v3211_v25 = vld [vmem:[%s6533_s22 + $0x3568] sm:$0xff] }
 0x501   : > { %5377 = vmatprep.subr.mxu1 %v2363_v26  ;;  %5448 = vmatprep.subr.mxu0 %v2875_v27  ;;  %v1677_v26 = vld [vmem:[%s6533_s22 + $0x578] sm:$0xff]  ;;  %v3210_v27 = vld [vmem:[%s6533_s22 + $0x3560] sm:$0xff] }
 0x502   : > { %5378 = vmatpush2.msra.mxu1 %v2362_v28  ;;  %5449 = vmatpush2.msra.mxu0 %v2874_v29  ;;  %v1676_v28 = vld [vmem:[%s6533_s22 + $0x570] sm:$0xff]  ;;  %v3195_v29 = vld [vmem:[%s6533_s22 + $0x34e8] sm:$0xff] }
 0x503   : > { %5379 = vmatprep.subr.mxu1 %v2347_v30  ;;  %5450 = vmatprep.subr.mxu0 %v2859_v55  ;;  %v1661_v30 = vld [vmem:[%s6533_s22 + $0x4f8] sm:$0xff]  ;;  %v3194_v55 = vld [vmem:[%s6533_s22 + $0x34e0] sm:$0xff] }
 0x504   : > { %5380 = vmatpush2.msra.mxu1 %v2346_v34  ;;  %5451 = vmatpush2.msra.mxu0 %v2858_v35  ;;  %v1645_v34 = vld [vmem:[%s6533_s22 + $0x478] sm:$0xff]  ;;  %v3178_v35 = vld [vmem:[%s6533_s22 + $0x3460] sm:$0xff] }
 0x505   : > { %5381 = vmatprep.subr.mxu1 %v2331_v37  ;;  %5452 = vmatprep.subr.mxu0 %v2843_v51  ;;  %v3163_v37 = vld [vmem:[%s6533_s22 + $0x33e8] sm:$0xff]  ;;  %v1629_v51 = vld [vmem:[%s6533_s22 + $0x3f8] sm:$0xff] }
 0x506   : > { %5382 = vmatpush2.msra.mxu1 %v2330_v13  ;;  %5453 = vmatpush2.msra.mxu0 %v2842_v40  ;;  %v1628_v13 = vld [vmem:[%s6533_s22 + $0x3f0] sm:$0xff]  ;;  %v3147_v40 = vld [vmem:[%s6533_s22 + $0x3368] sm:$0xff] }
 0x507   : > { %5383 = vmatprep.subr.mxu1 %v2315_v63  ;;  %5454 = vmatprep.subr.mxu0 %v2827_v19  ;;  %v4965_v52 = vpop.f32.mrf.mxu1  ;;  %v3146_v63 = vld [vmem:[%s6533_s22 + $0x3360] sm:$0xff]  ;;  %v1612_v19 = vld [vmem:[%s6533_s22 + $0x370] sm:$0xff] }
 0x508   : > { %5384 = vmatpush2.msra.mxu1 %v2314_v43  ;;  %5455 = vmatpush2.msra.mxu0 %v2826_v44  ;;  %v4966_v57 = vadd.f32 %v4965_v52, %v4895_v7  ;;  %v3131_v43 = vld [vmem:[%s6533_s22 + $0x32e8] sm:$0xff]  ;;  %v1597_v44 = vld [vmem:[%s6533_s22 + $0x2f8] sm:$0xff]  ;;  %v3130_v7 = vld [vmem:[%s6533_s22 + $0x32e0] sm:$0xff] }
 0x509   : > { %5385 = vmatprep.subr.mxu1 %v2299_v45  ;;  %5456 = vmatprep.subr.mxu0 %v2811_v46  ;;  %v4967_v61 = vpop.f32.mrf.mxu1  ;;  %v1596_v45 = vld [vmem:[%s6533_s22 + $0x2f0] sm:$0xff]  ;;  %v3115_v46 = vld [vmem:[%s6533_s22 + $0x3268] sm:$0xff] }
 0x50a   : > { %5386 = vmatpush2.msra.mxu1 %v2298_v49  ;;  %5457 = vmatpush2.msra.mxu0 %v2810_v50  ;;  %v4968_v62 = vadd.f32 %v4967_v61, %v4897_v53  ;;  %5846 = vst [vmem:[%s7859_s23 + $0x40] sm:$0xff] %v4966_v57  ;;  %v3114_v49 = vld [vmem:[%s6533_s22 + $0x3260] sm:$0xff]  ;;  %v1580_v50 = vld [vmem:[%s6533_s22 + $0x270] sm:$0xff]  ;;  %v3099_v52 = vld [vmem:[%s6533_s22 + $0x31e8] sm:$0xff] }
 0x50b   : > { %5387 = vmatprep.subr.mxu1 %v2283_v54  ;;  %5458 = vmatprep.subr.mxu0 %v2795_v31  ;;  %v1565_v53 = vld [vmem:[%s6533_s22 + $0x1f8] sm:$0xff]  ;;  %v3098_v54 = vld [vmem:[%s6533_s22 + $0x31e0] sm:$0xff]  ;;  %v1564_v31 = vld [vmem:[%s6533_s22 + $0x1f0] sm:$0xff] }
 0x50c   : > { %5388 = vmatpush2.msra.mxu1 %v2282_v59  ;;  %5459 = vmatpush2.msra.mxu0 %v2794_v60  ;;  %5847 = vst [vmem:[%s7859_s23 + $0x48] sm:$0xff] %v4968_v62  ;;  %v3083_v57 = vld [vmem:[%s6533_s22 + $0x3168] sm:$0xff]  ;;  %v1549_v59 = vld [vmem:[%s6533_s22 + $0x178] sm:$0xff]  ;;  %v3082_v60 = vld [vmem:[%s6533_s22 + $0x3160] sm:$0xff] }
 0x50d   : > { %5390 = vmatmul.mubr.f32.vlgmr.msra.gmra.mxu1 %v7240_v58  ;;  %5461 = vmatmul.mubr.f32.vlgmr.msra.gmra.mxu0 %v7378_v5  ;;  %v1548_v61 = vld [vmem:[%s6533_s22 + $0x170] sm:$0xff]  ;;  %v3067_v62 = vld [vmem:[%s6533_s22 + $0x30e8] sm:$0xff] }
 0x50e   : > { %5467 = vmatprep.subr.mxu1 %v3291_v0  ;;  %5538 = vmatprep.subr.mxu0 %v1757_v3  ;;  %v1533_v0 = vld [vmem:[%s6533_s22 + $0xf8] sm:$0xff]  ;;  %v3066_v3 = vld [vmem:[%s6533_s22 + $0x30e0] sm:$0xff] }
 0x50f   : > { %5468 = vmatpush1.msra.mxu1 %v3290_v4  ;;  %5531 = vmatprep.mubr.f32.mxu1 %v7453_v15  ;;  %v1532_v4 = vld [vmem:[%s6533_s22 + $0xf0] sm:$0xff] }
 0x510   : > { %5539 = vmatpush1.msra.mxu0 %v1756_v6  ;;  %5602 = vmatprep.mubr.f32.mxu0 %v7098_v39  ;;  %v1708_v39 = vld [vmem:[%s6533_s22 + $0x670] sm:$0xff]  ;;  %v3051_v6 = vld [vmem:[%s6533_s22 + $0x3068] sm:$0xff] }
 0x511   : > { %5469 = vmatprep.subr.mxu1 %v3275_v8  ;;  %5540 = vmatprep.subr.mxu0 %v1741_v9  ;;  %v1517_v8 = vld [vmem:[%s6533_s22 + $0x78] sm:$0xff]  ;;  %v3050_v9 = vld [vmem:[%s6533_s22 + $0x3060] sm:$0xff] }
 0x512   : > { %5470 = vmatpush1.msra.mxu1 %v3274_v10  ;;  %5541 = vmatpush1.msra.mxu0 %v1740_v11  ;;  %v1516_v10 = vld [vmem:[%s6533_s22 + $0x70] sm:$0xff]  ;;  %v3547_v11 = vld [vmem:[%s6533_s22 + $0x3fe8] sm:$0xff] }
 0x513   : > { %5471 = vmatprep.subr.mxu1 %v3259_v12  ;;  %5542 = vmatprep.subr.mxu0 %v1725_v14  ;;  %v2013_v12 = vld [vmem:[%s6533_s22 + $0xff8] sm:$0xff]  ;;  %v3546_v14 = vld [vmem:[%s6533_s22 + $0x3fe0] sm:$0xff] }
 0x514   : > { %5472 = vmatpush1.msra.mxu1 %v3258_v16  ;;  %5543 = vmatpush1.msra.mxu0 %v1724_v17  ;;  %v2012_v16 = vld [vmem:[%s6533_s22 + $0xff0] sm:$0xff]  ;;  %v3531_v17 = vld [vmem:[%s6533_s22 + $0x3f68] sm:$0xff] }
 0x515   : > { %5473 = vmatprep.subr.mxu1 %v3243_v18  ;;  %5544 = vmatprep.subr.mxu0 %v1709_v1  ;;  %v1997_v18 = vld [vmem:[%s6533_s22 + $0xf78] sm:$0xff]  ;;  %v3530_v1 = vld [vmem:[%s6533_s22 + $0x3f60] sm:$0xff] }
 0x516   : > { %5474 = vmatpush1.msra.mxu1 %v3242_v2  ;;  %5545 = vmatpush1.msra.mxu0 %v1708_v39  ;;  %v1996_v2 = vld [vmem:[%s6533_s22 + $0xf70] sm:$0xff]  ;;  %v3515_v39 = vld [vmem:[%s6533_s22 + $0x3ee8] sm:$0xff] }
 0x517   : > { %5475 = vmatprep.subr.mxu1 %v3227_v20  ;;  %5546 = vmatprep.subr.mxu0 %v1693_v22  ;;  %v1981_v20 = vld [vmem:[%s6533_s22 + $0xef8] sm:$0xff]  ;;  %v3514_v22 = vld [vmem:[%s6533_s22 + $0x3ee0] sm:$0xff] }
 0x518   : > { %5476 = vmatpush1.msra.mxu1 %v3226_v23  ;;  %5547 = vmatpush1.msra.mxu0 %v1692_v24  ;;  %v1980_v23 = vld [vmem:[%s6533_s22 + $0xef0] sm:$0xff]  ;;  %v3499_v24 = vld [vmem:[%s6533_s22 + $0x3e68] sm:$0xff] }
 0x519   : > { %5477 = vmatprep.subr.mxu1 %v3211_v25  ;;  %5548 = vmatprep.subr.mxu0 %v1677_v26  ;;  %v1965_v25 = vld [vmem:[%s6533_s22 + $0xe78] sm:$0xff]  ;;  %v3498_v26 = vld [vmem:[%s6533_s22 + $0x3e60] sm:$0xff] }
 0x51a   : > { %5478 = vmatpush1.msra.mxu1 %v3210_v27  ;;  %5549 = vmatpush1.msra.mxu0 %v1676_v28  ;;  %v1964_v27 = vld [vmem:[%s6533_s22 + $0xe70] sm:$0xff]  ;;  %v3483_v28 = vld [vmem:[%s6533_s22 + $0x3de8] sm:$0xff] }
 0x51b   : > { %5479 = vmatprep.subr.mxu1 %v3195_v29  ;;  %5550 = vmatprep.subr.mxu0 %v1661_v30  ;;  %v1949_v29 = vld [vmem:[%s6533_s22 + $0xdf8] sm:$0xff]  ;;  %v3482_v30 = vld [vmem:[%s6533_s22 + $0x3de0] sm:$0xff] }
 0x51c   : > { %5480 = vmatpush1.msra.mxu1 %v3194_v55  ;;  %5551 = vmatpush1.msra.mxu0 %v1660_v32  ;;  %v1948_v55 = vld [vmem:[%s6533_s22 + $0xdf0] sm:$0xff]  ;;  %v3467_v32 = vld [vmem:[%s6533_s22 + $0x3d68] sm:$0xff] }
 0x51d   : > { %5481 = vmatprep.subr.mxu1 %v3179_v33  ;;  %5552 = vmatprep.subr.mxu0 %v1645_v34  ;;  %v1933_v33 = vld [vmem:[%s6533_s22 + $0xd78] sm:$0xff]  ;;  %v3466_v34 = vld [vmem:[%s6533_s22 + $0x3d60] sm:$0xff] }
 0x51e   : > { %5482 = vmatpush1.msra.mxu1 %v3178_v35  ;;  %5553 = vmatpush1.msra.mxu0 %v1644_v36  ;;  %v1932_v35 = vld [vmem:[%s6533_s22 + $0xd70] sm:$0xff]  ;;  %v3451_v36 = vld [vmem:[%s6533_s22 + $0x3ce8] sm:$0xff] }
 0x51f   : > { %5483 = vmatprep.subr.mxu1 %v3163_v37  ;;  %5554 = vmatprep.subr.mxu0 %v1629_v51  ;;  %v1917_v37 = vld [vmem:[%s6533_s22 + $0xcf8] sm:$0xff]  ;;  %v3450_v51 = vld [vmem:[%s6533_s22 + $0x3ce0] sm:$0xff] }
 0x520   : > { %5484 = vmatpush1.msra.mxu1 %v3162_v38  ;;  %5555 = vmatpush1.msra.mxu0 %v1628_v13  ;;  %v1916_v38 = vld [vmem:[%s6533_s22 + $0xcf0] sm:$0xff]  ;;  %v3435_v13 = vld [vmem:[%s6533_s22 + $0x3c68] sm:$0xff] }
 0x521   : > { %5485 = vmatprep.subr.mxu1 %v3147_v40  ;;  %5556 = vmatprep.subr.mxu0 %v1613_v41  ;;  %v1901_v40 = vld [vmem:[%s6533_s22 + $0xc78] sm:$0xff]  ;;  %v3434_v41 = vld [vmem:[%s6533_s22 + $0x3c60] sm:$0xff] }
 0x522   : > { %5486 = vmatpush1.msra.mxu1 %v3146_v63  ;;  %5557 = vmatpush1.msra.mxu0 %v1612_v19  ;;  %v1900_v63 = vld [vmem:[%s6533_s22 + $0xc70] sm:$0xff]  ;;  %v3419_v19 = vld [vmem:[%s6533_s22 + $0x3be8] sm:$0xff] }
 0x523   : > { %5487 = vmatprep.subr.mxu1 %v3131_v43  ;;  %5558 = vmatprep.subr.mxu0 %v1597_v44  ;;  %v1885_v43 = vld [vmem:[%s6533_s22 + $0xbf8] sm:$0xff]  ;;  %v3418_v44 = vld [vmem:[%s6533_s22 + $0x3be0] sm:$0xff] }
 0x524   : > { %5488 = vmatpush1.msra.mxu1 %v3130_v7  ;;  %5559 = vmatpush1.msra.mxu0 %v1596_v45  ;;  %v1884_v7 = vld [vmem:[%s6533_s22 + $0xbf0] sm:$0xff]  ;;  %v3403_v45 = vld [vmem:[%s6533_s22 + $0x3b68] sm:$0xff] }
 0x525   : > { %5489 = vmatprep.subr.mxu1 %v3115_v46  ;;  %5560 = vmatprep.subr.mxu0 %v1581_v47  ;;  %v1869_v46 = vld [vmem:[%s6533_s22 + $0xb78] sm:$0xff]  ;;  %v3402_v47 = vld [vmem:[%s6533_s22 + $0x3b60] sm:$0xff] }
 0x526   : > { %5490 = vmatpush1.msra.mxu1 %v3114_v49  ;;  %5561 = vmatpush1.msra.mxu0 %v1580_v50  ;;  %v1868_v49 = vld [vmem:[%s6533_s22 + $0xb70] sm:$0xff]  ;;  %v3387_v50 = vld [vmem:[%s6533_s22 + $0x3ae8] sm:$0xff] }
 0x527   : > { %5491 = vmatprep.subr.mxu1 %v3099_v52  ;;  %5562 = vmatprep.subr.mxu0 %v1565_v53  ;;  %v1853_v52 = vld [vmem:[%s6533_s22 + $0xaf8] sm:$0xff]  ;;  %v3386_v53 = vld [vmem:[%s6533_s22 + $0x3ae0] sm:$0xff] }
 0x528   : > { %5492 = vmatpush1.msra.mxu1 %v3098_v54  ;;  %5563 = vmatpush1.msra.mxu0 %v1564_v31  ;;  %v1852_v54 = vld [vmem:[%s6533_s22 + $0xaf0] sm:$0xff]  ;;  %v3371_v31 = vld [vmem:[%s6533_s22 + $0x3a68] sm:$0xff] }
 0x529   : > { %5493 = vmatprep.subr.mxu1 %v3083_v57  ;;  %5564 = vmatprep.subr.mxu0 %v1549_v59  ;;  %v1837_v57 = vld [vmem:[%s6533_s22 + $0xa78] sm:$0xff]  ;;  %v3370_v59 = vld [vmem:[%s6533_s22 + $0x3a60] sm:$0xff] }
 0x52a   : > { %5494 = vmatpush1.msra.mxu1 %v3082_v60  ;;  %5565 = vmatpush1.msra.mxu0 %v1548_v61  ;;  %v1836_v60 = vld [vmem:[%s6533_s22 + $0xa70] sm:$0xff]  ;;  %v3355_v61 = vld [vmem:[%s6533_s22 + $0x39e8] sm:$0xff] }
 0x52b   : > { %5495 = vmatprep.subr.mxu1 %v3067_v62  ;;  %5566 = vmatprep.subr.mxu0 %v1533_v0  ;;  %v1821_v62 = vld [vmem:[%s6533_s22 + $0x9f8] sm:$0xff]  ;;  %v3354_v0 = vld [vmem:[%s6533_s22 + $0x39e0] sm:$0xff] }
 0x52c   : > { %5496 = vmatpush1.msra.mxu1 %v3066_v3  ;;  %5567 = vmatpush1.msra.mxu0 %v1532_v4  ;;  %v1820_v3 = vld [vmem:[%s6533_s22 + $0x9f0] sm:$0xff]  ;;  %v3339_v4 = vld [vmem:[%s6533_s22 + $0x3968] sm:$0xff] }
 0x52d   : > { %5497 = vmatprep.subr.mxu1 %v3051_v6  ;;  %5568 = vmatprep.subr.mxu0 %v1517_v8  ;;  %v1805_v6 = vld [vmem:[%s6533_s22 + $0x978] sm:$0xff]  ;;  %v3338_v8 = vld [vmem:[%s6533_s22 + $0x3960] sm:$0xff] }
 0x52e   : > { %5498 = vmatpush1.msra.mxu1 %v3050_v9  ;;  %5569 = vmatpush1.msra.mxu0 %v1516_v10  ;;  %v1804_v9 = vld [vmem:[%s6533_s22 + $0x970] sm:$0xff]  ;;  %v3323_v10 = vld [vmem:[%s6533_s22 + $0x38e8] sm:$0xff] }
 0x52f   : > { %5499 = vmatprep.subr.mxu1 %v3547_v11  ;;  %5570 = vmatprep.subr.mxu0 %v2013_v12  ;;  %v1789_v11 = vld [vmem:[%s6533_s22 + $0x8f8] sm:$0xff]  ;;  %v3322_v12 = vld [vmem:[%s6533_s22 + $0x38e0] sm:$0xff] }
 0x530   : > { %5500 = vmatpush2.msra.mxu1 %v3546_v14  ;;  %5571 = vmatpush2.msra.mxu0 %v2012_v16  ;;  %v1788_v14 = vld [vmem:[%s6533_s22 + $0x8f0] sm:$0xff]  ;;  %v3307_v16 = vld [vmem:[%s6533_s22 + $0x3868] sm:$0xff] }
 0x531   : > { %5501 = vmatprep.subr.mxu1 %v3531_v17  ;;  %5572 = vmatprep.subr.mxu0 %v1997_v18  ;;  %v1773_v17 = vld [vmem:[%s6533_s22 + $0x878] sm:$0xff]  ;;  %v3306_v18 = vld [vmem:[%s6533_s22 + $0x3860] sm:$0xff] }
 0x532   : > { %5502 = vmatpush2.msra.mxu1 %v3530_v1  ;;  %5573 = vmatpush2.msra.mxu0 %v1996_v2  ;;  %v1772_v1 = vld [vmem:[%s6533_s22 + $0x870] sm:$0xff]  ;;  %v2269_v2 = vld [vmem:[%s6533_s22 + $0x17f8] sm:$0xff] }
 0x533   : > { %5503 = vmatprep.subr.mxu1 %v3515_v39  ;;  %5574 = vmatprep.subr.mxu0 %v1981_v20  ;;  %v2781_v39 = vld [vmem:[%s6533_s22 + $0x27f8] sm:$0xff]  ;;  %v2268_v20 = vld [vmem:[%s6533_s22 + $0x17f0] sm:$0xff] }
 0x534   : > { %5504 = vmatpush2.msra.mxu1 %v3514_v22  ;;  %5575 = vmatpush2.msra.mxu0 %v1980_v23  ;;  %v2780_v22 = vld [vmem:[%s6533_s22 + $0x27f0] sm:$0xff]  ;;  %v2253_v23 = vld [vmem:[%s6533_s22 + $0x1778] sm:$0xff] }
 0x535   : > { %5505 = vmatprep.subr.mxu1 %v3499_v24  ;;  %5576 = vmatprep.subr.mxu0 %v1965_v25  ;;  %v2765_v24 = vld [vmem:[%s6533_s22 + $0x2778] sm:$0xff]  ;;  %v2252_v25 = vld [vmem:[%s6533_s22 + $0x1770] sm:$0xff] }
 0x536   : > { %5506 = vmatpush2.msra.mxu1 %v3498_v26  ;;  %5577 = vmatpush2.msra.mxu0 %v1964_v27  ;;  %v2764_v26 = vld [vmem:[%s6533_s22 + $0x2770] sm:$0xff]  ;;  %v2749_v27 = vld [vmem:[%s6533_s22 + $0x26f8] sm:$0xff] }
 0x537   : > { %5507 = vmatprep.subr.mxu1 %v3483_v28  ;;  %5578 = vmatprep.subr.mxu0 %v1949_v29  ;;  %v2236_v28 = vld [vmem:[%s6533_s22 + $0x16f0] sm:$0xff] }
 0x538   : > { %5508 = vmatpush2.msra.mxu1 %v3482_v30  ;;  %5579 = vmatpush2.msra.mxu0 %v1948_v55  ;;  %v2748_v29 = vld [vmem:[%s6533_s22 + $0x26f0] sm:$0xff]  ;;  %v2733_v30 = vld [vmem:[%s6533_s22 + $0x2678] sm:$0xff] }
 0x539   : > { %5509 = vmatprep.subr.mxu1 %v3467_v32  ;;  %5580 = vmatprep.subr.mxu0 %v1933_v33  ;;  %v2220_v55 = vld [vmem:[%s6533_s22 + $0x1670] sm:$0xff]  ;;  %v2205_v32 = vld [vmem:[%s6533_s22 + $0x15f8] sm:$0xff] }
 0x53a   : > { %5510 = vmatpush2.msra.mxu1 %v3466_v34  ;;  %5581 = vmatpush2.msra.mxu0 %v1932_v35  ;;  %v2717_v33 = vld [vmem:[%s6533_s22 + $0x25f8] sm:$0xff]  ;;  %v2204_v34 = vld [vmem:[%s6533_s22 + $0x15f0] sm:$0xff] }
 0x53b   : > { %5511 = vmatprep.subr.mxu1 %v3451_v36  ;;  %5582 = vmatprep.subr.mxu0 %v1917_v37  ;;  %v2716_v35 = vld [vmem:[%s6533_s22 + $0x25f0] sm:$0xff]  ;;  %v2189_v36 = vld [vmem:[%s6533_s22 + $0x1578] sm:$0xff] }
 0x53c   : > { %5512 = vmatpush2.msra.mxu1 %v3450_v51  ;;  %5583 = vmatpush2.msra.mxu0 %v1916_v38  ;;  %v2701_v37 = vld [vmem:[%s6533_s22 + $0x2578] sm:$0xff]  ;;  %v2188_v51 = vld [vmem:[%s6533_s22 + $0x1570] sm:$0xff] }
 0x53d   : > { %5513 = vmatprep.subr.mxu1 %v3435_v13  ;;  %5584 = vmatprep.subr.mxu0 %v1901_v40  ;;  %v2700_v38 = vld [vmem:[%s6533_s22 + $0x2570] sm:$0xff]  ;;  %v2173_v13 = vld [vmem:[%s6533_s22 + $0x14f8] sm:$0xff] }
 0x53e   : > { %5514 = vmatpush2.msra.mxu1 %v3434_v41  ;;  %5585 = vmatpush2.msra.mxu0 %v1900_v63  ;;  %v2685_v40 = vld [vmem:[%s6533_s22 + $0x24f8] sm:$0xff]  ;;  %v2172_v41 = vld [vmem:[%s6533_s22 + $0x14f0] sm:$0xff] }
 0x53f   : > { %5515 = vmatprep.subr.mxu1 %v3419_v19  ;;  %5586 = vmatprep.subr.mxu0 %v1885_v43  ;;  %v2684_v63 = vld [vmem:[%s6533_s22 + $0x24f0] sm:$0xff]  ;;  %v2157_v19 = vld [vmem:[%s6533_s22 + $0x1478] sm:$0xff] }
 0x540   : > { %5516 = vmatpush2.msra.mxu1 %v3418_v44  ;;  %5587 = vmatpush2.msra.mxu0 %v1884_v7  ;;  %v2669_v43 = vld [vmem:[%s6533_s22 + $0x2478] sm:$0xff]  ;;  %v2156_v44 = vld [vmem:[%s6533_s22 + $0x1470] sm:$0xff] }
 0x541   : > { %5517 = vmatprep.subr.mxu1 %v3403_v45  ;;  %5588 = vmatprep.subr.mxu0 %v1869_v46  ;;  %v2668_v7 = vld [vmem:[%s6533_s22 + $0x2470] sm:$0xff]  ;;  %v2141_v45 = vld [vmem:[%s6533_s22 + $0x13f8] sm:$0xff] }
 0x542   : > { %5518 = vmatpush2.msra.mxu1 %v3402_v47  ;;  %5589 = vmatpush2.msra.mxu0 %v1868_v49  ;;  %v2653_v46 = vld [vmem:[%s6533_s22 + $0x23f8] sm:$0xff]  ;;  %v2140_v47 = vld [vmem:[%s6533_s22 + $0x13f0] sm:$0xff] }
 0x543   : > { %5519 = vmatprep.subr.mxu1 %v3387_v50  ;;  %5590 = vmatprep.subr.mxu0 %v1853_v52  ;;  %v2652_v49 = vld [vmem:[%s6533_s22 + $0x23f0] sm:$0xff]  ;;  %v2125_v50 = vld [vmem:[%s6533_s22 + $0x1378] sm:$0xff] }
 0x544   : > { %5520 = vmatpush2.msra.mxu1 %v3386_v53  ;;  %5591 = vmatpush2.msra.mxu0 %v1852_v54  ;;  %v2637_v52 = vld [vmem:[%s6533_s22 + $0x2378] sm:$0xff]  ;;  %v2124_v53 = vld [vmem:[%s6533_s22 + $0x1370] sm:$0xff] }
 0x545   : > { %5521 = vmatprep.subr.mxu1 %v3371_v31  ;;  %5592 = vmatprep.subr.mxu0 %v1837_v57  ;;  %v2636_v54 = vld [vmem:[%s6533_s22 + $0x2370] sm:$0xff]  ;;  %v2109_v31 = vld [vmem:[%s6533_s22 + $0x12f8] sm:$0xff] }
 0x546   : > { %5522 = vmatpush2.msra.mxu1 %v3370_v59  ;;  %5593 = vmatpush2.msra.mxu0 %v1836_v60  ;;  %v2621_v57 = vld [vmem:[%s6533_s22 + $0x22f8] sm:$0xff]  ;;  %v2108_v59 = vld [vmem:[%s6533_s22 + $0x12f0] sm:$0xff] }
 0x547   : > { %5523 = vmatprep.subr.mxu1 %v3355_v61  ;;  %5594 = vmatprep.subr.mxu0 %v1821_v62  ;;  %v2620_v60 = vld [vmem:[%s6533_s22 + $0x22f0] sm:$0xff]  ;;  %v2093_v61 = vld [vmem:[%s6533_s22 + $0x1278] sm:$0xff] }
 0x548   : > { %5524 = vmatpush2.msra.mxu1 %v3354_v0  ;;  %5595 = vmatpush2.msra.mxu0 %v1820_v3  ;;  %v2605_v62 = vld [vmem:[%s6533_s22 + $0x2278] sm:$0xff]  ;;  %v2092_v0 = vld [vmem:[%s6533_s22 + $0x1270] sm:$0xff] }
 0x549   : > { %5525 = vmatprep.subr.mxu1 %v3339_v4  ;;  %5596 = vmatprep.subr.mxu0 %v1805_v6  ;;  %v2604_v3 = vld [vmem:[%s6533_s22 + $0x2270] sm:$0xff]  ;;  %v2077_v4 = vld [vmem:[%s6533_s22 + $0x11f8] sm:$0xff] }
 0x54a   : > { %5526 = vmatpush2.msra.mxu1 %v3338_v8  ;;  %5597 = vmatpush2.msra.mxu0 %v1804_v9  ;;  %v2589_v6 = vld [vmem:[%s6533_s22 + $0x21f8] sm:$0xff]  ;;  %v2076_v8 = vld [vmem:[%s6533_s22 + $0x11f0] sm:$0xff] }
 0x54b   : > { %5527 = vmatprep.subr.mxu1 %v3323_v10  ;;  %5598 = vmatprep.subr.mxu0 %v1789_v11  ;;  %v2588_v9 = vld [vmem:[%s6533_s22 + $0x21f0] sm:$0xff]  ;;  %v2061_v10 = vld [vmem:[%s6533_s22 + $0x1178] sm:$0xff] }
 0x54c   : > { %5528 = vmatpush2.msra.mxu1 %v3322_v12  ;;  %5599 = vmatpush2.msra.mxu0 %v1788_v14  ;;  %v2573_v11 = vld [vmem:[%s6533_s22 + $0x2178] sm:$0xff]  ;;  %v2060_v12 = vld [vmem:[%s6533_s22 + $0x1170] sm:$0xff] }
 0x54d   : > { %5529 = vmatprep.subr.mxu1 %v3307_v16  ;;  %5600 = vmatprep.subr.mxu0 %v1773_v17  ;;  %v2572_v14 = vld [vmem:[%s6533_s22 + $0x2170] sm:$0xff]  ;;  %v2045_v16 = vld [vmem:[%s6533_s22 + $0x10f8] sm:$0xff] }
 0x54e   : > { %5530 = vmatpush2.msra.mxu1 %v3306_v18  ;;  %5601 = vmatpush2.msra.mxu0 %v1772_v1  ;;  %v2557_v17 = vld [vmem:[%s6533_s22 + $0x20f8] sm:$0xff]  ;;  %v2044_v18 = vld [vmem:[%s6533_s22 + $0x10f0] sm:$0xff] }
 0x54f   : > { %5532 = vmatmul.mubr.f32.vlgmr.msra.gmra.mxu1 %v7457_v42  ;;  %5603 = vmatmul.mubr.f32.vlgmr.msra.gmra.mxu0 %v7230_v48  ;;  %v2237_v48 = vld [vmem:[%s6533_s22 + $0x16f8] sm:$0xff]  ;;  %v2556_v1 = vld [vmem:[%s6533_s22 + $0x20f0] sm:$0xff] }
 0x550   : > { %5609 = vmatprep.subr.mxu1 %v2269_v2  ;;  %5680 = vmatprep.subr.mxu0 %v2781_v39  ;;  %v2029_v2 = vld [vmem:[%s6533_s22 + $0x1078] sm:$0xff] }
 0x551   : > { %5610 = vmatpush1.msra.mxu1 %v2268_v20  ;;  %5673 = vmatprep.mubr.f32.mxu1 %v7237_v56  ;;  %v2221_v56 = vld [vmem:[%s6533_s22 + $0x1678] sm:$0xff]  ;;  %v2028_v20 = vld [vmem:[%s6533_s22 + $0x1070] sm:$0xff] }
 0x552   : > { %5681 = vmatpush1.msra.mxu0 %v2780_v22  ;;  %5744 = vmatprep.mubr.f32.mxu0 %v7376_v21  ;;  %v2732_v21 = vld [vmem:[%s6533_s22 + $0x2670] sm:$0xff]  ;;  %v2541_v39 = vld [vmem:[%s6533_s22 + $0x2078] sm:$0xff] }
 0x553   : > { %5611 = vmatprep.subr.mxu1 %v2253_v23  ;;  %5682 = vmatprep.subr.mxu0 %v2765_v24  ;;  %v2540_v22 = vld [vmem:[%s6533_s22 + $0x2070] sm:$0xff]  ;;  %v2525_v23 = vld [vmem:[%s6533_s22 + $0x1ff8] sm:$0xff] }
 0x554   : > { %5612 = vmatpush1.msra.mxu1 %v2252_v25  ;;  %5683 = vmatpush1.msra.mxu0 %v2764_v26  ;;  %v3037_v24 = vld [vmem:[%s6533_s22 + $0x2ff8] sm:$0xff]  ;;  %v2524_v25 = vld [vmem:[%s6533_s22 + $0x1ff0] sm:$0xff] }
 0x555   : > { %5613 = vmatprep.subr.mxu1 %v2237_v48  ;;  %5684 = vmatprep.subr.mxu0 %v2749_v27  ;;  %v3036_v26 = vld [vmem:[%s6533_s22 + $0x2ff0] sm:$0xff]  ;;  %v2509_v48 = vld [vmem:[%s6533_s22 + $0x1f78] sm:$0xff] }
 0x556   : > { %5614 = vmatpush1.msra.mxu1 %v2236_v28  ;;  %5685 = vmatpush1.msra.mxu0 %v2748_v29  ;;  %v3021_v27 = vld [vmem:[%s6533_s22 + $0x2f78] sm:$0xff]  ;;  %v2508_v28 = vld [vmem:[%s6533_s22 + $0x1f70] sm:$0xff] }
 0x557   : > { %5615 = vmatprep.subr.mxu1 %v2221_v56  ;;  %5686 = vmatprep.subr.mxu0 %v2733_v30  ;;  %v3020_v29 = vld [vmem:[%s6533_s22 + $0x2f70] sm:$0xff]  ;;  %v2493_v56 = vld [vmem:[%s6533_s22 + $0x1ef8] sm:$0xff] }
 0x558   : > { %5616 = vmatpush1.msra.mxu1 %v2220_v55  ;;  %5687 = vmatpush1.msra.mxu0 %v2732_v21  ;;  %v3005_v30 = vld [vmem:[%s6533_s22 + $0x2ef8] sm:$0xff]  ;;  %v2492_v55 = vld [vmem:[%s6533_s22 + $0x1ef0] sm:$0xff] }
 0x559   : > { %5617 = vmatprep.subr.mxu1 %v2205_v32  ;;  %5688 = vmatprep.subr.mxu0 %v2717_v33  ;;  %v3004_v21 = vld [vmem:[%s6533_s22 + $0x2ef0] sm:$0xff]  ;;  %v2477_v32 = vld [vmem:[%s6533_s22 + $0x1e78] sm:$0xff] }
 0x55a   : > { %5618 = vmatpush1.msra.mxu1 %v2204_v34  ;;  %5689 = vmatpush1.msra.mxu0 %v2716_v35  ;;  %v2989_v33 = vld [vmem:[%s6533_s22 + $0x2e78] sm:$0xff]  ;;  %v2476_v34 = vld [vmem:[%s6533_s22 + $0x1e70] sm:$0xff] }
 0x55b   : > { %5619 = vmatprep.subr.mxu1 %v2189_v36  ;;  %5690 = vmatprep.subr.mxu0 %v2701_v37  ;;  %v2988_v35 = vld [vmem:[%s6533_s22 + $0x2e70] sm:$0xff]  ;;  %v2461_v36 = vld [vmem:[%s6533_s22 + $0x1df8] sm:$0xff] }
 0x55c   : > { %5620 = vmatpush1.msra.mxu1 %v2188_v51  ;;  %5691 = vmatpush1.msra.mxu0 %v2700_v38  ;;  %v2973_v37 = vld [vmem:[%s6533_s22 + $0x2df8] sm:$0xff]  ;;  %v2460_v51 = vld [vmem:[%s6533_s22 + $0x1df0] sm:$0xff] }
 0x55d   : > { %5621 = vmatprep.subr.mxu1 %v2173_v13  ;;  %5692 = vmatprep.subr.mxu0 %v2685_v40  ;;  %v2972_v38 = vld [vmem:[%s6533_s22 + $0x2df0] sm:$0xff]  ;;  %v2445_v13 = vld [vmem:[%s6533_s22 + $0x1d78] sm:$0xff] }
 0x55e   : > { %5622 = vmatpush1.msra.mxu1 %v2172_v41  ;;  %5693 = vmatpush1.msra.mxu0 %v2684_v63  ;;  %v2957_v40 = vld [vmem:[%s6533_s22 + $0x2d78] sm:$0xff]  ;;  %v2444_v41 = vld [vmem:[%s6533_s22 + $0x1d70] sm:$0xff] }
 0x55f   : > { %5623 = vmatprep.subr.mxu1 %v2157_v19  ;;  %5694 = vmatprep.subr.mxu0 %v2669_v43  ;;  %v2956_v63 = vld [vmem:[%s6533_s22 + $0x2d70] sm:$0xff]  ;;  %v2429_v19 = vld [vmem:[%s6533_s22 + $0x1cf8] sm:$0xff] }
 0x560   : > { %5624 = vmatpush1.msra.mxu1 %v2156_v44  ;;  %5695 = vmatpush1.msra.mxu0 %v2668_v7  ;;  %v2941_v43 = vld [vmem:[%s6533_s22 + $0x2cf8] sm:$0xff]  ;;  %v2428_v44 = vld [vmem:[%s6533_s22 + $0x1cf0] sm:$0xff] }
 0x561   : > { %5625 = vmatprep.subr.mxu1 %v2141_v45  ;;  %5696 = vmatprep.subr.mxu0 %v2653_v46  ;;  %v2940_v7 = vld [vmem:[%s6533_s22 + $0x2cf0] sm:$0xff]  ;;  %v2413_v45 = vld [vmem:[%s6533_s22 + $0x1c78] sm:$0xff] }
 0x562   : > { %5626 = vmatpush1.msra.mxu1 %v2140_v47  ;;  %5697 = vmatpush1.msra.mxu0 %v2652_v49  ;;  %v2925_v46 = vld [vmem:[%s6533_s22 + $0x2c78] sm:$0xff]  ;;  %v2412_v47 = vld [vmem:[%s6533_s22 + $0x1c70] sm:$0xff] }
 0x563   : > { %5627 = vmatprep.subr.mxu1 %v2125_v50  ;;  %5698 = vmatprep.subr.mxu0 %v2637_v52  ;;  %v2924_v49 = vld [vmem:[%s6533_s22 + $0x2c70] sm:$0xff]  ;;  %v2397_v50 = vld [vmem:[%s6533_s22 + $0x1bf8] sm:$0xff] }
 0x564   : > { %5628 = vmatpush1.msra.mxu1 %v2124_v53  ;;  %5699 = vmatpush1.msra.mxu0 %v2636_v54  ;;  %v2909_v52 = vld [vmem:[%s6533_s22 + $0x2bf8] sm:$0xff]  ;;  %v2396_v53 = vld [vmem:[%s6533_s22 + $0x1bf0] sm:$0xff] }
 0x565   : > { %5629 = vmatprep.subr.mxu1 %v2109_v31  ;;  %5700 = vmatprep.subr.mxu0 %v2621_v57  ;;  %v2908_v54 = vld [vmem:[%s6533_s22 + $0x2bf0] sm:$0xff]  ;;  %v2381_v31 = vld [vmem:[%s6533_s22 + $0x1b78] sm:$0xff] }
 0x566   : > { %5630 = vmatpush1.msra.mxu1 %v2108_v59  ;;  %5701 = vmatpush1.msra.mxu0 %v2620_v60  ;;  %v2893_v57 = vld [vmem:[%s6533_s22 + $0x2b78] sm:$0xff]  ;;  %v5036_v59 = vpop.f32.mrf.mxu0  ;;  %v5107_v60 = vpop.f32.mrf.mxu1 }
 0x567   : > { %5631 = vmatprep.subr.mxu1 %v2093_v61  ;;  %5702 = vmatprep.subr.mxu0 %v2605_v62  ;;  %v2380_v61 = vld [vmem:[%s6533_s22 + $0x1b70] sm:$0xff] }
 0x568   : > { %5632 = vmatpush1.msra.mxu1 %v2092_v0  ;;  %5703 = vmatpush1.msra.mxu0 %v2604_v3  ;;  %v2892_v62 = vld [vmem:[%s6533_s22 + $0x2b70] sm:$0xff]  ;;  %v2365_v0 = vld [vmem:[%s6533_s22 + $0x1af8] sm:$0xff] }
 0x569   : > { %5633 = vmatprep.subr.mxu1 %v2077_v4  ;;  %5704 = vmatprep.subr.mxu0 %v2589_v6  ;;  %v2877_v3 = vld [vmem:[%s6533_s22 + $0x2af8] sm:$0xff]  ;;  %v2364_v4 = vld [vmem:[%s6533_s22 + $0x1af0] sm:$0xff] }
 0x56a   : > { %5634 = vmatpush1.msra.mxu1 %v2076_v8  ;;  %5705 = vmatpush1.msra.mxu0 %v2588_v9  ;;  %v2876_v6 = vld [vmem:[%s6533_s22 + $0x2af0] sm:$0xff]  ;;  %v2349_v8 = vld [vmem:[%s6533_s22 + $0x1a78] sm:$0xff] }
 0x56b   : > { %5635 = vmatprep.subr.mxu1 %v2061_v10  ;;  %5706 = vmatprep.subr.mxu0 %v2573_v11  ;;  %v2861_v9 = vld [vmem:[%s6533_s22 + $0x2a78] sm:$0xff]  ;;  %v5038_v10 = vpop.f32.mrf.mxu0  ;;  %v5109_v11 = vpop.f32.mrf.mxu1 }
 0x56c   : > { %5636 = vmatpush1.msra.mxu1 %v2060_v12  ;;  %5707 = vmatpush1.msra.mxu0 %v2572_v14  ;;  %v2348_v12 = vld [vmem:[%s6533_s22 + $0x1a70] sm:$0xff] }
 0x56d   : > { %5637 = vmatprep.subr.mxu1 %v2045_v16  ;;  %5708 = vmatprep.subr.mxu0 %v2557_v17  ;;  %v2860_v14 = vld [vmem:[%s6533_s22 + $0x2a70] sm:$0xff]  ;;  %v5108_v16 = vadd.f32 %v5107_v60, %v5036_v59  ;;  %v2333_v17 = vld [vmem:[%s6533_s22 + $0x19f8] sm:$0xff] }
 0x56e   : > { %5638 = vmatpush1.msra.mxu1 %v2044_v18  ;;  %5709 = vmatpush1.msra.mxu0 %v2556_v1  ;;  %v2845_v18 = vld [vmem:[%s6533_s22 + $0x29f8] sm:$0xff]  ;;  %v5178_v1 = vpop.f32.mrf.mxu0  ;;  %v3116_v59 = vld [vmem:[%s6533_s22 + $0x3270] sm:$0xff] }
 0x56f   : > { %5639 = vmatprep.subr.mxu1 %v2029_v2  ;;  %5710 = vmatprep.subr.mxu0 %v2541_v39  ;;  %v2332_v2 = vld [vmem:[%s6533_s22 + $0x19f0] sm:$0xff]  ;;  %v3101_v60 = vld [vmem:[%s6533_s22 + $0x31f8] sm:$0xff] }
 0x570   : > { %5640 = vmatpush1.msra.mxu1 %v2028_v20  ;;  %5711 = vmatpush1.msra.mxu0 %v2540_v22  ;;  %v2844_v39 = vld [vmem:[%s6533_s22 + $0x29f0] sm:$0xff]  ;;  %v5110_v20 = vadd.f32 %v5109_v11, %v5038_v10  ;;  %v2317_v22 = vld [vmem:[%s6533_s22 + $0x1978] sm:$0xff] }
 0x571   : > { %5641 = vmatprep.subr.mxu1 %v2525_v23  ;;  %5712 = vmatprep.subr.mxu0 %v3037_v24  ;;  %v2829_v23 = vld [vmem:[%s6533_s22 + $0x2978] sm:$0xff]  ;;  %v2316_v24 = vld [vmem:[%s6533_s22 + $0x1970] sm:$0xff] }
 0x572   : > { %5642 = vmatpush2.msra.mxu1 %v2524_v25  ;;  %5713 = vmatpush2.msra.mxu0 %v3036_v26  ;;  %v2828_v25 = vld [vmem:[%s6533_s22 + $0x2970] sm:$0xff]  ;;  %v5179_v26 = vadd.f32 %v5178_v1, %v5108_v16  ;;  %v3533_v11 = vld [vmem:[%s6533_s22 + $0x3f78] sm:$0xff] }
 0x573   : > { %5643 = vmatprep.subr.mxu1 %v2509_v48  ;;  %5714 = vmatprep.subr.mxu0 %v3021_v27  ;;  %v2301_v48 = vld [vmem:[%s6533_s22 + $0x18f8] sm:$0xff]  ;;  %v3548_v10 = vld [vmem:[%s6533_s22 + $0x3ff0] sm:$0xff] }
 0x574   : > { %5644 = vmatpush2.msra.mxu1 %v2508_v28  ;;  %5715 = vmatpush2.msra.mxu0 %v3020_v29  ;;  %v2813_v27 = vld [vmem:[%s6533_s22 + $0x28f8] sm:$0xff]  ;;  %v5180_v28 = vpop.f32.mrf.mxu0  ;;  %v2300_v29 = vld [vmem:[%s6533_s22 + $0x18f0] sm:$0xff] }
 0x575   : > { %5645 = vmatprep.subr.mxu1 %v2493_v56  ;;  %5716 = vmatprep.subr.mxu0 %v3005_v30  ;;  %v2812_v56 = vld [vmem:[%s6533_s22 + $0x28f0] sm:$0xff]  ;;  %v3485_v1 = vld [vmem:[%s6533_s22 + $0x3df8] sm:$0xff] }
 0x576   : > { %5646 = vmatpush2.msra.mxu1 %v2492_v55  ;;  %5717 = vmatpush2.msra.mxu0 %v3004_v21  ;;  %v5181_v55 = vadd.f32 %v5180_v28, %v5110_v20  ;;  %v2285_v21 = vld [vmem:[%s6533_s22 + $0x1878] sm:$0xff]  ;;  %v3516_v16 = vld [vmem:[%s6533_s22 + $0x3ef0] sm:$0xff] }
 0x577   : > { %5647 = vmatprep.subr.mxu1 %v2477_v32  ;;  %5718 = vmatprep.subr.mxu0 %v2989_v33  ;;  %v2797_v32 = vld [vmem:[%s6533_s22 + $0x2878] sm:$0xff]  ;;  %v3468_v20 = vld [vmem:[%s6533_s22 + $0x3d70] sm:$0xff] }
 0x578   : > { %5648 = vmatpush2.msra.mxu1 %v2476_v34  ;;  %5719 = vmatpush2.msra.mxu0 %v2988_v35  ;;  %v2284_v34 = vld [vmem:[%s6533_s22 + $0x1870] sm:$0xff] }
 0x579   : > { %5649 = vmatprep.subr.mxu1 %v2461_v36  ;;  %5720 = vmatprep.subr.mxu0 %v2973_v37  ;;  %v2796_v35 = vld [vmem:[%s6533_s22 + $0x2870] sm:$0xff] }
 0x57a   : > { %5650 = vmatpush2.msra.mxu1 %v2460_v51  ;;  %5721 = vmatpush2.msra.mxu0 %v2972_v38  ;;  %v3293_v51 = vld [vmem:[%s6533_s22 + $0x37f8] sm:$0xff]  ;;  %v3292_v38 = vld [vmem:[%s6533_s22 + $0x37f0] sm:$0xff] }
 0x57b   : > { %5651 = vmatprep.subr.mxu1 %v2445_v13  ;;  %5722 = vmatprep.subr.mxu0 %v2957_v40  ;;  %v3277_v13 = vld [vmem:[%s6533_s22 + $0x3778] sm:$0xff]  ;;  %v3276_v40 = vld [vmem:[%s6533_s22 + $0x3770] sm:$0xff] }
 0x57c   : > { %5652 = vmatpush2.msra.mxu1 %v2444_v41  ;;  %5723 = vmatpush2.msra.mxu0 %v2956_v63  ;;  %v3261_v41 = vld [vmem:[%s6533_s22 + $0x36f8] sm:$0xff]  ;;  %v3260_v63 = vld [vmem:[%s6533_s22 + $0x36f0] sm:$0xff] }
 0x57d   : > { %5653 = vmatprep.subr.mxu1 %v2429_v19  ;;  %5724 = vmatprep.subr.mxu0 %v2941_v43  ;;  %v3229_v19 = vld [vmem:[%s6533_s22 + $0x35f8] sm:$0xff]  ;;  %v3404_v28 = vld [vmem:[%s6533_s22 + $0x3b70] sm:$0xff] }
 0x57e   : > { %5654 = vmatpush2.msra.mxu1 %v2428_v44  ;;  %5725 = vmatpush2.msra.mxu0 %v2940_v7  ;;  %v3213_v43 = vld [vmem:[%s6533_s22 + $0x3578] sm:$0xff]  ;;  %v3212_v44 = vld [vmem:[%s6533_s22 + $0x3570] sm:$0xff] }
 0x57f   : > { %5655 = vmatprep.subr.mxu1 %v2413_v45  ;;  %5726 = vmatprep.subr.mxu0 %v2925_v46  ;;  %v3197_v7 = vld [vmem:[%s6533_s22 + $0x34f8] sm:$0xff]  ;;  %v3196_v45 = vld [vmem:[%s6533_s22 + $0x34f0] sm:$0xff] }
 0x580   : > { %5656 = vmatpush2.msra.mxu1 %v2412_v47  ;;  %5727 = vmatpush2.msra.mxu0 %v2924_v49  ;;  %v3181_v46 = vld [vmem:[%s6533_s22 + $0x3478] sm:$0xff]  ;;  %v3180_v47 = vld [vmem:[%s6533_s22 + $0x3470] sm:$0xff] }
 0x581   : > { %5657 = vmatprep.subr.mxu1 %v2397_v50  ;;  %5728 = vmatprep.subr.mxu0 %v2909_v52  ;;  %v3165_v49 = vld [vmem:[%s6533_s22 + $0x33f8] sm:$0xff]  ;;  %v3164_v50 = vld [vmem:[%s6533_s22 + $0x33f0] sm:$0xff] }
 0x582   : > { %5658 = vmatpush2.msra.mxu1 %v2396_v53  ;;  %5729 = vmatpush2.msra.mxu0 %v2908_v54  ;;  %v3149_v52 = vld [vmem:[%s6533_s22 + $0x3378] sm:$0xff]  ;;  %v3148_v53 = vld [vmem:[%s6533_s22 + $0x3370] sm:$0xff] }
 0x583   : > { %5659 = vmatprep.subr.mxu1 %v2381_v31  ;;  %5730 = vmatprep.subr.mxu0 %v2893_v57  ;;  %v3133_v54 = vld [vmem:[%s6533_s22 + $0x32f8] sm:$0xff]  ;;  %v3132_v31 = vld [vmem:[%s6533_s22 + $0x32f0] sm:$0xff] }
 0x584   : > { %5660 = vmatpush2.msra.mxu1 %v2380_v61  ;;  %5731 = vmatpush2.msra.mxu0 %v2892_v62  ;;  %v3117_v57 = vld [vmem:[%s6533_s22 + $0x3278] sm:$0xff]  ;;  %v3100_v61 = vld [vmem:[%s6533_s22 + $0x31f0] sm:$0xff] }
 0x585   : > { %5661 = vmatprep.subr.mxu1 %v2365_v0  ;;  %5732 = vmatprep.subr.mxu0 %v2877_v3  ;;  %v3085_v62 = vld [vmem:[%s6533_s22 + $0x3178] sm:$0xff]  ;;  %v3084_v0 = vld [vmem:[%s6533_s22 + $0x3170] sm:$0xff] }
 0x586   : > { %5662 = vmatpush2.msra.mxu1 %v2364_v4  ;;  %5733 = vmatpush2.msra.mxu0 %v2876_v6  ;;  %v3069_v3 = vld [vmem:[%s6533_s22 + $0x30f8] sm:$0xff]  ;;  %v3068_v4 = vld [vmem:[%s6533_s22 + $0x30f0] sm:$0xff] }
 0x587   : > { %5663 = vmatprep.subr.mxu1 %v2349_v8  ;;  %5734 = vmatprep.subr.mxu0 %v2861_v9  ;;  %v3053_v6 = vld [vmem:[%s6533_s22 + $0x3078] sm:$0xff]  ;;  %v3052_v8 = vld [vmem:[%s6533_s22 + $0x3070] sm:$0xff] }
 0x588   : > { %5664 = vmatpush2.msra.mxu1 %v2348_v12  ;;  %5735 = vmatpush2.msra.mxu0 %v2860_v14  ;;  %v3549_v9 = vld [vmem:[%s6533_s22 + $0x3ff8] sm:$0xff]  ;;  %v3532_v12 = vld [vmem:[%s6533_s22 + $0x3f70] sm:$0xff] }
 0x589   : > { %5665 = vmatprep.subr.mxu1 %v2333_v17  ;;  %5736 = vmatprep.subr.mxu0 %v2845_v18  ;;  %v3517_v14 = vld [vmem:[%s6533_s22 + $0x3ef8] sm:$0xff]  ;;  %v3500_v18 = vld [vmem:[%s6533_s22 + $0x3e70] sm:$0xff] }
 0x58a   : > { %5666 = vmatpush2.msra.mxu1 %v2332_v2  ;;  %5737 = vmatpush2.msra.mxu0 %v2844_v39  ;;  %v3501_v17 = vld [vmem:[%s6533_s22 + $0x3e78] sm:$0xff]  ;;  %v3484_v2 = vld [vmem:[%s6533_s22 + $0x3df0] sm:$0xff] }
 0x58b   : > { %5667 = vmatprep.subr.mxu1 %v2317_v22  ;;  %5738 = vmatprep.subr.mxu0 %v2829_v23  ;;  %v5249_v30 = vpop.f32.mrf.mxu1  ;;  %v3469_v39 = vld [vmem:[%s6533_s22 + $0x3d78] sm:$0xff]  ;;  %v3452_v23 = vld [vmem:[%s6533_s22 + $0x3cf0] sm:$0xff] }
 0x58c   : > { %5668 = vmatpush2.msra.mxu1 %v2316_v24  ;;  %5739 = vmatpush2.msra.mxu0 %v2828_v25  ;;  %v5250_v33 = vadd.f32 %v5249_v30, %v5179_v26  ;;  %v3453_v22 = vld [vmem:[%s6533_s22 + $0x3cf8] sm:$0xff]  ;;  %v3436_v25 = vld [vmem:[%s6533_s22 + $0x3c70] sm:$0xff] }
 0x58d   : > { %5669 = vmatprep.subr.mxu1 %v2301_v48  ;;  %5740 = vmatprep.subr.mxu0 %v2813_v27  ;;  %v5251_v36 = vpop.f32.mrf.mxu1  ;;  %v3437_v24 = vld [vmem:[%s6533_s22 + $0x3c78] sm:$0xff]  ;;  %v3420_v48 = vld [vmem:[%s6533_s22 + $0x3bf0] sm:$0xff] }
 0x58e   : > { %5670 = vmatpush2.msra.mxu1 %v2300_v29  ;;  %5741 = vmatpush2.msra.mxu0 %v2812_v56  ;;  %v5252_v37 = vadd.f32 %v5251_v36, %v5181_v55  ;;  %5848 = vst [vmem:[%s7859_s23 + $0x50] sm:$0xff] %v5250_v33  ;;  %v3421_v26 = vld [vmem:[%s6533_s22 + $0x3bf8] sm:$0xff]  ;;  %v3388_v56 = vld [vmem:[%s6533_s22 + $0x3af0] sm:$0xff] }
 0x58f   : > { %5671 = vmatprep.subr.mxu1 %v2285_v21  ;;  %5742 = vmatprep.subr.mxu0 %v2797_v32  ;;  %v3405_v27 = vld [vmem:[%s6533_s22 + $0x3b78] sm:$0xff]  ;;  %v3372_v55 = vld [vmem:[%s6533_s22 + $0x3a70] sm:$0xff] }
 0x590   : > { %5672 = vmatpush2.msra.mxu1 %v2284_v34  ;;  %5743 = vmatpush2.msra.mxu0 %v2796_v35  ;;  %5849 = vst [vmem:[%s7859_s23 + $0x58] sm:$0xff] %v5252_v37  ;;  %v3389_v29 = vld [vmem:[%s6533_s22 + $0x3af8] sm:$0xff]  ;;  %v3356_v32 = vld [vmem:[%s6533_s22 + $0x39f0] sm:$0xff] }
 0x591   : > { %5674 = vmatmul.mubr.f32.vlgmr.msra.gmra.mxu1 %v7240_v58  ;;  %5745 = vmatmul.mubr.f32.vlgmr.msra.gmra.mxu0 %v7378_v5  ;;  %v3245_v58 = vld [vmem:[%s6533_s22 + $0x3678] sm:$0xff]  ;;  %v3244_v5 = vld [vmem:[%s6533_s22 + $0x3670] sm:$0xff] }
 0x592   : > { %5751 = vmatprep.subr.mxu1 %v3293_v51  ;;  %5815 = vmatprep.mubr.f32.mxu1 %v7453_v15  ;;  %v3228_v15 = vld [vmem:[%s6533_s22 + $0x35f0] sm:$0xff]  ;;  %v3373_v30 = vld [vmem:[%s6533_s22 + $0x3a78] sm:$0xff] }
 0x593   : > { %5752 = vmatpush1.msra.mxu1 %v3292_v38  ;;  %v3357_v21 = vld [vmem:[%s6533_s22 + $0x39f8] sm:$0xff]  ;;  %v3340_v34 = vld [vmem:[%s6533_s22 + $0x3970] sm:$0xff]  ;;  %v5320_v38 = vpop.f32.mrf.mxu0 }
 0x594   : > { %5753 = vmatprep.subr.mxu1 %v3277_v13  ;;  %v3341_v33 = vld [vmem:[%s6533_s22 + $0x3978] sm:$0xff]  ;;  %v3324_v36 = vld [vmem:[%s6533_s22 + $0x38f0] sm:$0xff] }
 0x595   : > { %5754 = vmatpush1.msra.mxu1 %v3276_v40  ;;  %v3325_v35 = vld [vmem:[%s6533_s22 + $0x38f8] sm:$0xff]  ;;  %v3308_v51 = vld [vmem:[%s6533_s22 + $0x3870] sm:$0xff]  ;;  %v5322_v40 = vpop.f32.mrf.mxu0 }
 0x596   : > { %5755 = vmatprep.subr.mxu1 %v3261_v41  ;;  %v3309_v37 = vld [vmem:[%s6533_s22 + $0x3878] sm:$0xff] }
 0x597   : > { %5756 = vmatpush1.msra.mxu1 %v3260_v63 }
 0x598   : > { %5757 = vmatprep.subr.mxu1 %v3245_v58 }
 0x599   : > { %5758 = vmatpush1.msra.mxu1 %v3244_v5 }
 0x59a   : > { %5759 = vmatprep.subr.mxu1 %v3229_v19 }
 0x59b   : > { %5760 = vmatpush1.msra.mxu1 %v3228_v15 }
 0x59c   : > { %5761 = vmatprep.subr.mxu1 %v3213_v43 }
 0x59d   : > { %5762 = vmatpush1.msra.mxu1 %v3212_v44 }
 0x59e   : > { %5763 = vmatprep.subr.mxu1 %v3197_v7 }
 0x59f   : > { %5764 = vmatpush1.msra.mxu1 %v3196_v45 }
 0x5a0   : > { %5765 = vmatprep.subr.mxu1 %v3181_v46 }
 0x5a1   : > { %5766 = vmatpush1.msra.mxu1 %v3180_v47 }
 0x5a2   : > { %5767 = vmatprep.subr.mxu1 %v3165_v49 }
 0x5a3   : > { %5768 = vmatpush1.msra.mxu1 %v3164_v50 }
 0x5a4   : > { %5769 = vmatprep.subr.mxu1 %v3149_v52 }
 0x5a5   : > { %5770 = vmatpush1.msra.mxu1 %v3148_v53 }
 0x5a6   : > { %5771 = vmatprep.subr.mxu1 %v3133_v54 }
 0x5a7   : > { %5772 = vmatpush1.msra.mxu1 %v3132_v31 }
 0x5a8   : > { %5773 = vmatprep.subr.mxu1 %v3117_v57 }
 0x5a9   : > { %5774 = vmatpush1.msra.mxu1 %v3116_v59 }
 0x5aa   : > { %5775 = vmatprep.subr.mxu1 %v3101_v60 }
 0x5ab   : > { %5776 = vmatpush1.msra.mxu1 %v3100_v61 }
 0x5ac   : > { %5777 = vmatprep.subr.mxu1 %v3085_v62 }
 0x5ad   : > { %5778 = vmatpush1.msra.mxu1 %v3084_v0 }
 0x5ae   : > { %5779 = vmatprep.subr.mxu1 %v3069_v3 }
 0x5af   : > { %5780 = vmatpush1.msra.mxu1 %v3068_v4 }
 0x5b0   : > { %5781 = vmatprep.subr.mxu1 %v3053_v6 }
 0x5b1   : > { %5782 = vmatpush1.msra.mxu1 %v3052_v8 }
 0x5b2   : > { %5783 = vmatprep.subr.mxu1 %v3549_v9 }
 0x5b3   : > { %5784 = vmatpush2.msra.mxu1 %v3548_v10 }
 0x5b4   : > { %5785 = vmatprep.subr.mxu1 %v3533_v11 }
 0x5b5   : > { %5786 = vmatpush2.msra.mxu1 %v3532_v12 }
 0x5b6   : > { %5787 = vmatprep.subr.mxu1 %v3517_v14 }
 0x5b7   : > { %5788 = vmatpush2.msra.mxu1 %v3516_v16 }
 0x5b8   : > { %5789 = vmatprep.subr.mxu1 %v3501_v17 }
 0x5b9   : > { %5790 = vmatpush2.msra.mxu1 %v3500_v18 }
 0x5ba   : > { %5791 = vmatprep.subr.mxu1 %v3485_v1 }
 0x5bb   : > { %5792 = vmatpush2.msra.mxu1 %v3484_v2 }
 0x5bc   : > { %5793 = vmatprep.subr.mxu1 %v3469_v39 }
 0x5bd   : > { %5794 = vmatpush2.msra.mxu1 %v3468_v20 }
 0x5be   : > { %5795 = vmatprep.subr.mxu1 %v3453_v22 }
 0x5bf   : > { %5796 = vmatpush2.msra.mxu1 %v3452_v23 }
 0x5c0   : > { %5797 = vmatprep.subr.mxu1 %v3437_v24 }
 0x5c1   : > { %5798 = vmatpush2.msra.mxu1 %v3436_v25 }
 0x5c2   : > { %5799 = vmatprep.subr.mxu1 %v3421_v26 }
 0x5c3   : > { %5800 = vmatpush2.msra.mxu1 %v3420_v48 }
 0x5c4   : > { %5801 = vmatprep.subr.mxu1 %v3405_v27 }
 0x5c5   : > { %5802 = vmatpush2.msra.mxu1 %v3404_v28 }
 0x5c6   : > { %5803 = vmatprep.subr.mxu1 %v3389_v29 }
 0x5c7   : > { %5804 = vmatpush2.msra.mxu1 %v3388_v56 }
 0x5c8   : > { %5805 = vmatprep.subr.mxu1 %v3373_v30 }
 0x5c9   : > { %5806 = vmatpush2.msra.mxu1 %v3372_v55 }
 0x5ca   : > { %5807 = vmatprep.subr.mxu1 %v3357_v21 }
 0x5cb   : > { %5808 = vmatpush2.msra.mxu1 %v3356_v32 }
 0x5cc   : > { %5809 = vmatprep.subr.mxu1 %v3341_v33 }
 0x5cd   : > { %5810 = vmatpush2.msra.mxu1 %v3340_v34  ;;  %v5391_v13 = vpop.f32.mrf.mxu1  ;;  %v5462_v58 = vpop.f32.mrf.mxu0 }
 0x5ce   : > { %5811 = vmatprep.subr.mxu1 %v3325_v35  ;;  %v5392_v63 = vadd.f32 %v5391_v13, %v5320_v38 }
 0x5cf   : > { %5812 = vmatpush2.msra.mxu1 %v3324_v36  ;;  %v5393_v41 = vpop.f32.mrf.mxu1  ;;  %v5464_v15 = vpop.f32.mrf.mxu0 }
 0x5d0   : > { %5813 = vmatprep.subr.mxu1 %v3309_v37  ;;  %v5394_v5 = vadd.f32 %v5393_v41, %v5322_v40  ;;  %v5463_v19 = vadd.f32 %v5462_v58, %v5392_v63 }
 0x5d1   : > { %5814 = vmatpush2.msra.mxu1 %v3308_v51 }
 0x5d2   : > { %5816 = vmatmul.mubr.f32.vlgmr.msra.gmra.mxu1 %v7457_v42  ;;  %v5465_v44 = vadd.f32 %v5464_v15, %v5394_v5 }
 0x60f   : > { %v5533_v43 = vpop.f32.mrf.mxu1  ;;  %v5604_v42 = vpop.f32.mrf.mxu0 }
 0x610   : > { %v5534_v7 = vadd.f32 %v5533_v43, %v5463_v19 }
 0x611   : > { %v5535_v45 = vpop.f32.mrf.mxu1  ;;  %v5606_v49 = vpop.f32.mrf.mxu0 }
 0x612   : > { %v5536_v46 = vadd.f32 %v5535_v45, %v5465_v44  ;;  %5850 = vst [vmem:[%s7859_s23 + $0x60] sm:$0xff] %v5534_v7 }
 0x614   : > { %5851 = vst [vmem:[%s7859_s23 + $0x68] sm:$0xff] %v5536_v46 }
 0x651   : > { %v5675_v47 = vpop.f32.mrf.mxu1  ;;  %v5746_v53 = vpop.f32.mrf.mxu0 }
 0x652   : > { %v5676_v52 = vadd.f32 %v5675_v47, %v5604_v42 }
 0x653   : > { %v5677_v50 = vpop.f32.mrf.mxu1  ;;  %v5748_v57 = vpop.f32.mrf.mxu0 }
 0x654   : > { %v5678_v54 = vadd.f32 %v5677_v50, %v5606_v49  ;;  %v5747_v31 = vadd.f32 %v5746_v53, %v5676_v52 }
 0x656   : > { %v5749_v60 = vadd.f32 %v5748_v57, %v5678_v54 }
 0x692   : > { %v5817_v59 = vpop.f32.mrf.mxu1 }
 0x693   : > { %v5818_v61 = vadd.f32 %v5817_v59, %v5747_v31 }
 0x694   : > { %v5819_v62 = vpop.f32.mrf.mxu1 }
 0x695   : > { %v5820_v0 = vadd.f32 %v5819_v62, %v5749_v60  ;;  %5852 = vst [vmem:[%s7859_s23 + $0x70] sm:$0xff] %v5818_v61 }
 0x697   : > { %5853 = vst [vmem:[%s7859_s23 + $0x78] sm:$0xff] %v5820_v0 }
 0x698   : > { %6252 = shalt.err (!%p6249_p4)
}
 0x699   : > { %s6253_s18 = scalar_lea.hbm %s5867_s10, 2048  ;;  %s6257_s7 = scalar_lea.hbm %s9302_s4, 4096 }
 0x69a   : > { %p6254_p11 = scmp.ne.s32.totalorder %s5867_s10, %s6253_s18  ;;  %p6258_p6 = scmp.lt.s32.totalorder %s5867_s10, %s9302_s4 }
 0x69b   : > { %p6259_p9 = scmp.lt.s32.totalorder %s6257_s7, %s6253_s18 }
 0x69c   : > { %p6255_p0 = pnand %p6254_p11, %p9324_p3 }
 0x69d   : > { %p6260_p7 = por %p6259_p9, %p6258_p6 }
 0x69e   : > { %p6256_p1 = pneg %p6255_p0 }
 0x6a0   : > { %p6261_p2 = pnand %p6260_p7, %p6256_p1 }
 0x6a2   : > { %6264 = shalt.err (!%p6261_p2)
}
 0x6a3   : > { %6046 = dma.vmem_to_hbm [thread:$0]  (%p9324_p3), %s5870_s14, 2048, %s5867_s10, %s5855_s1  }
 0x6a4 PF: > { %s5881_s24 = sand.u32 1, %s6307_s15   ;;  %p9325_p13 = scmp.ne.s32.totalorder %s9316_s30, 0 }
 0x6a5   : > { %p9326_p8 = scmp.ge.s32.totalorder %s6327_s20, 2  ;;  %s5882_s22 = scalar_lea.sflag [#allocation4], %s5881_s24 }
 0x6a7   : > { %p6063_p5 = pnand %p9326_p8, %p9325_p13 }
 0x6a9   : > { %p6064_p10 = pneg %p6063_p5 }
 0x6ab   : > { %6302 = dma.done.wait (%p6064_p10), %s5882_s22, 2048  }
 0x6ac   : > { %6304 = vsyncadd (%p6064_p10), %s5882_s22, 4294965248  ;;  %s24_s20 = sadd.s32 1, %s6327_s20   ;;  %s9327_s28 = sld [smem:[#allocation16_spill]] }
 0x6ad   : > { %p21_p12 = scmp.ge.s32.totalorder %s24_s20, 4   ;;  %s9328_s29 = sld [smem:[#allocation15_spill]] }
 0x6ae   : > { %s9329_s15 = smov %s6311_s16  ;;  %s9330_s16 = smov %s6315_s17 }
 0x6af   : > { %s9332_s18 = smov %s6323_s19  ;;  %23 = sbr.rel (!%p21_p12) target bundleno = 11 (0xb), region = 114 }
 0x6b2   : > { %s9331_s17 = smov %s9327_s28 }
 0x6b3   : > { %s9333_s19 = smov %s9328_s29 }
 0x6b4   :  { %5887 = vsyncpa [#allocation3], 1 }
 0x6b5   :  { %5889 = vsyncpa [#allocation3 + $0x1], 1 }
 0x6b6   :  { %5890 = vsyncpa [#allocation6], 1 }
 0x6b7   :  { %5892 = vsyncpa [#allocation6 + $0x1], 1 }
 0x6b8   :  { %5893 = vsyncpa [#allocation9], 1 }
 0x6b9   :  { %5895 = vsyncpa [#allocation9 + $0x1], 1 }
 0x6ba   :  { %5896 = vsyncpa [#allocation4], 1 }
 0x6bb   :  { %5898 = vsyncpa [#allocation4 + $0x1], 1 }

</bundles_post_ra>
